<compile_context>
chip_gen: v6e
topology: v6e:2x2x1
jax: 0.10.0
libtpu: 0.0.40
codegen_flags: <defaults>
</compile_context>

<pallas_src>
import functools
from types import SimpleNamespace

import jax
import jax.numpy as jnp
from jax.experimental import pallas as pl
from jax.experimental.pallas import tpu as pltpu


# ----------------------------------------------------------------------------
# Tiling / compiler-param helpers
# ----------------------------------------------------------------------------

def _vmem_limit_bytes():
    try:
        cap = getattr(pltpu.get_tpu_info(), "vmem_capacity_bytes", None)
        if cap:
            return min(cap // 2, 64 * 1024 * 1024)   # ~32 MiB on v7x, 64 MiB on v5e/v6e
    except Exception:
        pass
    return 32 * 1024 * 1024


_VMEM_LIMIT = _vmem_limit_bytes()
_ROW_TILES = (2048, 1024, 512, 256, 128, 64)


def _cparams(dims):
    return pltpu.CompilerParams(dimension_semantics=dims,
                                vmem_limit_bytes=_VMEM_LIMIT)


def _pick_tile(full, candidates, min_steps=1):
    """Largest candidate dividing `full` with >= min_steps grid steps (v7x megacore);
    falls back to the largest divisor, then to the full extent."""
    best = None
    for c in sorted({int(c) for c in candidates}, reverse=True):
        if c <= full and full % c == 0:
            if best is None:
                best = c
            if full // c >= min_steps:
                return c
    return best if best is not None else full


# ----------------------------------------------------------------------------
# Pallas kernels
# ----------------------------------------------------------------------------

def _minmax_reduce_kernel(a_ref, b_ref, mn_ref, mx_ref):
    """Joint min/max over one (n, c) volume of both tensors.

    grid = (NC, n_chunks); chunk axis is the reduction ("arbitrary") axis.  A per-lane
    running min/max vector lives in the resident (1, 1, Lw) output block; the cross-lane
    reduce + broadcast happens only on the last chunk.
    """
    j = pl.program_id(1)
    av = a_ref[...].astype(jnp.float32)
    bv = b_ref[...].astype(jnp.float32)
    cmn = jnp.minimum(jnp.min(av, axis=1, keepdims=True),
                      jnp.min(bv, axis=1, keepdims=True))
    cmx = jnp.maximum(jnp.max(av, axis=1, keepdims=True),
                      jnp.max(bv, axis=1, keepdims=True))

    @pl.when(j == 0)
    def _():
        mn_ref[...] = cmn
        mx_ref[...] = cmx

    @pl.when(j > 0)
    def _():
        mn_ref[...] = jnp.minimum(mn_ref[...], cmn)
        mx_ref[...] = jnp.maximum(mx_ref[...], cmx)

    @pl.when(j == pl.num_programs(1) - 1)
    def _():
        mn_ref[...] = jnp.full(mn_ref.shape, jnp.min(mn_ref[...]), jnp.float32)
        mx_ref[...] = jnp.full(mx_ref.shape, jnp.max(mx_ref[...]), jnp.float32)


def _normalize_apply_kernel(a_ref, b_ref, mn_ref, mx_ref, o0_ref, o1_ref):
    """PyTorch semantics: subtract min always, divide only where max-min > 0; bf16 out."""
    mn = mn_ref[...]
    rng = mx_ref[...] - mn
    inv = 1.0 / jnp.where(rng > 0.0, rng, 1.0)
    o0_ref[...] = ((a_ref[...].astype(jnp.float32) - mn) * inv).astype(o0_ref.dtype)
    o1_ref[...] = ((b_ref[...].astype(jnp.float32) - mn) * inv).astype(o1_ref.dtype)


def _linear_kernel(x_ref, w_ref, b_ref, o_ref, *, act):
    """o = act(x @ w + b); bf16 MXU inputs, f32 accumulation."""
    y = jnp.dot(x_ref[...], w_ref[...], preferred_element_type=jnp.float32)
    y = y + b_ref[...]
    if act == "tanh":
        y = jnp.tanh(y)
    elif act == "relu":
        y = jnp.maximum(y, 0.0)
    o_ref[...] = y.astype(o_ref.dtype)


def _feat_ctx_kernel(x_ref, w_ref, b_ref, f_ref, net_ref, inp_ref, *, fdim, hdim):
    """Fused feature + context net on image1:
    y = x1 @ [Wf | Wc] + [bf | bc]; fmap1 = y[:, :fdim]; net = tanh; inp = relu."""
    y = jnp.dot(x_ref[...], w_ref[...], preferred_element_type=jnp.float32)
    y = y + b_ref[...]
    f_ref[...] = y[:, :fdim].astype(f_ref.dtype)
    net_ref[...] = jnp.tanh(y[:, fdim:fdim + hdim]).astype(net_ref.dtype)
    inp_ref[...] = jnp.maximum(y[:, fdim + hdim:], 0.0).astype(inp_ref.dtype)


def _corrctx_kernel(w_ref, f2_ref, o_ref):
    """Tt[n] += (scale*Wh_corr)ᵀ_block @ fmap2[n]_block; reduce over P tiles (NN matmul)."""
    @pl.when(pl.program_id(1) == 0)
    def _():
        o_ref[...] = jnp.zeros_like(o_ref)

    o_ref[0] = o_ref[0] + jnp.dot(w_ref[...], f2_ref[0],
                                  preferred_element_type=jnp.float32)


def _static_kernel(inp_ref, f1_ref, t_ref, wi_ref, b_ref, o_ref):
    """Iteration-invariant term: static = inp @ Wh_inp + fmap1 @ T + bh
    (T = scale * fmap2ᵀ @ Wh_corr, precomputed; both matmuls plain NN bf16 on the MXU)."""
    y = jnp.dot(inp_ref[0], wi_ref[...], preferred_element_type=jnp.float32)
    y = y + jnp.dot(f1_ref[0], t_ref[0], preferred_element_type=jnp.float32)
    o_ref[0] = y + b_ref[...]


def _update_kernel(net_ref, flow_ref, static_ref, wn_ref, wf_ref,
                   whead_ref, bhead_ref, net_out_ref, head_ref):
    """GRU-like update step (stand-in for BasicUpdateBlock).

    h = tanh(net @ Wh_net + flow @ Wh_flow + static)   (static = inp/corr terms + bias)
    head = h @ [0.25*Wm | Wd | pad] + [0.25*bm | bd | 0]  (lane-dense, 640 wide)
    net (bf16) is both read and written in bf16 to halve the per-iteration HBM traffic.
    """
    h = jnp.dot(net_ref[...], wn_ref[...], preferred_element_type=jnp.float32)
    f = flow_ref[...]                                         # (tm, 2)
    wf = wf_ref[...]                                          # (2, hdim)
    h = h + f[:, 0:1] * wf[0:1, :] + f[:, 1:2] * wf[1:2, :]   # K=2 term on the VPU
    h = jnp.tanh(h + static_ref[...])
    h_b = h.astype(jnp.bfloat16)
    net_out_ref[...] = h_b
    head_ref[...] = (jnp.dot(h_b, whead_ref[...], preferred_element_type=jnp.float32)
                     + bhead_ref[...])


def _upsample_kernel(h_ref, u_ref, o_ref):
    """Convex upsampling in native row layout.

    h_ref: (tm, HEAD_W) head rows; lanes [64k, 64k+64), k<9, hold the mask logits.
    u_ref: (tm, 18) = 9 unfolded 8*flow neighbours for channels (x, y).
    o_ref: (tm, 128) = [64 upsampled x values | 64 upsampled y values] (lane-dense).
    """
    h = h_ref[...]
    u = u_ref[...]
    groups = [h[:, 64 * k:64 * (k + 1)] for k in range(9)]
    mmax = groups[0]
    for k in range(1, 9):
        mmax = jnp.maximum(mmax, groups[k])
    es = [jnp.exp(g - mmax) for g in groups]
    den = es[0]
    for k in range(1, 9):
        den = den + es[k]
    inv = 1.0 / den
    acc0 = (es[0] * inv) * u[:, 0:1]
    acc1 = (es[0] * inv) * u[:, 9:10]
    for k in range(1, 9):
        wk = es[k] * inv
        acc0 = acc0 + wk * u[:, k:k + 1]
        acc1 = acc1 + wk * u[:, 9 + k:10 + k]
    o_ref[...] = jnp.concatenate([acc0, acc1], axis=-1)


# ----------------------------------------------------------------------------
# Pallas-backed module pieces
# ----------------------------------------------------------------------------

def normalization(t0, t1):
    """Port of ModuleVolRAFT.normalization: joint min/max per (N, C), two tiled passes."""
    N, C, H, W, D = t0.shape
    NC = N * C
    S = H * W * D
    if S % 128 == 0:
        R, Lw = S // 128, 128
    else:
        # TODO(synk): odd volumes fall back to a single lane row per (n, c).
        R, Lw = 1, S
    a = t0.reshape(NC, R, Lw)
    b = t1.reshape(NC, R, Lw)
    rc = _pick_tile(R, (2048, 1024, 512, 256, 128, 64, 32, 16, 8))
    nchunk = R // rc

    chunk_spec = pl.BlockSpec((1, rc, Lw), lambda i, j: (i, j, 0))
    stat_spec = pl.BlockSpec((1, 1, Lw), lambda i, j: (i, 0, 0))

    mn, mx = pl.pallas_call(
        _minmax_reduce_kernel,
        out_shape=(jax.ShapeDtypeStruct((NC, 1, Lw), jnp.float32),
                   jax.ShapeDtypeStruct((NC, 1, Lw), jnp.float32)),
        grid=(NC, nchunk),
        in_specs=[chunk_spec, chunk_spec],
        out_specs=(stat_spec, stat_spec),
        compiler_params=_cparams(("parallel", "arbitrary")),
    )(a, b)

    o0, o1 = pl.pallas_call(
        _normalize_apply_kernel,
        out_shape=(jax.ShapeDtypeStruct((NC, R, Lw), jnp.bfloat16),
                   jax.ShapeDtypeStruct((NC, R, Lw), jnp.bfloat16)),
        grid=(NC, nchunk),
        in_specs=[chunk_spec, chunk_spec, stat_spec, stat_spec],
        out_specs=(chunk_spec, chunk_spec),
        compiler_params=_cparams(("parallel", "parallel")),
    )(a, b, mn, mx)
    return o0.reshape(t0.shape), o1.reshape(t1.shape)


def linear(x, w, b, act="none", out_dtype=jnp.float32):
    """Row-tiled x @ w + b with optional activation; bf16 MXU inputs."""
    M, K = x.shape
    Cout = w.shape[1]
    tm = _pick_tile(M, _ROW_TILES, min_steps=2)
    return pl.pallas_call(
        functools.partial(_linear_kernel, act=act),
        out_shape=jax.ShapeDtypeStruct((M, Cout), out_dtype),
        grid=(M // tm,),
        in_specs=[pl.BlockSpec((tm, K), lambda i: (i, 0)),
                  pl.BlockSpec((K, Cout), lambda i: (0, 0)),
                  pl.BlockSpec((1, Cout), lambda i: (0, 0))],
        out_specs=pl.BlockSpec((tm, Cout), lambda i: (i, 0)),
        compiler_params=_cparams(("parallel",)),
    )(x.astype(jnp.bfloat16), w.astype(jnp.bfloat16), b.astype(jnp.float32))


def feat_ctx(x1, wfc_b, bfc, fdim, hdim):
    """Fused x1 @ [Wf | Wc] feature + context net; returns (fmap1, net, inp) in bf16."""
    M, K = x1.shape
    tot = wfc_b.shape[1]
    cdim = tot - fdim - hdim
    tm = _pick_tile(M, _ROW_TILES, min_steps=2)
    return pl.pallas_call(
        functools.partial(_feat_ctx_kernel, fdim=fdim, hdim=hdim),
        out_shape=(jax.ShapeDtypeStruct((M, fdim), jnp.bfloat16),
                   jax.ShapeDtypeStruct((M, hdim), jnp.bfloat16),
                   jax.ShapeDtypeStruct((M, cdim), jnp.bfloat16)),
        grid=(M // tm,),
        in_specs=[pl.BlockSpec((tm, K), lambda i: (i, 0)),
                  pl.BlockSpec((K, tot), lambda i: (0, 0)),
                  pl.BlockSpec((1, tot), lambda i: (0, 0))],
        out_specs=(pl.BlockSpec((tm, fdim), lambda i: (i, 0)),
                   pl.BlockSpec((tm, hdim), lambda i: (i, 0)),
                   pl.BlockSpec((tm, cdim), lambda i: (i, 0))),
        compiler_params=_cparams(("parallel",)),
    )(x1, wfc_b, bfc)


def corr_context(whc_t_b, fmap2_3):
    """Tt[n] = (scale*Wh_corr)ᵀ @ fmap2[n]  -> (N, hdim, C); reduction over P tiles."""
    hdim, P = whc_t_b.shape
    N, _, Cf = fmap2_3.shape
    tp = _pick_tile(P, (1024, 512, 256, 128))
    return pl.pallas_call(
        _corrctx_kernel,
        out_shape=jax.ShapeDtypeStruct((N, hdim, Cf), jnp.float32),
        grid=(N, P // tp),
        in_specs=[pl.BlockSpec((hdim, tp), lambda n, j: (0, j)),
                  pl.BlockSpec((1, tp, Cf), lambda n, j: (n, j, 0))],
        out_specs=pl.BlockSpec((1, hdim, Cf), lambda n, j: (n, 0, 0)),
        compiler_params=_cparams(("parallel", "arbitrary")),
    )(whc_t_b, fmap2_3)


def fused_static(inp3, fmap1_3, t_b, wi_b, bh):
    """static[n, p, :] = inp @ Wh_inp + fmap1 @ T[n] + bh  (iteration-invariant)."""
    N, P, cdim = inp3.shape
    Cf = fmap1_3.shape[2]
    hdim = wi_b.shape[1]
    tpr = _pick_tile(P, (1024, 512, 256, 128, 64))
    return pl.pallas_call(
        _static_kernel,
        out_shape=jax.ShapeDtypeStruct((N, P, hdim), jnp.float32),
        grid=(N, P // tpr),
        in_specs=[pl.BlockSpec((1, tpr, cdim), lambda n, j: (n, j, 0)),
                  pl.BlockSpec((1, tpr, Cf), lambda n, j: (n, j, 0)),
                  pl.BlockSpec((1, Cf, hdim), lambda n, j: (n, 0, 0)),
                  pl.BlockSpec((cdim, hdim), lambda n, j: (0, 0)),
                  pl.BlockSpec((1, hdim), lambda n, j: (0, 0))],
        out_specs=pl.BlockSpec((1, tpr, hdim), lambda n, j: (n, j, 0)),
        compiler_params=_cparams(("parallel", "parallel")),
    )(inp3, fmap1_3, t_b, wi_b, bh.astype(jnp.float32))


def update_step(net, flow_feat, static, wn_b, wf, whead_b, bhead):
    """Row-tiled update-block step; outputs new bf16 hidden state and fused f32 head."""
    M, hdim = net.shape
    HW = whead_b.shape[1]
    tm = _pick_tile(M, _ROW_TILES, min_steps=2)
    return pl.pallas_call(
        _update_kernel,
        out_shape=(jax.ShapeDtypeStruct((M, hdim), jnp.bfloat16),
                   jax.ShapeDtypeStruct((M, HW), jnp.float32)),
        grid=(M // tm,),
        in_specs=[pl.BlockSpec((tm, hdim), lambda i: (i, 0)),
                  pl.BlockSpec((tm, 2), lambda i: (i, 0)),
                  pl.BlockSpec((tm, hdim), lambda i: (i, 0)),
                  pl.BlockSpec((hdim, hdim), lambda i: (0, 0)),
                  pl.BlockSpec((2, hdim), lambda i: (0, 0)),
                  pl.BlockSpec((hdim, HW), lambda i: (0, 0)),
                  pl.BlockSpec((1, HW), lambda i: (0, 0))],
        out_specs=(pl.BlockSpec((tm, hdim), lambda i: (i, 0)),
                   pl.BlockSpec((tm, HW), lambda i: (i, 0))),
        compiler_params=_cparams(("parallel",)),
    )(net, flow_feat, static, wn_b, wf, whead_b, bhead)


def upsample_flow(head, flow_cl):
    """Port of ModuleVolRAFT.upsample_flow (convex combination upsampling).

    head: (M, 640) fused-head rows (mask logits in lanes 0..575);
    flow_cl: (N, ht, WD, 2) channel-last low-res flow  ->  (N, 2, 8*ht, 8*WD).
    """
    N, ht, WD, _ = flow_cl.shape
    M = N * ht * WD
    HW = head.shape[1]
    # F.unfold(8*flow, [3,3], padding=1): 9 shifted copies (cheap XLA data movement).
    fp = jnp.pad(8.0 * flow_cl, ((0, 0), (1, 1), (1, 1), (0, 0)))
    shifts = [fp[:, ki:ki + ht, kj:kj + WD, :] for ki in range(3) for kj in range(3)]
    uf = jnp.stack(shifts, axis=-1).reshape(M, 18)        # rows (n,h,w), cols c*9+k
    tm = _pick_tile(M, _ROW_TILES, min_steps=2)

    out = pl.pallas_call(
        _upsample_kernel,
        out_shape=jax.ShapeDtypeStruct((M, 128), jnp.float32),
        grid=(M // tm,),
        in_specs=[pl.BlockSpec((tm, HW), lambda i: (i, 0)),
                  pl.BlockSpec((tm, 18), lambda i: (i, 0))],
        out_specs=pl.BlockSpec((tm, 128), lambda i: (i, 0)),
        compiler_params=_cparams(("parallel",)),
    )(head, uf)

    out = out.reshape(N, ht, WD, 2, 8, 8).transpose(0, 3, 1, 4, 2, 5)  # pixel shuffle
    return out.reshape(N, 2, 8 * ht, 8 * WD)


# ----------------------------------------------------------------------------
# Glue: patchify "encoder" front-end, coords grid, parameter init
# ----------------------------------------------------------------------------

def patchify(x):
    """Space-to-depth stride-8 front-end: (N,C,H,W,D) -> (N*P, C*8*8*8)."""
    N, C, H, W, D = x.shape
    ht, wd, dp = H // 8, W // 8, D // 8
    x = x.reshape(N, C, ht, 8, wd, 8, dp, 8)
    x = x.transpose(0, 2, 4, 6, 1, 3, 5, 7)      # (N, ht, wd, dp, C, 8, 8, 8)
    return x.reshape(N * ht * wd * dp, C * 512)


def coords_grid(N, ht, wd):
    # TODO(synk): the true volumetric coords_grid (3-channel) lives in an un-provided
    # helper; a 2-channel (x, y) grid over (ht, wd*dp), channel-last, is used instead.
    ys, xs = jnp.meshgrid(jnp.arange(ht, dtype=jnp.float32),
                          jnp.arange(wd, dtype=jnp.float32), indexing="ij")
    coords = jnp.stack([xs, ys], axis=-1)                    # (ht, wd, 2)
    return jnp.broadcast_to(coords[None], (N, ht, wd, 2))


def initialize_flow(img):
    N, C, H, W, D = img.shape
    ht, wd, dp = H // 8, W // 8, D // 8
    c0 = coords_grid(N, ht, wd * dp)
    return c0, c0


def init_params(key, num_channels, hdim, cdim, fnet_dim, corr_feat_dim):
    patch_dim = num_channels * 512
    in_dim = hdim + cdim + corr_feat_dim + 2
    ks = jax.random.split(key, 10)
    s = 0.05

    def w(k, shape):
        return (s * jax.random.normal(k, shape)).astype(jnp.float32)

    return {
        "Wf": w(ks[0], (patch_dim, fnet_dim)), "bf": w(ks[1], (1, fnet_dim)),
        "Wc": w(ks[2], (patch_dim, hdim + cdim)), "bc": w(ks[3], (1, hdim + cdim)),
        "Wh": w(ks[4], (in_dim, hdim)), "bh": w(ks[5], (1, hdim)),
        "Wd": w(ks[6], (hdim, 2)), "bd": w(ks[7], (1, 2)),
        "Wm": w(ks[8], (hdim, 9 * 8 * 8)), "bm": w(ks[9], (1, 9 * 8 * 8)),
    }


# ----------------------------------------------------------------------------
# Forward pass (mirrors ModuleVolRAFT.forward)
# ----------------------------------------------------------------------------

def volraft_forward(params, args, image1, image2, iters=12, flow_init=None,
                    upsample=True, test_mode=False):
    hdim, cdim = args.hidden_dim, args.context_dim
    N, C, H, W, D = image1.shape
    assert H % 8 == 0 and W % 8 == 0 and D % 8 == 0   # TODO(synk): ceil-pad like coords_grid
    ht, wd, dp = H // 8, W // 8, D // 8
    WD = wd * dp
    P = ht * WD
    M = N * P

    if args.should_normalize:
        image1, image2 = normalization(image1, image2)          # bf16 outputs

    # ---- feature + context networks (stride-8 patchify + fused Pallas matmuls) ----
    # TODO(synk): SmallEncoder/BasicEncoder (residual conv stacks) not provided.
    x1 = patchify(image1).astype(jnp.bfloat16)
    x2 = patchify(image2).astype(jnp.bfloat16)

    fdim = params["Wf"].shape[1]
    wfc_b = jnp.concatenate([params["Wf"], params["Wc"]], axis=1).astype(jnp.bfloat16)
    bfc = jnp.concatenate([params["bf"], params["bc"]], axis=1).astype(jnp.float32)
    fmap1, net, inp = feat_ctx(x1, wfc_b, bfc, fdim, hdim)       # all bf16
    fmap2 = linear(x2, params["Wf"], params["bf"], out_dtype=jnp.bfloat16)

    fmap1_3 = fmap1.reshape(N, P, fdim)
    fmap2_3 = fmap2.reshape(N, P, fdim)                          # native layout, no transpose
    inp3 = inp.reshape(N, P, cdim)

    # ---- update-block weight packing (hoisted out of the iteration loop) ----
    # TODO(synk): real SepConvGRU / BasicUpdateBlock not provided; GRU-like stand-in.
    Wh = params["Wh"]
    wn_b = Wh[:hdim].astype(jnp.bfloat16)                        # net rows
    wi_b = Wh[hdim:hdim + cdim].astype(jnp.bfloat16)             # inp rows
    whc = Wh[hdim + cdim:hdim + cdim + P]                        # corr rows (P, hdim)
    wf = Wh[hdim + cdim + P:]                                    # flow rows (2, hdim)
    scale = 1.0 / float(fdim) ** 0.5
    whc_t_b = (scale * whc).T.astype(jnp.bfloat16)               # scale folded in f32

    mask_dim = params["Wm"].shape[1]                             # 9*8*8 = 576
    pad = (-(mask_dim + 2)) % 128                                # pad head to 640 lanes
    whead_b = jnp.concatenate(
        [0.25 * params["Wm"], params["Wd"], jnp.zeros((hdim, pad), jnp.float32)],
        axis=1).astype(jnp.bfloat16)                             # mask first -> lane 0
    bhead = jnp.concatenate(
        [0.25 * params["bm"], params["bd"], jnp.zeros((1, pad), jnp.float32)], axis=1)

    # ---- correlation term, reassociated: corr @ Wh_corr == fmap1 @ (fmap2ᵀ @ Wh_corr) ----
    # TODO(synk): CorrBlock pyramid + bilinear lookup not provided; this reassociation is
    # only valid while the stand-in corr is the full all-pairs matmul.
    tt = corr_context(whc_t_b, fmap2_3)                          # (N, hdim, C) f32
    t_b = tt.transpose(0, 2, 1).astype(jnp.bfloat16)             # tiny, P-independent
    static = fused_static(inp3, fmap1_3, t_b, wi_b, params["bh"]).reshape(M, hdim)

    # ---- flow initialisation (channel-last coords: no per-iter transposes) ----
    coords0, coords1 = initialize_flow(image1)                   # (N, ht, WD, 2)
    if flow_init is not None:
        coords1 = coords1 + flow_init

    flow_predictions = []
    head = None
    for _ in range(iters):
        coords1 = jax.lax.stop_gradient(coords1)
        flow_feat = (coords1 - coords0).reshape(M, 2)

        net, head = update_step(net, flow_feat, static, wn_b, wf, whead_b, bhead)
        delta_flow = head[:, mask_dim:mask_dim + 2].reshape(N, ht, WD, 2)
        coords1 = coords1 + delta_flow

        if not test_mode:     # convex upsampling per iteration only when predictions needed
            flow_predictions.append(upsample_flow(head, coords1 - coords0))

    if test_mode:
        flow_up = upsample_flow(head, coords1 - coords0)         # hoisted: run once
        return (coords1 - coords0).transpose(0, 3, 1, 2), flow_up
    return flow_predictions


# ----------------------------------------------------------------------------
# Main
# ----------------------------------------------------------------------------

if __name__ == "__main__":
    # "BasicEncoder"-style config: hdim = cdim = 128, corr_levels=4, radius=4
    args = SimpleNamespace(small=False, num_channels=1, should_normalize=True,
                           mixed_precision=False, corr_levels=4, corr_radius=4,
                           dropout=0, alternate_corr=False, flow_shape=None,
                           hidden_dim=128, context_dim=128)

    N, C, H, W, D = 2, 1, 32, 32, 32
    P = (H // 8) * (W // 8) * (D // 8)           # 64 voxels at 1/8 resolution

    key = jax.random.PRNGKey(0)
    k_img1, k_img2, k_par = jax.random.split(key, 3)
    image1 = 255.0 * jax.random.uniform(k_img1, (N, C, H, W, D), jnp.float32)
    image2 = 255.0 * jax.random.uniform(k_img2, (N, C, H, W, D), jnp.float32)

    params = init_params(k_par, num_channels=C, hdim=args.hidden_dim,
                         cdim=args.context_dim, fnet_dim=256, corr_feat_dim=P)

    fwd = jax.jit(functools.partial(volraft_forward, params, args, iters=4))
    flow_preds = fwd(image1, image2)
    flow_up = jax.block_until_ready(flow_preds[-1])

    ht, wdp = H // 8, (W // 8) * (D // 8)
    assert flow_up.shape == (N, 2, 8 * ht, 8 * wdp), flow_up.shape
    assert jnp.all(jnp.isfinite(flow_up))
    print("KERNEL_OK")
</pallas_src>

<mosaic_0001>
module attributes {stable_mosaic.version = 11 : i64} {
  func.func @_normalize_apply_kernel(%arg0: i32, %arg1: i32, %arg2: memref<1x256x128xf32, #tpu.memory_space<vmem>>, %arg3: memref<1x256x128xf32, #tpu.memory_space<vmem>>, %arg4: memref<1x1x128xf32, #tpu.memory_space<vmem>>, %arg5: memref<1x1x128xf32, #tpu.memory_space<vmem>>, %arg6: memref<1x256x128xbf16, #tpu.memory_space<vmem>>, %arg7: memref<1x256x128xbf16, #tpu.memory_space<vmem>>) attributes {dimension_semantics = [#tpu.dimension_semantics<parallel>, #tpu.dimension_semantics<parallel>], iteration_bounds = array<i64: 2, 1>, scalar_prefetch = 0 : i64, scratch_operands = 0 : i64, tpu.core_type = #tpu.core_type<tc>, window_params = [{transform_indices = @transform_0, window_bounds = array<i64: 1, 256, 128>}, {transform_indices = @transform_1, window_bounds = array<i64: 1, 256, 128>}, {transform_indices = @transform_2, window_bounds = array<i64: 1, 1, 128>}, {transform_indices = @transform_3, window_bounds = array<i64: 1, 1, 128>}, {transform_indices = @transform_4, window_bounds = array<i64: 1, 256, 128>}, {transform_indices = @transform_5, window_bounds = array<i64: 1, 256, 128>}]} {
    %c0 = arith.constant 0 : index
    %c0_0 = arith.constant 0 : index
    %c0_1 = arith.constant 0 : index
    %0 = vector.load %arg4[%c0, %c0_0, %c0_1] : memref<1x1x128xf32, #tpu.memory_space<vmem>>, vector<1x1x128xf32>
    %c0_2 = arith.constant 0 : index
    %c0_3 = arith.constant 0 : index
    %c0_4 = arith.constant 0 : index
    %1 = vector.load %arg5[%c0_2, %c0_3, %c0_4] : memref<1x1x128xf32, #tpu.memory_space<vmem>>, vector<1x1x128xf32>
    %2 = arith.subf %1, %0 : vector<1x1x128xf32>
    %cst = arith.constant 0.000000e+00 : f32
    %3 = vector.broadcast %cst : f32 to vector<1x1x128xf32>
    %4 = arith.cmpf ogt, %2, %3 : vector<1x1x128xf32>
    %cst_5 = arith.constant 1.000000e+00 : f32
    %5 = vector.broadcast %cst_5 : f32 to vector<1x1x128xf32>
    %6 = arith.select %4, %2, %5 : vector<1x1x128xi1>, vector<1x1x128xf32>
    %cst_6 = arith.constant 1.000000e+00 : f32
    %7 = vector.broadcast %cst_6 : f32 to vector<1x1x128xf32>
    %8 = arith.divf %7, %6 : vector<1x1x128xf32>
    %c0_7 = arith.constant 0 : index
    %c0_8 = arith.constant 0 : index
    %c0_9 = arith.constant 0 : index
    %9 = vector.load %arg2[%c0_7, %c0_8, %c0_9] : memref<1x256x128xf32, #tpu.memory_space<vmem>>, vector<1x256x128xf32>
    %10 = vector.broadcast %0 : vector<1x1x128xf32> to vector<1x256x128xf32>
    %11 = arith.subf %9, %10 : vector<1x256x128xf32>
    %12 = vector.broadcast %8 : vector<1x1x128xf32> to vector<1x256x128xf32>
    %13 = arith.mulf %11, %12 : vector<1x256x128xf32>
    %14 = arith.truncf %13 : vector<1x256x128xf32> to vector<1x256x128xbf16>
    %c0_10 = arith.constant 0 : index
    %c0_11 = arith.constant 0 : index
    %c0_12 = arith.constant 0 : index
    %15 = vector.load %arg6[%c0_10, %c0_11, %c0_12] : memref<1x256x128xbf16, #tpu.memory_space<vmem>>, vector<1x256x128xbf16>
    tpu.vector_store %arg6[%c0_10, %c0_11, %c0_12], %14 {strides = array<i32>} : memref<1x256x128xbf16, #tpu.memory_space<vmem>>, vector<1x256x128xbf16>,
    %c0_13 = arith.constant 0 : index
    %c0_14 = arith.constant 0 : index
    %c0_15 = arith.constant 0 : index
    %16 = vector.load %arg3[%c0_13, %c0_14, %c0_15] : memref<1x256x128xf32, #tpu.memory_space<vmem>>, vector<1x256x128xf32>
    %17 = vector.broadcast %0 : vector<1x1x128xf32> to vector<1x256x128xf32>
    %18 = arith.subf %16, %17 : vector<1x256x128xf32>
    %19 = vector.broadcast %8 : vector<1x1x128xf32> to vector<1x256x128xf32>
    %20 = arith.mulf %18, %19 : vector<1x256x128xf32>
    %21 = arith.truncf %20 : vector<1x256x128xf32> to vector<1x256x128xbf16>
    %c0_16 = arith.constant 0 : index
    %c0_17 = arith.constant 0 : index
    %c0_18 = arith.constant 0 : index
    %22 = vector.load %arg7[%c0_16, %c0_17, %c0_18] : memref<1x256x128xbf16, #tpu.memory_space<vmem>>, vector<1x256x128xbf16>
    tpu.vector_store %arg7[%c0_16, %c0_17, %c0_18], %21 {strides = array<i32>} : memref<1x256x128xbf16, #tpu.memory_space<vmem>>, vector<1x256x128xbf16>,
    return
  }
  func.func @transform_0(%arg0: i32, %arg1: i32) -> (i32, i32, i32) {
    %c0_i32 = arith.constant 0 : i32
    %c0_i32_0 = arith.constant 0 : i32
    return %arg0, %arg1, %c0_i32 : i32, i32, i32
  }
  func.func @transform_1(%arg0: i32, %arg1: i32) -> (i32, i32, i32) {
    %c0_i32 = arith.constant 0 : i32
    %c0_i32_0 = arith.constant 0 : i32
    return %arg0, %arg1, %c0_i32 : i32, i32, i32
  }
  func.func @transform_2(%arg0: i32, %arg1: i32) -> (i32, i32, i32) {
    %c0_i32 = arith.constant 0 : i32
    %c0_i32_0 = arith.constant 0 : i32
    %c0_i32_1 = arith.constant 0 : i32
    return %arg0, %c0_i32, %c0_i32_0 : i32, i32, i32
  }
  func.func @transform_3(%arg0: i32, %arg1: i32) -> (i32, i32, i32) {
    %c0_i32 = arith.constant 0 : i32
    %c0_i32_0 = arith.constant 0 : i32
    %c0_i32_1 = arith.constant 0 : i32
    return %arg0, %c0_i32, %c0_i32_0 : i32, i32, i32
  }
  func.func @transform_4(%arg0: i32, %arg1: i32) -> (i32, i32, i32) {
    %c0_i32 = arith.constant 0 : i32
    %c0_i32_0 = arith.constant 0 : i32
    return %arg0, %arg1, %c0_i32 : i32, i32, i32
  }
  func.func @transform_5(%arg0: i32, %arg1: i32) -> (i32, i32, i32) {
    %c0_i32 = arith.constant 0 : i32
    %c0_i32_0 = arith.constant 0 : i32
    return %arg0, %arg1, %c0_i32 : i32, i32, i32
  }
}

module attributes {stable_mosaic.version = 11 : i64} {
  func.func @_minmax_reduce_kernel(%arg0: i32, %arg1: i32, %arg2: memref<1x256x128xf32, #tpu.memory_space<vmem>>, %arg3: memref<1x256x128xf32, #tpu.memory_space<vmem>>, %arg4: memref<1x1x128xf32, #tpu.memory_space<vmem>>, %arg5: memref<1x1x128xf32, #tpu.memory_space<vmem>>) attributes {dimension_semantics = [#tpu.dimension_semantics<parallel>, #tpu.dimension_semantics<arbitrary>], iteration_bounds = array<i64: 2, 1>, scalar_prefetch = 0 : i64, scratch_operands = 0 : i64, tpu.core_type = #tpu.core_type<tc>, window_params = [{transform_indices = @transform_0, window_bounds = array<i64: 1, 256, 128>}, {transform_indices = @transform_1, window_bounds = array<i64: 1, 256, 128>}, {transform_indices = @transform_2, window_bounds = array<i64: 1, 1, 128>}, {transform_indices = @transform_3, window_bounds = array<i64: 1, 1, 128>}]} {
    %c0 = arith.constant 0 : index
    %c0_0 = arith.constant 0 : index
    %c0_1 = arith.constant 0 : index
    %0 = vector.load %arg2[%c0, %c0_0, %c0_1] : memref<1x256x128xf32, #tpu.memory_space<vmem>>, vector<1x256x128xf32>
    %c0_2 = arith.constant 0 : index
    %c0_3 = arith.constant 0 : index
    %c0_4 = arith.constant 0 : index
    %1 = vector.load %arg3[%c0_2, %c0_3, %c0_4] : memref<1x256x128xf32, #tpu.memory_space<vmem>>, vector<1x256x128xf32>
    %cst = arith.constant dense<0x7F800000> : vector<1x128xf32>
    %2 = vector.multi_reduction <minimumf>, %0, %cst [1] : vector<1x256x128xf32> to vector<1x128xf32>
    %3 = vector.shape_cast %2 : vector<1x128xf32> to vector<1x1x128xf32>
    %cst_5 = arith.constant dense<0x7F800000> : vector<1x128xf32>
    %4 = vector.multi_reduction <minimumf>, %1, %cst_5 [1] : vector<1x256x128xf32> to vector<1x128xf32>
    %5 = vector.shape_cast %4 : vector<1x128xf32> to vector<1x1x128xf32>
    %6 = arith.minimumf %3, %5 : vector<1x1x128xf32>
    %cst_6 = arith.constant dense<0xFF800000> : vector<1x128xf32>
    %7 = vector.multi_reduction <maximumf>, %0, %cst_6 [1] : vector<1x256x128xf32> to vector<1x128xf32>
    %8 = vector.shape_cast %7 : vector<1x128xf32> to vector<1x1x128xf32>
    %cst_7 = arith.constant dense<0xFF800000> : vector<1x128xf32>
    %9 = vector.multi_reduction <maximumf>, %1, %cst_7 [1] : vector<1x256x128xf32> to vector<1x128xf32>
    %10 = vector.shape_cast %9 : vector<1x128xf32> to vector<1x1x128xf32>
    %11 = arith.maximumf %8, %10 : vector<1x1x128xf32>
    %c0_i32 = arith.constant 0 : i32
    %12 = arith.cmpi eq, %arg1, %c0_i32 : i32
    %13 = arith.extui %12 : i1 to i32
    %c0_i32_8 = arith.constant 0 : i32
    %14 = arith.cmpi ne, %13, %c0_i32_8 : i32
    scf.if %14 {
      %c0_13 = arith.constant 0 : index
      %c0_14 = arith.constant 0 : index
      %c0_15 = arith.constant 0 : index
      %21 = vector.load %arg4[%c0_13, %c0_14, %c0_15] : memref<1x1x128xf32, #tpu.memory_space<vmem>>, vector<1x1x128xf32>
      tpu.vector_store %arg4[%c0_13, %c0_14, %c0_15], %6 {strides = array<i32>} : memref<1x1x128xf32, #tpu.memory_space<vmem>>, vector<1x1x128xf32>,
      %c0_16 = arith.constant 0 : index
      %c0_17 = arith.constant 0 : index
      %c0_18 = arith.constant 0 : index
      %22 = vector.load %arg5[%c0_16, %c0_17, %c0_18] : memref<1x1x128xf32, #tpu.memory_space<vmem>>, vector<1x1x128xf32>
      tpu.vector_store %arg5[%c0_16, %c0_17, %c0_18], %11 {strides = array<i32>} : memref<1x1x128xf32, #tpu.memory_space<vmem>>, vector<1x1x128xf32>,
    } else {
    }
    %c0_i32_9 = arith.constant 0 : i32
    %15 = arith.cmpi sgt, %arg1, %c0_i32_9 : i32
    %16 = arith.extui %15 : i1 to i32
    %c0_i32_10 = arith.constant 0 : i32
    %17 = arith.cmpi ne, %16, %c0_i32_10 : i32
    scf.if %17 {
      %c0_13 = arith.constant 0 : index
      %c0_14 = arith.constant 0 : index
      %c0_15 = arith.constant 0 : index
      %21 = vector.load %arg4[%c0_13, %c0_14, %c0_15] : memref<1x1x128xf32, #tpu.memory_space<vmem>>, vector<1x1x128xf32>
      %22 = arith.minimumf %21, %6 : vector<1x1x128xf32>
      %c0_16 = arith.constant 0 : index
      %c0_17 = arith.constant 0 : index
      %c0_18 = arith.constant 0 : index
      %23 = vector.load %arg4[%c0_16, %c0_17, %c0_18] : memref<1x1x128xf32, #tpu.memory_space<vmem>>, vector<1x1x128xf32>
      tpu.vector_store %arg4[%c0_16, %c0_17, %c0_18], %22 {strides = array<i32>} : memref<1x1x128xf32, #tpu.memory_space<vmem>>, vector<1x1x128xf32>,
      %c0_19 = arith.constant 0 : index
      %c0_20 = arith.constant 0 : index
      %c0_21 = arith.constant 0 : index
      %24 = vector.load %arg5[%c0_19, %c0_20, %c0_21] : memref<1x1x128xf32, #tpu.memory_space<vmem>>, vector<1x1x128xf32>
      %25 = arith.maximumf %24, %11 : vector<1x1x128xf32>
      %c0_22 = arith.constant 0 : index
      %c0_23 = arith.constant 0 : index
      %c0_24 = arith.constant 0 : index
      %26 = vector.load %arg5[%c0_22, %c0_23, %c0_24] : memref<1x1x128xf32, #tpu.memory_space<vmem>>, vector<1x1x128xf32>
      tpu.vector_store %arg5[%c0_22, %c0_23, %c0_24], %25 {strides = array<i32>} : memref<1x1x128xf32, #tpu.memory_space<vmem>>, vector<1x1x128xf32>,
    } else {
    }
    %c0_i32_11 = arith.constant 0 : i32
    %18 = arith.cmpi eq, %arg1, %c0_i32_11 : i32
    %19 = arith.extui %18 : i1 to i32
    %c0_i32_12 = arith.constant 0 : i32
    %20 = arith.cmpi ne, %19, %c0_i32_12 : i32
    scf.if %20 {
      %c0_13 = arith.constant 0 : index
      %c0_14 = arith.constant 0 : index
      %c0_15 = arith.constant 0 : index
      %21 = vector.load %arg4[%c0_13, %c0_14, %c0_15] : memref<1x1x128xf32, #tpu.memory_space<vmem>>, vector<1x1x128xf32>
      %22 = vector.shape_cast %21 : vector<1x1x128xf32> to vector<1x1x1x128xf32>
      %cst_16 = arith.constant dense<0x7F800000> : vector<1xf32>
      %23 = vector.multi_reduction <minimumf>, %22, %cst_16 [1, 2, 3] : vector<1x1x1x128xf32> to vector<1xf32>
      %24 = vector.shape_cast %23 : vector<1xf32> to vector<1x1x1x1xf32>
      %25 = vector.extract %24[0, 0, 0, 0] : f32 from vector<1x1x1x1xf32>
      %26 = vector.broadcast %25 : f32 to vector<1x1x128xf32>
      %c0_17 = arith.constant 0 : index
      %c0_18 = arith.constant 0 : index
      %c0_19 = arith.constant 0 : index
      %27 = vector.load %arg4[%c0_17, %c0_18, %c0_19] : memref<1x1x128xf32, #tpu.memory_space<vmem>>, vector<1x1x128xf32>
      tpu.vector_store %arg4[%c0_17, %c0_18, %c0_19], %26 {strides = array<i32>} : memref<1x1x128xf32, #tpu.memory_space<vmem>>, vector<1x1x128xf32>,
      %c0_20 = arith.constant 0 : index
      %c0_21 = arith.constant 0 : index
      %c0_22 = arith.constant 0 : index
      %28 = vector.load %arg5[%c0_20, %c0_21, %c0_22] : memref<1x1x128xf32, #tpu.memory_space<vmem>>, vector<1x1x128xf32>
      %29 = vector.shape_cast %28 : vector<1x1x128xf32> to vector<1x1x1x128xf32>
      %cst_23 = arith.constant dense<0xFF800000> : vector<1xf32>
      %30 = vector.multi_reduction <maximumf>, %29, %cst_23 [1, 2, 3] : vector<1x1x1x128xf32> to vector<1xf32>
      %31 = vector.shape_cast %30 : vector<1xf32> to vector<1x1x1x1xf32>
      %32 = vector.extract %31[0, 0, 0, 0] : f32 from vector<1x1x1x1xf32>
      %33 = vector.broadcast %32 : f32 to vector<1x1x128xf32>
      %c0_24 = arith.constant 0 : index
      %c0_25 = arith.constant 0 : index
      %c0_26 = arith.constant 0 : index
      %34 = vector.load %arg5[%c0_24, %c0_25, %c0_26] : memref<1x1x128xf32, #tpu.memory_space<vmem>>, vector<1x1x128xf32>
      tpu.vector_store %arg5[%c0_24, %c0_25, %c0_26], %33 {strides = array<i32>} : memref<1x1x128xf32, #tpu.memory_space<vmem>>, vector<1x1x128xf32>,
    } else {
    }
    return
  }
  func.func @transform_0(%arg0: i32, %arg1: i32) -> (i32, i32, i32) {
    %c0_i32 = arith.constant 0 : i32
    %c0_i32_0 = arith.constant 0 : i32
    return %arg0, %arg1, %c0_i32 : i32, i32, i32
  }
  func.func @transform_1(%arg0: i32, %arg1: i32) -> (i32, i32, i32) {
    %c0_i32 = arith.constant 0 : i32
    %c0_i32_0 = arith.constant 0 : i32
    return %arg0, %arg1, %c0_i32 : i32, i32, i32
  }
  func.func @transform_2(%arg0: i32, %arg1: i32) -> (i32, i32, i32) {
    %c0_i32 = arith.constant 0 : i32
    %c0_i32_0 = arith.constant 0 : i32
    %c0_i32_1 = arith.constant 0 : i32
    return %arg0, %c0_i32, %c0_i32_0 : i32, i32, i32
  }
  func.func @transform_3(%arg0: i32, %arg1: i32) -> (i32, i32, i32) {
    %c0_i32 = arith.constant 0 : i32
    %c0_i32_0 = arith.constant 0 : i32
    %c0_i32_1 = arith.constant 0 : i32
    return %arg0, %c0_i32, %c0_i32_0 : i32, i32, i32
  }
}

module attributes {stable_mosaic.version = 11 : i64} {
  func.func @_feat_ctx_kernel(%arg0: i32, %arg1: memref<64x512xbf16, #tpu.memory_space<vmem>>, %arg2: memref<512x512xbf16, #tpu.memory_space<vmem>>, %arg3: memref<1x512xf32, #tpu.memory_space<vmem>>, %arg4: memref<64x256xbf16, #tpu.memory_space<vmem>>, %arg5: memref<64x128xbf16, #tpu.memory_space<vmem>>, %arg6: memref<64x128xbf16, #tpu.memory_space<vmem>>) attributes {dimension_semantics = [#tpu.dimension_semantics<parallel>], iteration_bounds = array<i64: 2>, scalar_prefetch = 0 : i64, scratch_operands = 0 : i64, tpu.core_type = #tpu.core_type<tc>, window_params = [{transform_indices = @transform_0, window_bounds = array<i64: 64, 512>}, {pipeline_mode = #tpu.pipeline_mode<synchronous>, transform_indices = @transform_1, window_bounds = array<i64: 512, 512>}, {pipeline_mode = #tpu.pipeline_mode<synchronous>, transform_indices = @transform_2, window_bounds = array<i64: 1, 512>}, {transform_indices = @transform_3, window_bounds = array<i64: 64, 256>}, {transform_indices = @transform_4, window_bounds = array<i64: 64, 128>}, {transform_indices = @transform_5, window_bounds = array<i64: 64, 128>}]} {
    %c0 = arith.constant 0 : index
    %c0_0 = arith.constant 0 : index
    %0 = vector.load %arg1[%c0, %c0_0] : memref<64x512xbf16, #tpu.memory_space<vmem>>, vector<64x512xbf16>
    %c0_1 = arith.constant 0 : index
    %c0_2 = arith.constant 0 : index
    %1 = vector.load %arg2[%c0_1, %c0_2] : memref<512x512xbf16, #tpu.memory_space<vmem>>, vector<512x512xbf16>
    %cst = arith.constant dense<0.000000e+00> : vector<64x512xf32>
    %2 = tpu.matmul %0, %1, %cst {dimension_numbers = #tpu.dot_dimension_numbers<[1], [0], [0], [1], [0, 0, 1, 1], [], []>} : vector<64x512xbf16>, vector<512x512xbf16>, vector<64x512xf32> -> vector<64x512xf32>
    %c0_3 = arith.constant 0 : index
    %c0_4 = arith.constant 0 : index
    %3 = vector.load %arg3[%c0_3, %c0_4] : memref<1x512xf32, #tpu.memory_space<vmem>>, vector<1x512xf32>
    %4 = vector.broadcast %3 : vector<1x512xf32> to vector<64x512xf32>
    %5 = arith.addf %2, %4 : vector<64x512xf32>
    %6 = vector.extract_strided_slice %5 {offsets = [0, 0], sizes = [64, 256], strides = [1, 1]} : vector<64x512xf32> to vector<64x256xf32>
    %7 = arith.truncf %6 : vector<64x256xf32> to vector<64x256xbf16>
    %c0_5 = arith.constant 0 : index
    %c0_6 = arith.constant 0 : index
    %8 = vector.load %arg4[%c0_5, %c0_6] : memref<64x256xbf16, #tpu.memory_space<vmem>>, vector<64x256xbf16>
    tpu.vector_store %arg4[%c0_5, %c0_6], %7 {strides = array<i32>} : memref<64x256xbf16, #tpu.memory_space<vmem>>, vector<64x256xbf16>,
    %9 = vector.extract_strided_slice %5 {offsets = [0, 256], sizes = [64, 128], strides = [1, 1]} : vector<64x512xf32> to vector<64x128xf32>
    %10 = math.tanh %9 : vector<64x128xf32>
    %11 = arith.truncf %10 : vector<64x128xf32> to vector<64x128xbf16>
    %c0_7 = arith.constant 0 : index
    %c0_8 = arith.constant 0 : index
    %12 = vector.load %arg5[%c0_7, %c0_8] : memref<64x128xbf16, #tpu.memory_space<vmem>>, vector<64x128xbf16>
    tpu.vector_store %arg5[%c0_7, %c0_8], %11 {strides = array<i32>} : memref<64x128xbf16, #tpu.memory_space<vmem>>, vector<64x128xbf16>,
    %13 = vector.extract_strided_slice %5 {offsets = [0, 384], sizes = [64, 128], strides = [1, 1]} : vector<64x512xf32> to vector<64x128xf32>
    %cst_9 = arith.constant 0.000000e+00 : f32
    %14 = vector.broadcast %cst_9 : f32 to vector<64x128xf32>
    %15 = arith.maximumf %13, %14 : vector<64x128xf32>
    %16 = arith.truncf %15 : vector<64x128xf32> to vector<64x128xbf16>
    %c0_10 = arith.constant 0 : index
    %c0_11 = arith.constant 0 : index
    %17 = vector.load %arg6[%c0_10, %c0_11] : memref<64x128xbf16, #tpu.memory_space<vmem>>, vector<64x128xbf16>
    tpu.vector_store %arg6[%c0_10, %c0_11], %16 {strides = array<i32>} : memref<64x128xbf16, #tpu.memory_space<vmem>>, vector<64x128xbf16>,
    return
  }
  func.func @transform_0(%arg0: i32) -> (i32, i32) {
    %c0_i32 = arith.constant 0 : i32
    %c0_i32_0 = arith.constant 0 : i32
    return %arg0, %c0_i32 : i32, i32
  }
  func.func @transform_1(%arg0: i32) -> (i32, i32) {
    %c0_i32 = arith.constant 0 : i32
    %c0_i32_0 = arith.constant 0 : i32
    %c0_i32_1 = arith.constant 0 : i32
    return %c0_i32, %c0_i32_0 : i32, i32
  }
  func.func @transform_2(%arg0: i32) -> (i32, i32) {
    %c0_i32 = arith.constant 0 : i32
    %c0_i32_0 = arith.constant 0 : i32
    %c0_i32_1 = arith.constant 0 : i32
    return %c0_i32, %c0_i32_0 : i32, i32
  }
  func.func @transform_3(%arg0: i32) -> (i32, i32) {
    %c0_i32 = arith.constant 0 : i32
    %c0_i32_0 = arith.constant 0 : i32
    return %arg0, %c0_i32 : i32, i32
  }
  func.func @transform_4(%arg0: i32) -> (i32, i32) {
    %c0_i32 = arith.constant 0 : i32
    %c0_i32_0 = arith.constant 0 : i32
    return %arg0, %c0_i32 : i32, i32
  }
  func.func @transform_5(%arg0: i32) -> (i32, i32) {
    %c0_i32 = arith.constant 0 : i32
    %c0_i32_0 = arith.constant 0 : i32
    return %arg0, %c0_i32 : i32, i32
  }
}

module attributes {stable_mosaic.version = 11 : i64} {
  func.func @_linear_kernel(%arg0: i32, %arg1: memref<64x512xbf16, #tpu.memory_space<vmem>>, %arg2: memref<512x256xbf16, #tpu.memory_space<vmem>>, %arg3: memref<1x256xf32, #tpu.memory_space<vmem>>, %arg4: memref<64x256xbf16, #tpu.memory_space<vmem>>) attributes {dimension_semantics = [#tpu.dimension_semantics<parallel>], iteration_bounds = array<i64: 2>, scalar_prefetch = 0 : i64, scratch_operands = 0 : i64, tpu.core_type = #tpu.core_type<tc>, window_params = [{transform_indices = @transform_0, window_bounds = array<i64: 64, 512>}, {pipeline_mode = #tpu.pipeline_mode<synchronous>, transform_indices = @transform_1, window_bounds = array<i64: 512, 256>}, {pipeline_mode = #tpu.pipeline_mode<synchronous>, transform_indices = @transform_2, window_bounds = array<i64: 1, 256>}, {transform_indices = @transform_3, window_bounds = array<i64: 64, 256>}]} {
    %c0 = arith.constant 0 : index
    %c0_0 = arith.constant 0 : index
    %0 = vector.load %arg1[%c0, %c0_0] : memref<64x512xbf16, #tpu.memory_space<vmem>>, vector<64x512xbf16>
    %c0_1 = arith.constant 0 : index
    %c0_2 = arith.constant 0 : index
    %1 = vector.load %arg2[%c0_1, %c0_2] : memref<512x256xbf16, #tpu.memory_space<vmem>>, vector<512x256xbf16>
    %cst = arith.constant dense<0.000000e+00> : vector<64x256xf32>
    %2 = tpu.matmul %0, %1, %cst {dimension_numbers = #tpu.dot_dimension_numbers<[1], [0], [0], [1], [0, 0, 1, 1], [], []>} : vector<64x512xbf16>, vector<512x256xbf16>, vector<64x256xf32> -> vector<64x256xf32>
    %c0_3 = arith.constant 0 : index
    %c0_4 = arith.constant 0 : index
    %3 = vector.load %arg3[%c0_3, %c0_4] : memref<1x256xf32, #tpu.memory_space<vmem>>, vector<1x256xf32>
    %4 = vector.broadcast %3 : vector<1x256xf32> to vector<64x256xf32>
    %5 = arith.addf %2, %4 : vector<64x256xf32>
    %6 = arith.truncf %5 : vector<64x256xf32> to vector<64x256xbf16>
    %c0_5 = arith.constant 0 : index
    %c0_6 = arith.constant 0 : index
    %7 = vector.load %arg4[%c0_5, %c0_6] : memref<64x256xbf16, #tpu.memory_space<vmem>>, vector<64x256xbf16>
    tpu.vector_store %arg4[%c0_5, %c0_6], %6 {strides = array<i32>} : memref<64x256xbf16, #tpu.memory_space<vmem>>, vector<64x256xbf16>,
    return
  }
  func.func @transform_0(%arg0: i32) -> (i32, i32) {
    %c0_i32 = arith.constant 0 : i32
    %c0_i32_0 = arith.constant 0 : i32
    return %arg0, %c0_i32 : i32, i32
  }
  func.func @transform_1(%arg0: i32) -> (i32, i32) {
    %c0_i32 = arith.constant 0 : i32
    %c0_i32_0 = arith.constant 0 : i32
    %c0_i32_1 = arith.constant 0 : i32
    return %c0_i32, %c0_i32_0 : i32, i32
  }
  func.func @transform_2(%arg0: i32) -> (i32, i32) {
    %c0_i32 = arith.constant 0 : i32
    %c0_i32_0 = arith.constant 0 : i32
    %c0_i32_1 = arith.constant 0 : i32
    return %c0_i32, %c0_i32_0 : i32, i32
  }
  func.func @transform_3(%arg0: i32) -> (i32, i32) {
    %c0_i32 = arith.constant 0 : i32
    %c0_i32_0 = arith.constant 0 : i32
    return %arg0, %c0_i32 : i32, i32
  }
}

module attributes {stable_mosaic.version = 11 : i64} {
  func.func @_corrctx_kernel(%arg0: i32, %arg1: i32, %arg2: memref<128x64xbf16, #tpu.memory_space<vmem>>, %arg3: memref<1x64x256xbf16, #tpu.memory_space<vmem>>, %arg4: memref<1x128x256xf32, #tpu.memory_space<vmem>>) attributes {dimension_semantics = [#tpu.dimension_semantics<parallel>, #tpu.dimension_semantics<arbitrary>], iteration_bounds = array<i64: 2, 1>, scalar_prefetch = 0 : i64, scratch_operands = 0 : i64, tpu.core_type = #tpu.core_type<tc>, window_params = [{transform_indices = @transform_0, window_bounds = array<i64: 128, 64>}, {transform_indices = @transform_1, window_bounds = array<i64: 1, 64, 256>}, {transform_indices = @transform_2, window_bounds = array<i64: 1, 128, 256>}]} {
    %c0_i32 = arith.constant 0 : i32
    %0 = arith.cmpi eq, %arg1, %c0_i32 : i32
    %1 = arith.extui %0 : i1 to i32
    %c0_i32_0 = arith.constant 0 : i32
    %2 = arith.cmpi ne, %1, %c0_i32_0 : i32
    scf.if %2 {
      %cst_11 = arith.constant 0.000000e+00 : f32
      %13 = vector.broadcast %cst_11 : f32 to vector<1x128x256xf32>
      %c0_12 = arith.constant 0 : index
      %c0_13 = arith.constant 0 : index
      %c0_14 = arith.constant 0 : index
      %14 = vector.load %arg4[%c0_12, %c0_13, %c0_14] : memref<1x128x256xf32, #tpu.memory_space<vmem>>, vector<1x128x256xf32>
      tpu.vector_store %arg4[%c0_12, %c0_13, %c0_14], %13 {strides = array<i32>} : memref<1x128x256xf32, #tpu.memory_space<vmem>>, vector<1x128x256xf32>,
    } else {
    }
    %c0 = arith.constant 0 : index
    %c0_1 = arith.constant 0 : index
    %c0_2 = arith.constant 0 : index
    %3 = vector.load %arg4[%c0, %c0_1, %c0_2] : memref<1x128x256xf32, #tpu.memory_space<vmem>>, vector<1x128x256xf32>
    %4 = vector.shape_cast %3 : vector<1x128x256xf32> to vector<128x256xf32>
    %c0_3 = arith.constant 0 : index
    %c0_4 = arith.constant 0 : index
    %5 = vector.load %arg2[%c0_3, %c0_4] : memref<128x64xbf16, #tpu.memory_space<vmem>>, vector<128x64xbf16>
    %c0_5 = arith.constant 0 : index
    %c0_6 = arith.constant 0 : index
    %c0_7 = arith.constant 0 : index
    %6 = vector.load %arg3[%c0_5, %c0_6, %c0_7] : memref<1x64x256xbf16, #tpu.memory_space<vmem>>, vector<1x64x256xbf16>
    %7 = vector.shape_cast %6 : vector<1x64x256xbf16> to vector<64x256xbf16>
    %cst = arith.constant dense<0.000000e+00> : vector<128x256xf32>
    %8 = tpu.matmul %5, %7, %cst {dimension_numbers = #tpu.dot_dimension_numbers<[1], [0], [0], [1], [0, 0, 1, 1], [], []>} : vector<128x64xbf16>, vector<64x256xbf16>, vector<128x256xf32> -> vector<128x256xf32>
    %9 = arith.addf %4, %8 : vector<128x256xf32>
    %c0_8 = arith.constant 0 : index
    %c0_9 = arith.constant 0 : index
    %c0_10 = arith.constant 0 : index
    %10 = vector.load %arg4[%c0_8, %c0_9, %c0_10] : memref<1x128x256xf32, #tpu.memory_space<vmem>>, vector<1x128x256xf32>
    %11 = vector.shape_cast %10 : vector<1x128x256xf32> to vector<128x256xf32>
    %12 = vector.shape_cast %9 : vector<128x256xf32> to vector<1x128x256xf32>
    tpu.vector_store %arg4[%c0_8, %c0_9, %c0_10], %12 {strides = array<i32>} : memref<1x128x256xf32, #tpu.memory_space<vmem>>, vector<1x128x256xf32>,
    return
  }
  func.func @transform_0(%arg0: i32, %arg1: i32) -> (i32, i32) {
    %c0_i32 = arith.constant 0 : i32
    %c0_i32_0 = arith.constant 0 : i32
    return %c0_i32, %arg1 : i32, i32
  }
  func.func @transform_1(%arg0: i32, %arg1: i32) -> (i32, i32, i32) {
    %c0_i32 = arith.constant 0 : i32
    %c0_i32_0 = arith.constant 0 : i32
    return %arg0, %arg1, %c0_i32 : i32, i32, i32
  }
  func.func @transform_2(%arg0: i32, %arg1: i32) -> (i32, i32, i32) {
    %c0_i32 = arith.constant 0 : i32
    %c0_i32_0 = arith.constant 0 : i32
    %c0_i32_1 = arith.constant 0 : i32
    return %arg0, %c0_i32, %c0_i32_0 : i32, i32, i32
  }
}

module attributes {stable_mosaic.version = 11 : i64} {
  func.func @_static_kernel(%arg0: i32, %arg1: i32, %arg2: memref<1x64x128xbf16, #tpu.memory_space<vmem>>, %arg3: memref<1x64x256xbf16, #tpu.memory_space<vmem>>, %arg4: memref<1x256x128xbf16, #tpu.memory_space<vmem>>, %arg5: memref<128x128xbf16, #tpu.memory_space<vmem>>, %arg6: memref<1x128xf32, #tpu.memory_space<vmem>>, %arg7: memref<1x64x128xf32, #tpu.memory_space<vmem>>) attributes {dimension_semantics = [#tpu.dimension_semantics<parallel>, #tpu.dimension_semantics<parallel>], iteration_bounds = array<i64: 2, 1>, scalar_prefetch = 0 : i64, scratch_operands = 0 : i64, tpu.core_type = #tpu.core_type<tc>, window_params = [{transform_indices = @transform_0, window_bounds = array<i64: 1, 64, 128>}, {transform_indices = @transform_1, window_bounds = array<i64: 1, 64, 256>}, {transform_indices = @transform_2, window_bounds = array<i64: 1, 256, 128>}, {pipeline_mode = #tpu.pipeline_mode<synchronous>, transform_indices = @transform_3, window_bounds = array<i64: 128, 128>}, {pipeline_mode = #tpu.pipeline_mode<synchronous>, transform_indices = @transform_4, window_bounds = array<i64: 1, 128>}, {transform_indices = @transform_5, window_bounds = array<i64: 1, 64, 128>}]} {
    %c0 = arith.constant 0 : index
    %c0_0 = arith.constant 0 : index
    %c0_1 = arith.constant 0 : index
    %0 = vector.load %arg2[%c0, %c0_0, %c0_1] : memref<1x64x128xbf16, #tpu.memory_space<vmem>>, vector<1x64x128xbf16>
    %1 = vector.shape_cast %0 : vector<1x64x128xbf16> to vector<64x128xbf16>
    %c0_2 = arith.constant 0 : index
    %c0_3 = arith.constant 0 : index
    %2 = vector.load %arg5[%c0_2, %c0_3] : memref<128x128xbf16, #tpu.memory_space<vmem>>, vector<128x128xbf16>
    %cst = arith.constant dense<0.000000e+00> : vector<64x128xf32>
    %3 = tpu.matmul %1, %2, %cst {dimension_numbers = #tpu.dot_dimension_numbers<[1], [0], [0], [1], [0, 0, 1, 1], [], []>} : vector<64x128xbf16>, vector<128x128xbf16>, vector<64x128xf32> -> vector<64x128xf32>
    %c0_4 = arith.constant 0 : index
    %c0_5 = arith.constant 0 : index
    %c0_6 = arith.constant 0 : index
    %4 = vector.load %arg3[%c0_4, %c0_5, %c0_6] : memref<1x64x256xbf16, #tpu.memory_space<vmem>>, vector<1x64x256xbf16>
    %5 = vector.shape_cast %4 : vector<1x64x256xbf16> to vector<64x256xbf16>
    %c0_7 = arith.constant 0 : index
    %c0_8 = arith.constant 0 : index
    %c0_9 = arith.constant 0 : index
    %6 = vector.load %arg4[%c0_7, %c0_8, %c0_9] : memref<1x256x128xbf16, #tpu.memory_space<vmem>>, vector<1x256x128xbf16>
    %7 = vector.shape_cast %6 : vector<1x256x128xbf16> to vector<256x128xbf16>
    %cst_10 = arith.constant dense<0.000000e+00> : vector<64x128xf32>
    %8 = tpu.matmul %5, %7, %cst_10 {dimension_numbers = #tpu.dot_dimension_numbers<[1], [0], [0], [1], [0, 0, 1, 1], [], []>} : vector<64x256xbf16>, vector<256x128xbf16>, vector<64x128xf32> -> vector<64x128xf32>
    %9 = arith.addf %3, %8 : vector<64x128xf32>
    %c0_11 = arith.constant 0 : index
    %c0_12 = arith.constant 0 : index
    %10 = vector.load %arg6[%c0_11, %c0_12] : memref<1x128xf32, #tpu.memory_space<vmem>>, vector<1x128xf32>
    %11 = vector.broadcast %10 : vector<1x128xf32> to vector<64x128xf32>
    %12 = arith.addf %9, %11 : vector<64x128xf32>
    %c0_13 = arith.constant 0 : index
    %c0_14 = arith.constant 0 : index
    %c0_15 = arith.constant 0 : index
    %13 = vector.load %arg7[%c0_13, %c0_14, %c0_15] : memref<1x64x128xf32, #tpu.memory_space<vmem>>, vector<1x64x128xf32>
    %14 = vector.shape_cast %13 : vector<1x64x128xf32> to vector<64x128xf32>
    %15 = vector.shape_cast %12 : vector<64x128xf32> to vector<1x64x128xf32>
    tpu.vector_store %arg7[%c0_13, %c0_14, %c0_15], %15 {strides = array<i32>} : memref<1x64x128xf32, #tpu.memory_space<vmem>>, vector<1x64x128xf32>,
    return
  }
  func.func @transform_0(%arg0: i32, %arg1: i32) -> (i32, i32, i32) {
    %c0_i32 = arith.constant 0 : i32
    %c0_i32_0 = arith.constant 0 : i32
    return %arg0, %arg1, %c0_i32 : i32, i32, i32
  }
  func.func @transform_1(%arg0: i32, %arg1: i32) -> (i32, i32, i32) {
    %c0_i32 = arith.constant 0 : i32
    %c0_i32_0 = arith.constant 0 : i32
    return %arg0, %arg1, %c0_i32 : i32, i32, i32
  }
  func.func @transform_2(%arg0: i32, %arg1: i32) -> (i32, i32, i32) {
    %c0_i32 = arith.constant 0 : i32
    %c0_i32_0 = arith.constant 0 : i32
    %c0_i32_1 = arith.constant 0 : i32
    return %arg0, %c0_i32, %c0_i32_0 : i32, i32, i32
  }
  func.func @transform_3(%arg0: i32, %arg1: i32) -> (i32, i32) {
    %c0_i32 = arith.constant 0 : i32
    %c0_i32_0 = arith.constant 0 : i32
    %c0_i32_1 = arith.constant 0 : i32
    return %c0_i32, %c0_i32_0 : i32, i32
  }
  func.func @transform_4(%arg0: i32, %arg1: i32) -> (i32, i32) {
    %c0_i32 = arith.constant 0 : i32
    %c0_i32_0 = arith.constant 0 : i32
    %c0_i32_1 = arith.constant 0 : i32
    return %c0_i32, %c0_i32_0 : i32, i32
  }
  func.func @transform_5(%arg0: i32, %arg1: i32) -> (i32, i32, i32) {
    %c0_i32 = arith.constant 0 : i32
    %c0_i32_0 = arith.constant 0 : i32
    return %arg0, %arg1, %c0_i32 : i32, i32, i32
  }
}

module attributes {stable_mosaic.version = 11 : i64} {
  func.func @_update_kernel(%arg0: i32, %arg1: memref<64x128xbf16, #tpu.memory_space<vmem>>, %arg2: memref<64x2xf32, #tpu.memory_space<vmem>>, %arg3: memref<64x128xf32, #tpu.memory_space<vmem>>, %arg4: memref<128x128xbf16, #tpu.memory_space<vmem>>, %arg5: memref<2x128xf32, #tpu.memory_space<vmem>>, %arg6: memref<128x640xbf16, #tpu.memory_space<vmem>>, %arg7: memref<1x640xf32, #tpu.memory_space<vmem>>, %arg8: memref<64x128xbf16, #tpu.memory_space<vmem>>, %arg9: memref<64x640xf32, #tpu.memory_space<vmem>>) attributes {dimension_semantics = [#tpu.dimension_semantics<parallel>], iteration_bounds = array<i64: 2>, scalar_prefetch = 0 : i64, scratch_operands = 0 : i64, tpu.core_type = #tpu.core_type<tc>, window_params = [{transform_indices = @transform_0, window_bounds = array<i64: 64, 128>}, {transform_indices = @transform_1, window_bounds = array<i64: 64, 2>}, {transform_indices = @transform_2, window_bounds = array<i64: 64, 128>}, {pipeline_mode = #tpu.pipeline_mode<synchronous>, transform_indices = @transform_3, window_bounds = array<i64: 128, 128>}, {pipeline_mode = #tpu.pipeline_mode<synchronous>, transform_indices = @transform_4, window_bounds = array<i64: 2, 128>}, {pipeline_mode = #tpu.pipeline_mode<synchronous>, transform_indices = @transform_5, window_bounds = array<i64: 128, 640>}, {pipeline_mode = #tpu.pipeline_mode<synchronous>, transform_indices = @transform_6, window_bounds = array<i64: 1, 640>}, {transform_indices = @transform_7, window_bounds = array<i64: 64, 128>}, {transform_indices = @transform_8, window_bounds = array<i64: 64, 640>}]} {
    %c0 = arith.constant 0 : index
    %c0_0 = arith.constant 0 : index
    %0 = vector.load %arg1[%c0, %c0_0] : memref<64x128xbf16, #tpu.memory_space<vmem>>, vector<64x128xbf16>
    %c0_1 = arith.constant 0 : index
    %c0_2 = arith.constant 0 : index
    %1 = vector.load %arg4[%c0_1, %c0_2] : memref<128x128xbf16, #tpu.memory_space<vmem>>, vector<128x128xbf16>
    %cst = arith.constant dense<0.000000e+00> : vector<64x128xf32>
    %2 = tpu.matmul %0, %1, %cst {dimension_numbers = #tpu.dot_dimension_numbers<[1], [0], [0], [1], [0, 0, 1, 1], [], []>} : vector<64x128xbf16>, vector<128x128xbf16>, vector<64x128xf32> -> vector<64x128xf32>
    %c0_3 = arith.constant 0 : index
    %c0_4 = arith.constant 0 : index
    %3 = vector.load %arg2[%c0_3, %c0_4] : memref<64x2xf32, #tpu.memory_space<vmem>>, vector<64x2xf32>
    %c0_5 = arith.constant 0 : index
    %c0_6 = arith.constant 0 : index
    %4 = vector.load %arg5[%c0_5, %c0_6] : memref<2x128xf32, #tpu.memory_space<vmem>>, vector<2x128xf32>
    %5 = vector.extract_strided_slice %3 {offsets = [0, 0], sizes = [64, 1], strides = [1, 1]} : vector<64x2xf32> to vector<64x1xf32>
    %6 = vector.extract_strided_slice %4 {offsets = [0, 0], sizes = [1, 128], strides = [1, 1]} : vector<2x128xf32> to vector<1x128xf32>
    %7 = vector.broadcast %5 : vector<64x1xf32> to vector<64x128xf32>
    %8 = vector.broadcast %6 : vector<1x128xf32> to vector<64x128xf32>
    %9 = arith.mulf %7, %8 : vector<64x128xf32>
    %10 = arith.addf %2, %9 : vector<64x128xf32>
    %11 = vector.extract_strided_slice %3 {offsets = [0, 1], sizes = [64, 1], strides = [1, 1]} : vector<64x2xf32> to vector<64x1xf32>
    %12 = vector.extract_strided_slice %4 {offsets = [1, 0], sizes = [1, 128], strides = [1, 1]} : vector<2x128xf32> to vector<1x128xf32>
    %13 = vector.broadcast %11 : vector<64x1xf32> to vector<64x128xf32>
    %14 = vector.broadcast %12 : vector<1x128xf32> to vector<64x128xf32>
    %15 = arith.mulf %13, %14 : vector<64x128xf32>
    %16 = arith.addf %10, %15 : vector<64x128xf32>
    %c0_7 = arith.constant 0 : index
    %c0_8 = arith.constant 0 : index
    %17 = vector.load %arg3[%c0_7, %c0_8] : memref<64x128xf32, #tpu.memory_space<vmem>>, vector<64x128xf32>
    %18 = arith.addf %16, %17 : vector<64x128xf32>
    %19 = math.tanh %18 : vector<64x128xf32>
    %20 = arith.truncf %19 : vector<64x128xf32> to vector<64x128xbf16>
    %c0_9 = arith.constant 0 : index
    %c0_10 = arith.constant 0 : index
    %21 = vector.load %arg8[%c0_9, %c0_10] : memref<64x128xbf16, #tpu.memory_space<vmem>>, vector<64x128xbf16>
    tpu.vector_store %arg8[%c0_9, %c0_10], %20 {strides = array<i32>} : memref<64x128xbf16, #tpu.memory_space<vmem>>, vector<64x128xbf16>,
    %c0_11 = arith.constant 0 : index
    %c0_12 = arith.constant 0 : index
    %22 = vector.load %arg6[%c0_11, %c0_12] : memref<128x640xbf16, #tpu.memory_space<vmem>>, vector<128x640xbf16>
    %cst_13 = arith.constant dense<0.000000e+00> : vector<64x640xf32>
    %23 = tpu.matmul %20, %22, %cst_13 {dimension_numbers = #tpu.dot_dimension_numbers<[1], [0], [0], [1], [0, 0, 1, 1], [], []>} : vector<64x128xbf16>, vector<128x640xbf16>, vector<64x640xf32> -> vector<64x640xf32>
    %c0_14 = arith.constant 0 : index
    %c0_15 = arith.constant 0 : index
    %24 = vector.load %arg7[%c0_14, %c0_15] : memref<1x640xf32, #tpu.memory_space<vmem>>, vector<1x640xf32>
    %25 = vector.broadcast %24 : vector<1x640xf32> to vector<64x640xf32>
    %26 = arith.addf %23, %25 : vector<64x640xf32>
    %c0_16 = arith.constant 0 : index
    %c0_17 = arith.constant 0 : index
    %27 = vector.load %arg9[%c0_16, %c0_17] : memref<64x640xf32, #tpu.memory_space<vmem>>, vector<64x640xf32>
    tpu.vector_store %arg9[%c0_16, %c0_17], %26 {strides = array<i32>} : memref<64x640xf32, #tpu.memory_space<vmem>>, vector<64x640xf32>,
    return
  }
  func.func @transform_0(%arg0: i32) -> (i32, i32) {
    %c0_i32 = arith.constant 0 : i32
    %c0_i32_0 = arith.constant 0 : i32
    return %arg0, %c0_i32 : i32, i32
  }
  func.func @transform_1(%arg0: i32) -> (i32, i32) {
    %c0_i32 = arith.constant 0 : i32
    %c0_i32_0 = arith.constant 0 : i32
    return %arg0, %c0_i32 : i32, i32
  }
  func.func @transform_2(%arg0: i32) -> (i32, i32) {
    %c0_i32 = arith.constant 0 : i32
    %c0_i32_0 = arith.constant 0 : i32
    return %arg0, %c0_i32 : i32, i32
  }
  func.func @transform_3(%arg0: i32) -> (i32, i32) {
    %c0_i32 = arith.constant 0 : i32
    %c0_i32_0 = arith.constant 0 : i32
    %c0_i32_1 = arith.constant 0 : i32
    return %c0_i32, %c0_i32_0 : i32, i32
  }
  func.func @transform_4(%arg0: i32) -> (i32, i32) {
    %c0_i32 = arith.constant 0 : i32
    %c0_i32_0 = arith.constant 0 : i32
    %c0_i32_1 = arith.constant 0 : i32
    return %c0_i32, %c0_i32_0 : i32, i32
  }
  func.func @transform_5(%arg0: i32) -> (i32, i32) {
    %c0_i32 = arith.constant 0 : i32
    %c0_i32_0 = arith.constant 0 : i32
    %c0_i32_1 = arith.constant 0 : i32
    return %c0_i32, %c0_i32_0 : i32, i32
  }
  func.func @transform_6(%arg0: i32) -> (i32, i32) {
    %c0_i32 = arith.constant 0 : i32
    %c0_i32_0 = arith.constant 0 : i32
    %c0_i32_1 = arith.constant 0 : i32
    return %c0_i32, %c0_i32_0 : i32, i32
  }
  func.func @transform_7(%arg0: i32) -> (i32, i32) {
    %c0_i32 = arith.constant 0 : i32
    %c0_i32_0 = arith.constant 0 : i32
    return %arg0, %c0_i32 : i32, i32
  }
  func.func @transform_8(%arg0: i32) -> (i32, i32) {
    %c0_i32 = arith.constant 0 : i32
    %c0_i32_0 = arith.constant 0 : i32
    return %arg0, %c0_i32 : i32, i32
  }
}

module attributes {stable_mosaic.version = 11 : i64} {
  func.func @_update_kernel(%arg0: i32, %arg1: memref<64x128xbf16, #tpu.memory_space<vmem>>, %arg2: memref<64x2xf32, #tpu.memory_space<vmem>>, %arg3: memref<64x128xf32, #tpu.memory_space<vmem>>, %arg4: memref<128x128xbf16, #tpu.memory_space<vmem>>, %arg5: memref<2x128xf32, #tpu.memory_space<vmem>>, %arg6: memref<128x640xbf16, #tpu.memory_space<vmem>>, %arg7: memref<1x640xf32, #tpu.memory_space<vmem>>, %arg8: memref<64x128xbf16, #tpu.memory_space<vmem>>, %arg9: memref<64x640xf32, #tpu.memory_space<vmem>>) attributes {dimension_semantics = [#tpu.dimension_semantics<parallel>], iteration_bounds = array<i64: 2>, scalar_prefetch = 0 : i64, scratch_operands = 0 : i64, tpu.core_type = #tpu.core_type<tc>, window_params = [{transform_indices = @transform_0, window_bounds = array<i64: 64, 128>}, {transform_indices = @transform_1, window_bounds = array<i64: 64, 2>}, {transform_indices = @transform_2, window_bounds = array<i64: 64, 128>}, {pipeline_mode = #tpu.pipeline_mode<synchronous>, transform_indices = @transform_3, window_bounds = array<i64: 128, 128>}, {pipeline_mode = #tpu.pipeline_mode<synchronous>, transform_indices = @transform_4, window_bounds = array<i64: 2, 128>}, {pipeline_mode = #tpu.pipeline_mode<synchronous>, transform_indices = @transform_5, window_bounds = array<i64: 128, 640>}, {pipeline_mode = #tpu.pipeline_mode<synchronous>, transform_indices = @transform_6, window_bounds = array<i64: 1, 640>}, {transform_indices = @transform_7, window_bounds = array<i64: 64, 128>}, {transform_indices = @transform_8, window_bounds = array<i64: 64, 640>}]} {
    %c0 = arith.constant 0 : index
    %c0_0 = arith.constant 0 : index
    %0 = vector.load %arg1[%c0, %c0_0] : memref<64x128xbf16, #tpu.memory_space<vmem>>, vector<64x128xbf16>
    %c0_1 = arith.constant 0 : index
    %c0_2 = arith.constant 0 : index
    %1 = vector.load %arg4[%c0_1, %c0_2] : memref<128x128xbf16, #tpu.memory_space<vmem>>, vector<128x128xbf16>
    %cst = arith.constant dense<0.000000e+00> : vector<64x128xf32>
    %2 = tpu.matmul %0, %1, %cst {dimension_numbers = #tpu.dot_dimension_numbers<[1], [0], [0], [1], [0, 0, 1, 1], [], []>} : vector<64x128xbf16>, vector<128x128xbf16>, vector<64x128xf32> -> vector<64x128xf32>
    %c0_3 = arith.constant 0 : index
    %c0_4 = arith.constant 0 : index
    %3 = vector.load %arg2[%c0_3, %c0_4] : memref<64x2xf32, #tpu.memory_space<vmem>>, vector<64x2xf32>
    %c0_5 = arith.constant 0 : index
    %c0_6 = arith.constant 0 : index
    %4 = vector.load %arg5[%c0_5, %c0_6] : memref<2x128xf32, #tpu.memory_space<vmem>>, vector<2x128xf32>
    %5 = vector.extract_strided_slice %3 {offsets = [0, 0], sizes = [64, 1], strides = [1, 1]} : vector<64x2xf32> to vector<64x1xf32>
    %6 = vector.extract_strided_slice %4 {offsets = [0, 0], sizes = [1, 128], strides = [1, 1]} : vector<2x128xf32> to vector<1x128xf32>
    %7 = vector.broadcast %5 : vector<64x1xf32> to vector<64x128xf32>
    %8 = vector.broadcast %6 : vector<1x128xf32> to vector<64x128xf32>
    %9 = arith.mulf %7, %8 : vector<64x128xf32>
    %10 = arith.addf %2, %9 : vector<64x128xf32>
    %11 = vector.extract_strided_slice %3 {offsets = [0, 1], sizes = [64, 1], strides = [1, 1]} : vector<64x2xf32> to vector<64x1xf32>
    %12 = vector.extract_strided_slice %4 {offsets = [1, 0], sizes = [1, 128], strides = [1, 1]} : vector<2x128xf32> to vector<1x128xf32>
    %13 = vector.broadcast %11 : vector<64x1xf32> to vector<64x128xf32>
    %14 = vector.broadcast %12 : vector<1x128xf32> to vector<64x128xf32>
    %15 = arith.mulf %13, %14 : vector<64x128xf32>
    %16 = arith.addf %10, %15 : vector<64x128xf32>
    %c0_7 = arith.constant 0 : index
    %c0_8 = arith.constant 0 : index
    %17 = vector.load %arg3[%c0_7, %c0_8] : memref<64x128xf32, #tpu.memory_space<vmem>>, vector<64x128xf32>
    %18 = arith.addf %16, %17 : vector<64x128xf32>
    %19 = math.tanh %18 : vector<64x128xf32>
    %20 = arith.truncf %19 : vector<64x128xf32> to vector<64x128xbf16>
    %c0_9 = arith.constant 0 : index
    %c0_10 = arith.constant 0 : index
    %21 = vector.load %arg8[%c0_9, %c0_10] : memref<64x128xbf16, #tpu.memory_space<vmem>>, vector<64x128xbf16>
    tpu.vector_store %arg8[%c0_9, %c0_10], %20 {strides = array<i32>} : memref<64x128xbf16, #tpu.memory_space<vmem>>, vector<64x128xbf16>,
    %c0_11 = arith.constant 0 : index
    %c0_12 = arith.constant 0 : index
    %22 = vector.load %arg6[%c0_11, %c0_12] : memref<128x640xbf16, #tpu.memory_space<vmem>>, vector<128x640xbf16>
    %cst_13 = arith.constant dense<0.000000e+00> : vector<64x640xf32>
    %23 = tpu.matmul %20, %22, %cst_13 {dimension_numbers = #tpu.dot_dimension_numbers<[1], [0], [0], [1], [0, 0, 1, 1], [], []>} : vector<64x128xbf16>, vector<128x640xbf16>, vector<64x640xf32> -> vector<64x640xf32>
    %c0_14 = arith.constant 0 : index
    %c0_15 = arith.constant 0 : index
    %24 = vector.load %arg7[%c0_14, %c0_15] : memref<1x640xf32, #tpu.memory_space<vmem>>, vector<1x640xf32>
    %25 = vector.broadcast %24 : vector<1x640xf32> to vector<64x640xf32>
    %26 = arith.addf %23, %25 : vector<64x640xf32>
    %c0_16 = arith.constant 0 : index
    %c0_17 = arith.constant 0 : index
    %27 = vector.load %arg9[%c0_16, %c0_17] : memref<64x640xf32, #tpu.memory_space<vmem>>, vector<64x640xf32>
    tpu.vector_store %arg9[%c0_16, %c0_17], %26 {strides = array<i32>} : memref<64x640xf32, #tpu.memory_space<vmem>>, vector<64x640xf32>,
    return
  }
  func.func @transform_0(%arg0: i32) -> (i32, i32) {
    %c0_i32 = arith.constant 0 : i32
    %c0_i32_0 = arith.constant 0 : i32
    return %arg0, %c0_i32 : i32, i32
  }
  func.func @transform_1(%arg0: i32) -> (i32, i32) {
    %c0_i32 = arith.constant 0 : i32
    %c0_i32_0 = arith.constant 0 : i32
    return %arg0, %c0_i32 : i32, i32
  }
  func.func @transform_2(%arg0: i32) -> (i32, i32) {
    %c0_i32 = arith.constant 0 : i32
    %c0_i32_0 = arith.constant 0 : i32
    return %arg0, %c0_i32 : i32, i32
  }
  func.func @transform_3(%arg0: i32) -> (i32, i32) {
    %c0_i32 = arith.constant 0 : i32
    %c0_i32_0 = arith.constant 0 : i32
    %c0_i32_1 = arith.constant 0 : i32
    return %c0_i32, %c0_i32_0 : i32, i32
  }
  func.func @transform_4(%arg0: i32) -> (i32, i32) {
    %c0_i32 = arith.constant 0 : i32
    %c0_i32_0 = arith.constant 0 : i32
    %c0_i32_1 = arith.constant 0 : i32
    return %c0_i32, %c0_i32_0 : i32, i32
  }
  func.func @transform_5(%arg0: i32) -> (i32, i32) {
    %c0_i32 = arith.constant 0 : i32
    %c0_i32_0 = arith.constant 0 : i32
    %c0_i32_1 = arith.constant 0 : i32
    return %c0_i32, %c0_i32_0 : i32, i32
  }
  func.func @transform_6(%arg0: i32) -> (i32, i32) {
    %c0_i32 = arith.constant 0 : i32
    %c0_i32_0 = arith.constant 0 : i32
    %c0_i32_1 = arith.constant 0 : i32
    return %c0_i32, %c0_i32_0 : i32, i32
  }
  func.func @transform_7(%arg0: i32) -> (i32, i32) {
    %c0_i32 = arith.constant 0 : i32
    %c0_i32_0 = arith.constant 0 : i32
    return %arg0, %c0_i32 : i32, i32
  }
  func.func @transform_8(%arg0: i32) -> (i32, i32) {
    %c0_i32 = arith.constant 0 : i32
    %c0_i32_0 = arith.constant 0 : i32
    return %arg0, %c0_i32 : i32, i32
  }
}

module attributes {stable_mosaic.version = 11 : i64} {
  func.func @_upsample_kernel(%arg0: i32, %arg1: memref<64x640xf32, #tpu.memory_space<vmem>>, %arg2: memref<64x18xf32, #tpu.memory_space<vmem>>, %arg3: memref<64x128xf32, #tpu.memory_space<vmem>>) attributes {dimension_semantics = [#tpu.dimension_semantics<parallel>], iteration_bounds = array<i64: 2>, scalar_prefetch = 0 : i64, scratch_operands = 0 : i64, tpu.core_type = #tpu.core_type<tc>, window_params = [{transform_indices = @transform_0, window_bounds = array<i64: 64, 640>}, {transform_indices = @transform_1, window_bounds = array<i64: 64, 18>}, {transform_indices = @transform_2, window_bounds = array<i64: 64, 128>}]} {
    %c0 = arith.constant 0 : index
    %c0_0 = arith.constant 0 : index
    %0 = vector.load %arg1[%c0, %c0_0] : memref<64x640xf32, #tpu.memory_space<vmem>>, vector<64x640xf32>
    %c0_1 = arith.constant 0 : index
    %c0_2 = arith.constant 0 : index
    %1 = vector.load %arg2[%c0_1, %c0_2] : memref<64x18xf32, #tpu.memory_space<vmem>>, vector<64x18xf32>
    %2 = vector.extract_strided_slice %0 {offsets = [0, 0], sizes = [64, 64], strides = [1, 1]} : vector<64x640xf32> to vector<64x64xf32>
    %3 = vector.extract_strided_slice %0 {offsets = [0, 64], sizes = [64, 64], strides = [1, 1]} : vector<64x640xf32> to vector<64x64xf32>
    %4 = vector.extract_strided_slice %0 {offsets = [0, 128], sizes = [64, 64], strides = [1, 1]} : vector<64x640xf32> to vector<64x64xf32>
    %5 = vector.extract_strided_slice %0 {offsets = [0, 192], sizes = [64, 64], strides = [1, 1]} : vector<64x640xf32> to vector<64x64xf32>
    %6 = vector.extract_strided_slice %0 {offsets = [0, 256], sizes = [64, 64], strides = [1, 1]} : vector<64x640xf32> to vector<64x64xf32>
    %7 = vector.extract_strided_slice %0 {offsets = [0, 320], sizes = [64, 64], strides = [1, 1]} : vector<64x640xf32> to vector<64x64xf32>
    %8 = vector.extract_strided_slice %0 {offsets = [0, 384], sizes = [64, 64], strides = [1, 1]} : vector<64x640xf32> to vector<64x64xf32>
    %9 = vector.extract_strided_slice %0 {offsets = [0, 448], sizes = [64, 64], strides = [1, 1]} : vector<64x640xf32> to vector<64x64xf32>
    %10 = vector.extract_strided_slice %0 {offsets = [0, 512], sizes = [64, 64], strides = [1, 1]} : vector<64x640xf32> to vector<64x64xf32>
    %11 = arith.maximumf %2, %3 : vector<64x64xf32>
    %12 = arith.maximumf %11, %4 : vector<64x64xf32>
    %13 = arith.maximumf %12, %5 : vector<64x64xf32>
    %14 = arith.maximumf %13, %6 : vector<64x64xf32>
    %15 = arith.maximumf %14, %7 : vector<64x64xf32>
    %16 = arith.maximumf %15, %8 : vector<64x64xf32>
    %17 = arith.maximumf %16, %9 : vector<64x64xf32>
    %18 = arith.maximumf %17, %10 : vector<64x64xf32>
    %19 = arith.subf %2, %18 : vector<64x64xf32>
    %20 = math.exp %19 : vector<64x64xf32>
    %21 = arith.subf %3, %18 : vector<64x64xf32>
    %22 = math.exp %21 : vector<64x64xf32>
    %23 = arith.subf %4, %18 : vector<64x64xf32>
    %24 = math.exp %23 : vector<64x64xf32>
    %25 = arith.subf %5, %18 : vector<64x64xf32>
    %26 = math.exp %25 : vector<64x64xf32>
    %27 = arith.subf %6, %18 : vector<64x64xf32>
    %28 = math.exp %27 : vector<64x64xf32>
    %29 = arith.subf %7, %18 : vector<64x64xf32>
    %30 = math.exp %29 : vector<64x64xf32>
    %31 = arith.subf %8, %18 : vector<64x64xf32>
    %32 = math.exp %31 : vector<64x64xf32>
    %33 = arith.subf %9, %18 : vector<64x64xf32>
    %34 = math.exp %33 : vector<64x64xf32>
    %35 = arith.subf %10, %18 : vector<64x64xf32>
    %36 = math.exp %35 : vector<64x64xf32>
    %37 = arith.addf %20, %22 : vector<64x64xf32>
    %38 = arith.addf %37, %24 : vector<64x64xf32>
    %39 = arith.addf %38, %26 : vector<64x64xf32>
    %40 = arith.addf %39, %28 : vector<64x64xf32>
    %41 = arith.addf %40, %30 : vector<64x64xf32>
    %42 = arith.addf %41, %32 : vector<64x64xf32>
    %43 = arith.addf %42, %34 : vector<64x64xf32>
    %44 = arith.addf %43, %36 : vector<64x64xf32>
    %cst = arith.constant 1.000000e+00 : f32
    %45 = vector.broadcast %cst : f32 to vector<64x64xf32>
    %46 = arith.divf %45, %44 : vector<64x64xf32>
    %47 = arith.mulf %20, %46 : vector<64x64xf32>
    %48 = vector.extract_strided_slice %1 {offsets = [0, 0], sizes = [64, 1], strides = [1, 1]} : vector<64x18xf32> to vector<64x1xf32>
    %49 = vector.broadcast %48 : vector<64x1xf32> to vector<64x64xf32>
    %50 = arith.mulf %47, %49 : vector<64x64xf32>
    %51 = arith.mulf %20, %46 : vector<64x64xf32>
    %52 = vector.extract_strided_slice %1 {offsets = [0, 9], sizes = [64, 1], strides = [1, 1]} : vector<64x18xf32> to vector<64x1xf32>
    %53 = vector.broadcast %52 : vector<64x1xf32> to vector<64x64xf32>
    %54 = arith.mulf %51, %53 : vector<64x64xf32>
    %55 = arith.mulf %22, %46 : vector<64x64xf32>
    %56 = vector.extract_strided_slice %1 {offsets = [0, 1], sizes = [64, 1], strides = [1, 1]} : vector<64x18xf32> to vector<64x1xf32>
    %57 = vector.broadcast %56 : vector<64x1xf32> to vector<64x64xf32>
    %58 = arith.mulf %55, %57 : vector<64x64xf32>
    %59 = arith.addf %50, %58 : vector<64x64xf32>
    %60 = vector.extract_strided_slice %1 {offsets = [0, 10], sizes = [64, 1], strides = [1, 1]} : vector<64x18xf32> to vector<64x1xf32>
    %61 = vector.broadcast %60 : vector<64x1xf32> to vector<64x64xf32>
    %62 = arith.mulf %55, %61 : vector<64x64xf32>
    %63 = arith.addf %54, %62 : vector<64x64xf32>
    %64 = arith.mulf %24, %46 : vector<64x64xf32>
    %65 = vector.extract_strided_slice %1 {offsets = [0, 2], sizes = [64, 1], strides = [1, 1]} : vector<64x18xf32> to vector<64x1xf32>
    %66 = vector.broadcast %65 : vector<64x1xf32> to vector<64x64xf32>
    %67 = arith.mulf %64, %66 : vector<64x64xf32>
    %68 = arith.addf %59, %67 : vector<64x64xf32>
    %69 = vector.extract_strided_slice %1 {offsets = [0, 11], sizes = [64, 1], strides = [1, 1]} : vector<64x18xf32> to vector<64x1xf32>
    %70 = vector.broadcast %69 : vector<64x1xf32> to vector<64x64xf32>
    %71 = arith.mulf %64, %70 : vector<64x64xf32>
    %72 = arith.addf %63, %71 : vector<64x64xf32>
    %73 = arith.mulf %26, %46 : vector<64x64xf32>
    %74 = vector.extract_strided_slice %1 {offsets = [0, 3], sizes = [64, 1], strides = [1, 1]} : vector<64x18xf32> to vector<64x1xf32>
    %75 = vector.broadcast %74 : vector<64x1xf32> to vector<64x64xf32>
    %76 = arith.mulf %73, %75 : vector<64x64xf32>
    %77 = arith.addf %68, %76 : vector<64x64xf32>
    %78 = vector.extract_strided_slice %1 {offsets = [0, 12], sizes = [64, 1], strides = [1, 1]} : vector<64x18xf32> to vector<64x1xf32>
    %79 = vector.broadcast %78 : vector<64x1xf32> to vector<64x64xf32>
    %80 = arith.mulf %73, %79 : vector<64x64xf32>
    %81 = arith.addf %72, %80 : vector<64x64xf32>
    %82 = arith.mulf %28, %46 : vector<64x64xf32>
    %83 = vector.extract_strided_slice %1 {offsets = [0, 4], sizes = [64, 1], strides = [1, 1]} : vector<64x18xf32> to vector<64x1xf32>
    %84 = vector.broadcast %83 : vector<64x1xf32> to vector<64x64xf32>
    %85 = arith.mulf %82, %84 : vector<64x64xf32>
    %86 = arith.addf %77, %85 : vector<64x64xf32>
    %87 = vector.extract_strided_slice %1 {offsets = [0, 13], sizes = [64, 1], strides = [1, 1]} : vector<64x18xf32> to vector<64x1xf32>
    %88 = vector.broadcast %87 : vector<64x1xf32> to vector<64x64xf32>
    %89 = arith.mulf %82, %88 : vector<64x64xf32>
    %90 = arith.addf %81, %89 : vector<64x64xf32>
    %91 = arith.mulf %30, %46 : vector<64x64xf32>
    %92 = vector.extract_strided_slice %1 {offsets = [0, 5], sizes = [64, 1], strides = [1, 1]} : vector<64x18xf32> to vector<64x1xf32>
    %93 = vector.broadcast %92 : vector<64x1xf32> to vector<64x64xf32>
    %94 = arith.mulf %91, %93 : vector<64x64xf32>
    %95 = arith.addf %86, %94 : vector<64x64xf32>
    %96 = vector.extract_strided_slice %1 {offsets = [0, 14], sizes = [64, 1], strides = [1, 1]} : vector<64x18xf32> to vector<64x1xf32>
    %97 = vector.broadcast %96 : vector<64x1xf32> to vector<64x64xf32>
    %98 = arith.mulf %91, %97 : vector<64x64xf32>
    %99 = arith.addf %90, %98 : vector<64x64xf32>
    %100 = arith.mulf %32, %46 : vector<64x64xf32>
    %101 = vector.extract_strided_slice %1 {offsets = [0, 6], sizes = [64, 1], strides = [1, 1]} : vector<64x18xf32> to vector<64x1xf32>
    %102 = vector.broadcast %101 : vector<64x1xf32> to vector<64x64xf32>
    %103 = arith.mulf %100, %102 : vector<64x64xf32>
    %104 = arith.addf %95, %103 : vector<64x64xf32>
    %105 = vector.extract_strided_slice %1 {offsets = [0, 15], sizes = [64, 1], strides = [1, 1]} : vector<64x18xf32> to vector<64x1xf32>
    %106 = vector.broadcast %105 : vector<64x1xf32> to vector<64x64xf32>
    %107 = arith.mulf %100, %106 : vector<64x64xf32>
    %108 = arith.addf %99, %107 : vector<64x64xf32>
    %109 = arith.mulf %34, %46 : vector<64x64xf32>
    %110 = vector.extract_strided_slice %1 {offsets = [0, 7], sizes = [64, 1], strides = [1, 1]} : vector<64x18xf32> to vector<64x1xf32>
    %111 = vector.broadcast %110 : vector<64x1xf32> to vector<64x64xf32>
    %112 = arith.mulf %109, %111 : vector<64x64xf32>
    %113 = arith.addf %104, %112 : vector<64x64xf32>
    %114 = vector.extract_strided_slice %1 {offsets = [0, 16], sizes = [64, 1], strides = [1, 1]} : vector<64x18xf32> to vector<64x1xf32>
    %115 = vector.broadcast %114 : vector<64x1xf32> to vector<64x64xf32>
    %116 = arith.mulf %109, %115 : vector<64x64xf32>
    %117 = arith.addf %108, %116 : vector<64x64xf32>
    %118 = arith.mulf %36, %46 : vector<64x64xf32>
    %119 = vector.extract_strided_slice %1 {offsets = [0, 8], sizes = [64, 1], strides = [1, 1]} : vector<64x18xf32> to vector<64x1xf32>
    %120 = vector.broadcast %119 : vector<64x1xf32> to vector<64x64xf32>
    %121 = arith.mulf %118, %120 : vector<64x64xf32>
    %122 = arith.addf %113, %121 : vector<64x64xf32>
    %123 = vector.extract_strided_slice %1 {offsets = [0, 17], sizes = [64, 1], strides = [1, 1]} : vector<64x18xf32> to vector<64x1xf32>
    %124 = vector.broadcast %123 : vector<64x1xf32> to vector<64x64xf32>
    %125 = arith.mulf %118, %124 : vector<64x64xf32>
    %126 = arith.addf %117, %125 : vector<64x64xf32>
    %127 = tpu.concatenate %122, %126 in 1 : vector<64x64xf32>, vector<64x64xf32> -> vector<64x128xf32>
    %c0_3 = arith.constant 0 : index
    %c0_4 = arith.constant 0 : index
    %128 = vector.load %arg3[%c0_3, %c0_4] : memref<64x128xf32, #tpu.memory_space<vmem>>, vector<64x128xf32>
    tpu.vector_store %arg3[%c0_3, %c0_4], %127 {strides = array<i32>} : memref<64x128xf32, #tpu.memory_space<vmem>>, vector<64x128xf32>,
    return
  }
  func.func @transform_0(%arg0: i32) -> (i32, i32) {
    %c0_i32 = arith.constant 0 : i32
    %c0_i32_0 = arith.constant 0 : i32
    return %arg0, %c0_i32 : i32, i32
  }
  func.func @transform_1(%arg0: i32) -> (i32, i32) {
    %c0_i32 = arith.constant 0 : i32
    %c0_i32_0 = arith.constant 0 : i32
    return %arg0, %c0_i32 : i32, i32
  }
  func.func @transform_2(%arg0: i32) -> (i32, i32) {
    %c0_i32 = arith.constant 0 : i32
    %c0_i32_0 = arith.constant 0 : i32
    return %arg0, %c0_i32 : i32, i32
  }
}

</mosaic_0001>

<bundles_post_ra>
// kernel: volraft_forward.15
= control target key start
LH: loop header
LB: loop body
LE: loop exit
PB: predicated region body
PF: predicated region fallthrough
CT: control target
= control target key end

     0   :  { %s1473_s18 = smov 0   ;;  %s1475_s19 = smov 0   ;;  %s2147_s0 = inlined_call_operand.vmem [shape: f32[2,256,128], index: 0, kind: input, shape index: {}]   ;;  %s2148_s1 = inlined_call_operand.vmem [shape: f32[2,256,128], index: 1, kind: input, shape index: {}]   ;;  %s2149_s2 = inlined_call_operand.vmem [shape: f32[2,1,128], index: 2, kind: input, shape index: {}]   ;;  %s2150_s3 = inlined_call_operand.vmem [shape: f32[2,1,128], index: 3, kind: input, shape index: {}]   ;;  %s2151_s4 = inlined_call_operand.vmem [shape: bf16[2,256,128], index: 4, kind: output, shape index: {0}]   ;;  %s2152_s5 = inlined_call_operand.vmem [shape: bf16[2,256,128], index: 5, kind: output, shape index: {1}]  }
   0x1   :  { %s1477_s20 = smov 0  }
   0x2 LB: > { %s28_s21 = sadd.s32 1, %s1437_s19  ;;  %p1060_p0 = scmp.ge.s32.totalorder %s1441_s20, 1  ;;  %s1441_s20 = sphi %s1477_s20, %s16_s20   ;;  %s1437_s19 = sphi %s1475_s19, %s2248_s19   ;;  %s1433_s18 = sphi %s1473_s18, %s2247_s18  }
   0x3   : > { %p30_p1 = scmp.ge.s32.totalorder %s28_s21, 2  ;;  %p246_p2 = scmp.lt.s32.totalorder %s1441_s20, 3 }
   0x5   : > { %s2250_s21 = smov (%p30_p1, %s28_s21), 0  ;;  %p247_p3 = pnand %p1060_p0, %p246_p2 }
   0x7   : > { %250 = sbr.rel (%p247_p3) target bundleno = 82 (0x52), region = 36 }
   0xc   : > { %p307_p4 = scmp.lt.s32.totalorder %s1433_s18, 1  ;;  %v392_v0 = vlaneseq }
   0xe   : > { %s2252_s18 = smov (!%p307_p4, %s1433_s18), 1  ;;  %v1493_v1 = vshrl.u32 %v392_v0, 7 }
   0xf   : > { %s1135_s22 = sshll.u32 %s2252_s18, 8  ;;  %s328_s25 = scalar_lea.vmem %s2149_s2, %s2252_s18 }
  0x10   : > { %v2153_v2 = vsub.s32 0, %v1493_v1  ;;  %s1506_s28 = scalar_lea.vmem %s2147_s0, %s1135_s22  ;;  %v352_v3 = vld [vmem:[%s328_s25] sm:$0x1]  ;;  %s331_s6 = scalar_lea.vmem %s2150_s3, %s2252_s18 }
  0x11   : > { %v353_v4 = vld [vmem:[%s331_s6] sm:$0x1]  ;;  %v1516_v6 = vld [vmem:[%s1506_s28 + $0x8] sm:$0xff]  ;;  %v1519_v7 = vld [vmem:[%s1506_s28 + $0x10] sm:$0xff]  ;;  %s1604_s9 = scalar_lea.vmem %s2148_s1, %s1135_s22  ;;  %s1137_s10 = sshll.u32 %s2252_s18, 7 }
  0x12   : > { %v1513_v5 = vld [vmem:[%s1506_s28] sm:$0xff]  ;;  %v354_v8 = vsub.f32 %v353_v4, %v352_v3  ;;  %v1523_v9 = vrot.slane %v352_v3, %v2153_v2  ;;  %v1526_v10 = vld [vmem:[%s1506_s28 + $0x18] sm:$0xff]  ;;  %v1532_v12 = vld [vmem:[%s1506_s28 + $0x28] sm:$0xff]  ;;  %s1859_s13 = scalar_lea.vmem %s2151_s4, %s1137_s10  ;;  %s1999_s16 = scalar_lea.vmem %s2152_s5, %s1137_s10 }
  0x13   : > { %v1529_v11 = vld [vmem:[%s1506_s28 + $0x20] sm:$0xff]  ;;  %v1535_v13 = vld [vmem:[%s1506_s28 + $0x30] sm:$0xff]  ;;  %v1538_v14 = vld [vmem:[%s1506_s28 + $0x38] sm:$0xff] }
  0x14   : > { %v1541_v15 = vld [vmem:[%s1506_s28 + $0x40] sm:$0xff]  ;;  %v1544_v16 = vld [vmem:[%s1506_s28 + $0x48] sm:$0xff]  ;;  %v1547_v17 = vld [vmem:[%s1506_s28 + $0x50] sm:$0xff]  ;;  %vm355_vm0 = vcmp.gt.f32.partialorder %v354_v8, 0.0  ;;  %v2175_v62 = vsub.f32 %v1513_v5, %v1523_v9  ;;  %v2179_v5 = vsub.f32 %v1529_v11, %v1523_v9 }
  0x15   : > { %v1550_v18 = vld [vmem:[%s1506_s28 + $0x58] sm:$0xff]  ;;  %v1553_v19 = vld [vmem:[%s1506_s28 + $0x60] sm:$0xff]  ;;  %v1556_v20 = vld [vmem:[%s1506_s28 + $0x68] sm:$0xff]  ;;  %v356_v21 = vsel %vm355_vm0, %v354_v8, 1.0 }
  0x16   : > { %v1559_v22 = vld [vmem:[%s1506_s28 + $0x70] sm:$0xff]  ;;  %v1562_v23 = vld [vmem:[%s1506_s28 + $0x78] sm:$0xff]  ;;  %v1565_v24 = vld [vmem:[%s1506_s28 + $0x80] sm:$0xff]  ;;  %1417 = vrcp.f32 %v356_v21 }
  0x17   : > { %v1574_v28 = vld [vmem:[%s1506_s28 + $0x88] sm:$0xff]  ;;  %v1577_v29 = vld [vmem:[%s1506_s28 + $0x90] sm:$0xff]  ;;  %v1580_v30 = vld [vmem:[%s1506_s28 + $0x98] sm:$0xff] }
  0x18   : > { %v1591_v35 = vld [vmem:[%s1506_s28 + $0xa0] sm:$0xff]  ;;  %v1594_v36 = vld [vmem:[%s1506_s28 + $0xa8] sm:$0xff]  ;;  %v1597_v37 = vld [vmem:[%s1506_s28 + $0xb0] sm:$0xff] }
  0x19   : > { %v1615_v42 = vld [vmem:[%s1506_s28 + $0xb8] sm:$0xff]  ;;  %v1618_v43 = vld [vmem:[%s1506_s28 + $0xc0] sm:$0xff]  ;;  %v1621_v44 = vld [vmem:[%s1506_s28 + $0xc8] sm:$0xff] }
  0x1a   : > { %v1632_v49 = vld [vmem:[%s1506_s28 + $0xd0] sm:$0xff]  ;;  %v1635_v50 = vld [vmem:[%s1506_s28 + $0xd8] sm:$0xff]  ;;  %v1638_v51 = vld [vmem:[%s1506_s28 + $0xe0] sm:$0xff] }
  0x1b   : > { %v1649_v56 = vld [vmem:[%s1506_s28 + $0xe8] sm:$0xff]  ;;  %v1652_v57 = vld [vmem:[%s1506_s28 + $0xf0] sm:$0xff]  ;;  %v1655_v58 = vld [vmem:[%s1506_s28 + $0xf8] sm:$0xff] }
  0x1c   : > { %v1666_v63 = vld [vmem:[%s1604_s9] sm:$0xff]  ;;  %v1669_v0 = vld [vmem:[%s1604_s9 + $0x8] sm:$0xff]  ;;  %v1672_v3 = vld [vmem:[%s1604_s9 + $0x10] sm:$0xff] }
  0x1d   : > { %v1683_v61 = vld [vmem:[%s1604_s9 + $0x18] sm:$0xff]  ;;  %v1686_v60 = vld [vmem:[%s1604_s9 + $0x20] sm:$0xff]  ;;  %v1689_v59 = vld [vmem:[%s1604_s9 + $0x28] sm:$0xff] }
  0x1e   : > { %v1700_v55 = vld [vmem:[%s1604_s9 + $0x30] sm:$0xff]  ;;  %v1703_v54 = vld [vmem:[%s1604_s9 + $0x38] sm:$0xff]  ;;  %v1706_v53 = vld [vmem:[%s1604_s9 + $0x40] sm:$0xff] }
  0x1f   : > { %v1717_v52 = vld [vmem:[%s1604_s9 + $0x48] sm:$0xff]  ;;  %v1720_v48 = vld [vmem:[%s1604_s9 + $0x50] sm:$0xff]  ;;  %v1723_v47 = vld [vmem:[%s1604_s9 + $0x58] sm:$0xff] }
  0x20   : > { %v1734_v46 = vld [vmem:[%s1604_s9 + $0x60] sm:$0xff]  ;;  %v1737_v45 = vld [vmem:[%s1604_s9 + $0x68] sm:$0xff]  ;;  %v1740_v41 = vld [vmem:[%s1604_s9 + $0x70] sm:$0xff] }
  0x21   : > { %v1751_v40 = vld [vmem:[%s1604_s9 + $0x78] sm:$0xff]  ;;  %v1754_v39 = vld [vmem:[%s1604_s9 + $0x80] sm:$0xff]  ;;  %v1757_v38 = vld [vmem:[%s1604_s9 + $0x88] sm:$0xff] }
  0x22   : > { %2164 = vst [vmem:[#allocation2_spill] sm:$0xff] %v1754_v39  ;;  %2165 = vst [vmem:[#allocation3_spill] sm:$0xff] %v1757_v38  ;;  %v1768_v34 = vld [vmem:[%s1604_s9 + $0x90] sm:$0xff]  ;;  %v1771_v33 = vld [vmem:[%s1604_s9 + $0x98] sm:$0xff]  ;;  %v2172_v39 = vsub.s32 0, %v1493_v1  ;;  %v2177_v1 = vsub.f32 %v1519_v7, %v1523_v9  ;;  %v2180_v7 = vsub.f32 %v1532_v12, %v1523_v9 }
  0x23   : > { %2166 = vst [vmem:[#allocation4_spill] sm:$0xff] %v1768_v34  ;;  %v1774_v32 = vld [vmem:[%s1604_s9 + $0xa0] sm:$0xff]  ;;  %v1785_v31 = vld [vmem:[%s1604_s9 + $0xa8] sm:$0xff]  ;;  %v1788_v27 = vld [vmem:[%s1604_s9 + $0xb0] sm:$0xff]  ;;  %v1418_v25 = vpop.eup %1417 }
  0x24   : > { %2167 = vst [vmem:[#allocation5_spill] sm:$0xff] %v1774_v32  ;;  %2168 = vst [vmem:[#allocation6_spill] sm:$0xff] %v1785_v31  ;;  %v1791_v26 = vld [vmem:[%s1604_s9 + $0xb8] sm:$0xff]  ;;  %v1802_v2 = vld [vmem:[%s1604_s9 + $0xc0] sm:$0xff]  ;;  %v1813_v4 = vrot.slane %v1418_v25, %v2172_v39  ;;  %v2178_v39 = vsub.f32 %v1526_v10, %v1523_v9 }
  0x25   : > { %2169 = vst [vmem:[#allocation7_spill] sm:$0xff] %v1788_v27  ;;  %2170 = vst [vmem:[#allocation8_spill] sm:$0xff] %v1802_v2  ;;  %v1805_v34 = vld [vmem:[%s1604_s9 + $0xc8] sm:$0xff]  ;;  %v1808_v38 = vld [vmem:[%s1604_s9 + $0xd0] sm:$0xff] }
  0x26   : > { %2171 = vst [vmem:[#allocation9_spill] sm:$0xff] %v1805_v34  ;;  %v1822_v27 = vld [vmem:[%s1604_s9 + $0xd8] sm:$0xff]  ;;  %v1825_v31 = vld [vmem:[%s1604_s9 + $0xe0] sm:$0xff]  ;;  %v1828_v32 = vld [vmem:[%s1604_s9 + $0xe8] sm:$0xff]  ;;  %v435_v8 = vmul.f32 %v1813_v4, %v2175_v62  ;;  %v2176_v34 = vsub.f32 %v1516_v6, %v1523_v9  ;;  %v437_v25 = vmul.f32 %v1813_v4, %v2177_v1  ;;  %v438_v21 = vmul.f32 %v1813_v4, %v2178_v39 }
  0x27   : > { %2173 = vst [vmem:[#allocation10_spill] sm:$0xff] %v1825_v31  ;;  %2174 = vst [vmem:[#allocation11_spill] sm:$0xff] %v1828_v32  ;;  %v439_v6 = vmul.f32 %v1813_v4, %v2179_v5  ;;  %v440_v10 = vmul.f32 %v1813_v4, %v2180_v7  ;;  %v2182_v1 = vsub.f32 %v1538_v14, %v1523_v9 }
  0x28   : > { %v436_v2 = vmul.f32 %v1813_v4, %v2176_v34  ;;  %v2181_v34 = vsub.f32 %v1535_v13, %v1523_v9  ;;  %v1211_v32 = vpack.c.bf16 %v438_v21, %v437_v25  ;;  %v2183_v5 = vsub.f32 %v1541_v15, %v1523_v9 }
  0x29   : > { %v442_v11 = vmul.f32 %v1813_v4, %v2182_v1  ;;  %v2184_v7 = vsub.f32 %v1544_v16, %v1523_v9  ;;  %v2185_v14 = vsub.f32 %v1547_v17, %v1523_v9  ;;  %v2187_v16 = vsub.f32 %v1553_v19, %v1523_v9 }
  0x2a   : > { %v441_v62 = vmul.f32 %v1813_v4, %v2181_v34  ;;  %v1206_v39 = vpack.c.bf16 %v436_v2, %v435_v8  ;;  %v443_v12 = vmul.f32 %v1813_v4, %v2183_v5  ;;  %v1216_v34 = vpack.c.bf16 %v440_v10, %v439_v6  ;;  %1363 = vst [vmem:[%s1859_s13 + $0x8] sm:$0xff] %v1211_v32  }
  0x2b   : > { %v444_v13 = vmul.f32 %v1813_v4, %v2184_v7  ;;  %v445_v1 = vmul.f32 %v1813_v4, %v2185_v14  ;;  %v2186_v2 = vsub.f32 %v1550_v18, %v1523_v9  ;;  %v447_v21 = vmul.f32 %v1813_v4, %v2187_v16 }
  0x2c   : > { %v1221_v31 = vpack.c.bf16 %v442_v11, %v441_v62  ;;  %1207 = vst [vmem:[%s1859_s13] sm:$0xff] %v1206_v39   ;;  %v2188_v25 = vsub.f32 %v1556_v20, %v1523_v9  ;;  %v2189_v6 = vsub.f32 %v1559_v22, %v1523_v9  ;;  %1364 = vst [vmem:[%s1859_s13 + $0x10] sm:$0xff] %v1216_v34  }
  0x2d   : > { %v446_v15 = vmul.f32 %v1813_v4, %v2186_v2  ;;  %v1226_v8 = vpack.c.bf16 %v444_v13, %v443_v12  ;;  %v2190_v10 = vsub.f32 %v1562_v23, %v1523_v9  ;;  %v2191_v62 = vsub.f32 %v1565_v24, %v1523_v9 }
  0x2e   : > { %v448_v17 = vmul.f32 %v1813_v4, %v2188_v25  ;;  %v449_v18 = vmul.f32 %v1813_v4, %v2189_v6  ;;  %1365 = vst [vmem:[%s1859_s13 + $0x18] sm:$0xff] %v1221_v31   ;;  %v2192_v11 = vsub.f32 %v1574_v28, %v1523_v9  ;;  %v2193_v39 = vsub.f32 %v1577_v29, %v1523_v9 }
  0x2f   : > { %v1231_v32 = vpack.c.bf16 %v446_v15, %v445_v1  ;;  %v450_v19 = vmul.f32 %v1813_v4, %v2190_v10  ;;  %v451_v20 = vmul.f32 %v1813_v4, %v2191_v62  ;;  %1366 = vst [vmem:[%s1859_s13 + $0x20] sm:$0xff] %v1226_v8   ;;  %v2194_v5 = vsub.f32 %v1580_v30, %v1523_v9 }
  0x30   : > { %v452_v22 = vmul.f32 %v1813_v4, %v2192_v11  ;;  %v1236_v31 = vpack.c.bf16 %v448_v17, %v447_v21  ;;  %v453_v23 = vmul.f32 %v1813_v4, %v2193_v39  ;;  %v2195_v12 = vsub.f32 %v1591_v35, %v1523_v9 }
  0x31   : > { %v454_v24 = vmul.f32 %v1813_v4, %v2194_v5  ;;  %1367 = vst [vmem:[%s1859_s13 + $0x28] sm:$0xff] %v1231_v32   ;;  %v1241_v7 = vpack.c.bf16 %v450_v19, %v449_v18  ;;  %v2196_v34 = vsub.f32 %v1594_v36, %v1523_v9  ;;  %v2197_v14 = vsub.f32 %v1597_v37, %v1523_v9 }
  0x32   : > { %v455_v28 = vmul.f32 %v1813_v4, %v2195_v12  ;;  %v1246_v13 = vpack.c.bf16 %v452_v22, %v451_v20  ;;  %1368 = vst [vmem:[%s1859_s13 + $0x30] sm:$0xff] %v1236_v31   ;;  %v2198_v35 = vsub.f32 %v1615_v42, %v1523_v9  ;;  %v2199_v15 = vsub.f32 %v1618_v43, %v1523_v9 }
  0x33   : > { %v456_v29 = vmul.f32 %v1813_v4, %v2196_v34  ;;  %v457_v30 = vmul.f32 %v1813_v4, %v2197_v14  ;;  %v1251_v1 = vpack.c.bf16 %v454_v24, %v453_v23  ;;  %v2200_v8 = vsub.f32 %v1621_v44, %v1523_v9  ;;  %1369 = vst [vmem:[%s1859_s13 + $0x38] sm:$0xff] %v1241_v7  }
  0x34   : > { %v458_v2 = vmul.f32 %v1813_v4, %v2198_v35  ;;  %v459_v36 = vmul.f32 %v1813_v4, %v2199_v15  ;;  %1370 = vst [vmem:[%s1859_s13 + $0x40] sm:$0xff] %v1246_v13   ;;  %v2201_v42 = vsub.f32 %v1632_v49, %v1523_v9  ;;  %v2202_v43 = vsub.f32 %v1635_v50, %v1523_v9 }
  0x35   : > { %v460_v37 = vmul.f32 %v1813_v4, %v2200_v8  ;;  %v1256_v16 = vpack.c.bf16 %v456_v29, %v455_v28  ;;  %v2203_v44 = vsub.f32 %v1638_v51, %v1523_v9  ;;  %1371 = vst [vmem:[%s1859_s13 + $0x48] sm:$0xff] %v1251_v1   ;;  %v2204_v49 = vsub.f32 %v1649_v56, %v1523_v9 }
  0x36   : > { %v461_v21 = vmul.f32 %v1813_v4, %v2201_v42  ;;  %v462_v25 = vmul.f32 %v1813_v4, %v2202_v43  ;;  %v1261_v6 = vpack.c.bf16 %v458_v2, %v457_v30  ;;  %v2205_v50 = vsub.f32 %v1652_v57, %v1523_v9  ;;  %v2223_v42 = vld [vmem:[#allocation2_spill] sm:$0xff]  ;;  %v2225_v43 = vld [vmem:[#allocation3_spill] sm:$0xff] }
  0x37   : > { %v463_v17 = vmul.f32 %v1813_v4, %v2203_v44  ;;  %v1266_v18 = vpack.c.bf16 %v460_v37, %v459_v36  ;;  %v464_v32 = vmul.f32 %v1813_v4, %v2204_v49  ;;  %1372 = vst [vmem:[%s1859_s13 + $0x50] sm:$0xff] %v1256_v16   ;;  %v2206_v51 = vsub.f32 %v1655_v58, %v1523_v9 }
  0x38   : > { %v465_v10 = vmul.f32 %v1813_v4, %v2205_v50  ;;  %v1271_v19 = vpack.c.bf16 %v462_v25, %v461_v21  ;;  %v2207_v20 = vsub.f32 %v1666_v63, %v1523_v9  ;;  %v2208_v11 = vsub.f32 %v1669_v0, %v1523_v9  ;;  %1373 = vst [vmem:[%s1859_s13 + $0x58] sm:$0xff] %v1261_v6  }
  0x39   : > { %v466_v62 = vmul.f32 %v1813_v4, %v2206_v51  ;;  %1374 = vst [vmem:[%s1859_s13 + $0x60] sm:$0xff] %v1266_v18   ;;  %v1276_v22 = vpack.c.bf16 %v464_v32, %v463_v17  ;;  %v2209_v58 = vsub.f32 %v1672_v3, %v1523_v9  ;;  %v2210_v0 = vsub.f32 %v1683_v61, %v1523_v9  ;;  %v2227_v17 = vld [vmem:[#allocation4_spill] sm:$0xff]  ;;  %v2230_v32 = vld [vmem:[#allocation5_spill] sm:$0xff] }
  0x3a   : > { %v691_v56 = vmul.f32 %v2207_v20, %v1813_v4  ;;  %v692_v57 = vmul.f32 %v2208_v11, %v1813_v4  ;;  %v2211_v39 = vsub.f32 %v1686_v60, %v1523_v9  ;;  %1375 = vst [vmem:[%s1859_s13 + $0x68] sm:$0xff] %v1271_v19   ;;  %v2212_v3 = vsub.f32 %v1689_v59, %v1523_v9  ;;  %v2234_v11 = vld [vmem:[#allocation7_spill] sm:$0xff] }
  0x3b   : > { %v693_v63 = vmul.f32 %v2209_v58, %v1813_v4  ;;  %v694_v31 = vmul.f32 %v2210_v0, %v1813_v4  ;;  %v1281_v5 = vpack.c.bf16 %v466_v62, %v465_v10  ;;  %v2213_v28 = vsub.f32 %v1700_v55, %v1523_v9  ;;  %1376 = vst [vmem:[%s1859_s13 + $0x70] sm:$0xff] %v1276_v22   ;;  %v2232_v62 = vld [vmem:[#allocation6_spill] sm:$0xff]  ;;  %v657_v22 = vld [vmem:[%s1604_s9 + $0xf0] sm:$0xff] }
  0x3c   : > { %v695_v23 = vmul.f32 %v2211_v39, %v1813_v4  ;;  %v1286_v24 = vpack.c.bf16 %v692_v57, %v691_v56  ;;  %v696_v12 = vmul.f32 %v2212_v3, %v1813_v4  ;;  %v2214_v60 = vsub.f32 %v1703_v54, %v1523_v9 }
  0x3d   : > { %v697_v61 = vmul.f32 %v2213_v28, %v1813_v4  ;;  %v1291_v7 = vpack.c.bf16 %v694_v31, %v693_v63  ;;  %v2215_v34 = vsub.f32 %v1706_v53, %v1523_v9  ;;  %v2216_v59 = vsub.f32 %v1717_v52, %v1523_v9  ;;  %1377 = vst [vmem:[%s1859_s13 + $0x78] sm:$0xff] %v1281_v5   ;;  %v2237_v31 = vld [vmem:[#allocation8_spill] sm:$0xff]  ;;  %v2239_v5 = vld [vmem:[#allocation9_spill] sm:$0xff] }
  0x3e   : > { %v698_v13 = vmul.f32 %v2214_v60, %v1813_v4  ;;  %1287 = vst [vmem:[%s1999_s16] sm:$0xff] %v1286_v24   ;;  %v1296_v55 = vpack.c.bf16 %v696_v12, %v695_v23  ;;  %v2217_v54 = vsub.f32 %v1720_v48, %v1523_v9  ;;  %v2218_v53 = vsub.f32 %v1723_v47, %v1523_v9  ;;  %v658_v12 = vld [vmem:[%s1604_s9 + $0xf8] sm:$0xff] }
  0x3f   : > { %v699_v29 = vmul.f32 %v2215_v34, %v1813_v4  ;;  %v700_v14 = vmul.f32 %v2216_v59, %v1813_v4  ;;  %v2219_v52 = vsub.f32 %v1734_v46, %v1523_v9  ;;  %1378 = vst [vmem:[%s1999_s16 + $0x8] sm:$0xff] %v1291_v7   ;;  %v2220_v36 = vsub.f32 %v1737_v45, %v1523_v9 }
  0x40   : > { %v701_v30 = vmul.f32 %v2217_v54, %v1813_v4  ;;  %v702_v1 = vmul.f32 %v2218_v53, %v1813_v4  ;;  %v1301_v2 = vpack.c.bf16 %v698_v13, %v697_v61  ;;  %v2221_v8 = vsub.f32 %v1740_v41, %v1523_v9  ;;  %1379 = vst [vmem:[%s1999_s16 + $0x10] sm:$0xff] %v1296_v55   ;;  %v2243_v13 = vld [vmem:[#allocation10_spill] sm:$0xff]  ;;  %v2245_v55 = vld [vmem:[#allocation11_spill] sm:$0xff] }
  0x41   : > { %v703_v35 = vmul.f32 %v2219_v52, %v1813_v4  ;;  %v1306_v15 = vpack.c.bf16 %v700_v14, %v699_v29  ;;  %v704_v48 = vmul.f32 %v2220_v36, %v1813_v4  ;;  %v2222_v46 = vsub.f32 %v1751_v40, %v1523_v9 }
  0x42   : > { %v705_v47 = vmul.f32 %v2221_v8, %v1813_v4  ;;  %v1311_v37 = vpack.c.bf16 %v702_v1, %v701_v30  ;;  %v2224_v21 = vsub.f32 %v2223_v42, %v1523_v9  ;;  %v2226_v25 = vsub.f32 %v2225_v43, %v1523_v9  ;;  %1380 = vst [vmem:[%s1999_s16 + $0x18] sm:$0xff] %v1301_v2  }
  0x43   : > { %v706_v16 = vmul.f32 %v2222_v46, %v1813_v4  ;;  %1381 = vst [vmem:[%s1999_s16 + $0x20] sm:$0xff] %v1306_v15   ;;  %v1316_v44 = vpack.c.bf16 %v704_v48, %v703_v35  ;;  %v2228_v40 = vsub.f32 %v2227_v17, %v1523_v9  ;;  %v2229_v18 = vsub.f32 %v1771_v33, %v1523_v9 }
  0x44   : > { %v707_v45 = vmul.f32 %v2224_v21, %v1813_v4  ;;  %v708_v41 = vmul.f32 %v2226_v25, %v1813_v4  ;;  %v2231_v50 = vsub.f32 %v2230_v32, %v1523_v9  ;;  %1382 = vst [vmem:[%s1999_s16 + $0x28] sm:$0xff] %v1311_v37   ;;  %v2233_v20 = vsub.f32 %v2232_v62, %v1523_v9 }
  0x45   : > { %v709_v6 = vmul.f32 %v2228_v40, %v1813_v4  ;;  %v710_v49 = vmul.f32 %v2229_v18, %v1813_v4  ;;  %v1321_v19 = vpack.c.bf16 %v706_v16, %v705_v47  ;;  %v2235_v33 = vsub.f32 %v2234_v11, %v1523_v9  ;;  %1383 = vst [vmem:[%s1999_s16 + $0x30] sm:$0xff] %v1316_v44  }
  0x46   : > { %v711_v10 = vmul.f32 %v2231_v50, %v1813_v4  ;;  %v1326_v51 = vpack.c.bf16 %v708_v41, %v707_v45  ;;  %v712_v56 = vmul.f32 %v2233_v20, %v1813_v4  ;;  %v2236_v63 = vsub.f32 %v1791_v26, %v1523_v9 }
  0x47   : > { %v713_v57 = vmul.f32 %v2235_v33, %v1813_v4  ;;  %v1331_v58 = vpack.c.bf16 %v710_v49, %v709_v6  ;;  %v2238_v39 = vsub.f32 %v2237_v31, %v1523_v9  ;;  %v2240_v24 = vsub.f32 %v2239_v5, %v1523_v9  ;;  %1384 = vst [vmem:[%s1999_s16 + $0x38] sm:$0xff] %v1321_v19  }
  0x48   : > { %v714_v0 = vmul.f32 %v2236_v63, %v1813_v4  ;;  %1385 = vst [vmem:[%s1999_s16 + $0x40] sm:$0xff] %v1326_v51   ;;  %v1336_v28 = vpack.c.bf16 %v712_v56, %v711_v10  ;;  %v2241_v26 = vsub.f32 %v1808_v38, %v1523_v9  ;;  %v2242_v7 = vsub.f32 %v1822_v27, %v1523_v9 }
  0x49   : > { %v715_v23 = vmul.f32 %v2238_v39, %v1813_v4  ;;  %v716_v3 = vmul.f32 %v2240_v24, %v1813_v4  ;;  %v2244_v34 = vsub.f32 %v2243_v13, %v1523_v9  ;;  %1386 = vst [vmem:[%s1999_s16 + $0x48] sm:$0xff] %v1331_v58   ;;  %v2246_v38 = vsub.f32 %v2245_v55, %v1523_v9 }
  0x4a   : > { %v717_v61 = vmul.f32 %v2241_v26, %v1813_v4  ;;  %v718_v60 = vmul.f32 %v2242_v7, %v1813_v4  ;;  %v1341_v59 = vpack.c.bf16 %v714_v0, %v713_v57  ;;  %v689_v30 = vsub.f32 %v657_v22, %v1523_v9  ;;  %1387 = vst [vmem:[%s1999_s16 + $0x50] sm:$0xff] %v1336_v28  }
  0x4b   : > { %v719_v29 = vmul.f32 %v2244_v34, %v1813_v4  ;;  %v1346_v14 = vpack.c.bf16 %v716_v3, %v715_v23  ;;  %v720_v54 = vmul.f32 %v2246_v38, %v1813_v4  ;;  %v690_v53 = vsub.f32 %v658_v12, %v1523_v9 }
  0x4c   : > { %v1351_v27 = vpack.c.bf16 %v718_v60, %v717_v61  ;;  %1388 = vst [vmem:[%s1999_s16 + $0x58] sm:$0xff] %v1341_v59   ;;  %v721_v52 = vmul.f32 %v689_v30, %v1813_v4 }
  0x4d   : > { %1389 = vst [vmem:[%s1999_s16 + $0x60] sm:$0xff] %v1346_v14   ;;  %v1356_v1 = vpack.c.bf16 %v720_v54, %v719_v29  ;;  %v722_v35 = vmul.f32 %v690_v53, %v1813_v4 }
  0x4e   : > { %1390 = vst [vmem:[%s1999_s16 + $0x68] sm:$0xff] %v1351_v27  }
  0x4f   : > { %1391 = vst [vmem:[%s1999_s16 + $0x70] sm:$0xff] %v1356_v1   ;;  %v1361_v2 = vpack.c.bf16 %v722_v35, %v721_v52 }
  0x51   : > { %1392 = vst [vmem:[%s1999_s16 + $0x78] sm:$0xff] %v1361_v2  }
  0x52 PF: > { %s16_s20 = sadd.s32 1, %s1441_s20   ;;  %s2247_s18 = smov %s1437_s19 }
  0x53   : > { %p13_p5 = scmp.ge.s32.totalorder %s16_s20, 4   ;;  %s2248_s19 = smov %s2250_s21 }
  0x55   :  { %15 = sbr.rel (!%p13_p5) target bundleno = 2 (0x2), region = 87 }

// kernel: volraft_forward.14
= control target key start
LH: loop header
LB: loop body
LE: loop exit
PB: predicated region body
PF: predicated region fallthrough
CT: control target
= control target key end

     0   :  { %s689_s12 = smov 0   ;;  %s691_s13 = smov 0   ;;  %s964_s0 = inlined_call_operand.vmem [shape: f32[2,256,128], index: 0, kind: input, shape index: {}]   ;;  %s965_s1 = inlined_call_operand.vmem [shape: f32[2,256,128], index: 1, kind: input, shape index: {}]   ;;  %s966_s2 = inlined_call_operand.vmem [shape: f32[2,1,128], index: 2, kind: output, shape index: {0}]   ;;  %s967_s3 = inlined_call_operand.vmem [shape: f32[2,1,128], index: 3, kind: output, shape index: {1}]  }
   0x1   :  { %s693_s14 = smov 0  }
   0x2 LB: > { %s26_s15 = sadd.s32 1, %s663_s13  ;;  %p608_p0 = scmp.ge.s32.totalorder %s667_s14, 1  ;;  %s667_s14 = sphi %s693_s14, %s14_s14   ;;  %s663_s13 = sphi %s691_s13, %s975_s13   ;;  %s659_s12 = sphi %s689_s12, %s974_s12  }
   0x3   : > { %p28_p1 = scmp.ge.s32.totalorder %s26_s15, 2  ;;  %p176_p2 = scmp.lt.s32.totalorder %s667_s14, 3 }
   0x5   : > { %s977_s15 = smov (%p28_p1, %s26_s15), 0  ;;  %p177_p3 = pnand %p608_p0, %p176_p2 }
   0x7   : > { %180 = sbr.rel (%p177_p3) target bundleno = 310 (0x136), region = 28 }
   0xc   : > { %p215_p4 = scmp.lt.s32.totalorder %s659_s12, 1  ;;  %vm474_vm0 = vcmask 1040384  }
   0xe   : > { %s979_s12 = smov (!%p215_p4, %s659_s12), 1 }
   0xf   : > { %s615_s16 = sshll.u32 %s979_s12, 8  ;;  %s920_s25 = scalar_lea.vmem %s966_s2, %s979_s12 }
  0x10   : > { %s715_s19 = scalar_lea.vmem %s964_s0, %s615_s16  ;;  %s791_s22 = scalar_lea.vmem %s965_s1, %s615_s16 }
  0x11   : > { %v718_v0 = vld [vmem:[%s715_s19] sm:$0xff]  ;;  %v721_v1 = vld [vmem:[%s715_s19 + $0x8] sm:$0xff]  ;;  %v724_v2 = vld [vmem:[%s715_s19 + $0x10] sm:$0xff]  ;;  %s239_s28 = scalar_lea.vmem %s967_s3, %s979_s12 }
  0x12   : > { %v727_v3 = vld [vmem:[%s715_s19 + $0x18] sm:$0xff]  ;;  %v730_v4 = vld [vmem:[%s715_s19 + $0x20] sm:$0xff]  ;;  %v733_v5 = vld [vmem:[%s715_s19 + $0x28] sm:$0xff] }
  0x13   : > { %v736_v6 = vld [vmem:[%s715_s19 + $0x30] sm:$0xff]  ;;  %v739_v7 = vld [vmem:[%s715_s19 + $0x38] sm:$0xff]  ;;  %v248_v8 = vld [vmem:[%s715_s19 + $0x40] sm:$0xff]  ;;  %v304_v9 = vmin.f32 %v718_v0, %v730_v4  ;;  %v305_v10 = vmin.f32 %v721_v1, %v733_v5 }
  0x14   : > { %v249_v11 = vld [vmem:[%s715_s19 + $0x48] sm:$0xff]  ;;  %v250_v12 = vld [vmem:[%s715_s19 + $0x50] sm:$0xff]  ;;  %v306_v13 = vmin.f32 %v724_v2, %v736_v6  ;;  %v307_v14 = vmin.f32 %v727_v3, %v739_v7  ;;  %v251_v16 = vld [vmem:[%s715_s19 + $0x58] sm:$0xff] }
  0x15   : > { %v383_v15 = vmax.f32 %v249_v11, %v248_v8  ;;  %v308_v17 = vmin.f32 %v304_v9, %v248_v8  ;;  %v309_v18 = vmin.f32 %v305_v10, %v249_v11  ;;  %v252_v19 = vld [vmem:[%s715_s19 + $0x60] sm:$0xff]  ;;  %v253_v20 = vld [vmem:[%s715_s19 + $0x68] sm:$0xff]  ;;  %v254_v21 = vld [vmem:[%s715_s19 + $0x70] sm:$0xff] }
  0x16   : > { %v310_v22 = vmin.f32 %v306_v13, %v250_v12  ;;  %v311_v23 = vmin.f32 %v307_v14, %v251_v16  ;;  %v757_v25 = vld [vmem:[%s715_s19 + $0x78] sm:$0xff]  ;;  %v760_v26 = vld [vmem:[%s715_s19 + $0x80] sm:$0xff]  ;;  %v763_v27 = vld [vmem:[%s715_s19 + $0x88] sm:$0xff] }
  0x17   : > { %v384_v24 = vmax.f32 %v250_v12, %v383_v15  ;;  %v312_v28 = vmin.f32 %v308_v17, %v252_v19  ;;  %v313_v29 = vmin.f32 %v309_v18, %v253_v20  ;;  %v766_v30 = vld [vmem:[%s715_s19 + $0x90] sm:$0xff]  ;;  %v769_v31 = vld [vmem:[%s715_s19 + $0x98] sm:$0xff]  ;;  %v772_v32 = vld [vmem:[%s715_s19 + $0xa0] sm:$0xff] }
  0x18   : > { %v314_v33 = vmin.f32 %v310_v22, %v254_v21  ;;  %v315_v34 = vmin.f32 %v311_v23, %v757_v25  ;;  %v776_v36 = vld [vmem:[%s715_s19 + $0xa8] sm:$0xff]  ;;  %v779_v37 = vld [vmem:[%s715_s19 + $0xb0] sm:$0xff]  ;;  %v782_v38 = vld [vmem:[%s715_s19 + $0xb8] sm:$0xff] }
  0x19   : > { %v385_v35 = vmax.f32 %v251_v16, %v384_v24  ;;  %v316_v39 = vmin.f32 %v312_v28, %v760_v26  ;;  %v317_v40 = vmin.f32 %v313_v29, %v763_v27  ;;  %v794_v41 = vld [vmem:[%s715_s19 + $0xc0] sm:$0xff]  ;;  %v797_v42 = vld [vmem:[%s715_s19 + $0xc8] sm:$0xff]  ;;  %v800_v43 = vld [vmem:[%s715_s19 + $0xd8] sm:$0xff] }
  0x1a   : > { %v803_v44 = vld [vmem:[%s715_s19 + $0xe0] sm:$0xff]  ;;  %v806_v45 = vld [vmem:[%s715_s19 + $0xe8] sm:$0xff]  ;;  %v318_v46 = vmin.f32 %v314_v33, %v766_v30  ;;  %v319_v47 = vmin.f32 %v315_v34, %v769_v31  ;;  %v811_v49 = vld [vmem:[%s715_s19 + $0xd0] sm:$0xff] }
  0x1b   : > { %v386_v48 = vmax.f32 %v252_v19, %v385_v35  ;;  %v814_v50 = vld [vmem:[%s715_s19 + $0xf0] sm:$0xff]  ;;  %v817_v51 = vld [vmem:[%s715_s19 + $0xf8] sm:$0xff]  ;;  %v820_v52 = vld [vmem:[%s791_s22] sm:$0xff]  ;;  %v320_v53 = vmin.f32 %v316_v39, %v772_v32  ;;  %v321_v54 = vmin.f32 %v317_v40, %v776_v36 }
  0x1c   : > { %v825_v55 = vld [vmem:[%s791_s22 + $0x8] sm:$0xff]  ;;  %v828_v56 = vld [vmem:[%s791_s22 + $0x10] sm:$0xff]  ;;  %v831_v57 = vld [vmem:[%s791_s22 + $0x18] sm:$0xff]  ;;  %v322_v58 = vmin.f32 %v318_v46, %v779_v37  ;;  %v323_v59 = vmin.f32 %v319_v47, %v782_v38 }
  0x1d   : > { %970 = vst [vmem:[#allocation2_spill] sm:$0xff] %v831_v57  ;;  %v387_v60 = vmax.f32 %v253_v20, %v386_v48  ;;  %v836_v61 = vld [vmem:[%s791_s22 + $0x20] sm:$0xff]  ;;  %v839_v62 = vld [vmem:[%s791_s22 + $0x28] sm:$0xff]  ;;  %v842_v63 = vld [vmem:[%s791_s22 + $0x30] sm:$0xff]  ;;  %v324_v8 = vmin.f32 %v320_v53, %v794_v41  ;;  %v325_v9 = vmin.f32 %v321_v54, %v797_v42 }
  0x1e   : > { %v847_v10 = vld [vmem:[%s791_s22 + $0x38] sm:$0xff]  ;;  %v280_v11 = vld [vmem:[%s791_s22 + $0x40] sm:$0xff]  ;;  %v281_v12 = vld [vmem:[%s791_s22 + $0x48] sm:$0xff]  ;;  %v326_v13 = vmin.f32 %v322_v58, %v811_v49  ;;  %v327_v14 = vmin.f32 %v323_v59, %v800_v43  ;;  %v341_v15 = vmin.f32 %v820_v52, %v836_v61  ;;  %v342_v16 = vmin.f32 %v825_v55, %v839_v62 }
  0x1f   : > { %971 = vst [vmem:[#allocation3_spill] sm:$0xff] %v847_v10  ;;  %v388_v17 = vmax.f32 %v254_v21, %v387_v60  ;;  %v420_v18 = vmax.f32 %v281_v12, %v280_v11  ;;  %v282_v19 = vld [vmem:[%s791_s22 + $0x50] sm:$0xff]  ;;  %v328_v20 = vmin.f32 %v324_v8, %v803_v44  ;;  %v329_v22 = vmin.f32 %v325_v9, %v806_v45  ;;  %v283_v23 = vld [vmem:[%s791_s22 + $0x58] sm:$0xff]  ;;  %v284_v40 = vld [vmem:[%s791_s22 + $0x60] sm:$0xff] }
  0x20   : > { %v330_v24 = vmin.f32 %v326_v13, %v814_v50  ;;  %v331_v28 = vmin.f32 %v327_v14, %v817_v51  ;;  %v343_v29 = vmin.f32 %v828_v56, %v842_v63  ;;  %v344_v21 = vmin.f32 %v831_v57, %v847_v10  ;;  %v285_v59 = vld [vmem:[%s791_s22 + $0x68] sm:$0xff]  ;;  %v286_v60 = vld [vmem:[%s791_s22 + $0x70] sm:$0xff]  ;;  %v288_v9 = vld [vmem:[%s791_s22 + $0x80] sm:$0xff] }
  0x21   : > { %v389_v33 = vmax.f32 %v757_v25, %v388_v17  ;;  %v421_v34 = vmax.f32 %v282_v19, %v420_v18  ;;  %v332_v35 = vmin.f32 %v328_v20, %v329_v22  ;;  %v345_v39 = vmin.f32 %v341_v15, %v280_v11  ;;  %v287_v25 = vld [vmem:[%s791_s22 + $0x78] sm:$0xff]  ;;  %v290_v17 = vld [vmem:[%s791_s22 + $0x90] sm:$0xff]  ;;  %v292_v20 = vld [vmem:[%s791_s22 + $0xa0] sm:$0xff] }
  0x22   : > { %v333_v46 = vmin.f32 %v330_v24, %v331_v28  ;;  %v346_v47 = vmin.f32 %v342_v16, %v281_v12  ;;  %v347_v48 = vmin.f32 %v343_v29, %v282_v19  ;;  %v348_v53 = vmin.f32 %v344_v21, %v283_v23  ;;  %v291_v18 = vld [vmem:[%s791_s22 + $0x98] sm:$0xff]  ;;  %v293_v22 = vld [vmem:[%s791_s22 + $0xa8] sm:$0xff] }
  0x23   : > { %v390_v54 = vmax.f32 %v760_v26, %v389_v33  ;;  %v422_v58 = vmax.f32 %v283_v23, %v421_v34  ;;  %v349_v8 = vmin.f32 %v345_v39, %v284_v40  ;;  %v289_v26 = vld [vmem:[%s791_s22 + $0x88] sm:$0xff]  ;;  %v294_v23 = vld [vmem:[%s791_s22 + $0xb0] sm:$0xff]  ;;  %v295_v34 = vld [vmem:[%s791_s22 + $0xb8] sm:$0xff] }
  0x24   : > { %v334_v11 = vmin.f32 %v332_v35, %v333_v46  ;;  %v350_v13 = vmin.f32 %v346_v47, %v285_v59  ;;  %v351_v14 = vmin.f32 %v347_v48, %v286_v60  ;;  %v352_v12 = vmin.f32 %v348_v53, %v287_v25  ;;  %v296_v35 = vld [vmem:[%s791_s22 + $0xc0] sm:$0xff]  ;;  %v885_v39 = vld [vmem:[%s791_s22 + $0xd8] sm:$0xff]  ;;  %v297_v46 = vld [vmem:[%s791_s22 + $0xc8] sm:$0xff] }
  0x25   : > { %v391_v15 = vmax.f32 %v763_v27, %v390_v54  ;;  %v423_v16 = vmax.f32 %v284_v40, %v422_v58  ;;  %v353_v19 = vmin.f32 %v349_v8, %v288_v9  ;;  %v298_v47 = vld [vmem:[%s791_s22 + $0xd0] sm:$0xff]  ;;  %v890_v48 = vld [vmem:[%s791_s22 + $0xe0] sm:$0xff] }
  0x26   : > { %v335_v24 = vrot.slane %v334_v11, 4  ;;  %v354_v28 = vmin.f32 %v350_v13, %v289_v26  ;;  %v355_v29 = vmin.f32 %v351_v14, %v290_v17  ;;  %v356_v21 = vmin.f32 %v352_v12, %v291_v18  ;;  %v894_v14 = vld [vmem:[%s791_s22 + $0xe8] sm:$0xff] }
  0x27   : > { %v392_v27 = vmax.f32 %v766_v30, %v391_v15  ;;  %v424_v33 = vmax.f32 %v285_v59, %v423_v16  ;;  %v357_v40 = vmin.f32 %v353_v19, %v292_v20  ;;  %v897_v30 = vld [vmem:[%s791_s22 + $0xf0] sm:$0xff]  ;;  %v900_v59 = vld [vmem:[%s791_s22 + $0xf8] sm:$0xff] }
  0x28   : > { %v358_v53 = vmin.f32 %v354_v28, %v293_v22  ;;  %v359_v54 = vmin.f32 %v355_v29, %v294_v23  ;;  %v360_v58 = vmin.f32 %v356_v21, %v295_v34  ;;  %v336_v15 = vmin.f32 %v334_v11, %v335_v24 }
  0x29   : > { %v393_v8 = vmax.f32 %v769_v31, %v392_v27  ;;  %v425_v13 = vmax.f32 %v286_v60, %v424_v33  ;;  %v361_v12 = vmin.f32 %v357_v40, %v296_v35 }
  0x2a   : > { %v362_v16 = vmin.f32 %v358_v53, %v297_v46  ;;  %v363_v19 = vmin.f32 %v359_v54, %v298_v47  ;;  %v364_v57 = vmin.f32 %v360_v58, %v885_v39  ;;  %v337_v40 = vrot.slane %v336_v15, 2 }
  0x2b   : > { %v394_v10 = vmax.f32 %v772_v32, %v393_v8  ;;  %v426_v28 = vmax.f32 %v287_v25, %v425_v13  ;;  %v365_v29 = vmin.f32 %v361_v12, %v890_v48 }
  0x2c   : > { %v366_v31 = vmin.f32 %v362_v16, %v894_v14  ;;  %v367_v60 = vmin.f32 %v363_v19, %v897_v30  ;;  %v368_v21 = vmin.f32 %v364_v57, %v900_v59  ;;  %v338_v8 = vmin.f32 %v336_v15, %v337_v40  ;;  %v972_v40 = vld [vmem:[#allocation3_spill] sm:$0xff] }
  0x2d   : > { %v395_v27 = vmax.f32 %v776_v36, %v394_v10  ;;  %v427_v33 = vmax.f32 %v288_v9, %v426_v28 }
  0x2e   : > { %v369_v11 = vmin.f32 %v365_v29, %v366_v31  ;;  %v370_v24 = vmin.f32 %v367_v60, %v368_v21  ;;  %v339_v9 = vrot.slane %v338_v8, 1  ;;  %v380_v60 = vmax.f32 %v721_v1, %v733_v5 }
  0x2f   : > { %v396_v53 = vmax.f32 %v779_v37, %v395_v27  ;;  %v428_v54 = vmax.f32 %v289_v26, %v427_v33 }
  0x30   : > { %v371_v58 = vmin.f32 %v369_v11, %v370_v24 }
  0x31   : > { %v397_v32 = vmax.f32 %v782_v38, %v396_v53  ;;  %v429_v25 = vmax.f32 %v290_v17, %v428_v54  ;;  %v340_v17 = vmin.f32 %v338_v8, %v339_v9 }
  0x32   : > { %v372_v13 = vrot.slane %v371_v58, 4 }
  0x33   : > { %v398_v12 = vmax.f32 %v794_v41, %v397_v32  ;;  %v430_v16 = vmax.f32 %v291_v18, %v429_v25 }
  0x34   : > { %v373_v57 = vmin.f32 %v371_v58, %v372_v13 }
  0x35   : > { %v399_v36 = vmax.f32 %v797_v42, %v398_v12  ;;  %v431_v10 = vmax.f32 %v292_v20, %v430_v16 }
  0x36   : > { %v374_v19 = vrot.slane %v373_v57, 2 }
  0x37   : > { %v400_v28 = vmax.f32 %v811_v49, %v399_v36  ;;  %v432_v37 = vmax.f32 %v293_v22, %v431_v10 }
  0x38   : > { %v375_v26 = vmin.f32 %v373_v57, %v374_v19 }
  0x39   : > { %v401_v29 = vmax.f32 %v800_v43, %v400_v28  ;;  %v433_v38 = vmax.f32 %v294_v23, %v432_v37  ;;  %v379_v23 = vmax.f32 %v718_v0, %v730_v4  ;;  %v382_v0 = vmax.f32 %v727_v3, %v739_v7 }
  0x3a   : > { %v376_v15 = vrot.slane %v375_v26, 1 }
  0x3b   : > { %v402_v31 = vmax.f32 %v803_v44, %v401_v29  ;;  %v434_v41 = vmax.f32 %v295_v34, %v433_v38 }
  0x3c   : > { %v377_v18 = vmin.f32 %v375_v26, %v376_v15 }
  0x3d   : > { %v403_v42 = vmax.f32 %v806_v45, %v402_v31  ;;  %v435_v49 = vmax.f32 %v296_v35, %v434_v41  ;;  %v381_v45 = vmax.f32 %v724_v2, %v736_v6  ;;  %v416_v2 = vmax.f32 %v820_v52, %v836_v61 }
  0x3e   : > { %v378_v20 = vmin.f32 %v340_v17, %v377_v18 }
  0x3f   : > { %v404_v43 = vmax.f32 %v814_v50, %v403_v42  ;;  %v436_v22 = vmax.f32 %v297_v46, %v435_v49 }
  0x40   : > { %458 = vst [vmem:[%s920_s25] sm:$0x1] %v378_v20 }
  0x41   : > { %v405_v44 = vmax.f32 %v817_v51, %v404_v43  ;;  %v437_v34 = vmax.f32 %v298_v47, %v436_v22 }
  0x43   : > { %v438_v21 = vmax.f32 %v885_v39, %v437_v34  ;;  %v406_v27 = vmax.f32 %v379_v23, %v405_v44 }
  0x45   : > { %v439_v35 = vmax.f32 %v890_v48, %v438_v21  ;;  %v407_v50 = vmax.f32 %v380_v60, %v406_v27  ;;  %v417_v48 = vmax.f32 %v825_v55, %v839_v62 }
  0x47   : > { %v440_v4 = vmax.f32 %v894_v14, %v439_v35  ;;  %v473_v51 = vld [vmem:[%s920_s25] sm:$0x1]  ;;  %v408_v46 = vmax.f32 %v381_v45, %v407_v50  ;;  %v418_v14 = vmax.f32 %v828_v56, %v842_v63 }
  0x48   : > { %v475_v47 = vsel %vm474_vm0, %v473_v51, inf }
  0x49   : > { %v441_v1 = vmax.f32 %v897_v30, %v440_v4  ;;  %476 = vmin.xlane.f32.xlu0 %v475_v47  ;;  %v409_v5 = vmax.f32 %v382_v0, %v408_v46  ;;  %v973_v30 = vld [vmem:[#allocation2_spill] sm:$0xff] }
  0x4a   : > { %v419_v11 = vmax.f32 %v973_v30, %v972_v40 }
  0x4b   : > { %v442_v6 = vmax.f32 %v900_v59, %v441_v1  ;;  %v410_v39 = vrot.slane %v409_v5, 4 }
  0x4d   : > { %v411_v3 = vmax.f32 %v409_v5, %v410_v39  ;;  %v443_v7 = vmax.f32 %v416_v2, %v442_v6 }
  0x4f   : > { %v444_v33 = vmax.f32 %v417_v48, %v443_v7  ;;  %v412_v24 = vrot.slane %v411_v3, 2 }
  0x51   : > { %v445_v53 = vmax.f32 %v418_v14, %v444_v33  ;;  %v413_v52 = vmax.f32 %v411_v3, %v412_v24 }
  0x53   : > { %v446_v54 = vmax.f32 %v419_v11, %v445_v53  ;;  %v414_v58 = vrot.slane %v413_v52, 1 }
  0x55   : > { %v447_v61 = vrot.slane %v446_v54, 4  ;;  %v415_v55 = vmax.f32 %v413_v52, %v414_v58 }
  0x57   : > { %v448_v59 = vmax.f32 %v446_v54, %v447_v61 }
  0x59   : > { %v449_v32 = vrot.slane %v448_v59, 2 }
  0x5b   : > { %v450_v25 = vmax.f32 %v448_v59, %v449_v32 }
  0x5d   : > { %v451_v62 = vrot.slane %v450_v25, 1 }
  0x5f   : > { %v452_v8 = vmax.f32 %v450_v25, %v451_v62 }
  0x61   : > { %v453_v56 = vmax.f32 %v415_v55, %v452_v8 }
  0x63   : > { %459 = vst [vmem:[%s239_s28] sm:$0x1] %v453_v56 }
  0x6a   : > { %v487_v63 = vld [vmem:[%s239_s28] sm:$0x1] }
  0x6b   : > { %v488_v13 = vsel %vm474_vm0, %v487_v63, -inf }
  0x6c   : > { %489 = vmax.xlane.f32.xlu0 %v488_v13 }
  0xd2   : > { %v477_v12 = vpop.xlane.xlu0 %476 }
  0xd3   : > { %v478_v16 = vrot.slane %v477_v12, 4 }
  0xd5   : > { %v479_v57 = vmin.f32 %v477_v12, %v478_v16 }
  0xd7   : > { %v480_v36 = vrot.slane %v479_v57, 2 }
  0xd9   : > { %v481_v10 = vmin.f32 %v479_v57, %v480_v36 }
  0xdb   : > { %v482_v9 = vrot.slane %v481_v10, 1 }
  0xdd   : > { %v483_v19 = vmin.f32 %v481_v10, %v482_v9 }
  0xdf   : > { %617 = vpush %v483_v19 }
  0xf5   : > { %v490_v28 = vpop.xlane.xlu0 %489 }
  0xf6   : > { %v491_v37 = vrot.slane %v490_v28, 4 }
  0xf8   : > { %v492_v26 = vmax.f32 %v490_v28, %v491_v37 }
  0xfa   : > { %v493_v29 = vrot.slane %v492_v26, 2 }
  0xfc   : > { %v494_v38 = vmax.f32 %v492_v26, %v493_v29 }
  0xfe   : > { %v495_v17 = vrot.slane %v494_v38, 1 }
 0x100   : > { %v496_v15 = vmax.f32 %v494_v38, %v495_v17 }
 0x102   : > { %619 = vpush %v496_v15 }
 0x110   : > { %s618_s29 = spop %617 }
 0x111   : > { %v485_v31 = vstv %s618_s29 }
 0x112   : > { %486 = vst [vmem:[%s920_s25] sm:$0x1] %v485_v31 }
 0x133   : > { %s620_s30 = spop %619 }
 0x134   : > { %v498_v41 = vstv %s620_s30 }
 0x135   : > { %499 = vst [vmem:[%s239_s28] sm:$0x1] %v498_v41 }
 0x136 PF: > { %s14_s14 = sadd.s32 1, %s667_s14   ;;  %s974_s12 = smov %s663_s13 }
 0x137   : > { %p11_p5 = scmp.ge.s32.totalorder %s14_s14, 4   ;;  %s975_s13 = smov %s977_s15 }
 0x139   :  { %13 = sbr.rel (!%p11_p5) target bundleno = 2 (0x2), region = 85 }

// kernel: volraft_forward.16
= control target key start
LH: loop header
LB: loop body
LE: loop exit
PB: predicated region body
PF: predicated region fallthrough
CT: control target
= control target key end

     0   :  { %s2251_s18 = smov 0   ;;  %s2828_s0 = inlined_call_operand.vmem [shape: bf16[128,512], index: 0, kind: input, shape index: {}]   ;;  %s2829_s1 = inlined_call_operand.vmem [shape: bf16[512,512], index: 1, kind: input, shape index: {}]   ;;  %s2830_s2 = inlined_call_operand.vmem [shape: f32[1,512], index: 2, kind: input, shape index: {}]   ;;  %s2831_s3 = inlined_call_operand.vmem [shape: bf16[128,256], index: 3, kind: output, shape index: {0}]   ;;  %s2832_s4 = inlined_call_operand.vmem [shape: bf16[128,128], index: 4, kind: output, shape index: {1}]   ;;  %s2833_s5 = inlined_call_operand.vmem [shape: bf16[128,128], index: 5, kind: output, shape index: {2}]  }
   0x1 LB: > { %s1716_s19 = sadd.s32 4294967295, %s2219_s18   ;;  %p1720_p0 = scmp.ge.s32.totalorder %s2219_s18, 1  ;;  %s2219_s18 = sphi %s2251_s18, %s16_s18  }
   0x2   : > { %p194_p1 = scmp.lt.s32.totalorder %s2219_s18, 3 }
   0x4   : > { %p195_p2 = pnand %p1720_p0, %p194_p1 }
   0x5   : > { %s1721_s9 = sshll.u32 (!%p195_p2), %s1716_s19, 3 }
   0x6   : > { %198 = sbr.rel (%p195_p2) target bundleno = 382 (0x17e), region = 32  ;;  %p235_p3 = scmp.lt.s32.totalorder (!%p195_p2), %s1721_s9, 15 }
   0xb   : > { %v1981_v0 = vld [vmem:[%s2829_s1 + $0xe4] ss:$16 sps:$4 sm:$0xff]   ;;  %v1985_v2 = vld [vmem:[%s2829_s1 + $0xe0] ss:$16 sps:$4 sm:$0xff]   ;;  %s2835_s9 = smov (!%p235_p3, %s1721_s9), 15 }
   0xc   : > { %v1983_v1 = vld [vmem:[%s2829_s1 + $0x2e4] ss:$16 sps:$4 sm:$0xff]   ;;  %1146 = vmatprep.subr.bf16.mxu0 %v1981_v0  ;;  %v1986_v3 = vld [vmem:[%s2829_s1 + $0x2e0] ss:$16 sps:$4 sm:$0xff]   ;;  %s1901_s11 = sshll.u32 %s2835_s9, 4  ;;  %s1902_s8 = sshll.u32 %s2835_s9, 3 }
   0xd   : > { %1219 = vmatprep.subr.bf16.mxu1 %v1983_v1  ;;  %v1987_v4 = vld [vmem:[%s2829_s1 + $0xc4] ss:$16 sps:$4 sm:$0xff]   ;;  %1147 = vmatpush1.bf16.msra.mxu0 %v1985_v2  ;;  %v1991_v6 = vld [vmem:[%s2829_s1 + $0xc0] ss:$16 sps:$4 sm:$0xff]   ;;  %s2402_s21 = scalar_lea.vmem %s2828_s0, %s1901_s11  ;;  %v2085_v2 = vld [vmem:[%s2829_s1 + $0xec] ss:$16 sps:$4 sm:$0xff]   ;;  %s2755_s11 = scalar_lea.vmem %s2831_s3, %s1902_s8 }
   0xe   : > { %1220 = vmatpush1.bf16.msra.mxu1 %v1986_v3  ;;  %v1989_v5 = vld [vmem:[%s2829_s1 + $0x2c4] ss:$16 sps:$4 sm:$0xff]   ;;  %1148 = vmatprep.subr.bf16.mxu0 %v1987_v4  ;;  %v1992_v7 = vld [vmem:[%s2829_s1 + $0x2c0] ss:$16 sps:$4 sm:$0xff]   ;;  %v2423_v51 = vld [vmem:[%s2402_s21 + $0xc] ss:$16 sps:$4 sm:$0xff]  }
   0xf   : > { %1221 = vmatprep.subr.bf16.mxu1 %v1989_v5  ;;  %v1993_v8 = vld [vmem:[%s2829_s1 + $0xa4] ss:$16 sps:$4 sm:$0xff]   ;;  %v1997_v10 = vld [vmem:[%s2829_s1 + $0xa0] ss:$16 sps:$4 sm:$0xff]   ;;  %1251 = vmatprep.mubr.bf16.mxu1 %v2423_v51  ;;  %v2088_v3 = vld [vmem:[%s2829_s1 + $0x2ec] ss:$16 sps:$4 sm:$0xff]  }
  0x10   : > { %v1995_v9 = vld [vmem:[%s2829_s1 + $0x2a4] ss:$16 sps:$4 sm:$0xff]   ;;  %v1998_v11 = vld [vmem:[%s2829_s1 + $0x2a0] ss:$16 sps:$4 sm:$0xff]   ;;  %v2479_v5 = vld [vmem:[%s2402_s21 + $0x8] ss:$16 sps:$4 sm:$0xff]  }
  0x11   : > { %1149 = vmatpush1.bf16.msra.mxu0 %v1991_v6  ;;  %v1999_v12 = vld [vmem:[%s2829_s1 + $0x84] ss:$16 sps:$4 sm:$0xff]   ;;  %v2003_v14 = vld [vmem:[%s2829_s1 + $0x80] ss:$16 sps:$4 sm:$0xff]   ;;  %v2083_v6 = vld [vmem:[%s2829_s1 + $0xe8] ss:$16 sps:$4 sm:$0xff]  }
  0x12   : > { %1222 = vmatpush1.bf16.msra.mxu1 %v1992_v7  ;;  %1150 = vmatprep.subr.bf16.mxu0 %v1993_v8  ;;  %v2001_v13 = vld [vmem:[%s2829_s1 + $0x284] ss:$16 sps:$4 sm:$0xff]   ;;  %v2004_v15 = vld [vmem:[%s2829_s1 + $0x280] ss:$16 sps:$4 sm:$0xff]   ;;  %v2086_v7 = vld [vmem:[%s2829_s1 + $0x2e8] ss:$16 sps:$4 sm:$0xff]  }
  0x13   : > { %1223 = vmatprep.subr.bf16.mxu1 %v1995_v9  ;;  %v2005_v16 = vld [vmem:[%s2829_s1 + $0x64] ss:$16 sps:$4 sm:$0xff]   ;;  %v2009_v18 = vld [vmem:[%s2829_s1 + $0x60] ss:$16 sps:$4 sm:$0xff]   ;;  %v2091_v8 = vld [vmem:[%s2829_s1 + $0xcc] ss:$16 sps:$4 sm:$0xff]  }
  0x14   : > { %v2007_v17 = vld [vmem:[%s2829_s1 + $0x264] ss:$16 sps:$4 sm:$0xff]   ;;  %v2010_v19 = vld [vmem:[%s2829_s1 + $0x260] ss:$16 sps:$4 sm:$0xff]   ;;  %v2094_v9 = vld [vmem:[%s2829_s1 + $0x2cc] ss:$16 sps:$4 sm:$0xff]  }
  0x15   : > { %1151 = vmatpush1.bf16.msra.mxu0 %v1997_v10  ;;  %v2011_v20 = vld [vmem:[%s2829_s1 + $0x44] ss:$16 sps:$4 sm:$0xff]   ;;  %v2015_v22 = vld [vmem:[%s2829_s1 + $0x40] ss:$16 sps:$4 sm:$0xff]   ;;  %v2089_v10 = vld [vmem:[%s2829_s1 + $0xc8] ss:$16 sps:$4 sm:$0xff]  }
  0x16   : > { %1224 = vmatpush1.bf16.msra.mxu1 %v1998_v11  ;;  %1152 = vmatprep.subr.bf16.mxu0 %v1999_v12  ;;  %v2013_v21 = vld [vmem:[%s2829_s1 + $0x244] ss:$16 sps:$4 sm:$0xff]   ;;  %v2016_v23 = vld [vmem:[%s2829_s1 + $0x240] ss:$16 sps:$4 sm:$0xff]   ;;  %v2092_v11 = vld [vmem:[%s2829_s1 + $0x2c8] ss:$16 sps:$4 sm:$0xff]  }
  0x17   : > { %1225 = vmatprep.subr.bf16.mxu1 %v2001_v13  ;;  %v2017_v24 = vld [vmem:[%s2829_s1 + $0x24] ss:$16 sps:$4 sm:$0xff]   ;;  %v2021_v26 = vld [vmem:[%s2829_s1 + $0x20] ss:$16 sps:$4 sm:$0xff]   ;;  %v2097_v12 = vld [vmem:[%s2829_s1 + $0xac] ss:$16 sps:$4 sm:$0xff]  }
  0x18   : > { %v2019_v25 = vld [vmem:[%s2829_s1 + $0x224] ss:$16 sps:$4 sm:$0xff]   ;;  %v2022_v27 = vld [vmem:[%s2829_s1 + $0x220] ss:$16 sps:$4 sm:$0xff]   ;;  %v2100_v13 = vld [vmem:[%s2829_s1 + $0x2ac] ss:$16 sps:$4 sm:$0xff]  }
  0x19   : > { %1153 = vmatpush1.bf16.msra.mxu0 %v2003_v14  ;;  %v2023_v28 = vld [vmem:[%s2829_s1 + $0x4] ss:$16 sps:$4 sm:$0xff]   ;;  %v2027_v30 = vld [vmem:[%s2829_s1] ss:$16 sps:$4 sm:$0xff]   ;;  %v2095_v14 = vld [vmem:[%s2829_s1 + $0xa8] ss:$16 sps:$4 sm:$0xff]  }
  0x1a   : > { %1226 = vmatpush1.bf16.msra.mxu1 %v2004_v15  ;;  %1154 = vmatprep.subr.bf16.mxu0 %v2005_v16  ;;  %v2025_v29 = vld [vmem:[%s2829_s1 + $0x204] ss:$16 sps:$4 sm:$0xff]   ;;  %v2028_v31 = vld [vmem:[%s2829_s1 + $0x200] ss:$16 sps:$4 sm:$0xff]   ;;  %v2098_v15 = vld [vmem:[%s2829_s1 + $0x2a8] ss:$16 sps:$4 sm:$0xff]  }
  0x1b   : > { %1227 = vmatprep.subr.bf16.mxu1 %v2007_v17  ;;  %v2029_v32 = vld [vmem:[%s2829_s1 + $0x1e4] ss:$16 sps:$4 sm:$0xff]   ;;  %v2033_v34 = vld [vmem:[%s2829_s1 + $0x1e0] ss:$16 sps:$4 sm:$0xff]   ;;  %s1728_s12 = sshll.u32 %s2835_s9, 2 }
  0x1c   : > { %v2031_v33 = vld [vmem:[%s2829_s1 + $0x3e4] ss:$16 sps:$4 sm:$0xff]   ;;  %v2034_v35 = vld [vmem:[%s2829_s1 + $0x3e0] ss:$16 sps:$4 sm:$0xff]   ;;  %s2798_s15 = scalar_lea.vmem %s2833_s5, %s1728_s12  ;;  %s2811_s19 = scalar_lea.vmem %s2832_s4, %s1728_s12 }
  0x1d   : > { %1155 = vmatpush1.bf16.msra.mxu0 %v2009_v18  ;;  %v2035_v36 = vld [vmem:[%s2829_s1 + $0x1c4] ss:$16 sps:$4 sm:$0xff]   ;;  %v2039_v38 = vld [vmem:[%s2829_s1 + $0x1c0] ss:$16 sps:$4 sm:$0xff]   ;;  %v2520_v18 = vld [vmem:[%s2402_s21 + $0x2c] ss:$16 sps:$4 sm:$0xff]  }
  0x1e   : > { %1228 = vmatpush1.bf16.msra.mxu1 %v2010_v19  ;;  %1156 = vmatprep.subr.bf16.mxu0 %v2011_v20  ;;  %v2037_v37 = vld [vmem:[%s2829_s1 + $0x3c4] ss:$16 sps:$4 sm:$0xff]   ;;  %v2040_v39 = vld [vmem:[%s2829_s1 + $0x3c0] ss:$16 sps:$4 sm:$0xff]   ;;  %v2523_v19 = vld [vmem:[%s2402_s21 + $0x28] ss:$16 sps:$4 sm:$0xff]  }
  0x1f   : > { %1229 = vmatprep.subr.bf16.mxu1 %v2013_v21  ;;  %v2041_v40 = vld [vmem:[%s2829_s1 + $0x1a4] ss:$16 sps:$4 sm:$0xff]   ;;  %v2045_v42 = vld [vmem:[%s2829_s1 + $0x1a0] ss:$16 sps:$4 sm:$0xff]   ;;  %v2103_v20 = vld [vmem:[%s2829_s1 + $0x8c] ss:$16 sps:$4 sm:$0xff]  }
  0x20   : > { %v2043_v41 = vld [vmem:[%s2829_s1 + $0x3a4] ss:$16 sps:$4 sm:$0xff]   ;;  %v2046_v43 = vld [vmem:[%s2829_s1 + $0x3a0] ss:$16 sps:$4 sm:$0xff]   ;;  %v2106_v21 = vld [vmem:[%s2829_s1 + $0x28c] ss:$16 sps:$4 sm:$0xff]  }
  0x21   : > { %1157 = vmatpush1.bf16.msra.mxu0 %v2015_v22  ;;  %v2047_v44 = vld [vmem:[%s2829_s1 + $0x184] ss:$16 sps:$4 sm:$0xff]   ;;  %v2051_v46 = vld [vmem:[%s2829_s1 + $0x180] ss:$16 sps:$4 sm:$0xff]   ;;  %v2101_v22 = vld [vmem:[%s2829_s1 + $0x88] ss:$16 sps:$4 sm:$0xff]  }
  0x22   : > { %1230 = vmatpush1.bf16.msra.mxu1 %v2016_v23  ;;  %1158 = vmatprep.subr.bf16.mxu0 %v2017_v24  ;;  %v2049_v45 = vld [vmem:[%s2829_s1 + $0x384] ss:$16 sps:$4 sm:$0xff]   ;;  %v2052_v47 = vld [vmem:[%s2829_s1 + $0x380] ss:$16 sps:$4 sm:$0xff]   ;;  %v2104_v23 = vld [vmem:[%s2829_s1 + $0x288] ss:$16 sps:$4 sm:$0xff]  }
  0x23   : > { %1231 = vmatprep.subr.bf16.mxu1 %v2019_v25  ;;  %v2053_v48 = vld [vmem:[%s2829_s1 + $0x164] ss:$16 sps:$4 sm:$0xff]   ;;  %v2057_v52 = vld [vmem:[%s2829_s1 + $0x160] ss:$16 sps:$4 sm:$0xff]   ;;  %v2109_v24 = vld [vmem:[%s2829_s1 + $0x6c] ss:$16 sps:$4 sm:$0xff]  }
  0x24   : > { %v2417_v49 = vld [vmem:[%s2402_s21 + $0x4] ss:$16 sps:$4 sm:$0xff]   ;;  %v2058_v53 = vld [vmem:[%s2829_s1 + $0x360] ss:$16 sps:$4 sm:$0xff]   ;;  %v2112_v25 = vld [vmem:[%s2829_s1 + $0x26c] ss:$16 sps:$4 sm:$0xff]  }
  0x25   : > { %1159 = vmatpush1.bf16.msra.mxu0 %v2021_v26  ;;  %v2055_v50 = vld [vmem:[%s2829_s1 + $0x364] ss:$16 sps:$4 sm:$0xff]   ;;  %1178 = vmatprep.mubr.bf16.mxu0 %v2417_v49  ;;  %v2063_v56 = vld [vmem:[%s2829_s1 + $0x140] ss:$16 sps:$4 sm:$0xff]   ;;  %v2107_v26 = vld [vmem:[%s2829_s1 + $0x68] ss:$16 sps:$4 sm:$0xff]  }
  0x26   : > { %1232 = vmatpush1.bf16.msra.mxu1 %v2022_v27  ;;  %1160 = vmatprep.subr.bf16.mxu0 %v2023_v28  ;;  %v2059_v54 = vld [vmem:[%s2829_s1 + $0x144] ss:$16 sps:$4 sm:$0xff]   ;;  %v2064_v57 = vld [vmem:[%s2829_s1 + $0x340] ss:$16 sps:$4 sm:$0xff]   ;;  %v2110_v27 = vld [vmem:[%s2829_s1 + $0x268] ss:$16 sps:$4 sm:$0xff]  }
  0x27   : > { %1233 = vmatprep.subr.bf16.mxu1 %v2025_v29  ;;  %v2061_v55 = vld [vmem:[%s2829_s1 + $0x344] ss:$16 sps:$4 sm:$0xff]   ;;  %v2069_v60 = vld [vmem:[%s2829_s1 + $0x120] ss:$16 sps:$4 sm:$0xff]  }
  0x28   : > { %v2065_v58 = vld [vmem:[%s2829_s1 + $0x124] ss:$16 sps:$4 sm:$0xff]   ;;  %v2070_v61 = vld [vmem:[%s2829_s1 + $0x320] ss:$16 sps:$4 sm:$0xff]  }
  0x29   : > { %1161 = vmatpush1.bf16.msra.mxu0 %v2027_v30  ;;  %v2067_v59 = vld [vmem:[%s2829_s1 + $0x324] ss:$16 sps:$4 sm:$0xff]   ;;  %v2075_v0 = vld [vmem:[%s2829_s1 + $0x100] ss:$16 sps:$4 sm:$0xff]   ;;  %v2560_v30 = vld [vmem:[%s2402_s21 + $0x4c] ss:$16 sps:$4 sm:$0xff]  }
  0x2a   : > { %1234 = vmatpush1.bf16.msra.mxu1 %v2028_v31  ;;  %1162 = vmatprep.subr.bf16.mxu0 %v2029_v32  ;;  %v2071_v62 = vld [vmem:[%s2829_s1 + $0x104] ss:$16 sps:$4 sm:$0xff]   ;;  %v2076_v1 = vld [vmem:[%s2829_s1 + $0x300] ss:$16 sps:$4 sm:$0xff]   ;;  %v2563_v31 = vld [vmem:[%s2402_s21 + $0x48] ss:$16 sps:$4 sm:$0xff]  }
  0x2b   : > { %1235 = vmatprep.subr.bf16.mxu1 %v2031_v33  ;;  %v2073_v63 = vld [vmem:[%s2829_s1 + $0x304] ss:$16 sps:$4 sm:$0xff]   ;;  %v2476_v4 = vld [vmem:[%s2402_s21] ss:$16 sps:$4 sm:$0xff]   ;;  %v2115_v32 = vld [vmem:[%s2829_s1 + $0x4c] ss:$16 sps:$4 sm:$0xff]  }
  0x2c   : > { %v2514_v16 = vld [vmem:[%s2402_s21 + $0x24] ss:$16 sps:$4 sm:$0xff]   ;;  %v2517_v17 = vld [vmem:[%s2402_s21 + $0x20] ss:$16 sps:$4 sm:$0xff]   ;;  %v2118_v33 = vld [vmem:[%s2829_s1 + $0x24c] ss:$16 sps:$4 sm:$0xff]  }
  0x2d   : > { %1163 = vmatpush2.bf16.msra.mxu0 %v2033_v34  ;;  %v2554_v28 = vld [vmem:[%s2402_s21 + $0x44] ss:$16 sps:$4 sm:$0xff]   ;;  %v2557_v29 = vld [vmem:[%s2402_s21 + $0x40] ss:$16 sps:$4 sm:$0xff]   ;;  %v2113_v34 = vld [vmem:[%s2829_s1 + $0x48] ss:$16 sps:$4 sm:$0xff]  }
  0x2e   : > { %1236 = vmatpush2.bf16.msra.mxu1 %v2034_v35  ;;  %1164 = vmatprep.subr.bf16.mxu0 %v2035_v36  ;;  %v2116_v35 = vld [vmem:[%s2829_s1 + $0x248] ss:$16 sps:$4 sm:$0xff]   ;;  %v2121_v36 = vld [vmem:[%s2829_s1 + $0x2c] ss:$16 sps:$4 sm:$0xff]  }
  0x2f   : > { %1237 = vmatprep.subr.bf16.mxu1 %v2037_v37  ;;  %v2124_v37 = vld [vmem:[%s2829_s1 + $0x22c] ss:$16 sps:$4 sm:$0xff]  }
  0x31   : > { %1165 = vmatpush2.bf16.msra.mxu0 %v2039_v38  ;;  %v2119_v38 = vld [vmem:[%s2829_s1 + $0x28] ss:$16 sps:$4 sm:$0xff]  }
  0x32   : > { %1238 = vmatpush2.bf16.msra.mxu1 %v2040_v39  ;;  %1166 = vmatprep.subr.bf16.mxu0 %v2041_v40  ;;  %v2122_v39 = vld [vmem:[%s2829_s1 + $0x228] ss:$16 sps:$4 sm:$0xff]   ;;  %v2594_v40 = vld [vmem:[%s2402_s21 + $0x64] ss:$16 sps:$4 sm:$0xff]  }
  0x33   : > { %1239 = vmatprep.subr.bf16.mxu1 %v2043_v41  ;;  %v2597_v41 = vld [vmem:[%s2402_s21 + $0x60] ss:$16 sps:$4 sm:$0xff]  }
  0x35   : > { %1167 = vmatpush2.bf16.msra.mxu0 %v2045_v42  ;;  %v2600_v42 = vld [vmem:[%s2402_s21 + $0x6c] ss:$16 sps:$4 sm:$0xff]  }
  0x36   : > { %1240 = vmatpush2.bf16.msra.mxu1 %v2046_v43  ;;  %1168 = vmatprep.subr.bf16.mxu0 %v2047_v44  ;;  %v2603_v43 = vld [vmem:[%s2402_s21 + $0x68] ss:$16 sps:$4 sm:$0xff]   ;;  %v2127_v44 = vld [vmem:[%s2829_s1 + $0xc] ss:$16 sps:$4 sm:$0xff]  }
  0x37   : > { %1241 = vmatprep.subr.bf16.mxu1 %v2049_v45  ;;  %v2130_v45 = vld [vmem:[%s2829_s1 + $0x20c] ss:$16 sps:$4 sm:$0xff]  }
  0x39   : > { %1169 = vmatpush2.bf16.msra.mxu0 %v2051_v46  ;;  %v2125_v46 = vld [vmem:[%s2829_s1 + $0x8] ss:$16 sps:$4 sm:$0xff]  }
  0x3a   : > { %1242 = vmatpush2.bf16.msra.mxu1 %v2052_v47  ;;  %1170 = vmatprep.subr.bf16.mxu0 %v2053_v48  ;;  %v2128_v47 = vld [vmem:[%s2829_s1 + $0x208] ss:$16 sps:$4 sm:$0xff]   ;;  %v2133_v48 = vld [vmem:[%s2829_s1 + $0x1ec] ss:$16 sps:$4 sm:$0xff]  }
  0x3b   : > { %1243 = vmatprep.subr.bf16.mxu1 %v2055_v50  ;;  %v2136_v50 = vld [vmem:[%s2829_s1 + $0x3ec] ss:$16 sps:$4 sm:$0xff]  }
  0x3d   : > { %1171 = vmatpush2.bf16.msra.mxu0 %v2057_v52  ;;  %v2131_v52 = vld [vmem:[%s2829_s1 + $0x1e8] ss:$16 sps:$4 sm:$0xff]  }
  0x3e   : > { %1244 = vmatpush2.bf16.msra.mxu1 %v2058_v53  ;;  %1172 = vmatprep.subr.bf16.mxu0 %v2059_v54  ;;  %v2134_v53 = vld [vmem:[%s2829_s1 + $0x3e8] ss:$16 sps:$4 sm:$0xff]   ;;  %v2145_v54 = vld [vmem:[%s2829_s1 + $0x1cc] ss:$16 sps:$4 sm:$0xff]  }
  0x3f   : > { %1245 = vmatprep.subr.bf16.mxu1 %v2061_v55  ;;  %v2146_v55 = vld [vmem:[%s2829_s1 + $0x3c8] ss:$16 sps:$4 sm:$0xff]  }
  0x41   : > { %1173 = vmatpush2.bf16.msra.mxu0 %v2063_v56  ;;  %v2151_v56 = vld [vmem:[%s2829_s1 + $0x1ac] ss:$16 sps:$4 sm:$0xff]  }
  0x42   : > { %1246 = vmatpush2.bf16.msra.mxu1 %v2064_v57  ;;  %1174 = vmatprep.subr.bf16.mxu0 %v2065_v58  ;;  %v2154_v57 = vld [vmem:[%s2829_s1 + $0x3ac] ss:$16 sps:$4 sm:$0xff]   ;;  %v2149_v58 = vld [vmem:[%s2829_s1 + $0x1a8] ss:$16 sps:$4 sm:$0xff]  }
  0x43   : > { %1247 = vmatprep.subr.bf16.mxu1 %v2067_v59  ;;  %v2152_v59 = vld [vmem:[%s2829_s1 + $0x3a8] ss:$16 sps:$4 sm:$0xff]  }
  0x45   : > { %1175 = vmatpush2.bf16.msra.mxu0 %v2069_v60  ;;  %v2163_v60 = vld [vmem:[%s2829_s1 + $0x18c] ss:$16 sps:$4 sm:$0xff]  }
  0x46   : > { %1248 = vmatpush2.bf16.msra.mxu1 %v2070_v61  ;;  %1176 = vmatprep.subr.bf16.mxu0 %v2071_v62  ;;  %v2166_v61 = vld [vmem:[%s2829_s1 + $0x38c] ss:$16 sps:$4 sm:$0xff]   ;;  %v2161_v62 = vld [vmem:[%s2829_s1 + $0x188] ss:$16 sps:$4 sm:$0xff]  }
  0x47   : > { %1249 = vmatprep.subr.bf16.mxu1 %v2073_v63  ;;  %v2164_v63 = vld [vmem:[%s2829_s1 + $0x388] ss:$16 sps:$4 sm:$0xff]  }
  0x49   : > { %1177 = vmatpush2.bf16.msra.mxu0 %v2075_v0  ;;  %v2169_v0 = vld [vmem:[%s2829_s1 + $0x16c] ss:$16 sps:$4 sm:$0xff]  }
  0x4a   : > { %1250 = vmatpush2.bf16.msra.mxu1 %v2076_v1  ;;  %1292 = vmatprep.subr.bf16.mxu0 %v2085_v2  ;;  %v2172_v1 = vld [vmem:[%s2829_s1 + $0x36c] ss:$16 sps:$4 sm:$0xff]   ;;  %v2167_v2 = vld [vmem:[%s2829_s1 + $0x168] ss:$16 sps:$4 sm:$0xff]  }
  0x4b   : > { %1365 = vmatprep.subr.bf16.mxu1 %v2088_v3  ;;  %v2170_v3 = vld [vmem:[%s2829_s1 + $0x368] ss:$16 sps:$4 sm:$0xff]  }
  0x4c   : > { %1179 = vmatmul.mubr.bf16.vlgmr.msra.gmra.mxu0 %v2476_v4 }
  0x4d   : > { %1252 = vmatmul.mubr.bf16.vlgmr.msra.gmra.mxu1 %v2479_v5  ;;  %1293 = vmatpush1.bf16.msra.mxu0 %v2083_v6  ;;  %v2181_v6 = vld [vmem:[%s2829_s1 + $0x14c] ss:$16 sps:$4 sm:$0xff]  }
  0x4e   : > { %1366 = vmatpush1.bf16.msra.mxu1 %v2086_v7  ;;  %1294 = vmatprep.subr.bf16.mxu0 %v2091_v8  ;;  %v2184_v7 = vld [vmem:[%s2829_s1 + $0x34c] ss:$16 sps:$4 sm:$0xff]   ;;  %v2179_v8 = vld [vmem:[%s2829_s1 + $0x148] ss:$16 sps:$4 sm:$0xff]  }
  0x4f   : > { %1367 = vmatprep.subr.bf16.mxu1 %v2094_v9  ;;  %1188 = vmatprep.mubr.bf16.mxu0 %v2514_v16  ;;  %v2182_v9 = vld [vmem:[%s2829_s1 + $0x348] ss:$16 sps:$4 sm:$0xff]  }
  0x50   : > { %1261 = vmatprep.mubr.bf16.mxu1 %v2520_v18 }
  0x51   : > { %1295 = vmatpush1.bf16.msra.mxu0 %v2089_v10  ;;  %v2187_v10 = vld [vmem:[%s2829_s1 + $0x12c] ss:$16 sps:$4 sm:$0xff]  }
  0x52   : > { %1368 = vmatpush1.bf16.msra.mxu1 %v2092_v11  ;;  %1296 = vmatprep.subr.bf16.mxu0 %v2097_v12  ;;  %v2190_v11 = vld [vmem:[%s2829_s1 + $0x32c] ss:$16 sps:$4 sm:$0xff]   ;;  %v2185_v12 = vld [vmem:[%s2829_s1 + $0x128] ss:$16 sps:$4 sm:$0xff]  }
  0x53   : > { %1369 = vmatprep.subr.bf16.mxu1 %v2100_v13  ;;  %v2188_v13 = vld [vmem:[%s2829_s1 + $0x328] ss:$16 sps:$4 sm:$0xff]  }
  0x54   : > { %1189 = vmatmul.mubr.bf16.gmra.mxu0 %v2517_v17 }
  0x55   : > { %1262 = vmatmul.mubr.bf16.gmra.mxu1 %v2523_v19  ;;  %1297 = vmatpush1.bf16.msra.mxu0 %v2095_v14  ;;  %v2193_v14 = vld [vmem:[%s2829_s1 + $0x10c] ss:$16 sps:$4 sm:$0xff]  }
  0x56   : > { %1370 = vmatpush1.bf16.msra.mxu1 %v2098_v15  ;;  %1298 = vmatprep.subr.bf16.mxu0 %v2103_v20  ;;  %v2196_v15 = vld [vmem:[%s2829_s1 + $0x30c] ss:$16 sps:$4 sm:$0xff]   ;;  %v2191_v20 = vld [vmem:[%s2829_s1 + $0x108] ss:$16 sps:$4 sm:$0xff]  }
  0x57   : > { %1371 = vmatprep.subr.bf16.mxu1 %v2106_v21  ;;  %1198 = vmatprep.mubr.bf16.mxu0 %v2554_v28  ;;  %v2194_v21 = vld [vmem:[%s2829_s1 + $0x308] ss:$16 sps:$4 sm:$0xff]  }
  0x58   : > { %1271 = vmatprep.mubr.bf16.mxu1 %v2560_v30 }
  0x59   : > { %1299 = vmatpush1.bf16.msra.mxu0 %v2101_v22 }
  0x5a   : > { %1372 = vmatpush1.bf16.msra.mxu1 %v2104_v23  ;;  %1300 = vmatprep.subr.bf16.mxu0 %v2109_v24 }
  0x5b   : > { %1373 = vmatprep.subr.bf16.mxu1 %v2112_v25 }
  0x5c   : > { %1199 = vmatmul.mubr.bf16.gmra.mxu0 %v2557_v29 }
  0x5d   : > { %1272 = vmatmul.mubr.bf16.gmra.mxu1 %v2563_v31  ;;  %1301 = vmatpush1.bf16.msra.mxu0 %v2107_v26 }
  0x5e   : > { %1374 = vmatpush1.bf16.msra.mxu1 %v2110_v27  ;;  %1302 = vmatprep.subr.bf16.mxu0 %v2115_v32 }
  0x5f   : > { %1375 = vmatprep.subr.bf16.mxu1 %v2118_v33  ;;  %1208 = vmatprep.mubr.bf16.mxu0 %v2594_v40 }
  0x60   : > { %1281 = vmatprep.mubr.bf16.mxu1 %v2600_v42 }
  0x61   : > { %1303 = vmatpush1.bf16.msra.mxu0 %v2113_v34 }
  0x62   : > { %1376 = vmatpush1.bf16.msra.mxu1 %v2116_v35  ;;  %1304 = vmatprep.subr.bf16.mxu0 %v2121_v36 }
  0x63   : > { %1377 = vmatprep.subr.bf16.mxu1 %v2124_v37 }
  0x64   : > { %1209 = vmatmul.mubr.bf16.gmra.mxu0 %v2597_v41 }
  0x65   : > { %1282 = vmatmul.mubr.bf16.gmra.mxu1 %v2603_v43  ;;  %1305 = vmatpush1.bf16.msra.mxu0 %v2119_v38 }
  0x66   : > { %1378 = vmatpush1.bf16.msra.mxu1 %v2122_v39  ;;  %1306 = vmatprep.subr.bf16.mxu0 %v2127_v44 }
  0x67   : > { %1379 = vmatprep.subr.bf16.mxu1 %v2130_v45  ;;  %1324 = vmatprep.mubr.bf16.mxu0 %v2417_v49  ;;  %v2148_v49 = vld [vmem:[%s2829_s1 + $0x3cc] ss:$16 sps:$4 sm:$0xff]  }
  0x68   : > { %1397 = vmatprep.mubr.bf16.mxu1 %v2423_v51  ;;  %v2143_v51 = vld [vmem:[%s2829_s1 + $0x1c8] ss:$16 sps:$4 sm:$0xff]  }
  0x69   : > { %1307 = vmatpush1.bf16.msra.mxu0 %v2125_v46 }
  0x6a   : > { %1380 = vmatpush1.bf16.msra.mxu1 %v2128_v47  ;;  %1308 = vmatprep.subr.bf16.mxu0 %v2133_v48 }
  0x6b   : > { %1381 = vmatprep.subr.bf16.mxu1 %v2136_v50 }
  0x6d   : > { %1309 = vmatpush2.bf16.msra.mxu0 %v2131_v52 }
  0x6e   : > { %1382 = vmatpush2.bf16.msra.mxu1 %v2134_v53  ;;  %1310 = vmatprep.subr.bf16.mxu0 %v2145_v54 }
  0x6f   : > { %1383 = vmatprep.subr.bf16.mxu1 %v2148_v49 }
  0x71   : > { %1311 = vmatpush2.bf16.msra.mxu0 %v2143_v51 }
  0x72   : > { %1384 = vmatpush2.bf16.msra.mxu1 %v2146_v55  ;;  %1312 = vmatprep.subr.bf16.mxu0 %v2151_v56 }
  0x73   : > { %1385 = vmatprep.subr.bf16.mxu1 %v2154_v57 }
  0x75   : > { %1313 = vmatpush2.bf16.msra.mxu0 %v2149_v58 }
  0x76   : > { %1386 = vmatpush2.bf16.msra.mxu1 %v2152_v59  ;;  %1314 = vmatprep.subr.bf16.mxu0 %v2163_v60 }
  0x77   : > { %1387 = vmatprep.subr.bf16.mxu1 %v2166_v61 }
  0x79   : > { %1315 = vmatpush2.bf16.msra.mxu0 %v2161_v62 }
  0x7a   : > { %1388 = vmatpush2.bf16.msra.mxu1 %v2164_v63  ;;  %1316 = vmatprep.subr.bf16.mxu0 %v2169_v0 }
  0x7b   : > { %1389 = vmatprep.subr.bf16.mxu1 %v2172_v1 }
  0x7d   : > { %1317 = vmatpush2.bf16.msra.mxu0 %v2167_v2 }
  0x7e   : > { %1390 = vmatpush2.bf16.msra.mxu1 %v2170_v3  ;;  %1318 = vmatprep.subr.bf16.mxu0 %v2181_v6 }
  0x7f   : > { %1391 = vmatprep.subr.bf16.mxu1 %v2184_v7 }
  0x81   : > { %1319 = vmatpush2.bf16.msra.mxu0 %v2179_v8 }
  0x82   : > { %1392 = vmatpush2.bf16.msra.mxu1 %v2182_v9  ;;  %1320 = vmatprep.subr.bf16.mxu0 %v2187_v10 }
  0x83   : > { %1393 = vmatprep.subr.bf16.mxu1 %v2190_v11 }
  0x85   : > { %1321 = vmatpush2.bf16.msra.mxu0 %v2185_v12 }
  0x86   : > { %1394 = vmatpush2.bf16.msra.mxu1 %v2188_v13  ;;  %1322 = vmatprep.subr.bf16.mxu0 %v2193_v14 }
  0x87   : > { %1395 = vmatprep.subr.bf16.mxu1 %v2196_v15 }
  0x89   : > { %1323 = vmatpush2.bf16.msra.mxu0 %v2191_v20 }
  0x8a   : > { %1396 = vmatpush2.bf16.msra.mxu1 %v2194_v21 }
  0x8c   : > { %1325 = vmatmul.mubr.bf16.vlgmr.msra.gmra.mxu0 %v2476_v4  ;;  %v406_v4 = vlaneseq }
  0x8d   : > { %1398 = vmatmul.mubr.bf16.vlgmr.msra.gmra.mxu1 %v2479_v5  ;;  %1334 = vmatprep.mubr.bf16.mxu0 %v2514_v16 }
  0x8e   : > { %1407 = vmatprep.mubr.bf16.mxu1 %v2520_v18  ;;  %v2733_v5 = vshrl.u32 %v406_v4, 7 }
  0x90   : > { %v408_v16 = vsub.s32 0, %v2733_v5  ;;  %v412_v18 = vsub.s32 1, %v2733_v5 }
  0x94   : > { %1335 = vmatmul.mubr.bf16.gmra.mxu0 %v2517_v17  ;;  %v2739_v17 = vld [vmem:[%s2830_s2] sm:$0xf] }
  0x95   : > { %1408 = vmatmul.mubr.bf16.gmra.mxu1 %v2523_v19  ;;  %1344 = vmatprep.mubr.bf16.mxu0 %v2554_v28  ;;  %v2743_v19 = vrot.slane %v2739_v17, %v408_v16  ;;  %v2746_v22 = vrot.slane %v2739_v17, %v412_v18 }
  0x96   : > { %1417 = vmatprep.mubr.bf16.mxu1 %v2560_v30 }
  0x9c   : > { %1345 = vmatmul.mubr.bf16.gmra.mxu0 %v2557_v29 }
  0x9d   : > { %1418 = vmatmul.mubr.bf16.gmra.mxu1 %v2563_v31  ;;  %1354 = vmatprep.mubr.bf16.mxu0 %v2594_v40 }
  0x9e   : > { %1427 = vmatprep.mubr.bf16.mxu1 %v2600_v42 }
  0xa4   : > { %1355 = vmatmul.mubr.bf16.gmra.mxu0 %v2597_v41 }
  0xa5   : > { %1428 = vmatmul.mubr.bf16.gmra.mxu1 %v2603_v43 }
 0x10c   : > { %v1180_v23 = vpop.f32.mrf.mxu0 }
 0x10d   : > { %v1253_v24 = vpop.f32.mrf.mxu1  ;;  %v1181_v25 = vadd.f32 %v1180_v23, %v2743_v19 }
 0x10e   : > { %v1182_v26 = vpop.f32.mrf.mxu0 }
 0x10f   : > { %v1255_v27 = vpop.f32.mrf.mxu1  ;;  %v1254_v28 = vadd.f32 %v1253_v24, %v1181_v25  ;;  %v1183_v29 = vadd.f32 %v1182_v26, %v2746_v22 }
 0x110   : > { %v1184_v30 = vpop.f32.mrf.mxu0 }
 0x111   : > { %v1257_v31 = vpop.f32.mrf.mxu1  ;;  %v1256_v32 = vadd.f32 %v1255_v27, %v1183_v29  ;;  %v1185_v33 = vadd.f32 %v1184_v30, %v2743_v19 }
 0x112   : > { %v1186_v34 = vpop.f32.mrf.mxu0 }
 0x113   : > { %v1259_v35 = vpop.f32.mrf.mxu1  ;;  %v1903_v36 = vpack.c.bf16 %v1256_v32, %v1254_v28  ;;  %v1187_v37 = vadd.f32 %v1186_v34, %v2746_v22  ;;  %v1258_v40 = vadd.f32 %v1257_v31, %v1185_v33 }
 0x114   : > { %v1190_v38 = vpop.f32.mrf.mxu0 }
 0x115   : > { %v1263_v39 = vpop.f32.mrf.mxu1  ;;  %1486 = vst [vmem:[%s2755_s11] sm:$0xff] %v1903_v36  ;;  %v1260_v41 = vadd.f32 %v1259_v35, %v1187_v37  ;;  %v1191_v42 = vadd.f32 %v1190_v38, %v2743_v19  ;;  %v416_v35 = vsub.s32 2, %v2733_v5  ;;  %v420_v36 = vsub.s32 3, %v2733_v5 }
 0x116   : > { %v1192_v43 = vpop.f32.mrf.mxu0 }
 0x117   : > { %v1265_v44 = vpop.f32.mrf.mxu1  ;;  %v1904_v45 = vpack.c.bf16 %v1260_v41, %v1258_v40  ;;  %v1193_v46 = vadd.f32 %v1192_v43, %v2746_v22  ;;  %v1264_v47 = vadd.f32 %v1263_v39, %v1191_v42  ;;  %v2781_v37 = vrot.slane %v2739_v17, %v416_v35 }
 0x118   : > { %v1194_v48 = vpop.f32.mrf.mxu0 }
 0x119   : > { %v1267_v50 = vpop.f32.mrf.mxu1  ;;  %1487 = vst [vmem:[%s2755_s11 + $0x8] sm:$0xff] %v1904_v45  ;;  %v1195_v52 = vadd.f32 %v1194_v48, %v2743_v19  ;;  %v1266_v53 = vadd.f32 %v1265_v44, %v1193_v46 }
 0x11a   : > { %v1196_v54 = vpop.f32.mrf.mxu0 }
 0x11b   : > { %v1269_v49 = vpop.f32.mrf.mxu1  ;;  %v1905_v51 = vpack.c.bf16 %v1266_v53, %v1264_v47  ;;  %v1197_v55 = vadd.f32 %v1196_v54, %v2746_v22  ;;  %v1268_v56 = vadd.f32 %v1267_v50, %v1195_v52 }
 0x11c   : > { %v1200_v57 = vpop.f32.mrf.mxu0 }
 0x11d   : > { %v1273_v58 = vpop.f32.mrf.mxu1  ;;  %1488 = vst [vmem:[%s2755_s11 + $0x10] sm:$0xff] %v1905_v51  ;;  %v1201_v59 = vadd.f32 %v1200_v57, %v2743_v19  ;;  %v1270_v60 = vadd.f32 %v1269_v49, %v1197_v55 }
 0x11e   : > { %v1202_v61 = vpop.f32.mrf.mxu0 }
 0x11f   : > { %v1275_v62 = vpop.f32.mrf.mxu1  ;;  %v1906_v63 = vpack.c.bf16 %v1270_v60, %v1268_v56  ;;  %v1203_v0 = vadd.f32 %v1202_v61, %v2746_v22  ;;  %v1274_v1 = vadd.f32 %v1273_v58, %v1201_v59 }
 0x120   : > { %v1204_v2 = vpop.f32.mrf.mxu0 }
 0x121   : > { %v1277_v3 = vpop.f32.mrf.mxu1  ;;  %1489 = vst [vmem:[%s2755_s11 + $0x18] sm:$0xff] %v1906_v63  ;;  %v1205_v6 = vadd.f32 %v1204_v2, %v2743_v19  ;;  %v1276_v7 = vadd.f32 %v1275_v62, %v1203_v0 }
 0x122   : > { %v1206_v8 = vpop.f32.mrf.mxu0 }
 0x123   : > { %v1279_v9 = vpop.f32.mrf.mxu1  ;;  %v1907_v10 = vpack.c.bf16 %v1276_v7, %v1274_v1  ;;  %v1207_v11 = vadd.f32 %v1206_v8, %v2746_v22  ;;  %v1278_v12 = vadd.f32 %v1277_v3, %v1205_v6 }
 0x124   : > { %v1210_v13 = vpop.f32.mrf.mxu0 }
 0x125   : > { %v1283_v14 = vpop.f32.mrf.mxu1  ;;  %1490 = vst [vmem:[%s2755_s11 + $0x20] sm:$0xff] %v1907_v10  ;;  %v1211_v15 = vadd.f32 %v1210_v13, %v2743_v19  ;;  %v1280_v20 = vadd.f32 %v1279_v9, %v1207_v11 }
 0x126   : > { %v1212_v21 = vpop.f32.mrf.mxu0 }
 0x127   : > { %v1285_v4 = vpop.f32.mrf.mxu1  ;;  %v1908_v16 = vpack.c.bf16 %v1280_v20, %v1278_v12  ;;  %v1213_v18 = vadd.f32 %v1212_v21, %v2746_v22  ;;  %v1284_v23 = vadd.f32 %v1283_v14, %v1211_v15 }
 0x128   : > { %v1214_v24 = vpop.f32.mrf.mxu0 }
 0x129   : > { %v1287_v25 = vpop.f32.mrf.mxu1  ;;  %1491 = vst [vmem:[%s2755_s11 + $0x28] sm:$0xff] %v1908_v16  ;;  %v1215_v26 = vadd.f32 %v1214_v24, %v2743_v19  ;;  %v1286_v27 = vadd.f32 %v1285_v4, %v1213_v18  ;;  %v2784_v19 = vrot.slane %v2739_v17, %v420_v36 }
 0x12a   : > { %v1216_v28 = vpop.f32.mrf.mxu0 }
 0x12b   : > { %v1289_v29 = vpop.f32.mrf.mxu1  ;;  %v1909_v30 = vpack.c.bf16 %v1286_v27, %v1284_v23  ;;  %v1217_v31 = vadd.f32 %v1216_v28, %v2746_v22  ;;  %v1288_v32 = vadd.f32 %v1287_v25, %v1215_v26 }
 0x12d   : > { %1492 = vst [vmem:[%s2755_s11 + $0x30] sm:$0xff] %v1909_v30  ;;  %v1290_v33 = vadd.f32 %v1289_v29, %v1217_v31 }
 0x12f   : > { %v1910_v34 = vpack.c.bf16 %v1290_v33, %v1288_v32 }
 0x131   : > { %1493 = vst [vmem:[%s2755_s11 + $0x38] sm:$0xff] %v1910_v34 }
 0x14c   : > { %v1326_v38 = vpop.f32.mrf.mxu0 }
 0x14d   : > { %v1399_v39 = vpop.f32.mrf.mxu1  ;;  %v1327_v40 = vadd.f32 %v1326_v38, %v2781_v37 }
 0x14e   : > { %v1328_v22 = vpop.f32.mrf.mxu0 }
 0x14f   : > { %v1401_v41 = vpop.f32.mrf.mxu1  ;;  %v1329_v42 = vadd.f32 %v1328_v22, %v2784_v19  ;;  %v1400_v43 = vadd.f32 %v1399_v39, %v1327_v40 }
 0x150   : > { %v1330_v44 = vpop.f32.mrf.mxu0 }
 0x151   : > { %v1403_v45 = vpop.f32.mrf.mxu1  ;;  %v1331_v5 = vadd.f32 %v1330_v44, %v2781_v37  ;;  %v1402_v48 = vadd.f32 %v1401_v41, %v1329_v42  ;;  %2197 = vtanh.f32 %v1400_v43 }
 0x152   : > { %v1332_v46 = vpop.f32.mrf.mxu0 }
 0x153   : > { %v1405_v47 = vpop.f32.mrf.mxu1  ;;  %v1404_v17 = vadd.f32 %v1403_v45, %v1331_v5  ;;  %v1333_v50 = vadd.f32 %v1332_v46, %v2784_v19  ;;  %v1542_v56 = vmax.f32 %v1402_v48, 0.0 }
 0x154   : > { %v1336_v52 = vpop.f32.mrf.mxu0 }
 0x155   : > { %v1409_v53 = vpop.f32.mrf.mxu1  ;;  %2199 = vtanh.f32 %v1404_v17  ;;  %v1406_v54 = vadd.f32 %v1405_v47, %v1333_v50  ;;  %v1337_v49 = vadd.f32 %v1336_v52, %v2781_v37 }
 0x156   : > { %v1338_v51 = vpop.f32.mrf.mxu0 }
 0x157   : > { %v1411_v55 = vpop.f32.mrf.mxu1  ;;  %v1543_v57 = vmax.f32 %v1406_v54, 0.0  ;;  %v1339_v58 = vadd.f32 %v1338_v51, %v2784_v19  ;;  %v1410_v59 = vadd.f32 %v1409_v53, %v1337_v49 }
 0x158   : > { %v1340_v60 = vpop.f32.mrf.mxu0 }
 0x159   : > { %v1413_v61 = vpop.f32.mrf.mxu1  ;;  %v1950_v62 = vpack.c.bf16 %v1543_v57, %v1542_v56  ;;  %v1341_v63 = vadd.f32 %v1340_v60, %v2781_v37  ;;  %v1412_v2 = vadd.f32 %v1411_v55, %v1339_v58  ;;  %2201 = vtanh.f32 %v1410_v59 }
 0x15a   : > { %v1342_v0 = vpop.f32.mrf.mxu0 }
 0x15b   : > { %v1415_v1 = vpop.f32.mrf.mxu1  ;;  %1951 = vst [vmem:[%s2798_s15] sm:$0xff] %v1950_v62   ;;  %v1414_v3 = vadd.f32 %v1413_v61, %v1341_v63  ;;  %v1343_v6 = vadd.f32 %v1342_v0, %v2784_v19  ;;  %v1544_v13 = vmax.f32 %v1412_v2, 0.0 }
 0x15c   : > { %v1346_v7 = vpop.f32.mrf.mxu0 }
 0x15d   : > { %v1419_v8 = vpop.f32.mrf.mxu1  ;;  %2203 = vtanh.f32 %v1414_v3  ;;  %v1416_v9 = vadd.f32 %v1415_v1, %v1343_v6  ;;  %v1347_v10 = vadd.f32 %v1346_v7, %v2781_v37 }
 0x15e   : > { %v1348_v11 = vpop.f32.mrf.mxu0  ;;  %v2198_v16 = vpop.eup %2197 }
 0x15f   : > { %v1421_v12 = vpop.f32.mrf.mxu1  ;;  %v1545_v14 = vmax.f32 %v1416_v9, 0.0  ;;  %v1349_v15 = vadd.f32 %v1348_v11, %v2784_v19  ;;  %v1420_v20 = vadd.f32 %v1419_v8, %v1347_v10 }
 0x160   : > { %v1350_v21 = vpop.f32.mrf.mxu0 }
 0x161   : > { %v1423_v4 = vpop.f32.mrf.mxu1  ;;  %v1955_v18 = vpack.c.bf16 %v1545_v14, %v1544_v13  ;;  %v1351_v23 = vadd.f32 %v1350_v21, %v2781_v37  ;;  %v1422_v28 = vadd.f32 %v1421_v12, %v1349_v15  ;;  %2205 = vtanh.f32 %v1420_v20 }
 0x162   : > { %v2200_v24 = vpop.eup %2199  ;;  %v1352_v25 = vpop.f32.mrf.mxu0 }
 0x163   : > { %v1425_v26 = vpop.f32.mrf.mxu1  ;;  %v1930_v27 = vpack.c.bf16 %v2200_v24, %v2198_v16  ;;  %1970 = vst [vmem:[%s2798_s15 + $0x8] sm:$0xff] %v1955_v18   ;;  %v1424_v29 = vadd.f32 %v1423_v4, %v1351_v23  ;;  %v1353_v30 = vadd.f32 %v1352_v25, %v2784_v19  ;;  %v1546_v38 = vmax.f32 %v1422_v28, 0.0 }
 0x164   : > { %v1356_v31 = vpop.f32.mrf.mxu0 }
 0x165   : > { %v1429_v32 = vpop.f32.mrf.mxu1  ;;  %1931 = vst [vmem:[%s2811_s19] sm:$0xff] %v1930_v27   ;;  %2207 = vtanh.f32 %v1424_v29  ;;  %v1426_v33 = vadd.f32 %v1425_v26, %v1353_v30  ;;  %v1357_v34 = vadd.f32 %v1356_v31, %v2781_v37 }
 0x166   : > { %v1358_v35 = vpop.f32.mrf.mxu0  ;;  %v2202_v43 = vpop.eup %2201 }
 0x167   : > { %v1431_v36 = vpop.f32.mrf.mxu1  ;;  %v1547_v39 = vmax.f32 %v1426_v33, 0.0  ;;  %v1359_v40 = vadd.f32 %v1358_v35, %v2784_v19  ;;  %v1430_v22 = vadd.f32 %v1429_v32, %v1357_v34 }
 0x168   : > { %v1360_v41 = vpop.f32.mrf.mxu0 }
 0x169   : > { %v1433_v42 = vpop.f32.mrf.mxu1  ;;  %v1960_v44 = vpack.c.bf16 %v1547_v39, %v1546_v38  ;;  %v1361_v45 = vadd.f32 %v1360_v41, %v2781_v37  ;;  %v1432_v48 = vadd.f32 %v1431_v36, %v1359_v40  ;;  %2209 = vtanh.f32 %v1430_v22 }
 0x16a   : > { %v2204_v5 = vpop.eup %2203  ;;  %v1362_v46 = vpop.f32.mrf.mxu0 }
 0x16b   : > { %v1935_v47 = vpack.c.bf16 %v2204_v5, %v2202_v43  ;;  %1971 = vst [vmem:[%s2798_s15 + $0x10] sm:$0xff] %v1960_v44   ;;  %v1434_v17 = vadd.f32 %v1433_v42, %v1361_v45  ;;  %v1363_v50 = vadd.f32 %v1362_v46, %v2784_v19  ;;  %v1435_v52 = vpop.f32.mrf.mxu1  ;;  %v1548_v54 = vmax.f32 %v1432_v48, 0.0 }
 0x16d   : > { %1967 = vst [vmem:[%s2811_s19 + $0x8] sm:$0xff] %v1935_v47   ;;  %2211 = vtanh.f32 %v1434_v17  ;;  %v1436_v53 = vadd.f32 %v1435_v52, %v1363_v50 }
 0x16e   : > { %v2206_v51 = vpop.eup %2205 }
 0x16f   : > { %v1549_v49 = vmax.f32 %v1436_v53, 0.0 }
 0x171   : > { %v1965_v37 = vpack.c.bf16 %v1549_v49, %v1548_v54 }
 0x172   : > { %v2208_v55 = vpop.eup %2207 }
 0x173   : > { %v1940_v56 = vpack.c.bf16 %v2208_v55, %v2206_v51  ;;  %1972 = vst [vmem:[%s2798_s15 + $0x18] sm:$0xff] %v1965_v37  }
 0x175   : > { %1968 = vst [vmem:[%s2811_s19 + $0x10] sm:$0xff] %v1940_v56  }
 0x176   : > { %v2210_v57 = vpop.eup %2209 }
 0x17a   : > { %v2212_v58 = vpop.eup %2211 }
 0x17b   : > { %v1945_v59 = vpack.c.bf16 %v2212_v58, %v2210_v57 }
 0x17d   : > { %1969 = vst [vmem:[%s2811_s19 + $0x18] sm:$0xff] %v1945_v59  }
 0x17e PF: > { %s16_s18 = sadd.s32 1, %s2219_s18  }
 0x17f   : > { %p13_p4 = scmp.ge.s32.totalorder %s16_s18, 4  }
 0x181   :  { %15 = sbr.rel (!%p13_p4) target bundleno = 1 (0x1), region = 86 }

// kernel: volraft_forward.17
= control target key start
LH: loop header
LB: loop body
LE: loop exit
PB: predicated region body
PF: predicated region fallthrough
CT: control target
= control target key end

     0   :  { %s1198_s12 = smov 0   ;;  %s1464_s0 = inlined_call_operand.vmem [shape: bf16[128,512], index: 0, kind: input, shape index: {}]   ;;  %s1465_s1 = inlined_call_operand.vmem [shape: bf16[512,256], index: 1, kind: input, shape index: {}]   ;;  %s1466_s2 = inlined_call_operand.vmem [shape: f32[1,256], index: 2, kind: input, shape index: {}]   ;;  %s1467_s3 = inlined_call_operand.vmem [shape: bf16[128,256], index: 3, kind: output, shape index: {}]  }
   0x1 LB: > { %s931_s13 = sadd.s32 4294967295, %s1176_s12   ;;  %p935_p0 = scmp.ge.s32.totalorder %s1176_s12, 1  ;;  %s1176_s12 = sphi %s1198_s12, %s13_s12  }
   0x2   : > { %p139_p1 = scmp.lt.s32.totalorder %s1176_s12, 3 }
   0x4   : > { %p140_p2 = pnand %p935_p0, %p139_p1 }
   0x5   : > { %s936_s24 = sshll.u32 (!%p140_p2), %s931_s13, 3 }
   0x6   : > { %143 = sbr.rel (%p140_p2) target bundleno = 306 (0x132), region = 32  ;;  %p166_p3 = scmp.lt.s32.totalorder (!%p140_p2), %s936_s24, 15 }
   0xb   : > { %v1050_v0 = vld [vmem:[%s1465_s1 + $0x74] ss:$8 sps:$4 sm:$0xff]   ;;  %v1054_v2 = vld [vmem:[%s1465_s1 + $0x70] ss:$8 sps:$4 sm:$0xff]   ;;  %v1056_v4 = vld [vmem:[%s1465_s1 + $0x64] ss:$8 sps:$4 sm:$0xff]  }
   0xc   : > { %v1052_v1 = vld [vmem:[%s1465_s1 + $0x174] ss:$8 sps:$4 sm:$0xff]   ;;  %671 = vmatprep.subr.bf16.mxu0 %v1050_v0  ;;  %v1055_v3 = vld [vmem:[%s1465_s1 + $0x170] ss:$8 sps:$4 sm:$0xff]   ;;  %v1058_v5 = vld [vmem:[%s1465_s1 + $0x164] ss:$8 sps:$4 sm:$0xff]  }
   0xd   : > { %744 = vmatprep.subr.bf16.mxu1 %v1052_v1  ;;  %672 = vmatpush1.bf16.msra.mxu0 %v1054_v2  ;;  %v1060_v6 = vld [vmem:[%s1465_s1 + $0x60] ss:$8 sps:$4 sm:$0xff]   ;;  %v1062_v8 = vld [vmem:[%s1465_s1 + $0x54] ss:$8 sps:$4 sm:$0xff]   ;;  %v1066_v10 = vld [vmem:[%s1465_s1 + $0x50] ss:$8 sps:$4 sm:$0xff]  }
   0xe   : > { %745 = vmatpush1.bf16.msra.mxu1 %v1055_v3  ;;  %673 = vmatprep.subr.bf16.mxu0 %v1056_v4  ;;  %v1061_v7 = vld [vmem:[%s1465_s1 + $0x160] ss:$8 sps:$4 sm:$0xff]   ;;  %v1064_v9 = vld [vmem:[%s1465_s1 + $0x154] ss:$8 sps:$4 sm:$0xff]   ;;  %v1067_v11 = vld [vmem:[%s1465_s1 + $0x150] ss:$8 sps:$4 sm:$0xff]  }
   0xf   : > { %746 = vmatprep.subr.bf16.mxu1 %v1058_v5  ;;  %v1068_v12 = vld [vmem:[%s1465_s1 + $0x44] ss:$8 sps:$4 sm:$0xff]   ;;  %v1072_v14 = vld [vmem:[%s1465_s1 + $0x40] ss:$8 sps:$4 sm:$0xff]   ;;  %v1074_v16 = vld [vmem:[%s1465_s1 + $0x34] ss:$8 sps:$4 sm:$0xff]  }
  0x10   : > { %v1070_v13 = vld [vmem:[%s1465_s1 + $0x144] ss:$8 sps:$4 sm:$0xff]   ;;  %v1073_v15 = vld [vmem:[%s1465_s1 + $0x140] ss:$8 sps:$4 sm:$0xff]   ;;  %v1076_v17 = vld [vmem:[%s1465_s1 + $0x134] ss:$8 sps:$4 sm:$0xff]  }
  0x11   : > { %674 = vmatpush1.bf16.msra.mxu0 %v1060_v6  ;;  %v1078_v18 = vld [vmem:[%s1465_s1 + $0x30] ss:$8 sps:$4 sm:$0xff]   ;;  %v1080_v20 = vld [vmem:[%s1465_s1 + $0x24] ss:$8 sps:$4 sm:$0xff]   ;;  %v1084_v22 = vld [vmem:[%s1465_s1 + $0x20] ss:$8 sps:$4 sm:$0xff]  }
  0x12   : > { %747 = vmatpush1.bf16.msra.mxu1 %v1061_v7  ;;  %675 = vmatprep.subr.bf16.mxu0 %v1062_v8  ;;  %v1079_v19 = vld [vmem:[%s1465_s1 + $0x130] ss:$8 sps:$4 sm:$0xff]   ;;  %v1082_v21 = vld [vmem:[%s1465_s1 + $0x124] ss:$8 sps:$4 sm:$0xff]   ;;  %v1085_v23 = vld [vmem:[%s1465_s1 + $0x120] ss:$8 sps:$4 sm:$0xff]  }
  0x13   : > { %748 = vmatprep.subr.bf16.mxu1 %v1064_v9  ;;  %v1086_v24 = vld [vmem:[%s1465_s1 + $0x14] ss:$8 sps:$4 sm:$0xff]   ;;  %v1090_v26 = vld [vmem:[%s1465_s1 + $0x10] ss:$8 sps:$4 sm:$0xff]   ;;  %v1092_v28 = vld [vmem:[%s1465_s1 + $0x4] ss:$8 sps:$4 sm:$0xff]  }
  0x14   : > { %v1088_v25 = vld [vmem:[%s1465_s1 + $0x114] ss:$8 sps:$4 sm:$0xff]   ;;  %v1091_v27 = vld [vmem:[%s1465_s1 + $0x110] ss:$8 sps:$4 sm:$0xff]   ;;  %v1094_v29 = vld [vmem:[%s1465_s1 + $0x104] ss:$8 sps:$4 sm:$0xff]  }
  0x15   : > { %676 = vmatpush1.bf16.msra.mxu0 %v1066_v10  ;;  %v1096_v30 = vld [vmem:[%s1465_s1] ss:$8 sps:$4 sm:$0xff]   ;;  %v1098_v32 = vld [vmem:[%s1465_s1 + $0xf4] ss:$8 sps:$4 sm:$0xff]   ;;  %v1102_v34 = vld [vmem:[%s1465_s1 + $0xf0] ss:$8 sps:$4 sm:$0xff]  }
  0x16   : > { %749 = vmatpush1.bf16.msra.mxu1 %v1067_v11  ;;  %677 = vmatprep.subr.bf16.mxu0 %v1068_v12  ;;  %v1097_v31 = vld [vmem:[%s1465_s1 + $0x100] ss:$8 sps:$4 sm:$0xff]   ;;  %v1100_v33 = vld [vmem:[%s1465_s1 + $0x1f4] ss:$8 sps:$4 sm:$0xff]   ;;  %v1103_v35 = vld [vmem:[%s1465_s1 + $0x1f0] ss:$8 sps:$4 sm:$0xff]  }
  0x17   : > { %750 = vmatprep.subr.bf16.mxu1 %v1070_v13  ;;  %v1104_v36 = vld [vmem:[%s1465_s1 + $0xe4] ss:$8 sps:$4 sm:$0xff]   ;;  %s1469_s24 = smov (!%p166_p3, %s936_s24), 15  ;;  %v1108_v38 = vld [vmem:[%s1465_s1 + $0xe0] ss:$8 sps:$4 sm:$0xff]  }
  0x18   : > { %v1106_v37 = vld [vmem:[%s1465_s1 + $0x1e4] ss:$8 sps:$4 sm:$0xff]   ;;  %v1109_v39 = vld [vmem:[%s1465_s1 + $0x1e0] ss:$8 sps:$4 sm:$0xff]   ;;  %v1110_v40 = vld [vmem:[%s1465_s1 + $0xd4] ss:$8 sps:$4 sm:$0xff]  }
  0x19   : > { %678 = vmatpush1.bf16.msra.mxu0 %v1072_v14  ;;  %v1112_v41 = vld [vmem:[%s1465_s1 + $0x1d4] ss:$8 sps:$4 sm:$0xff]   ;;  %s1032_s23 = sshll.u32 %s1469_s24, 4  ;;  %v1114_v42 = vld [vmem:[%s1465_s1 + $0xd0] ss:$8 sps:$4 sm:$0xff]  }
  0x1a   : > { %751 = vmatpush1.bf16.msra.mxu1 %v1073_v15  ;;  %679 = vmatprep.subr.bf16.mxu0 %v1074_v16  ;;  %v1115_v43 = vld [vmem:[%s1465_s1 + $0x1d0] ss:$8 sps:$4 sm:$0xff]   ;;  %v1116_v44 = vld [vmem:[%s1465_s1 + $0xc4] ss:$8 sps:$4 sm:$0xff]   ;;  %s1349_s13 = scalar_lea.vmem %s1464_s0, %s1032_s23  ;;  %v1120_v46 = vld [vmem:[%s1465_s1 + $0xc0] ss:$8 sps:$4 sm:$0xff]   ;;  %v261_v16 = vlaneseq }
  0x1b   : > { %752 = vmatprep.subr.bf16.mxu1 %v1076_v17  ;;  %v1118_v45 = vld [vmem:[%s1465_s1 + $0x1c4] ss:$8 sps:$4 sm:$0xff]   ;;  %v1121_v47 = vld [vmem:[%s1465_s1 + $0x1c0] ss:$8 sps:$4 sm:$0xff]   ;;  %v1122_v48 = vld [vmem:[%s1465_s1 + $0xb4] ss:$8 sps:$4 sm:$0xff]  }
  0x1c   : > { %v1148_v49 = vld [vmem:[%s1349_s13 + $0x4] ss:$16 sps:$4 sm:$0xff]   ;;  %v1151_v51 = vld [vmem:[%s1349_s13 + $0xc] ss:$16 sps:$4 sm:$0xff]   ;;  %v1126_v52 = vld [vmem:[%s1465_s1 + $0xb0] ss:$8 sps:$4 sm:$0xff]  }
  0x1d   : > { %680 = vmatpush1.bf16.msra.mxu0 %v1078_v18  ;;  %v1124_v50 = vld [vmem:[%s1465_s1 + $0x1b4] ss:$8 sps:$4 sm:$0xff]   ;;  %703 = vmatprep.mubr.bf16.mxu0 %v1148_v49  ;;  %v1127_v53 = vld [vmem:[%s1465_s1 + $0x1b0] ss:$8 sps:$4 sm:$0xff]   ;;  %v1128_v54 = vld [vmem:[%s1465_s1 + $0xa4] ss:$8 sps:$4 sm:$0xff]  }
  0x1e   : > { %753 = vmatpush1.bf16.msra.mxu1 %v1079_v19  ;;  %681 = vmatprep.subr.bf16.mxu0 %v1080_v20  ;;  %v1130_v55 = vld [vmem:[%s1465_s1 + $0x1a4] ss:$8 sps:$4 sm:$0xff]   ;;  %v1132_v56 = vld [vmem:[%s1465_s1 + $0xa0] ss:$8 sps:$4 sm:$0xff]   ;;  %v1134_v58 = vld [vmem:[%s1465_s1 + $0x94] ss:$8 sps:$4 sm:$0xff]  }
  0x1f   : > { %754 = vmatprep.subr.bf16.mxu1 %v1082_v21  ;;  %776 = vmatprep.mubr.bf16.mxu1 %v1151_v51  ;;  %v1133_v57 = vld [vmem:[%s1465_s1 + $0x1a0] ss:$8 sps:$4 sm:$0xff]   ;;  %v1136_v59 = vld [vmem:[%s1465_s1 + $0x194] ss:$8 sps:$4 sm:$0xff]   ;;  %v1138_v60 = vld [vmem:[%s1465_s1 + $0x90] ss:$8 sps:$4 sm:$0xff]  }
  0x20   : > { %v1139_v61 = vld [vmem:[%s1465_s1 + $0x190] ss:$8 sps:$4 sm:$0xff]   ;;  %v1140_v62 = vld [vmem:[%s1465_s1 + $0x84] ss:$8 sps:$4 sm:$0xff]   ;;  %v1144_v0 = vld [vmem:[%s1465_s1 + $0x80] ss:$8 sps:$4 sm:$0xff]  }
  0x21   : > { %682 = vmatpush1.bf16.msra.mxu0 %v1084_v22  ;;  %v1142_v63 = vld [vmem:[%s1465_s1 + $0x184] ss:$8 sps:$4 sm:$0xff]   ;;  %v1145_v1 = vld [vmem:[%s1465_s1 + $0x180] ss:$8 sps:$4 sm:$0xff]   ;;  %v262_v17 = vshrl.u32 %v261_v16, 7 }
  0x22   : > { %755 = vmatpush1.bf16.msra.mxu1 %v1085_v23  ;;  %683 = vmatprep.subr.bf16.mxu0 %v1086_v24  ;;  %v1146_v2 = vld [vmem:[%s1349_s13] ss:$16 sps:$4 sm:$0xff]   ;;  %v1149_v3 = vld [vmem:[%s1349_s13 + $0x8] ss:$16 sps:$4 sm:$0xff]   ;;  %v1152_v4 = vld [vmem:[%s1349_s13 + $0x24] ss:$16 sps:$4 sm:$0xff]  }
  0x23   : > { %756 = vmatprep.subr.bf16.mxu1 %v1088_v25  ;;  %v1154_v5 = vld [vmem:[%s1349_s13 + $0x2c] ss:$16 sps:$4 sm:$0xff]   ;;  %v1156_v6 = vld [vmem:[%s1349_s13 + $0x20] ss:$16 sps:$4 sm:$0xff]   ;;  %v1157_v7 = vld [vmem:[%s1349_s13 + $0x28] ss:$16 sps:$4 sm:$0xff]  }
  0x24   : > { %v1158_v8 = vld [vmem:[%s1349_s13 + $0x44] ss:$16 sps:$4 sm:$0xff]   ;;  %v1160_v9 = vld [vmem:[%s1349_s13 + $0x4c] ss:$16 sps:$4 sm:$0xff]   ;;  %v1162_v10 = vld [vmem:[%s1349_s13 + $0x40] ss:$16 sps:$4 sm:$0xff]  }
  0x25   : > { %684 = vmatpush1.bf16.msra.mxu0 %v1090_v26  ;;  %v1163_v11 = vld [vmem:[%s1349_s13 + $0x48] ss:$16 sps:$4 sm:$0xff]   ;;  %v1164_v12 = vld [vmem:[%s1349_s13 + $0x64] ss:$16 sps:$4 sm:$0xff]   ;;  %v1166_v13 = vld [vmem:[%s1349_s13 + $0x6c] ss:$16 sps:$4 sm:$0xff]  }
  0x26   : > { %757 = vmatpush1.bf16.msra.mxu1 %v1091_v27  ;;  %685 = vmatprep.subr.bf16.mxu0 %v1092_v28  ;;  %v1168_v14 = vld [vmem:[%s1349_s13 + $0x60] ss:$16 sps:$4 sm:$0xff]   ;;  %v1169_v15 = vld [vmem:[%s1349_s13 + $0x68] ss:$16 sps:$4 sm:$0xff]   ;;  %v263_v18 = vsub.s32 0, %v262_v17  ;;  %v267_v20 = vsub.s32 1, %v262_v17 }
  0x27   : > { %758 = vmatprep.subr.bf16.mxu1 %v1094_v29  ;;  %v259_v19 = vld [vmem:[%s1466_s2] sm:$0x3]  ;;  %s1033_s13 = sshll.u32 %s1469_s24, 3 }
  0x28   : > { %v1427_v21 = vrot.slane %v259_v19, %v263_v18  ;;  %v1429_v22 = vrot.slane %v259_v19, %v267_v20  ;;  %s1438_s27 = scalar_lea.vmem %s1467_s3, %s1033_s13 }
  0x29   : > { %686 = vmatpush1.bf16.msra.mxu0 %v1096_v30 }
  0x2a   : > { %759 = vmatpush1.bf16.msra.mxu1 %v1097_v31  ;;  %687 = vmatprep.subr.bf16.mxu0 %v1098_v32 }
  0x2b   : > { %760 = vmatprep.subr.bf16.mxu1 %v1100_v33 }
  0x2d   : > { %688 = vmatpush2.bf16.msra.mxu0 %v1102_v34 }
  0x2e   : > { %761 = vmatpush2.bf16.msra.mxu1 %v1103_v35  ;;  %689 = vmatprep.subr.bf16.mxu0 %v1104_v36 }
  0x2f   : > { %762 = vmatprep.subr.bf16.mxu1 %v1106_v37 }
  0x31   : > { %690 = vmatpush2.bf16.msra.mxu0 %v1108_v38 }
  0x32   : > { %763 = vmatpush2.bf16.msra.mxu1 %v1109_v39  ;;  %691 = vmatprep.subr.bf16.mxu0 %v1110_v40 }
  0x33   : > { %764 = vmatprep.subr.bf16.mxu1 %v1112_v41 }
  0x35   : > { %692 = vmatpush2.bf16.msra.mxu0 %v1114_v42 }
  0x36   : > { %765 = vmatpush2.bf16.msra.mxu1 %v1115_v43  ;;  %693 = vmatprep.subr.bf16.mxu0 %v1116_v44 }
  0x37   : > { %766 = vmatprep.subr.bf16.mxu1 %v1118_v45 }
  0x39   : > { %694 = vmatpush2.bf16.msra.mxu0 %v1120_v46 }
  0x3a   : > { %767 = vmatpush2.bf16.msra.mxu1 %v1121_v47  ;;  %695 = vmatprep.subr.bf16.mxu0 %v1122_v48 }
  0x3b   : > { %768 = vmatprep.subr.bf16.mxu1 %v1124_v50 }
  0x3d   : > { %696 = vmatpush2.bf16.msra.mxu0 %v1126_v52 }
  0x3e   : > { %769 = vmatpush2.bf16.msra.mxu1 %v1127_v53  ;;  %697 = vmatprep.subr.bf16.mxu0 %v1128_v54 }
  0x3f   : > { %770 = vmatprep.subr.bf16.mxu1 %v1130_v55 }
  0x41   : > { %698 = vmatpush2.bf16.msra.mxu0 %v1132_v56 }
  0x42   : > { %771 = vmatpush2.bf16.msra.mxu1 %v1133_v57  ;;  %699 = vmatprep.subr.bf16.mxu0 %v1134_v58 }
  0x43   : > { %772 = vmatprep.subr.bf16.mxu1 %v1136_v59 }
  0x45   : > { %700 = vmatpush2.bf16.msra.mxu0 %v1138_v60 }
  0x46   : > { %773 = vmatpush2.bf16.msra.mxu1 %v1139_v61  ;;  %701 = vmatprep.subr.bf16.mxu0 %v1140_v62 }
  0x47   : > { %774 = vmatprep.subr.bf16.mxu1 %v1142_v63 }
  0x49   : > { %702 = vmatpush2.bf16.msra.mxu0 %v1144_v0 }
  0x4a   : > { %775 = vmatpush2.bf16.msra.mxu1 %v1145_v1 }
  0x4c   : > { %704 = vmatmul.mubr.bf16.vlgmr.msra.gmra.mxu0 %v1146_v2 }
  0x4d   : > { %777 = vmatmul.mubr.bf16.vlgmr.msra.gmra.mxu1 %v1149_v3  ;;  %713 = vmatprep.mubr.bf16.mxu0 %v1152_v4 }
  0x4e   : > { %786 = vmatprep.mubr.bf16.mxu1 %v1154_v5 }
  0x54   : > { %714 = vmatmul.mubr.bf16.gmra.mxu0 %v1156_v6 }
  0x55   : > { %787 = vmatmul.mubr.bf16.gmra.mxu1 %v1157_v7  ;;  %723 = vmatprep.mubr.bf16.mxu0 %v1158_v8 }
  0x56   : > { %796 = vmatprep.mubr.bf16.mxu1 %v1160_v9 }
  0x5c   : > { %724 = vmatmul.mubr.bf16.gmra.mxu0 %v1162_v10 }
  0x5d   : > { %797 = vmatmul.mubr.bf16.gmra.mxu1 %v1163_v11  ;;  %733 = vmatprep.mubr.bf16.mxu0 %v1164_v12 }
  0x5e   : > { %806 = vmatprep.mubr.bf16.mxu1 %v1166_v13 }
  0x64   : > { %734 = vmatmul.mubr.bf16.gmra.mxu0 %v1168_v14 }
  0x65   : > { %807 = vmatmul.mubr.bf16.gmra.mxu1 %v1169_v15 }
 0x10c   : > { %v705_v23 = vpop.f32.mrf.mxu0 }
 0x10d   : > { %v778_v24 = vpop.f32.mrf.mxu1  ;;  %v706_v25 = vadd.f32 %v705_v23, %v1427_v21 }
 0x10e   : > { %v707_v26 = vpop.f32.mrf.mxu0 }
 0x10f   : > { %v780_v27 = vpop.f32.mrf.mxu1  ;;  %v708_v28 = vadd.f32 %v707_v26, %v1429_v22  ;;  %v779_v31 = vadd.f32 %v778_v24, %v706_v25 }
 0x110   : > { %v709_v29 = vpop.f32.mrf.mxu0 }
 0x111   : > { %v782_v30 = vpop.f32.mrf.mxu1  ;;  %v781_v32 = vadd.f32 %v780_v27, %v708_v28  ;;  %v710_v33 = vadd.f32 %v709_v29, %v1427_v21 }
 0x112   : > { %v711_v34 = vpop.f32.mrf.mxu0 }
 0x113   : > { %v784_v35 = vpop.f32.mrf.mxu1  ;;  %v1034_v36 = vpack.c.bf16 %v781_v32, %v779_v31  ;;  %v712_v37 = vadd.f32 %v711_v34, %v1429_v22  ;;  %v783_v40 = vadd.f32 %v782_v30, %v710_v33 }
 0x114   : > { %v715_v38 = vpop.f32.mrf.mxu0 }
 0x115   : > { %v788_v39 = vpop.f32.mrf.mxu1  ;;  %865 = vst [vmem:[%s1438_s27] sm:$0xff] %v1034_v36  ;;  %v785_v41 = vadd.f32 %v784_v35, %v712_v37  ;;  %v716_v42 = vadd.f32 %v715_v38, %v1427_v21 }
 0x116   : > { %v717_v43 = vpop.f32.mrf.mxu0 }
 0x117   : > { %v790_v44 = vpop.f32.mrf.mxu1  ;;  %v1035_v45 = vpack.c.bf16 %v785_v41, %v783_v40  ;;  %v718_v46 = vadd.f32 %v717_v43, %v1429_v22  ;;  %v789_v49 = vadd.f32 %v788_v39, %v716_v42 }
 0x118   : > { %v719_v47 = vpop.f32.mrf.mxu0 }
 0x119   : > { %v792_v48 = vpop.f32.mrf.mxu1  ;;  %866 = vst [vmem:[%s1438_s27 + $0x8] sm:$0xff] %v1035_v45  ;;  %v791_v50 = vadd.f32 %v790_v44, %v718_v46  ;;  %v720_v51 = vadd.f32 %v719_v47, %v1427_v21 }
 0x11a   : > { %v721_v52 = vpop.f32.mrf.mxu0 }
 0x11b   : > { %v794_v53 = vpop.f32.mrf.mxu1  ;;  %v1036_v54 = vpack.c.bf16 %v791_v50, %v789_v49  ;;  %v722_v55 = vadd.f32 %v721_v52, %v1429_v22  ;;  %v793_v58 = vadd.f32 %v792_v48, %v720_v51 }
 0x11c   : > { %v725_v56 = vpop.f32.mrf.mxu0 }
 0x11d   : > { %v798_v57 = vpop.f32.mrf.mxu1  ;;  %867 = vst [vmem:[%s1438_s27 + $0x10] sm:$0xff] %v1036_v54  ;;  %v795_v59 = vadd.f32 %v794_v53, %v722_v55  ;;  %v726_v60 = vadd.f32 %v725_v56, %v1427_v21 }
 0x11e   : > { %v727_v61 = vpop.f32.mrf.mxu0 }
 0x11f   : > { %v800_v62 = vpop.f32.mrf.mxu1  ;;  %v1037_v63 = vpack.c.bf16 %v795_v59, %v793_v58  ;;  %v728_v0 = vadd.f32 %v727_v61, %v1429_v22  ;;  %v799_v3 = vadd.f32 %v798_v57, %v726_v60 }
 0x120   : > { %v729_v1 = vpop.f32.mrf.mxu0 }
 0x121   : > { %v802_v2 = vpop.f32.mrf.mxu1  ;;  %868 = vst [vmem:[%s1438_s27 + $0x18] sm:$0xff] %v1037_v63  ;;  %v801_v4 = vadd.f32 %v800_v62, %v728_v0  ;;  %v730_v5 = vadd.f32 %v729_v1, %v1427_v21 }
 0x122   : > { %v731_v6 = vpop.f32.mrf.mxu0 }
 0x123   : > { %v804_v7 = vpop.f32.mrf.mxu1  ;;  %v1038_v8 = vpack.c.bf16 %v801_v4, %v799_v3  ;;  %v732_v9 = vadd.f32 %v731_v6, %v1429_v22  ;;  %v803_v12 = vadd.f32 %v802_v2, %v730_v5 }
 0x124   : > { %v735_v10 = vpop.f32.mrf.mxu0 }
 0x125   : > { %v808_v11 = vpop.f32.mrf.mxu1  ;;  %869 = vst [vmem:[%s1438_s27 + $0x20] sm:$0xff] %v1038_v8  ;;  %v805_v13 = vadd.f32 %v804_v7, %v732_v9  ;;  %v736_v14 = vadd.f32 %v735_v10, %v1427_v21 }
 0x126   : > { %v737_v15 = vpop.f32.mrf.mxu0 }
 0x127   : > { %v810_v16 = vpop.f32.mrf.mxu1  ;;  %v1039_v17 = vpack.c.bf16 %v805_v13, %v803_v12  ;;  %v738_v18 = vadd.f32 %v737_v15, %v1429_v22  ;;  %v809_v23 = vadd.f32 %v808_v11, %v736_v14 }
 0x128   : > { %v739_v19 = vpop.f32.mrf.mxu0 }
 0x129   : > { %v812_v20 = vpop.f32.mrf.mxu1  ;;  %870 = vst [vmem:[%s1438_s27 + $0x28] sm:$0xff] %v1039_v17  ;;  %v811_v24 = vadd.f32 %v810_v16, %v738_v18  ;;  %v740_v25 = vadd.f32 %v739_v19, %v1427_v21 }
 0x12a   : > { %v741_v26 = vpop.f32.mrf.mxu0 }
 0x12b   : > { %v1040_v27 = vpack.c.bf16 %v811_v24, %v809_v23  ;;  %v742_v28 = vadd.f32 %v741_v26, %v1429_v22  ;;  %v814_v29 = vpop.f32.mrf.mxu1  ;;  %v813_v30 = vadd.f32 %v812_v20, %v740_v25 }
 0x12d   : > { %871 = vst [vmem:[%s1438_s27 + $0x30] sm:$0xff] %v1040_v27  ;;  %v815_v31 = vadd.f32 %v814_v29, %v742_v28 }
 0x12f   : > { %v1041_v32 = vpack.c.bf16 %v815_v31, %v813_v30 }
 0x131   : > { %872 = vst [vmem:[%s1438_s27 + $0x38] sm:$0xff] %v1041_v32 }
 0x132 PF: > { %s13_s12 = sadd.s32 1, %s1176_s12  }
 0x133   : > { %p10_p4 = scmp.ge.s32.totalorder %s13_s12, 4  }
 0x135   :  { %12 = sbr.rel (!%p10_p4) target bundleno = 1 (0x1), region = 62 }

// kernel: volraft_forward.18
= control target key start
LH: loop header
LB: loop body
LE: loop exit
PB: predicated region body
PF: predicated region fallthrough
CT: control target
= control target key end

     0   :  { %s787_s9 = smov 0   ;;  %s789_s10 = smov 0   ;;  %s890_s0 = inlined_call_operand.vmem [shape: bf16[128,64], index: 0, kind: input, shape index: {}]   ;;  %s891_s1 = inlined_call_operand.vmem [shape: bf16[2,64,256], index: 1, kind: input, shape index: {}]   ;;  %s892_s2 = inlined_call_operand.vmem [shape: f32[2,128,256], index: 2, kind: output, shape index: {}]  }
   0x1   :  { %s791_s11 = smov 0  }
   0x2 LB: > { %s24_s12 = sadd.s32 1, %s765_s10  ;;  %p660_p0 = scmp.ge.s32.totalorder %s769_s11, 1  ;;  %s769_s11 = sphi %s791_s11, %s12_s11   ;;  %s765_s10 = sphi %s789_s10, %s894_s10   ;;  %s761_s9 = sphi %s787_s9, %s893_s9  }
   0x3   : > { %p26_p1 = scmp.ge.s32.totalorder %s24_s12, 2  ;;  %p141_p2 = scmp.lt.s32.totalorder %s769_s11, 3 }
   0x5   : > { %s896_s12 = smov (%p26_p1, %s24_s12), 0  ;;  %p142_p3 = pnand %p660_p0, %p141_p2 }
   0x6   : > { %p177_p4 = scmp.lt.s32.totalorder (!%p142_p3), %s761_s9, 1 }
   0x7   : > { %145 = sbr.rel (%p142_p3) target bundleno = 256 (0x100), region = 28 }
   0xc   : > { %v771_v0 = vmov 0   ;;  %s898_s9 = smov (!%p177_p4, %s761_s9), 1  ;;  %v739_v9 = vld [vmem:[%s890_s0] sm:$0xff]   ;;  %vm365_vm0 = vcmask 523264   ;;  %v741_v11 = vld [vmem:[%s890_s0 + $0x8] sm:$0xff]   ;;  %v743_v13 = vld [vmem:[%s890_s0 + $0x10] sm:$0xff]  }
   0xd   : > { %422 = vmatprep.mubr.bf16.mxu0 %v771_v0  ;;  %462 = vmatprep.mubr.bf16.mxu1 %v771_v0  ;;  %s691_s13 = sshll.u32 %s898_s9, 6  ;;  %v740_v10 = vld [vmem:[%s890_s0 + $0x20] sm:$0xff]   ;;  %v742_v12 = vld [vmem:[%s890_s0 + $0x28] sm:$0xff]   ;;  %v744_v14 = vld [vmem:[%s890_s0 + $0x30] sm:$0xff]   ;;  %s692_s5 = sshll.u32 %s898_s9, 8 }
   0xe   : > { %s185_s16 = scalar_lea.vmem %s891_s1, %s691_s13  ;;  %v745_v15 = vld [vmem:[%s890_s0 + $0x18] sm:$0xff]   ;;  %s847_s8 = scalar_lea.vmem %s892_s2, %s692_s5 }
   0xf   : > { %v727_v1 = vld [vmem:[%s185_s16 + $0x34] ss:$8 sps:$4 sm:$0xff]   ;;  %v729_v2 = vld [vmem:[%s185_s16 + $0x30] ss:$8 sps:$4 sm:$0xff]   ;;  %v730_v3 = vld [vmem:[%s185_s16 + $0x24] ss:$8 sps:$4 sm:$0xff]  }
  0x10   : > { %398 = vmatprep.subr.bf16.mxu0 %v727_v1  ;;  %693 = vmatprep.subr.bf16.mxu1 %v727_v1  ;;  %v732_v4 = vld [vmem:[%s185_s16 + $0x20] ss:$8 sps:$4 sm:$0xff]   ;;  %v733_v5 = vld [vmem:[%s185_s16 + $0x14] ss:$8 sps:$4 sm:$0xff]   ;;  %v735_v6 = vld [vmem:[%s185_s16 + $0x10] ss:$8 sps:$4 sm:$0xff]  }
  0x11   : > { %399 = vmatpush1.bf16.msra.mxu0 %v729_v2  ;;  %697 = vmatpush1.bf16.msra.mxu1 %v729_v2  ;;  %v736_v7 = vld [vmem:[%s185_s16 + $0x4] ss:$8 sps:$4 sm:$0xff]   ;;  %v738_v8 = vld [vmem:[%s185_s16] ss:$8 sps:$4 sm:$0xff]   ;;  %v746_v16 = vld [vmem:[%s890_s0 + $0x38] sm:$0xff]  }
  0x12   : > { %400 = vmatprep.subr.bf16.mxu0 %v730_v3  ;;  %694 = vmatprep.subr.bf16.mxu1 %v730_v3 }
  0x15   : > { %401 = vmatpush1.bf16.msra.mxu0 %v732_v4  ;;  %698 = vmatpush1.bf16.msra.mxu1 %v732_v4 }
  0x16   : > { %402 = vmatprep.subr.bf16.mxu0 %v733_v5  ;;  %695 = vmatprep.subr.bf16.mxu1 %v733_v5 }
  0x19   : > { %403 = vmatpush1.bf16.msra.mxu0 %v735_v6  ;;  %699 = vmatpush1.bf16.msra.mxu1 %v735_v6 }
  0x1a   : > { %404 = vmatprep.subr.bf16.mxu0 %v736_v7  ;;  %696 = vmatprep.subr.bf16.mxu1 %v736_v7 }
  0x1d   : > { %405 = vmatpush1.bf16.msra.mxu0 %v738_v8  ;;  %700 = vmatpush1.bf16.msra.mxu1 %v738_v8 }
  0x20   : > { %681 = vmatmul.mubr.msk.bf16.vlgmr.msra.gmra.mxu0 %vm365_vm0, %v739_v9  ;;  %685 = vmatmul.mubr.msk.bf16.vlgmr.msra.gmra.mxu1 %vm365_vm0, %v740_v10 }
  0x21   : > { %432 = vmatprep.mubr.bf16.mxu0 %v771_v0  ;;  %472 = vmatprep.mubr.bf16.mxu1 %v771_v0 }
  0x28   : > { %682 = vmatmul.mubr.msk.bf16.gmra.mxu0 %vm365_vm0, %v741_v11  ;;  %686 = vmatmul.mubr.msk.bf16.gmra.mxu1 %vm365_vm0, %v742_v12 }
  0x29   : > { %442 = vmatprep.mubr.bf16.mxu0 %v771_v0  ;;  %482 = vmatprep.mubr.bf16.mxu1 %v771_v0 }
  0x30   : > { %683 = vmatmul.mubr.msk.bf16.gmra.mxu0 %vm365_vm0, %v743_v13  ;;  %687 = vmatmul.mubr.msk.bf16.gmra.mxu1 %vm365_vm0, %v744_v14 }
  0x31   : > { %452 = vmatprep.mubr.bf16.mxu0 %v771_v0  ;;  %492 = vmatprep.mubr.bf16.mxu1 %v771_v0 }
  0x38   : > { %684 = vmatmul.mubr.msk.bf16.gmra.mxu0 %vm365_vm0, %v745_v15  ;;  %688 = vmatmul.mubr.msk.bf16.gmra.mxu1 %vm365_vm0, %v746_v16 }
  0xe0   : > { %v424_v17 = vpop.f32.mrf.mxu0  ;;  %v464_v18 = vpop.f32.mrf.mxu1 }
  0xe1   : > { %535 = vst [vmem:[%s847_s8] sm:$0xff] %v424_v17  ;;  %551 = vst [vmem:[%s847_s8 + $0x80] sm:$0xff] %v464_v18 }
  0xe2   : > { %v426_v19 = vpop.f32.mrf.mxu0  ;;  %v466_v20 = vpop.f32.mrf.mxu1 }
  0xe3   : > { %536 = vst [vmem:[%s847_s8 + $0x8] sm:$0xff] %v426_v19  ;;  %552 = vst [vmem:[%s847_s8 + $0x88] sm:$0xff] %v466_v20 }
  0xe4   : > { %v428_v21 = vpop.f32.mrf.mxu0  ;;  %v468_v22 = vpop.f32.mrf.mxu1 }
  0xe5   : > { %537 = vst [vmem:[%s847_s8 + $0x10] sm:$0xff] %v428_v21  ;;  %553 = vst [vmem:[%s847_s8 + $0x90] sm:$0xff] %v468_v22 }
  0xe6   : > { %v430_v23 = vpop.f32.mrf.mxu0  ;;  %v470_v24 = vpop.f32.mrf.mxu1 }
  0xe7   : > { %538 = vst [vmem:[%s847_s8 + $0x18] sm:$0xff] %v430_v23  ;;  %554 = vst [vmem:[%s847_s8 + $0x98] sm:$0xff] %v470_v24 }
  0xe8   : > { %v434_v25 = vpop.f32.mrf.mxu0  ;;  %v474_v26 = vpop.f32.mrf.mxu1 }
  0xe9   : > { %539 = vst [vmem:[%s847_s8 + $0x20] sm:$0xff] %v434_v25  ;;  %555 = vst [vmem:[%s847_s8 + $0xa0] sm:$0xff] %v474_v26 }
  0xea   : > { %v436_v27 = vpop.f32.mrf.mxu0  ;;  %v476_v28 = vpop.f32.mrf.mxu1 }
  0xeb   : > { %540 = vst [vmem:[%s847_s8 + $0x28] sm:$0xff] %v436_v27  ;;  %556 = vst [vmem:[%s847_s8 + $0xa8] sm:$0xff] %v476_v28 }
  0xec   : > { %v438_v29 = vpop.f32.mrf.mxu0  ;;  %v478_v30 = vpop.f32.mrf.mxu1 }
  0xed   : > { %541 = vst [vmem:[%s847_s8 + $0x30] sm:$0xff] %v438_v29  ;;  %557 = vst [vmem:[%s847_s8 + $0xb0] sm:$0xff] %v478_v30 }
  0xee   : > { %v440_v31 = vpop.f32.mrf.mxu0  ;;  %v480_v32 = vpop.f32.mrf.mxu1 }
  0xef   : > { %542 = vst [vmem:[%s847_s8 + $0x38] sm:$0xff] %v440_v31  ;;  %558 = vst [vmem:[%s847_s8 + $0xb8] sm:$0xff] %v480_v32 }
  0xf0   : > { %v444_v33 = vpop.f32.mrf.mxu0  ;;  %v484_v34 = vpop.f32.mrf.mxu1 }
  0xf1   : > { %543 = vst [vmem:[%s847_s8 + $0x40] sm:$0xff] %v444_v33  ;;  %559 = vst [vmem:[%s847_s8 + $0xc0] sm:$0xff] %v484_v34 }
  0xf2   : > { %v446_v35 = vpop.f32.mrf.mxu0  ;;  %v486_v36 = vpop.f32.mrf.mxu1 }
  0xf3   : > { %544 = vst [vmem:[%s847_s8 + $0x48] sm:$0xff] %v446_v35  ;;  %560 = vst [vmem:[%s847_s8 + $0xc8] sm:$0xff] %v486_v36 }
  0xf4   : > { %v448_v37 = vpop.f32.mrf.mxu0  ;;  %v488_v38 = vpop.f32.mrf.mxu1 }
  0xf5   : > { %545 = vst [vmem:[%s847_s8 + $0x50] sm:$0xff] %v448_v37  ;;  %561 = vst [vmem:[%s847_s8 + $0xd0] sm:$0xff] %v488_v38 }
  0xf6   : > { %v450_v39 = vpop.f32.mrf.mxu0  ;;  %v490_v40 = vpop.f32.mrf.mxu1 }
  0xf7   : > { %546 = vst [vmem:[%s847_s8 + $0x58] sm:$0xff] %v450_v39  ;;  %562 = vst [vmem:[%s847_s8 + $0xd8] sm:$0xff] %v490_v40 }
  0xf8   : > { %v454_v41 = vpop.f32.mrf.mxu0  ;;  %v494_v42 = vpop.f32.mrf.mxu1 }
  0xf9   : > { %547 = vst [vmem:[%s847_s8 + $0x60] sm:$0xff] %v454_v41  ;;  %563 = vst [vmem:[%s847_s8 + $0xe0] sm:$0xff] %v494_v42 }
  0xfa   : > { %v456_v43 = vpop.f32.mrf.mxu0  ;;  %v496_v44 = vpop.f32.mrf.mxu1 }
  0xfb   : > { %548 = vst [vmem:[%s847_s8 + $0x68] sm:$0xff] %v456_v43  ;;  %564 = vst [vmem:[%s847_s8 + $0xe8] sm:$0xff] %v496_v44 }
  0xfc   : > { %v458_v45 = vpop.f32.mrf.mxu0  ;;  %v498_v46 = vpop.f32.mrf.mxu1 }
  0xfd   : > { %549 = vst [vmem:[%s847_s8 + $0x70] sm:$0xff] %v458_v45  ;;  %565 = vst [vmem:[%s847_s8 + $0xf0] sm:$0xff] %v498_v46 }
  0xfe   : > { %v460_v47 = vpop.f32.mrf.mxu0  ;;  %v500_v48 = vpop.f32.mrf.mxu1 }
  0xff   : > { %550 = vst [vmem:[%s847_s8 + $0x78] sm:$0xff] %v460_v47  ;;  %566 = vst [vmem:[%s847_s8 + $0xf8] sm:$0xff] %v500_v48 }
 0x100 PF: > { %s12_s11 = sadd.s32 1, %s769_s11   ;;  %s893_s9 = smov %s765_s10 }
 0x101   : > { %p9_p5 = scmp.ge.s32.totalorder %s12_s11, 4   ;;  %s894_s10 = smov %s896_s12 }
 0x103   :  { %11 = sbr.rel (!%p9_p5) target bundleno = 2 (0x2), region = 65 }

// kernel: volraft_forward.19
= control target key start
LH: loop header
LB: loop body
LE: loop exit
PB: predicated region body
PF: predicated region fallthrough
CT: control target
= control target key end

     0   :  { %s1119_s18 = smov 0   ;;  %s1121_s19 = smov 0   ;;  %s1232_s0 = inlined_call_operand.vmem [shape: bf16[2,64,128], index: 0, kind: input, shape index: {}]   ;;  %s1233_s1 = inlined_call_operand.vmem [shape: bf16[2,64,256], index: 1, kind: input, shape index: {}]   ;;  %s1234_s2 = inlined_call_operand.vmem [shape: bf16[2,256,128], index: 2, kind: input, shape index: {}]   ;;  %s1235_s3 = inlined_call_operand.vmem [shape: bf16[128,128], index: 3, kind: input, shape index: {}]   ;;  %s1236_s4 = inlined_call_operand.vmem [shape: f32[1,128], index: 4, kind: input, shape index: {}]   ;;  %s1237_s5 = inlined_call_operand.vmem [shape: f32[2,64,128], index: 5, kind: output, shape index: {}]  }
   0x1   :  { %s1123_s20 = smov 0  }
   0x2 LB: > { %s27_s21 = sadd.s32 1, %s1083_s19  ;;  %p873_p0 = scmp.ge.s32.totalorder %s1087_s20, 1  ;;  %s1087_s20 = sphi %s1123_s20, %s15_s20   ;;  %s1083_s19 = sphi %s1121_s19, %s1239_s19   ;;  %s1079_s18 = sphi %s1119_s18, %s1238_s18  }
   0x3   : > { %p29_p1 = scmp.ge.s32.totalorder %s27_s21, 2  ;;  %p236_p2 = scmp.lt.s32.totalorder %s1087_s20, 3 }
   0x5   : > { %s1241_s21 = smov (%p29_p1, %s27_s21), 0  ;;  %p237_p3 = pnand %p873_p0, %p236_p2 }
   0x6   : > { %p288_p4 = scmp.lt.s32.totalorder (!%p237_p3), %s1079_s18, 1 }
   0x7   : > { %240 = sbr.rel (%p237_p3) target bundleno = 278 (0x116), region = 40 }
   0xc   : > { %v1027_v0 = vld [vmem:[%s1235_s3 + $0x38] sm:$0xff]   ;;  %v1030_v1 = vld [vmem:[%s1235_s3 + $0x30] sm:$0xff]   ;;  %s1243_s18 = smov (!%p288_p4, %s1079_s18), 1  ;;  %v1033_v2 = vld [vmem:[%s1235_s3 + $0x28] sm:$0xff]  }
   0xd   : > { %977 = vmatprep.subr.bf16.mxu1 %v1027_v0  ;;  %s923_s26 = sshll.u32 %s1243_s18, 7  ;;  %v1036_v4 = vld [vmem:[%s1235_s3 + $0x20] sm:$0xff]   ;;  %v1039_v9 = vld [vmem:[%s1235_s3 + $0x18] sm:$0xff]   ;;  %v1042_v12 = vld [vmem:[%s1235_s3 + $0x10] sm:$0xff]   ;;  %s922_s13 = sshll.u32 %s1243_s18, 6 }
   0xe   : > { %978 = vmatpush3.bf16.msra.mxu1 %v1027_v0  ;;  %s1152_s6 = scalar_lea.vmem %s1234_s2, %s923_s26  ;;  %v1045_v15 = vld [vmem:[%s1235_s3 + $0x8] sm:$0xff]   ;;  %s921_s16 = sshll.u32 %s1243_s18, 5  ;;  %v1048_v20 = vld [vmem:[%s1235_s3] sm:$0xff]  }
   0xf   : > { %979 = vmatprep.subr.bf16.mxu1 %v1030_v1  ;;  %v1025_v3 = vld [vmem:[%s1152_s6 + $0x78] sm:$0xff]   ;;  %v1028_v6 = vld [vmem:[%s1152_s6 + $0x70] sm:$0xff]   ;;  %v1031_v8 = vld [vmem:[%s1152_s6 + $0x68] sm:$0xff]   ;;  %s1184_s23 = scalar_lea.vmem %s1233_s1, %s922_s13  ;;  %s295_s26 = scalar_lea.vmem %s1232_s0, %s921_s16 }
  0x10   : > { %v1026_v5 = vld [vmem:[%s1152_s6 + $0x38] sm:$0xff]   ;;  %925 = vmatprep.subr.bf16.mxu0 %v1025_v3  ;;  %v1029_v7 = vld [vmem:[%s1152_s6 + $0x30] sm:$0xff]   ;;  %v1032_v10 = vld [vmem:[%s1152_s6 + $0x28] sm:$0xff]   ;;  %s1213_s8 = scalar_lea.vmem %s1237_s5, %s922_s13 }
  0x11   : > { %926 = vmatpush3.bf16.msra.mxu0 %v1026_v5  ;;  %v1034_v11 = vld [vmem:[%s1152_s6 + $0x60] sm:$0xff]   ;;  %v1037_v14 = vld [vmem:[%s1152_s6 + $0x58] sm:$0xff]   ;;  %v1040_v17 = vld [vmem:[%s1152_s6 + $0x50] sm:$0xff]  }
  0x12   : > { %980 = vmatpush3.bf16.msra.mxu1 %v1030_v1  ;;  %927 = vmatprep.subr.bf16.mxu0 %v1028_v6  ;;  %v1035_v13 = vld [vmem:[%s1152_s6 + $0x20] sm:$0xff]   ;;  %v1038_v16 = vld [vmem:[%s1152_s6 + $0x18] sm:$0xff]   ;;  %v1041_v18 = vld [vmem:[%s1152_s6 + $0x10] sm:$0xff]  }
  0x13   : > { %981 = vmatprep.subr.bf16.mxu1 %v1033_v2  ;;  %v1043_v19 = vld [vmem:[%s1152_s6 + $0x48] sm:$0xff]   ;;  %v1052_v22 = vld [vmem:[%s295_s26] sm:$0xff]   ;;  %v1060_v26 = vld [vmem:[%s295_s26 + $0x10] sm:$0xff]  }
  0x14   : > { %v1051_v21 = vld [vmem:[%s1184_s23 + $0x4] ss:$8 sps:$4 sm:$0xff]   ;;  %993 = vmatprep.mubr.bf16.mxu1 %v1052_v22  ;;  %v1049_v28 = vld [vmem:[%s1184_s23] ss:$8 sps:$4 sm:$0xff]   ;;  %v1054_v29 = vld [vmem:[%s1184_s23 + $0x14] ss:$8 sps:$4 sm:$0xff]  }
  0x15   : > { %928 = vmatpush3.bf16.msra.mxu0 %v1029_v7  ;;  %556 = vmatprep.mubr.bf16.mxu0 %v1051_v21  ;;  %v1044_v23 = vld [vmem:[%s1152_s6 + $0x8] sm:$0xff]   ;;  %v1046_v24 = vld [vmem:[%s1152_s6 + $0x40] sm:$0xff]   ;;  %v1061_v30 = vld [vmem:[%s295_s26 + $0x18] sm:$0xff]  }
  0x16   : > { %982 = vmatpush3.bf16.msra.mxu1 %v1033_v2  ;;  %929 = vmatprep.subr.bf16.mxu0 %v1031_v8  ;;  %v1053_v25 = vld [vmem:[%s295_s26 + $0x8] sm:$0xff]   ;;  %v1047_v27 = vld [vmem:[%s1152_s6] sm:$0xff]   ;;  %v1056_v31 = vld [vmem:[%s1184_s23 + $0x10] ss:$8 sps:$4 sm:$0xff]  }
  0x17   : > { %983 = vmatprep.subr.bf16.mxu1 %v1036_v4  ;;  %v1057_v32 = vld [vmem:[%s1184_s23 + $0x24] ss:$8 sps:$4 sm:$0xff]   ;;  %v1059_v33 = vld [vmem:[%s1184_s23 + $0x20] ss:$8 sps:$4 sm:$0xff]   ;;  %v1062_v34 = vld [vmem:[%s1184_s23 + $0x34] ss:$8 sps:$4 sm:$0xff]  }
  0x18   : > { %v1064_v35 = vld [vmem:[%s1184_s23 + $0x30] ss:$8 sps:$4 sm:$0xff]   ;;  %v918_v43 = vld [vmem:[%s1236_s4] ss:$0 sm:$0xff] }
  0x19   : > { %930 = vmatpush3.bf16.msra.mxu0 %v1032_v10 }
  0x1a   : > { %984 = vmatpush3.bf16.msra.mxu1 %v1036_v4  ;;  %931 = vmatprep.subr.bf16.mxu0 %v1034_v11 }
  0x1b   : > { %985 = vmatprep.subr.bf16.mxu1 %v1039_v9 }
  0x1d   : > { %932 = vmatpush3.bf16.msra.mxu0 %v1035_v13 }
  0x1e   : > { %986 = vmatpush3.bf16.msra.mxu1 %v1039_v9  ;;  %933 = vmatprep.subr.bf16.mxu0 %v1037_v14 }
  0x1f   : > { %987 = vmatprep.subr.bf16.mxu1 %v1042_v12 }
  0x21   : > { %934 = vmatpush3.bf16.msra.mxu0 %v1038_v16 }
  0x22   : > { %988 = vmatpush3.bf16.msra.mxu1 %v1042_v12  ;;  %935 = vmatprep.subr.bf16.mxu0 %v1040_v17 }
  0x23   : > { %989 = vmatprep.subr.bf16.mxu1 %v1045_v15 }
  0x25   : > { %936 = vmatpush3.bf16.msra.mxu0 %v1041_v18 }
  0x26   : > { %990 = vmatpush3.bf16.msra.mxu1 %v1045_v15  ;;  %937 = vmatprep.subr.bf16.mxu0 %v1043_v19 }
  0x27   : > { %991 = vmatprep.subr.bf16.mxu1 %v1048_v20 }
  0x29   : > { %938 = vmatpush3.bf16.msra.mxu0 %v1044_v23 }
  0x2a   : > { %992 = vmatpush3.bf16.msra.mxu1 %v1048_v20  ;;  %939 = vmatprep.subr.bf16.mxu0 %v1046_v24 }
  0x2d   : > { %994 = vmatmul.mubr.bf16.vlgmr.msra.gmra.mxu1 %v1053_v25  ;;  %940 = vmatpush3.bf16.msra.mxu0 %v1047_v27 }
  0x2e   : > { %997 = vmatprep.mubr.bf16.mxu1 %v1060_v26 }
  0x30   : > { %557 = vmatmul.mubr.bf16.vlgmr.msra.gmra.mxu0 %v1049_v28 }
  0x31   : > { %564 = vmatprep.mubr.bf16.mxu0 %v1054_v29 }
  0x35   : > { %998 = vmatmul.mubr.bf16.gmra.mxu1 %v1061_v30 }
  0x38   : > { %565 = vmatmul.mubr.bf16.gmra.mxu0 %v1056_v31 }
  0x39   : > { %572 = vmatprep.mubr.bf16.mxu0 %v1057_v32 }
  0x40   : > { %573 = vmatmul.mubr.bf16.gmra.mxu0 %v1059_v33 }
  0x41   : > { %580 = vmatprep.mubr.bf16.mxu0 %v1062_v34 }
  0x48   : > { %581 = vmatmul.mubr.bf16.gmra.mxu0 %v1064_v35 }
  0xed   : > { %v995_v36 = vpop.f32.mrf.mxu1 }
  0xef   : > { %v695_v37 = vpop.f32.mrf.mxu1 }
  0xf0   : > { %v941_v38 = vpop.f32.mrf.mxu0 }
  0xf1   : > { %v996_v40 = vpop.f32.mrf.mxu1 }
  0xf2   : > { %v942_v39 = vpop.f32.mrf.mxu0 }
  0xf3   : > { %v943_v41 = vadd.f32 %v942_v39, %v941_v38  ;;  %v698_v46 = vpop.f32.mrf.mxu1 }
  0xf4   : > { %v944_v42 = vpop.f32.mrf.mxu0 }
  0xf5   : > { %v696_v44 = vadd.f32 %v943_v41, %v695_v37  ;;  %v999_v52 = vpop.f32.mrf.mxu1 }
  0xf6   : > { %v945_v45 = vpop.f32.mrf.mxu0 }
  0xf7   : > { %v733_v47 = vadd.f32 %v918_v43, %v696_v44  ;;  %v946_v48 = vadd.f32 %v945_v45, %v944_v42  ;;  %v711_v58 = vpop.f32.mrf.mxu1 }
  0xf8   : > { %v947_v49 = vpop.f32.mrf.mxu0 }
  0xf9   : > { %741 = vst [vmem:[%s1213_s8] sm:$0xff] %v733_v47  ;;  %v699_v50 = vadd.f32 %v946_v48, %v698_v46  ;;  %v1000_v0 = vpop.f32.mrf.mxu1 }
  0xfa   : > { %v948_v51 = vpop.f32.mrf.mxu0 }
  0xfb   : > { %v734_v53 = vadd.f32 %v918_v43, %v699_v50  ;;  %v949_v54 = vadd.f32 %v948_v51, %v947_v49  ;;  %v714_v6 = vpop.f32.mrf.mxu1 }
  0xfc   : > { %v950_v55 = vpop.f32.mrf.mxu0 }
  0xfd   : > { %742 = vst [vmem:[%s1213_s8 + $0x8] sm:$0xff] %v734_v53  ;;  %v704_v56 = vadd.f32 %v995_v36, %v949_v54 }
  0xfe   : > { %v951_v57 = vpop.f32.mrf.mxu0 }
  0xff   : > { %v735_v59 = vadd.f32 %v918_v43, %v704_v56  ;;  %v952_v60 = vadd.f32 %v951_v57, %v950_v55 }
 0x100   : > { %v953_v61 = vpop.f32.mrf.mxu0 }
 0x101   : > { %743 = vst [vmem:[%s1213_s8 + $0x10] sm:$0xff] %v735_v59  ;;  %v707_v62 = vadd.f32 %v996_v40, %v952_v60 }
 0x102   : > { %v954_v63 = vpop.f32.mrf.mxu0 }
 0x103   : > { %v736_v1 = vadd.f32 %v918_v43, %v707_v62  ;;  %v955_v2 = vadd.f32 %v954_v63, %v953_v61 }
 0x104   : > { %v956_v3 = vpop.f32.mrf.mxu0 }
 0x105   : > { %744 = vst [vmem:[%s1213_s8 + $0x18] sm:$0xff] %v736_v1  ;;  %v712_v4 = vadd.f32 %v955_v2, %v711_v58 }
 0x106   : > { %v957_v5 = vpop.f32.mrf.mxu0 }
 0x107   : > { %v737_v7 = vadd.f32 %v918_v43, %v712_v4  ;;  %v958_v8 = vadd.f32 %v957_v5, %v956_v3 }
 0x108   : > { %v959_v9 = vpop.f32.mrf.mxu0 }
 0x109   : > { %745 = vst [vmem:[%s1213_s8 + $0x20] sm:$0xff] %v737_v7  ;;  %v715_v10 = vadd.f32 %v958_v8, %v714_v6 }
 0x10a   : > { %v960_v11 = vpop.f32.mrf.mxu0 }
 0x10b   : > { %v738_v12 = vadd.f32 %v918_v43, %v715_v10  ;;  %v961_v13 = vadd.f32 %v960_v11, %v959_v9 }
 0x10c   : > { %v962_v14 = vpop.f32.mrf.mxu0 }
 0x10d   : > { %746 = vst [vmem:[%s1213_s8 + $0x28] sm:$0xff] %v738_v12  ;;  %v720_v15 = vadd.f32 %v999_v52, %v961_v13 }
 0x10e   : > { %v963_v16 = vpop.f32.mrf.mxu0 }
 0x10f   : > { %v739_v17 = vadd.f32 %v918_v43, %v720_v15  ;;  %v964_v18 = vadd.f32 %v963_v16, %v962_v14 }
 0x111   : > { %747 = vst [vmem:[%s1213_s8 + $0x30] sm:$0xff] %v739_v17  ;;  %v723_v19 = vadd.f32 %v1000_v0, %v964_v18 }
 0x113   : > { %v740_v20 = vadd.f32 %v918_v43, %v723_v19 }
 0x115   : > { %748 = vst [vmem:[%s1213_s8 + $0x38] sm:$0xff] %v740_v20 }
 0x116 PF: > { %s15_s20 = sadd.s32 1, %s1087_s20   ;;  %s1238_s18 = smov %s1083_s19 }
 0x117   : > { %p12_p5 = scmp.ge.s32.totalorder %s15_s20, 4   ;;  %s1239_s19 = smov %s1241_s21 }
 0x119   :  { %14 = sbr.rel (!%p12_p5) target bundleno = 2 (0x2), region = 76 }

// kernel: volraft_forward.20
= control target key start
LH: loop header
LB: loop body
LE: loop exit
PB: predicated region body
PF: predicated region fallthrough
CT: control target
= control target key end

     0   :  { %s1699_s27 = smov 0   ;;  %s2041_s0 = inlined_call_operand.vmem [shape: bf16[128,128], index: 0, kind: input, shape index: {}]   ;;  %s2042_s1 = inlined_call_operand.vmem [shape: f32[128,2], index: 1, kind: input, shape index: {}]   ;;  %s2043_s2 = inlined_call_operand.vmem [shape: f32[128,128], index: 2, kind: input, shape index: {}]   ;;  %s2044_s3 = inlined_call_operand.vmem [shape: bf16[128,128], index: 3, kind: input, shape index: {}]   ;;  %s2045_s4 = inlined_call_operand.vmem [shape: f32[2,128], index: 4, kind: input, shape index: {}]   ;;  %s2046_s5 = inlined_call_operand.vmem [shape: bf16[128,640], index: 5, kind: input, shape index: {}]   ;;  %s2047_s6 = inlined_call_operand.vmem [shape: f32[1,640], index: 6, kind: input, shape index: {}]   ;;  %s2048_s7 = inlined_call_operand.vmem [shape: bf16[128,128], index: 7, kind: output, shape index: {0}]   ;;  %s2049_s8 = inlined_call_operand.vmem [shape: f32[128,640], index: 8, kind: output, shape index: {1}]  }
   0x1 LB: > { %s1358_s28 = sadd.s32 4294967295, %s1650_s27   ;;  %p1362_p0 = scmp.ge.s32.totalorder %s1650_s27, 1  ;;  %s1650_s27 = sphi %s1699_s27, %s19_s27  }
   0x2   : > { %p288_p1 = scmp.lt.s32.totalorder %s1650_s27, 3 }
   0x4   : > { %p289_p2 = pnand %p1362_p0, %p288_p1 }
   0x5   : > { %s1363_s9 = sshll.u32 (!%p289_p2), %s1358_s28, 3 }
   0x6   : > { %292 = sbr.rel (%p289_p2) target bundleno = 507 (0x1fb), region = 48  ;;  %p339_p3 = scmp.lt.s32.totalorder (!%p289_p2), %s1363_s9, 15 }
   0xb   : > { %v1560_v0 = vld [vmem:[%s2044_s3 + $0x38] sm:$0xff]   ;;  %v1561_v1 = vld [vmem:[%s2044_s3 + $0x30] sm:$0xff]   ;;  %s2051_s9 = smov (!%p339_p3, %s1363_s9), 15  ;;  %v1652_v2 = vmov 1   ;;  %v1562_v3 = vld [vmem:[%s2044_s3 + $0x28] sm:$0xff]   ;;  %v1653_v4 = vmov 0   ;;  %v443_v62 = vlaneseq }
   0xc   : > { %1490 = vmatprep.subr.bf16.mxu0 %v1560_v0  ;;  %1550 = vset.pattern.permute.xlu1 %v1652_v2  ;;  %s1364_s14 = sshll.u32 %s2051_s9, 2  ;;  %v1563_v5 = vld [vmem:[%s2044_s3 + $0x20] sm:$0xff]   ;;  %s1366_s20 = sshll.u32 %s2051_s9, 3  ;;  %v1564_v7 = vld [vmem:[%s2044_s3 + $0x18] sm:$0xff]   ;;  %v1565_v9 = vld [vmem:[%s2044_s3 + $0x10] sm:$0xff]  }
   0xd   : > { %1491 = vmatpush3.bf16.msra.mxu0 %v1560_v0  ;;  %1549 = vset.pattern.permute.xlu0 %v1653_v4  ;;  %s1727_s17 = scalar_lea.vmem %s2041_s0, %s1364_s14  ;;  %s1739_s23 = scalar_lea.vmem %s2042_s1, %s1366_s20  ;;  %v1566_v13 = vld [vmem:[%s2044_s3 + $0x8] sm:$0xff]   ;;  %v1572_v14 = vld [vmem:[%s2046_s5 + $0x11c] ss:$20 sps:$4 sm:$0xff]   ;;  %v1567_v15 = vld [vmem:[%s2044_s3] sm:$0xff]   ;;  %v1876_v0 = vshrl.u32 %v443_v62, 7 }
   0xe   : > { %1492 = vmatprep.subr.bf16.mxu0 %v1561_v1  ;;  %1023 = vmatprep.mubr.bf16.mxu1 %v1653_v4  ;;  %v1568_v6 = vld [vmem:[%s1727_s17] sm:$0xff]   ;;  %v395_v10 = vld [vmem:[%s1739_s23 + $0x8] sm:$0xff]  ;;  %v396_v11 = vld [vmem:[%s1739_s23 + $0x10] sm:$0xff]  ;;  %s360_s12 = scalar_lea.vmem %s2048_s7, %s1364_s14 }
   0xf   : > { %1506 = vmatprep.mubr.bf16.mxu0 %v1568_v6  ;;  %v394_v8 = vld [vmem:[%s1739_s23] sm:$0xff]  ;;  %v397_v12 = vld [vmem:[%s1739_s23 + $0x18] sm:$0xff]  ;;  %991 = vmatprep.subr.bf16.mxu1 %v1572_v14  ;;  %v1578_v17 = vld [vmem:[%s2046_s5 + $0xf4] ss:$20 sps:$4 sm:$0xff]  }
  0x10   : > { %593 = vperm.xlu1 %1550, %v394_v8   ;;  %405 = vperm.xlu0 %1549, %v394_v8   ;;  %v1574_v16 = vld [vmem:[%s2046_s5 + $0x118] ss:$20 sps:$4 sm:$0xff]   ;;  %v398_v18 = vld [vmem:[%s1739_s23 + $0x20] sm:$0xff]  ;;  %v1570_v22 = vld [vmem:[%s1727_s17 + $0x10] sm:$0xff]  }
  0x11   : > { %1493 = vmatpush3.bf16.msra.mxu0 %v1561_v1  ;;  %992 = vmatpush1.bf16.msra.mxu1 %v1574_v16  ;;  %v399_v19 = vld [vmem:[%s1739_s23 + $0x28] sm:$0xff]  ;;  %v1577_v20 = vld [vmem:[%s2046_s5 + $0x124] ss:$20 sps:$4 sm:$0xff]   ;;  %v1575_v23 = vld [vmem:[%s2046_s5 + $0x120] ss:$20 sps:$4 sm:$0xff]  }
  0x12   : > { %1494 = vmatprep.subr.bf16.mxu0 %v1562_v3  ;;  %v1569_v21 = vld [vmem:[%s1727_s17 + $0x8] sm:$0xff]   ;;  %993 = vmatprep.subr.bf16.mxu1 %v1578_v17  ;;  %v400_v24 = vld [vmem:[%s1739_s23 + $0x30] sm:$0xff]  ;;  %v1571_v25 = vld [vmem:[%s1727_s17 + $0x18] sm:$0xff]  }
  0x13   : > { %v401_v26 = vld [vmem:[%s1739_s23 + $0x38] sm:$0xff]  ;;  %v1580_v28 = vld [vmem:[%s2046_s5 + $0xf0] ss:$20 sps:$4 sm:$0xff]   ;;  %v1584_v30 = vld [vmem:[%s2046_s5 + $0xcc] ss:$20 sps:$4 sm:$0xff]   ;;  %s1892_s23 = scalar_lea.vmem %s2043_s2, %s1366_s20 }
  0x14   : > { %597 = vperm.xlu1 %1550, %v395_v10   ;;  %410 = vperm.xlu0 %1549, %v395_v10   ;;  %v1583_v27 = vld [vmem:[%s2046_s5 + $0xfc] ss:$20 sps:$4 sm:$0xff]   ;;  %v1581_v29 = vld [vmem:[%s2046_s5 + $0xf8] ss:$20 sps:$4 sm:$0xff]   ;;  %v1589_v31 = vld [vmem:[%s2046_s5 + $0xd4] ss:$20 sps:$4 sm:$0xff]  }
  0x15   : > { %1495 = vmatpush3.bf16.msra.mxu0 %v1562_v3  ;;  %994 = vmatpush1.bf16.msra.mxu1 %v1580_v28  ;;  %v1586_v32 = vld [vmem:[%s2046_s5 + $0xc8] ss:$20 sps:$4 sm:$0xff]   ;;  %v1587_v33 = vld [vmem:[%s2046_s5 + $0xd0] ss:$20 sps:$4 sm:$0xff]   ;;  %v1595_v35 = vld [vmem:[%s2046_s5 + $0xac] ss:$20 sps:$4 sm:$0xff]  }
  0x16   : > { %1496 = vmatprep.subr.bf16.mxu0 %v1563_v5  ;;  %995 = vmatprep.subr.bf16.mxu1 %v1584_v30  ;;  %v1590_v34 = vld [vmem:[%s2046_s5 + $0xa4] ss:$20 sps:$4 sm:$0xff]   ;;  %v1592_v36 = vld [vmem:[%s2046_s5 + $0xa0] ss:$20 sps:$4 sm:$0xff]   ;;  %v1593_v37 = vld [vmem:[%s2046_s5 + $0xa8] ss:$20 sps:$4 sm:$0xff]  }
  0x17   : > { %v1596_v38 = vld [vmem:[%s2046_s5 + $0x7c] ss:$20 sps:$4 sm:$0xff]   ;;  %v1601_v39 = vld [vmem:[%s2046_s5 + $0x84] ss:$20 sps:$4 sm:$0xff]   ;;  %v1599_v41 = vld [vmem:[%s2046_s5 + $0x80] ss:$20 sps:$4 sm:$0xff]  }
  0x18   : > { %1551 = vset.pattern.permute.xlu1 %v1653_v4  ;;  %415 = vperm.xlu0 %1549, %v396_v11   ;;  %v1598_v40 = vld [vmem:[%s2046_s5 + $0x78] ss:$20 sps:$4 sm:$0xff]   ;;  %v1602_v42 = vld [vmem:[%s2046_s5 + $0x54] ss:$20 sps:$4 sm:$0xff]   ;;  %v1607_v43 = vld [vmem:[%s2046_s5 + $0x5c] ss:$20 sps:$4 sm:$0xff]  }
  0x19   : > { %1497 = vmatpush3.bf16.msra.mxu0 %v1563_v5  ;;  %420 = vperm.xlu1 %1551, %v397_v12   ;;  %v1604_v44 = vld [vmem:[%s2046_s5 + $0x50] ss:$20 sps:$4 sm:$0xff]   ;;  %v1605_v45 = vld [vmem:[%s2046_s5 + $0x58] ss:$20 sps:$4 sm:$0xff]   ;;  %v1613_v47 = vld [vmem:[%s2046_s5 + $0x34] ss:$20 sps:$4 sm:$0xff]  }
  0x1a   : > { %1498 = vmatprep.subr.bf16.mxu0 %v1564_v7  ;;  %996 = vmatpush1.bf16.msra.mxu1 %v1586_v32  ;;  %v1608_v46 = vld [vmem:[%s2046_s5 + $0x2c] ss:$20 sps:$4 sm:$0xff]   ;;  %v1610_v48 = vld [vmem:[%s2046_s5 + $0x28] ss:$20 sps:$4 sm:$0xff]   ;;  %v1611_v49 = vld [vmem:[%s2046_s5 + $0x30] ss:$20 sps:$4 sm:$0xff]  }
  0x1b   : > { %997 = vmatprep.subr.bf16.mxu1 %v1590_v34  ;;  %v1614_v50 = vld [vmem:[%s2046_s5 + $0x4] ss:$20 sps:$4 sm:$0xff]   ;;  %v1616_v51 = vld [vmem:[%s2046_s5] ss:$20 sps:$4 sm:$0xff]   ;;  %v1617_v53 = vld [vmem:[%s2046_s5 + $0x8] ss:$20 sps:$4 sm:$0xff]  }
  0x1c   : > { %1552 = vset.pattern.permute.xlu0 %v1652_v2  ;;  %v1619_v52 = vld [vmem:[%s2046_s5 + $0xc] ss:$20 sps:$4 sm:$0xff]   ;;  %v1873_v54 = vld [vmem:[%s2046_s5 + $0x128] ss:$20 sps:$4 sm:$0xff]  }
  0x1d   : > { %1499 = vmatpush3.bf16.msra.mxu0 %v1564_v7  ;;  %1553 = vset.pattern.permute.xlu1 %v1652_v2  ;;  %v402_v5 = vld [vmem:[%s2045_s4] sm:$0x3]  ;;  %v626_v7 = vsub.s32 1, %v1876_v0  ;;  %v647_v34 = vld [vmem:[%s1892_s23 + $0x18] sm:$0xff] }
  0x1e   : > { %1500 = vmatprep.subr.bf16.mxu0 %v1565_v9  ;;  %601 = vperm.xlu0 %1552, %v396_v11  }
  0x1f   : > { %605 = vperm.xlu1 %1553, %v397_v12   ;;  %998 = vmatpush1.bf16.msra.mxu1 %v1592_v36  ;;  %v627_v10 = vrot.slane %v402_v5, %v626_v7 }
  0x20   : > { %999 = vmatprep.subr.bf16.mxu1 %v1596_v38 }
  0x21   : > { %1501 = vmatpush3.bf16.msra.mxu0 %v1565_v9 }
  0x22   : > { %1502 = vmatprep.subr.bf16.mxu0 %v1566_v13  ;;  %1555 = vset.pattern.permute.xlu0 %v1653_v4 }
  0x23   : > { %1554 = vset.pattern.permute.xlu1 %v1653_v4  ;;  %430 = vperm.xlu0 %1555, %v399_v19  }
  0x24   : > { %425 = vperm.xlu1 %1554, %v398_v18   ;;  %1000 = vmatpush1.bf16.msra.mxu1 %v1598_v40 }
  0x25   : > { %1503 = vmatpush3.bf16.msra.mxu0 %v1566_v13  ;;  %1001 = vmatprep.subr.bf16.mxu1 %v1602_v42 }
  0x26   : > { %1504 = vmatprep.subr.bf16.mxu0 %v1567_v15 }
  0x27   : > { %435 = vperm.xlu0 %1555, %v400_v24  }
  0x28   : > { %1556 = vset.pattern.permute.xlu1 %v1652_v2  ;;  %1002 = vmatpush1.bf16.msra.mxu1 %v1604_v44 }
  0x29   : > { %1505 = vmatpush3.bf16.msra.mxu0 %v1567_v15  ;;  %609 = vperm.xlu1 %1556, %v398_v18  }
  0x2a   : > { %1064 = vmatprep.subr.bf16.mxu0 %v1577_v20  ;;  %1003 = vmatprep.subr.bf16.mxu1 %v1608_v46 }
  0x2b   : > { %1558 = vset.pattern.permute.xlu0 %v1652_v2 }
  0x2c   : > { %1507 = vmatmul.mubr.bf16.vlgmr.msra.gmra.mxu0 %v1569_v21  ;;  %617 = vperm.xlu0 %1558, %v400_v24  }
  0x2d   : > { %1510 = vmatprep.mubr.bf16.mxu0 %v1570_v22  ;;  %1065 = vmatpush1.bf16.msra.mxu0 %v1575_v23  ;;  %v646_v23 = vld [vmem:[%s1892_s23 + $0x10] sm:$0xff] }
  0x2e   : > { %613 = vperm.xlu1 %1556, %v399_v19   ;;  %1066 = vmatprep.subr.bf16.mxu0 %v1583_v27 }
  0x2f   : > { %1004 = vmatpush1.bf16.msra.mxu1 %v1610_v48 }
  0x30   : > { %1005 = vmatprep.subr.bf16.mxu1 %v1614_v50 }
  0x31   : > { %1067 = vmatpush1.bf16.msra.mxu0 %v1581_v29  ;;  %v644_v29 = vld [vmem:[%s1892_s23] sm:$0xff] }
  0x32   : > { %1557 = vset.pattern.permute.xlu1 %v1653_v4  ;;  %1068 = vmatprep.subr.bf16.mxu0 %v1589_v31 }
  0x33   : > { %440 = vperm.xlu1 %1557, %v401_v26   ;;  %1006 = vmatpush1.bf16.msra.mxu1 %v1616_v51 }
  0x34   : > { %1511 = vmatmul.mubr.bf16.gmra.mxu0 %v1571_v25  ;;  %1514 = vmatprep.subr.bf16.mxu1 %v1873_v54 }
  0x35   : > { %1096 = vmatprep.mubr.bf16.mxu0 %v1653_v4  ;;  %1069 = vmatpush1.bf16.msra.mxu0 %v1587_v33 }
  0x36   : > { %1070 = vmatprep.subr.bf16.mxu0 %v1595_v35 }
  0x37   : > { %1559 = vset.pattern.permute.xlu1 %v1652_v2  ;;  %v445_v2 = vsub.s32 0, %v1876_v0 }
  0x38   : > { %621 = vperm.xlu1 %1559, %v401_v26  }
  0x39   : > { %1071 = vmatpush1.bf16.msra.mxu0 %v1593_v37  ;;  %v446_v8 = vrot.slane %v402_v5, %v445_v2 }
  0x3a   : > { %1072 = vmatprep.subr.bf16.mxu0 %v1601_v39 }
  0x3d   : > { %1073 = vmatpush1.bf16.msra.mxu0 %v1599_v41 }
  0x3e   : > { %1074 = vmatprep.subr.bf16.mxu0 %v1607_v43  ;;  %v645_v43 = vld [vmem:[%s1892_s23 + $0x8] sm:$0xff] }
  0x41   : > { %1075 = vmatpush1.bf16.msra.mxu0 %v1605_v45 }
  0x42   : > { %1076 = vmatprep.subr.bf16.mxu0 %v1613_v47 }
  0x45   : > { %1077 = vmatpush1.bf16.msra.mxu0 %v1611_v49 }
  0x46   : > { %1078 = vmatprep.subr.bf16.mxu0 %v1619_v52  ;;  %v650_v52 = vld [vmem:[%s1892_s23 + $0x30] sm:$0xff] }
  0x49   : > { %1079 = vmatpush1.bf16.msra.mxu0 %v1617_v53 }
  0x8b   : > { %v594_v55 = vpop.permute.xlu1 %593  ;;  %v406_v57 = vpop.permute.xlu0 %405 }
  0x8c   : > { %v447_v13 = vmul.f32 %v446_v8, %v406_v57  ;;  %v628_v20 = vmul.f32 %v627_v10, %v594_v55 }
  0x8f   : > { %v598_v56 = vpop.permute.xlu1 %597  ;;  %v411_v59 = vpop.permute.xlu0 %410 }
  0x90   : > { %v448_v27 = vmul.f32 %v446_v8, %v411_v59  ;;  %v629_v32 = vmul.f32 %v627_v10, %v598_v56 }
  0x93   : > { %v416_v61 = vpop.permute.xlu0 %415 }
  0x94   : > { %v421_v58 = vpop.permute.xlu1 %420  ;;  %v449_v11 = vmul.f32 %v446_v8, %v416_v61 }
  0x95   : > { %v450_v16 = vmul.f32 %v446_v8, %v421_v58  ;;  %v648_v58 = vld [vmem:[%s1892_s23 + $0x20] sm:$0xff] }
  0x99   : > { %v602_v1 = vpop.permute.xlu0 %601 }
  0x9a   : > { %v606_v60 = vpop.permute.xlu1 %605  ;;  %v630_v14 = vmul.f32 %v627_v10, %v602_v1  ;;  %v651_v1 = vld [vmem:[%s1892_s23 + $0x38] sm:$0xff] }
  0x9b   : > { %v631_v21 = vmul.f32 %v627_v10, %v606_v60 }
  0x9e   : > { %v431_v6 = vpop.permute.xlu0 %430 }
  0x9f   : > { %v426_v63 = vpop.permute.xlu1 %425  ;;  %v452_v49 = vmul.f32 %v446_v8, %v431_v6 }
  0xa0   : > { %v451_v36 = vmul.f32 %v446_v8, %v426_v63 }
  0xa2   : > { %v436_v12 = vpop.permute.xlu0 %435 }
  0xa3   : > { %v453_v31 = vmul.f32 %v446_v8, %v436_v12 }
  0xa4   : > { %v610_v3 = vpop.permute.xlu1 %609 }
  0xa5   : > { %v632_v42 = vmul.f32 %v627_v10, %v610_v3 }
  0xa7   : > { %v618_v26 = vpop.permute.xlu0 %617 }
  0xa8   : > { %v634_v40 = vmul.f32 %v627_v10, %v618_v26  ;;  %v1624_v26 = vld [vmem:[%s2046_s5 + $0x88] ss:$20 sps:$4 sm:$0xff]  }
  0xa9   : > { %v614_v9 = vpop.permute.xlu1 %613 }
  0xaa   : > { %v633_v57 = vmul.f32 %v627_v10, %v614_v9 }
  0xae   : > { %v441_v18 = vpop.permute.xlu1 %440 }
  0xaf   : > { %v454_v47 = vmul.f32 %v446_v8, %v441_v18  ;;  %v649_v8 = vld [vmem:[%s1892_s23 + $0x28] sm:$0xff]  ;;  %v1621_v18 = vld [vmem:[%s2046_s5 + $0x100] ss:$20 sps:$4 sm:$0xff]   ;;  %s1538_s23 = smul.u32 40, %s2051_s9 }
  0xb1   : > { %s1962_s9 = scalar_lea.vmem %s2049_s8, %s1538_s23 }
  0xb3   : > { %v622_v39 = vpop.permute.xlu1 %621 }
  0xb4   : > { %v635_v51 = vmul.f32 %v627_v10, %v622_v39 }
  0xec   : > { %v1508_v15 = vpop.f32.mrf.mxu0 }
  0xed   : > { %v570_v17 = vadd.f32 %v1508_v15, %v449_v11 }
  0xee   : > { %v561_v19 = vpop.f32.mrf.mxu0 }
  0xef   : > { %v638_v22 = vadd.f32 %v630_v14, %v570_v17  ;;  %v562_v24 = vadd.f32 %v561_v19, %v447_v13 }
  0xf0   : > { %v1509_v25 = vpop.f32.mrf.mxu0 }
  0xf1   : > { %v636_v28 = vadd.f32 %v628_v20, %v562_v24  ;;  %v573_v30 = vadd.f32 %v1509_v25, %v450_v16  ;;  %v654_v33 = vadd.f32 %v646_v23, %v638_v22  ;;  %v1623_v25 = vld [vmem:[%s2046_s5 + $0xb0] ss:$20 sps:$4 sm:$0xff]  }
  0xf2   : > { %v564_v35 = vpop.f32.mrf.mxu0 }
  0xf3   : > { %v639_v37 = vadd.f32 %v631_v21, %v573_v30  ;;  %v565_v38 = vadd.f32 %v564_v35, %v448_v27  ;;  %v652_v41 = vadd.f32 %v644_v29, %v636_v28  ;;  %1628 = vtanh.f32 %v654_v33  ;;  %v1622_v21 = vld [vmem:[%s2046_s5 + $0xd8] ss:$20 sps:$4 sm:$0xff]   ;;  %v1625_v27 = vld [vmem:[%s2046_s5 + $0x60] ss:$20 sps:$4 sm:$0xff]   ;;  %v1627_v29 = vld [vmem:[%s2046_s5 + $0x10] ss:$20 sps:$4 sm:$0xff]  }
  0xf4   : > { %v1512_v44 = vpop.f32.mrf.mxu0  ;;  %v1626_v28 = vld [vmem:[%s2046_s5 + $0x38] ss:$20 sps:$4 sm:$0xff]   ;;  %v1939_v30 = vld [vmem:[%s2047_s6] sm:$0x1f] }
  0xf5   : > { %v655_v45 = vadd.f32 %v647_v34, %v639_v37  ;;  %v637_v46 = vadd.f32 %v629_v32, %v565_v38  ;;  %v586_v48 = vadd.f32 %v1512_v44, %v453_v31  ;;  %v772_v31 = vsub.s32 3, %v1876_v0 }
  0xf6   : > { %v577_v50 = vpop.f32.mrf.mxu0  ;;  %v1946_v32 = vrot.slane %v1939_v30, %v445_v2  ;;  %v1954_v34 = vrot.slane %v1939_v30, %v626_v7 }
  0xf7   : > { %1630 = vtanh.f32 %v655_v45  ;;  %v653_v53 = vadd.f32 %v645_v43, %v637_v46  ;;  %v578_v55 = vadd.f32 %v577_v50, %v451_v36  ;;  %v642_v56 = vadd.f32 %v634_v40, %v586_v48 }
  0xf8   : > { %1632 = vtanh.f32 %v652_v41  ;;  %v1513_v59 = vpop.f32.mrf.mxu0  ;;  %v1957_v35 = vrot.slane %v1939_v30, %v772_v31 }
  0xf9   : > { %1634 = vtanh.f32 %v653_v53  ;;  %v640_v60 = vadd.f32 %v632_v42, %v578_v55  ;;  %v589_v61 = vadd.f32 %v1513_v59, %v454_v47  ;;  %v658_v62 = vadd.f32 %v650_v52, %v642_v56 }
  0xfa   : > { %v580_v63 = vpop.f32.mrf.mxu0 }
  0xfb   : > { %v656_v3 = vadd.f32 %v648_v58, %v640_v60  ;;  %v581_v5 = vadd.f32 %v580_v63, %v452_v49  ;;  %v643_v6 = vadd.f32 %v635_v51, %v589_v61  ;;  %1636 = vtanh.f32 %v658_v62 }
  0xfd   : > { %v641_v11 = vadd.f32 %v633_v57, %v581_v5  ;;  %v659_v12 = vadd.f32 %v651_v1, %v643_v6  ;;  %1638 = vtanh.f32 %v656_v3 }
  0xff   : > { %v657_v13 = vadd.f32 %v649_v8, %v641_v11  ;;  %1640 = vtanh.f32 %v659_v12 }
 0x100   : > { %v1629_v9 = vpop.eup %1628 }
 0x101   : > { %1642 = vtanh.f32 %v657_v13 }
 0x104   : > { %v1631_v10 = vpop.eup %1630 }
 0x105   : > { %v1633_v14 = vpop.eup %1632  ;;  %v669_v15 = vpack.c.bf16 %v1631_v10, %v1629_v9 }
 0x106   : > { %v1635_v16 = vpop.eup %1634 }
 0x107   : > { %v668_v17 = vpack.c.bf16 %v1635_v16, %v1633_v14  ;;  %1463 = vst [vmem:[%s360_s12 + $0x8] sm:$0xff] %v669_v15  }
 0x108   : > { %v1637_v19 = vpop.eup %1636 }
 0x109   : > { %1447 = vst [vmem:[%s360_s12] sm:$0xff] %v668_v17   ;;  %1024 = vmatmul.mubr.bf16.vlgmr.msra.gmra.mxu1 %v668_v17  ;;  %1097 = vmatmul.mubr.bf16.vlgmr.msra.gmra.mxu0 %v668_v17 }
 0x10a   : > { %1515 = vmatpush3.bf16.msra.mxu1 %v1873_v54  ;;  %1033 = vmatprep.mubr.bf16.mxu1 %v1653_v4  ;;  %v1639_v20 = vpop.eup %1638 }
 0x10b   : > { %1516 = vmatprep.subr.bf16.mxu1 %v1621_v18  ;;  %1106 = vmatprep.mubr.bf16.mxu0 %v1653_v4 }
 0x10c   : > { %v1641_v22 = vpop.eup %1640 }
 0x10d   : > { %v671_v23 = vpack.c.bf16 %v1641_v22, %v1637_v19 }
 0x10e   : > { %v1643_v24 = vpop.eup %1642  ;;  %1517 = vmatpush3.bf16.msra.mxu1 %v1621_v18 }
 0x10f   : > { %1518 = vmatprep.subr.bf16.mxu1 %v1622_v21  ;;  %v670_v54 = vpack.c.bf16 %v1643_v24, %v1639_v20  ;;  %1465 = vst [vmem:[%s360_s12 + $0x18] sm:$0xff] %v671_v23  }
 0x111   : > { %1034 = vmatmul.mubr.bf16.gmra.mxu1 %v669_v15  ;;  %1107 = vmatmul.mubr.bf16.gmra.mxu0 %v669_v15  ;;  %1464 = vst [vmem:[%s360_s12 + $0x10] sm:$0xff] %v670_v54  }
 0x112   : > { %1519 = vmatpush3.bf16.msra.mxu1 %v1622_v21  ;;  %1043 = vmatprep.mubr.bf16.mxu1 %v1653_v4 }
 0x113   : > { %1520 = vmatprep.subr.bf16.mxu1 %v1623_v25  ;;  %1116 = vmatprep.mubr.bf16.mxu0 %v1653_v4 }
 0x116   : > { %1521 = vmatpush3.bf16.msra.mxu1 %v1623_v25 }
 0x117   : > { %1522 = vmatprep.subr.bf16.mxu1 %v1624_v26 }
 0x119   : > { %1044 = vmatmul.mubr.bf16.gmra.mxu1 %v670_v54  ;;  %1117 = vmatmul.mubr.bf16.gmra.mxu0 %v670_v54 }
 0x11a   : > { %1523 = vmatpush3.bf16.msra.mxu1 %v1624_v26  ;;  %1053 = vmatprep.mubr.bf16.mxu1 %v1653_v4  ;;  %v776_v26 = vsub.s32 4, %v1876_v0 }
 0x11b   : > { %1524 = vmatprep.subr.bf16.mxu1 %v1625_v27  ;;  %1126 = vmatprep.mubr.bf16.mxu0 %v1653_v4  ;;  %v768_v4 = vsub.s32 2, %v1876_v0 }
 0x11d   : > { %v1949_v33 = vrot.slane %v1939_v30, %v768_v4 }
 0x11e   : > { %1525 = vmatpush3.bf16.msra.mxu1 %v1625_v27 }
 0x11f   : > { %1526 = vmatprep.subr.bf16.mxu1 %v1626_v28 }
 0x121   : > { %1054 = vmatmul.mubr.bf16.gmra.mxu1 %v671_v23  ;;  %1127 = vmatmul.mubr.bf16.gmra.mxu0 %v671_v23 }
 0x122   : > { %1527 = vmatpush3.bf16.msra.mxu1 %v1626_v28  ;;  %1530 = vmatprep.mubr.bf16.mxu1 %v668_v17 }
 0x123   : > { %1528 = vmatprep.subr.bf16.mxu1 %v1627_v29 }
 0x126   : > { %1529 = vmatpush3.bf16.msra.mxu1 %v1627_v29 }
 0x129   : > { %1531 = vmatmul.mubr.bf16.vlgmr.msra.gmra.mxu1 %v669_v15 }
 0x12a   : > { %1534 = vmatprep.mubr.bf16.mxu1 %v670_v54 }
 0x131   : > { %1535 = vmatmul.mubr.bf16.gmra.mxu1 %v671_v23 }
 0x1c9   : > { %v1025_v2 = vpop.f32.mrf.mxu1  ;;  %v1098_v36 = vpop.f32.mrf.mxu0 }
 0x1ca   : > { %v1026_v37 = vadd.f32 %v1025_v2, %v1946_v32  ;;  %v1099_v7 = vadd.f32 %v1098_v36, %v1949_v33 }
 0x1cb   : > { %v1027_v38 = vpop.f32.mrf.mxu1  ;;  %v1100_v39 = vpop.f32.mrf.mxu0 }
 0x1cc   : > { %1202 = vst [vmem:[%s1962_s9] sm:$0xff] %v1026_v37  ;;  %1204 = vst [vmem:[%s1962_s9 + $0x10] sm:$0xff] %v1099_v7  ;;  %v1028_v40 = vadd.f32 %v1027_v38, %v1954_v34  ;;  %v1101_v41 = vadd.f32 %v1100_v39, %v1957_v35  ;;  %v777_v37 = vrot.slane %v1939_v30, %v776_v26 }
 0x1cd   : > { %v1029_v42 = vpop.f32.mrf.mxu1  ;;  %v1102_v43 = vpop.f32.mrf.mxu0 }
 0x1ce   : > { %1203 = vst [vmem:[%s1962_s9 + $0x8] sm:$0xff] %v1028_v40  ;;  %1205 = vst [vmem:[%s1962_s9 + $0x18] sm:$0xff] %v1101_v41  ;;  %v1030_v44 = vadd.f32 %v1029_v42, %v1946_v32  ;;  %v1103_v45 = vadd.f32 %v1102_v43, %v1949_v33 }
 0x1cf   : > { %v1031_v46 = vpop.f32.mrf.mxu1  ;;  %v1104_v47 = vpop.f32.mrf.mxu0 }
 0x1d0   : > { %1207 = vst [vmem:[%s1962_s9 + $0x28] sm:$0xff] %v1030_v44  ;;  %1209 = vst [vmem:[%s1962_s9 + $0x38] sm:$0xff] %v1103_v45  ;;  %v1032_v48 = vadd.f32 %v1031_v46, %v1954_v34  ;;  %v1105_v49 = vadd.f32 %v1104_v47, %v1957_v35 }
 0x1d1   : > { %v1035_v50 = vpop.f32.mrf.mxu1  ;;  %v1108_v51 = vpop.f32.mrf.mxu0 }
 0x1d2   : > { %1208 = vst [vmem:[%s1962_s9 + $0x30] sm:$0xff] %v1032_v48  ;;  %1210 = vst [vmem:[%s1962_s9 + $0x40] sm:$0xff] %v1105_v49  ;;  %v1036_v52 = vadd.f32 %v1035_v50, %v1946_v32  ;;  %v1109_v53 = vadd.f32 %v1108_v51, %v1949_v33 }
 0x1d3   : > { %v1037_v55 = vpop.f32.mrf.mxu1  ;;  %v1110_v56 = vpop.f32.mrf.mxu0 }
 0x1d4   : > { %1212 = vst [vmem:[%s1962_s9 + $0x50] sm:$0xff] %v1036_v52  ;;  %1214 = vst [vmem:[%s1962_s9 + $0x60] sm:$0xff] %v1109_v53  ;;  %v1038_v57 = vadd.f32 %v1037_v55, %v1954_v34  ;;  %v1111_v58 = vadd.f32 %v1110_v56, %v1957_v35 }
 0x1d5   : > { %v1039_v59 = vpop.f32.mrf.mxu1  ;;  %v1112_v60 = vpop.f32.mrf.mxu0 }
 0x1d6   : > { %1213 = vst [vmem:[%s1962_s9 + $0x58] sm:$0xff] %v1038_v57  ;;  %1215 = vst [vmem:[%s1962_s9 + $0x68] sm:$0xff] %v1111_v58  ;;  %v1040_v61 = vadd.f32 %v1039_v59, %v1946_v32  ;;  %v1113_v62 = vadd.f32 %v1112_v60, %v1949_v33 }
 0x1d7   : > { %v1041_v63 = vpop.f32.mrf.mxu1  ;;  %v1114_v1 = vpop.f32.mrf.mxu0 }
 0x1d8   : > { %1217 = vst [vmem:[%s1962_s9 + $0x78] sm:$0xff] %v1040_v61  ;;  %1219 = vst [vmem:[%s1962_s9 + $0x88] sm:$0xff] %v1113_v62  ;;  %v1042_v3 = vadd.f32 %v1041_v63, %v1954_v34  ;;  %v1115_v5 = vadd.f32 %v1114_v1, %v1957_v35 }
 0x1d9   : > { %v1045_v6 = vpop.f32.mrf.mxu1  ;;  %v1118_v8 = vpop.f32.mrf.mxu0 }
 0x1da   : > { %1218 = vst [vmem:[%s1962_s9 + $0x80] sm:$0xff] %v1042_v3  ;;  %1220 = vst [vmem:[%s1962_s9 + $0x90] sm:$0xff] %v1115_v5  ;;  %v1046_v11 = vadd.f32 %v1045_v6, %v1946_v32  ;;  %v1119_v12 = vadd.f32 %v1118_v8, %v1949_v33 }
 0x1db   : > { %v1047_v13 = vpop.f32.mrf.mxu1  ;;  %v1120_v9 = vpop.f32.mrf.mxu0 }
 0x1dc   : > { %1222 = vst [vmem:[%s1962_s9 + $0xa0] sm:$0xff] %v1046_v11  ;;  %1224 = vst [vmem:[%s1962_s9 + $0xb0] sm:$0xff] %v1119_v12  ;;  %v1048_v10 = vadd.f32 %v1047_v13, %v1954_v34  ;;  %v1121_v14 = vadd.f32 %v1120_v9, %v1957_v35 }
 0x1dd   : > { %v1049_v15 = vpop.f32.mrf.mxu1  ;;  %v1122_v16 = vpop.f32.mrf.mxu0 }
 0x1de   : > { %1223 = vst [vmem:[%s1962_s9 + $0xa8] sm:$0xff] %v1048_v10  ;;  %1225 = vst [vmem:[%s1962_s9 + $0xb8] sm:$0xff] %v1121_v14  ;;  %v1050_v17 = vadd.f32 %v1049_v15, %v1946_v32  ;;  %v1123_v18 = vadd.f32 %v1122_v16, %v1949_v33 }
 0x1df   : > { %v1051_v19 = vpop.f32.mrf.mxu1  ;;  %v1124_v20 = vpop.f32.mrf.mxu0 }
 0x1e0   : > { %1227 = vst [vmem:[%s1962_s9 + $0xc8] sm:$0xff] %v1050_v17  ;;  %1229 = vst [vmem:[%s1962_s9 + $0xd8] sm:$0xff] %v1123_v18  ;;  %v1052_v21 = vadd.f32 %v1051_v19, %v1954_v34  ;;  %v1125_v22 = vadd.f32 %v1124_v20, %v1957_v35 }
 0x1e1   : > { %v1055_v23 = vpop.f32.mrf.mxu1  ;;  %v1128_v24 = vpop.f32.mrf.mxu0 }
 0x1e2   : > { %1228 = vst [vmem:[%s1962_s9 + $0xd0] sm:$0xff] %v1052_v21  ;;  %1230 = vst [vmem:[%s1962_s9 + $0xe0] sm:$0xff] %v1125_v22  ;;  %v1056_v25 = vadd.f32 %v1055_v23, %v1946_v32  ;;  %v1129_v54 = vadd.f32 %v1128_v24, %v1949_v33 }
 0x1e3   : > { %v1057_v27 = vpop.f32.mrf.mxu1  ;;  %v1130_v28 = vpop.f32.mrf.mxu0 }
 0x1e4   : > { %1232 = vst [vmem:[%s1962_s9 + $0xf0] sm:$0xff] %v1056_v25  ;;  %1234 = vst [vmem:[%s1962_s9 + $0x100] sm:$0xff] %v1129_v54  ;;  %v1058_v29 = vadd.f32 %v1057_v27, %v1954_v34  ;;  %v1131_v4 = vadd.f32 %v1130_v28, %v1957_v35 }
 0x1e5   : > { %v1059_v31 = vpop.f32.mrf.mxu1  ;;  %v1132_v2 = vpop.f32.mrf.mxu0 }
 0x1e6   : > { %1233 = vst [vmem:[%s1962_s9 + $0xf8] sm:$0xff] %v1058_v29  ;;  %1235 = vst [vmem:[%s1962_s9 + $0x108] sm:$0xff] %v1131_v4  ;;  %v1060_v36 = vadd.f32 %v1059_v31, %v1946_v32  ;;  %v1133_v0 = vadd.f32 %v1132_v2, %v1949_v33 }
 0x1e7   : > { %v1061_v7 = vpop.f32.mrf.mxu1  ;;  %v1134_v38 = vpop.f32.mrf.mxu0 }
 0x1e8   : > { %1237 = vst [vmem:[%s1962_s9 + $0x118] sm:$0xff] %v1060_v36  ;;  %1239 = vst [vmem:[%s1962_s9 + $0x128] sm:$0xff] %v1133_v0  ;;  %v1062_v39 = vadd.f32 %v1061_v7, %v1954_v34  ;;  %v1135_v40 = vadd.f32 %v1134_v38, %v1957_v35 }
 0x1e9   : > { %v1532_v41 = vpop.f32.mrf.mxu1 }
 0x1ea   : > { %1238 = vst [vmem:[%s1962_s9 + $0x120] sm:$0xff] %v1062_v39  ;;  %1240 = vst [vmem:[%s1962_s9 + $0x130] sm:$0xff] %v1135_v40  ;;  %v1180_v32 = vadd.f32 %v1532_v41, %v777_v37 }
 0x1eb   : > { %v1171_v42 = vpop.f32.mrf.mxu1 }
 0x1ec   : > { %1216 = vst [vmem:[%s1962_s9 + $0x70] sm:$0xff] %v1180_v32  ;;  %v1172_v33 = vadd.f32 %v1171_v42, %v777_v37 }
 0x1ed   : > { %v1533_v30 = vpop.f32.mrf.mxu1 }
 0x1ee   : > { %1206 = vst [vmem:[%s1962_s9 + $0x20] sm:$0xff] %v1172_v33  ;;  %v1183_v43 = vadd.f32 %v1533_v30, %v777_v37 }
 0x1ef   : > { %v1174_v44 = vpop.f32.mrf.mxu1 }
 0x1f0   : > { %1221 = vst [vmem:[%s1962_s9 + $0x98] sm:$0xff] %v1183_v43  ;;  %v1175_v34 = vadd.f32 %v1174_v44, %v777_v37 }
 0x1f1   : > { %v1536_v45 = vpop.f32.mrf.mxu1 }
 0x1f2   : > { %1211 = vst [vmem:[%s1962_s9 + $0x48] sm:$0xff] %v1175_v34  ;;  %v1196_v35 = vadd.f32 %v1536_v45, %v777_v37 }
 0x1f3   : > { %v1187_v46 = vpop.f32.mrf.mxu1 }
 0x1f4   : > { %1236 = vst [vmem:[%s1962_s9 + $0x110] sm:$0xff] %v1196_v35  ;;  %v1188_v47 = vadd.f32 %v1187_v46, %v777_v37 }
 0x1f5   : > { %v1537_v48 = vpop.f32.mrf.mxu1 }
 0x1f6   : > { %1226 = vst [vmem:[%s1962_s9 + $0xc0] sm:$0xff] %v1188_v47  ;;  %v1199_v49 = vadd.f32 %v1537_v48, %v777_v37 }
 0x1f7   : > { %v1190_v50 = vpop.f32.mrf.mxu1 }
 0x1f8   : > { %1241 = vst [vmem:[%s1962_s9 + $0x138] sm:$0xff] %v1199_v49  ;;  %v1191_v51 = vadd.f32 %v1190_v50, %v777_v37 }
 0x1fa   : > { %1231 = vst [vmem:[%s1962_s9 + $0xe8] sm:$0xff] %v1191_v51 }
 0x1fb PF: > { %s19_s27 = sadd.s32 1, %s1650_s27  }
 0x1fc   : > { %p16_p4 = scmp.ge.s32.totalorder %s19_s27, 4  }
 0x1fe   :  { %18 = sbr.rel (!%p16_p4) target bundleno = 1 (0x1), region = 96 }

// kernel: volraft_forward.26
= control target key start
LH: loop header
LB: loop body
LE: loop exit
PB: predicated region body
PF: predicated region fallthrough
CT: control target
= control target key end

     0   :  { %14 = vsyncpa [#allocation3], 0  ;;  %s2242_s0 = inlined_call_operand.vmem [shape: bf16[128,128], index: 0, kind: input, shape index: {}]   ;;  %s2243_s1 = inlined_call_operand.vmem [shape: f32[128,2], index: 1, kind: input, shape index: {}]   ;;  %s2244_s2 = inlined_call_operand.vmem [shape: f32[128,128], index: 2, kind: input, shape index: {}]   ;;  %s2245_s3 = inlined_call_operand.vmem [shape: bf16[128,128], index: 3, kind: input, shape index: {}]   ;;  %s2246_s4 = inlined_call_operand.vmem [shape: f32[2,128], index: 4, kind: input, shape index: {}]   ;;  %s2247_s5 = inlined_call_operand.vmem [shape: bf16[128,640], index: 5, kind: input, shape index: {}]   ;;  %s2248_s6 = inlined_call_operand.vmem [shape: f32[1,640], index: 6, kind: input, shape index: {}]   ;;  %s2249_s7 = inlined_call_operand.hbm [shape: bf16[128,128], index: 7, kind: output, shape index: {0}]   ;;  %s2250_s8 = inlined_call_operand.vmem [shape: f32[128,640], index: 8, kind: output, shape index: {1}]  }
   0x1   :  { %16 = vsyncpa [#allocation3 + $0x1], 0  ;;  %s1809_s27 = smov 0   ;;  %s1811_s28 = smov 0  }
   0x2   :  { %s1813_s29 = smov 0   ;;  %s1815_s30 = smov 0  }
   0x3 LB: > { %s1830_s9 = sadd.s32 4294967295, %s1757_s30   ;;  %s1376_s10 = sadd.s32 4294967294, %s1757_s30   ;;  %s1757_s30 = sphi %s1815_s30, %s2256_s30   ;;  %s1753_s29 = sphi %s1813_s29, %s2255_s29   ;;  %s1749_s28 = sphi %s1811_s28, %s2254_s28   ;;  %s1745_s27 = sphi %s1809_s27, %s2253_s27  }
   0x4   : > { %s1834_s11 = sadd.s32 1, %s1757_s30   ;;  %s191_s12 = sadd.s32 1, %s1753_s29 }
   0x5   : > { %s188_s13 = ssub.s32 %s1757_s30, %s1834_s11  ;;  %p201_p0 = scmp.ne.s32.totalorder %s1753_s29, %s1749_s28 }
   0x6   : > { %p189_p1 = scmp.eq.s32.totalorder %s188_s13, 0  ;;  %p202_p2 = scmp.eq.s32.totalorder %s1830_s9, 1 }
   0x7   : > { %p207_p3 = scmp.ne.s32.totalorder %s1749_s28, %s1745_s27  ;;  %p208_p4 = scmp.eq.s32.totalorder %s1376_s10, 1 }
   0x8   : > { %s1845_s14 = scalar_select %p189_p1, %s1753_s29, %s191_s12  }
   0x9   : > { %p1847_p5 = por %p202_p2, %p201_p0  ;;  %p1851_p6 = por %p208_p4, %p207_p3 }
   0xa   : > { %p1379_p7 = scmp.ge.s32.totalorder %s1757_s30, 1  ;;  %p291_p8 = scmp.lt.s32.totalorder %s1757_s30, 3 }
   0xc   : > { %p292_p9 = pnand %p1379_p7, %p291_p8 }
   0xd   : > { %s1381_s19 = sshll.u32 (!%p292_p9), %s1830_s9, 3  ;;  %s1462_s23 = sshll.u32 (!%p292_p9), %s1830_s9, 9 }
   0xe   : > { %295 = sbr.rel (%p292_p9) target bundleno = 515 (0x203), region = 48  ;;  %p342_p10 = scmp.lt.s32.totalorder (!%p292_p9), %s1381_s19, 15 }
   0xf   : > { %s1761_s9 = smov (!%p292_p9), [#allocation2]  }
  0x13   : > { %v1613_v0 = vld [vmem:[%s2245_s3 + $0x38] sm:$0xff]   ;;  %v1614_v1 = vld [vmem:[%s2245_s3 + $0x30] sm:$0xff]   ;;  %s2258_s19 = smov (!%p342_p10, %s1381_s19), 15  ;;  %v1759_v2 = vmov 1   ;;  %v1615_v3 = vld [vmem:[%s2245_s3 + $0x28] sm:$0xff]   ;;  %v1760_v4 = vmov 0   ;;  %v441_v62 = vlaneseq }
  0x14   : > { %1510 = vmatprep.subr.bf16.mxu0 %v1613_v0  ;;  %1603 = vset.pattern.permute.xlu1 %v1759_v2  ;;  %s1382_s24 = sshll.u32 %s2258_s19, 2  ;;  %v1616_v5 = vld [vmem:[%s2245_s3 + $0x20] sm:$0xff]   ;;  %s1384_s17 = sshll.u32 %s2258_s19, 3  ;;  %v1617_v7 = vld [vmem:[%s2245_s3 + $0x18] sm:$0xff]   ;;  %v1618_v9 = vld [vmem:[%s2245_s3 + $0x10] sm:$0xff]  }
  0x15   : > { %1511 = vmatpush3.bf16.msra.mxu0 %v1613_v0  ;;  %1602 = vset.pattern.permute.xlu0 %v1760_v4  ;;  %s1876_s10 = scalar_lea.vmem %s2242_s0, %s1382_s24  ;;  %s1888_s21 = scalar_lea.vmem %s2243_s1, %s1384_s17  ;;  %v1619_v13 = vld [vmem:[%s2245_s3 + $0x8] sm:$0xff]   ;;  %v1625_v14 = vld [vmem:[%s2247_s5 + $0x11c] ss:$20 sps:$4 sm:$0xff]   ;;  %v1620_v15 = vld [vmem:[%s2245_s3] sm:$0xff]   ;;  %v2025_v0 = vshrl.u32 %v441_v62, 7 }
  0x16   : > { %1512 = vmatprep.subr.bf16.mxu0 %v1614_v1  ;;  %1021 = vmatprep.mubr.bf16.mxu1 %v1760_v4  ;;  %v1621_v6 = vld [vmem:[%s1876_s10] sm:$0xff]   ;;  %v393_v10 = vld [vmem:[%s1888_s21 + $0x8] sm:$0xff]  ;;  %v394_v11 = vld [vmem:[%s1888_s21 + $0x10] sm:$0xff]  ;;  %s2041_s26 = scalar_lea.vmem %s2244_s2, %s1384_s17  ;;  %s330_s17 = sand.u32 1, %s1749_s28  }
  0x17   : > { %1526 = vmatprep.mubr.bf16.mxu0 %v1621_v6  ;;  %v392_v8 = vld [vmem:[%s1888_s21] sm:$0xff]  ;;  %v395_v12 = vld [vmem:[%s1888_s21 + $0x18] sm:$0xff]  ;;  %989 = vmatprep.subr.bf16.mxu1 %v1625_v14  ;;  %v1631_v17 = vld [vmem:[%s2247_s5 + $0xf4] ss:$20 sps:$4 sm:$0xff]  }
  0x18   : > { %591 = vperm.xlu1 %1603, %v392_v8   ;;  %403 = vperm.xlu0 %1602, %v392_v8   ;;  %v1627_v16 = vld [vmem:[%s2247_s5 + $0x118] ss:$20 sps:$4 sm:$0xff]   ;;  %v396_v18 = vld [vmem:[%s1888_s21 + $0x20] sm:$0xff]  ;;  %v1623_v22 = vld [vmem:[%s1876_s10 + $0x10] sm:$0xff]  }
  0x19   : > { %1513 = vmatpush3.bf16.msra.mxu0 %v1614_v1  ;;  %990 = vmatpush1.bf16.msra.mxu1 %v1627_v16  ;;  %v397_v19 = vld [vmem:[%s1888_s21 + $0x28] sm:$0xff]  ;;  %v1630_v20 = vld [vmem:[%s2247_s5 + $0x124] ss:$20 sps:$4 sm:$0xff]   ;;  %v1628_v23 = vld [vmem:[%s2247_s5 + $0x120] ss:$20 sps:$4 sm:$0xff]  }
  0x1a   : > { %1514 = vmatprep.subr.bf16.mxu0 %v1615_v3  ;;  %v1622_v21 = vld [vmem:[%s1876_s10 + $0x8] sm:$0xff]   ;;  %991 = vmatprep.subr.bf16.mxu1 %v1631_v17  ;;  %v398_v24 = vld [vmem:[%s1888_s21 + $0x30] sm:$0xff]  ;;  %v1624_v25 = vld [vmem:[%s1876_s10 + $0x18] sm:$0xff]  }
  0x1b   : > { %v399_v26 = vld [vmem:[%s1888_s21 + $0x38] sm:$0xff]  ;;  %v1633_v28 = vld [vmem:[%s2247_s5 + $0xf0] ss:$20 sps:$4 sm:$0xff]   ;;  %v1637_v30 = vld [vmem:[%s2247_s5 + $0xcc] ss:$20 sps:$4 sm:$0xff]   ;;  %s1380_s21 = sshll.u32 %s330_s17, 5 }
  0x1c   : > { %595 = vperm.xlu1 %1603, %v393_v10   ;;  %408 = vperm.xlu0 %1602, %v393_v10   ;;  %v1636_v27 = vld [vmem:[%s2247_s5 + $0xfc] ss:$20 sps:$4 sm:$0xff]   ;;  %v1634_v29 = vld [vmem:[%s2247_s5 + $0xf8] ss:$20 sps:$4 sm:$0xff]   ;;  %v1642_v31 = vld [vmem:[%s2247_s5 + $0xd4] ss:$20 sps:$4 sm:$0xff]  }
  0x1d   : > { %1515 = vmatpush3.bf16.msra.mxu0 %v1615_v3  ;;  %992 = vmatpush1.bf16.msra.mxu1 %v1633_v28  ;;  %v1639_v32 = vld [vmem:[%s2247_s5 + $0xc8] ss:$20 sps:$4 sm:$0xff]   ;;  %v1640_v33 = vld [vmem:[%s2247_s5 + $0xd0] ss:$20 sps:$4 sm:$0xff]   ;;  %v1648_v35 = vld [vmem:[%s2247_s5 + $0xac] ss:$20 sps:$4 sm:$0xff]  }
  0x1e   : > { %1516 = vmatprep.subr.bf16.mxu0 %v1616_v5  ;;  %993 = vmatprep.subr.bf16.mxu1 %v1637_v30  ;;  %v1643_v34 = vld [vmem:[%s2247_s5 + $0xa4] ss:$20 sps:$4 sm:$0xff]   ;;  %v1645_v36 = vld [vmem:[%s2247_s5 + $0xa0] ss:$20 sps:$4 sm:$0xff]   ;;  %v1646_v37 = vld [vmem:[%s2247_s5 + $0xa8] ss:$20 sps:$4 sm:$0xff]  }
  0x1f   : > { %v1649_v38 = vld [vmem:[%s2247_s5 + $0x7c] ss:$20 sps:$4 sm:$0xff]   ;;  %v1654_v39 = vld [vmem:[%s2247_s5 + $0x84] ss:$20 sps:$4 sm:$0xff]   ;;  %v1652_v41 = vld [vmem:[%s2247_s5 + $0x80] ss:$20 sps:$4 sm:$0xff]  }
  0x20   : > { %1604 = vset.pattern.permute.xlu1 %v1760_v4  ;;  %413 = vperm.xlu0 %1602, %v394_v11   ;;  %v1651_v40 = vld [vmem:[%s2247_s5 + $0x78] ss:$20 sps:$4 sm:$0xff]   ;;  %v1655_v42 = vld [vmem:[%s2247_s5 + $0x54] ss:$20 sps:$4 sm:$0xff]   ;;  %v1660_v43 = vld [vmem:[%s2247_s5 + $0x5c] ss:$20 sps:$4 sm:$0xff]  }
  0x21   : > { %1517 = vmatpush3.bf16.msra.mxu0 %v1616_v5  ;;  %418 = vperm.xlu1 %1604, %v395_v12   ;;  %v1657_v44 = vld [vmem:[%s2247_s5 + $0x50] ss:$20 sps:$4 sm:$0xff]   ;;  %v1658_v45 = vld [vmem:[%s2247_s5 + $0x58] ss:$20 sps:$4 sm:$0xff]   ;;  %v1666_v47 = vld [vmem:[%s2247_s5 + $0x34] ss:$20 sps:$4 sm:$0xff]  }
  0x22   : > { %1518 = vmatprep.subr.bf16.mxu0 %v1617_v7  ;;  %994 = vmatpush1.bf16.msra.mxu1 %v1639_v32  ;;  %v1661_v46 = vld [vmem:[%s2247_s5 + $0x2c] ss:$20 sps:$4 sm:$0xff]   ;;  %v1663_v48 = vld [vmem:[%s2247_s5 + $0x28] ss:$20 sps:$4 sm:$0xff]   ;;  %v1664_v49 = vld [vmem:[%s2247_s5 + $0x30] ss:$20 sps:$4 sm:$0xff]  }
  0x23   : > { %995 = vmatprep.subr.bf16.mxu1 %v1643_v34  ;;  %v1667_v50 = vld [vmem:[%s2247_s5 + $0x4] ss:$20 sps:$4 sm:$0xff]   ;;  %v1669_v51 = vld [vmem:[%s2247_s5] ss:$20 sps:$4 sm:$0xff]   ;;  %v1670_v53 = vld [vmem:[%s2247_s5 + $0x8] ss:$20 sps:$4 sm:$0xff]  }
  0x24   : > { %1605 = vset.pattern.permute.xlu0 %v1759_v2  ;;  %v1672_v52 = vld [vmem:[%s2247_s5 + $0xc] ss:$20 sps:$4 sm:$0xff]   ;;  %v2022_v54 = vld [vmem:[%s2247_s5 + $0x128] ss:$20 sps:$4 sm:$0xff]   ;;  %s2057_s18 = scalar_lea.vmem [#allocation2], %s1380_s21  ;;  %s2099_s21 = scalar_lea.sflag [#allocation3], %s330_s17 }
  0x25   : > { %1519 = vmatpush3.bf16.msra.mxu0 %v1617_v7  ;;  %1606 = vset.pattern.permute.xlu1 %v1759_v2  ;;  %v400_v5 = vld [vmem:[%s2246_s4] sm:$0x3]  ;;  %v624_v7 = vsub.s32 1, %v2025_v0  ;;  %v645_v34 = vld [vmem:[%s2041_s26 + $0x18] sm:$0xff]  ;;  %s1260_s24 = sshll.u32 %s2057_s18, 4  ;;  %s2095_s24 = int_to_ptr.vmem [resolvable:$true] %s1260_s24 }
  0x26   : > { %1520 = vmatprep.subr.bf16.mxu0 %v1618_v9  ;;  %599 = vperm.xlu0 %1605, %v394_v11   ;;  %s1697_s12 = scalar_lea.vmem %s2095_s24, 512 }
  0x27   : > { %603 = vperm.xlu1 %1606, %v395_v12   ;;  %996 = vmatpush1.bf16.msra.mxu1 %v1645_v36  ;;  %v625_v10 = vrot.slane %v400_v5, %v624_v7  ;;  %p1698_p11 = scmp.ne.s32.totalorder %s2095_s24, %s1697_s12 }
  0x28   : > { %997 = vmatprep.subr.bf16.mxu1 %v1649_v38 }
  0x29   : > { %1521 = vmatpush3.bf16.msra.mxu0 %v1618_v9  ;;  %p1699_p12 = pnand %p1698_p11, %p1847_p5 }
  0x2a   : > { %1522 = vmatprep.subr.bf16.mxu0 %v1619_v13  ;;  %1608 = vset.pattern.permute.xlu0 %v1760_v4 }
  0x2b   : > { %1607 = vset.pattern.permute.xlu1 %v1760_v4  ;;  %428 = vperm.xlu0 %1608, %v397_v19   ;;  %p1700_p13 = pneg %p1699_p12 }
  0x2c   : > { %423 = vperm.xlu1 %1607, %v396_v18   ;;  %998 = vmatpush1.bf16.msra.mxu1 %v1651_v40 }
  0x2d   : > { %1523 = vmatpush3.bf16.msra.mxu0 %v1619_v13  ;;  %999 = vmatprep.subr.bf16.mxu1 %v1655_v42 }
  0x2e   : > { %1524 = vmatprep.subr.bf16.mxu0 %v1620_v15 }
  0x2f   : > { %433 = vperm.xlu0 %1608, %v398_v24  }
  0x30   : > { %1609 = vset.pattern.permute.xlu1 %v1759_v2  ;;  %1000 = vmatpush1.bf16.msra.mxu1 %v1657_v44 }
  0x31   : > { %1525 = vmatpush3.bf16.msra.mxu0 %v1620_v15  ;;  %607 = vperm.xlu1 %1609, %v396_v18  }
  0x32   : > { %1062 = vmatprep.subr.bf16.mxu0 %v1630_v20  ;;  %1001 = vmatprep.subr.bf16.mxu1 %v1661_v46 }
  0x33   : > { %1611 = vset.pattern.permute.xlu0 %v1759_v2 }
  0x34   : > { %1527 = vmatmul.mubr.bf16.vlgmr.msra.gmra.mxu0 %v1622_v21  ;;  %615 = vperm.xlu0 %1611, %v398_v24  }
  0x35   : > { %1530 = vmatprep.mubr.bf16.mxu0 %v1623_v22  ;;  %1063 = vmatpush1.bf16.msra.mxu0 %v1628_v23  ;;  %v644_v23 = vld [vmem:[%s2041_s26 + $0x10] sm:$0xff] }
  0x36   : > { %611 = vperm.xlu1 %1609, %v397_v19   ;;  %1064 = vmatprep.subr.bf16.mxu0 %v1636_v27 }
  0x37   : > { %1002 = vmatpush1.bf16.msra.mxu1 %v1663_v48 }
  0x38   : > { %1003 = vmatprep.subr.bf16.mxu1 %v1667_v50 }
  0x39   : > { %1065 = vmatpush1.bf16.msra.mxu0 %v1634_v29  ;;  %v642_v29 = vld [vmem:[%s2041_s26] sm:$0xff] }
  0x3a   : > { %1610 = vset.pattern.permute.xlu1 %v1760_v4  ;;  %1066 = vmatprep.subr.bf16.mxu0 %v1642_v31 }
  0x3b   : > { %438 = vperm.xlu1 %1610, %v399_v26   ;;  %1004 = vmatpush1.bf16.msra.mxu1 %v1669_v51 }
  0x3c   : > { %1531 = vmatmul.mubr.bf16.gmra.mxu0 %v1624_v25  ;;  %1534 = vmatprep.subr.bf16.mxu1 %v2022_v54 }
  0x3d   : > { %1094 = vmatprep.mubr.bf16.mxu0 %v1760_v4  ;;  %1067 = vmatpush1.bf16.msra.mxu0 %v1640_v33 }
  0x3e   : > { %1068 = vmatprep.subr.bf16.mxu0 %v1648_v35 }
  0x3f   : > { %1612 = vset.pattern.permute.xlu1 %v1759_v2  ;;  %v443_v2 = vsub.s32 0, %v2025_v0 }
  0x40   : > { %619 = vperm.xlu1 %1612, %v399_v26  }
  0x41   : > { %1069 = vmatpush1.bf16.msra.mxu0 %v1646_v37  ;;  %v444_v8 = vrot.slane %v400_v5, %v443_v2 }
  0x42   : > { %1070 = vmatprep.subr.bf16.mxu0 %v1654_v39 }
  0x45   : > { %1071 = vmatpush1.bf16.msra.mxu0 %v1652_v41 }
  0x46   : > { %1072 = vmatprep.subr.bf16.mxu0 %v1660_v43  ;;  %v643_v43 = vld [vmem:[%s2041_s26 + $0x8] sm:$0xff] }
  0x49   : > { %1073 = vmatpush1.bf16.msra.mxu0 %v1658_v45 }
  0x4a   : > { %1074 = vmatprep.subr.bf16.mxu0 %v1666_v47 }
  0x4d   : > { %1075 = vmatpush1.bf16.msra.mxu0 %v1664_v49 }
  0x4e   : > { %1076 = vmatprep.subr.bf16.mxu0 %v1672_v52  ;;  %v648_v52 = vld [vmem:[%s2041_s26 + $0x30] sm:$0xff] }
  0x51   : > { %1077 = vmatpush1.bf16.msra.mxu0 %v1670_v53 }
  0x93   : > { %v592_v55 = vpop.permute.xlu1 %591  ;;  %v404_v57 = vpop.permute.xlu0 %403 }
  0x94   : > { %v445_v13 = vmul.f32 %v444_v8, %v404_v57  ;;  %v626_v20 = vmul.f32 %v625_v10, %v592_v55 }
  0x97   : > { %v596_v56 = vpop.permute.xlu1 %595  ;;  %v409_v59 = vpop.permute.xlu0 %408 }
  0x98   : > { %v446_v27 = vmul.f32 %v444_v8, %v409_v59  ;;  %v627_v32 = vmul.f32 %v625_v10, %v596_v56 }
  0x9b   : > { %v414_v61 = vpop.permute.xlu0 %413 }
  0x9c   : > { %v419_v58 = vpop.permute.xlu1 %418  ;;  %v447_v11 = vmul.f32 %v444_v8, %v414_v61 }
  0x9d   : > { %v448_v16 = vmul.f32 %v444_v8, %v419_v58  ;;  %v646_v58 = vld [vmem:[%s2041_s26 + $0x20] sm:$0xff] }
  0xa1   : > { %v600_v1 = vpop.permute.xlu0 %599 }
  0xa2   : > { %v604_v60 = vpop.permute.xlu1 %603  ;;  %v628_v14 = vmul.f32 %v625_v10, %v600_v1  ;;  %v649_v1 = vld [vmem:[%s2041_s26 + $0x38] sm:$0xff] }
  0xa3   : > { %v629_v21 = vmul.f32 %v625_v10, %v604_v60 }
  0xa6   : > { %v429_v6 = vpop.permute.xlu0 %428 }
  0xa7   : > { %v424_v63 = vpop.permute.xlu1 %423  ;;  %v450_v49 = vmul.f32 %v444_v8, %v429_v6 }
  0xa8   : > { %v449_v36 = vmul.f32 %v444_v8, %v424_v63 }
  0xaa   : > { %v434_v12 = vpop.permute.xlu0 %433 }
  0xab   : > { %v451_v31 = vmul.f32 %v444_v8, %v434_v12 }
  0xac   : > { %v608_v3 = vpop.permute.xlu1 %607 }
  0xad   : > { %v630_v42 = vmul.f32 %v625_v10, %v608_v3 }
  0xaf   : > { %v616_v26 = vpop.permute.xlu0 %615 }
  0xb0   : > { %v632_v40 = vmul.f32 %v625_v10, %v616_v26  ;;  %v1677_v26 = vld [vmem:[%s2247_s5 + $0x88] ss:$20 sps:$4 sm:$0xff]  }
  0xb1   : > { %v612_v9 = vpop.permute.xlu1 %611 }
  0xb2   : > { %v631_v57 = vmul.f32 %v625_v10, %v612_v9 }
  0xb6   : > { %v439_v18 = vpop.permute.xlu1 %438 }
  0xb7   : > { %v452_v47 = vmul.f32 %v444_v8, %v439_v18  ;;  %v647_v8 = vld [vmem:[%s2041_s26 + $0x28] sm:$0xff]  ;;  %v1674_v18 = vld [vmem:[%s2247_s5 + $0x100] ss:$20 sps:$4 sm:$0xff]   ;;  %s2093_s26 = scalar_lea.hbm %s2249_s7, %s1462_s23 }
  0xbb   : > { %v620_v39 = vpop.permute.xlu1 %619 }
  0xbc   : > { %v633_v51 = vmul.f32 %v625_v10, %v620_v39 }
  0xf4   : > { %v1528_v15 = vpop.f32.mrf.mxu0 }
  0xf5   : > { %v568_v17 = vadd.f32 %v1528_v15, %v447_v11 }
  0xf6   : > { %v559_v19 = vpop.f32.mrf.mxu0 }
  0xf7   : > { %v636_v22 = vadd.f32 %v628_v14, %v568_v17  ;;  %v560_v24 = vadd.f32 %v559_v19, %v445_v13 }
  0xf8   : > { %v1529_v25 = vpop.f32.mrf.mxu0 }
  0xf9   : > { %v634_v28 = vadd.f32 %v626_v20, %v560_v24  ;;  %v571_v30 = vadd.f32 %v1529_v25, %v448_v16  ;;  %v652_v33 = vadd.f32 %v644_v23, %v636_v22 }
  0xfa   : > { %v562_v35 = vpop.f32.mrf.mxu0 }
  0xfb   : > { %v637_v37 = vadd.f32 %v629_v21, %v571_v30  ;;  %v563_v38 = vadd.f32 %v562_v35, %v446_v27  ;;  %v650_v41 = vadd.f32 %v642_v29, %v634_v28  ;;  %1681 = vtanh.f32 %v652_v33  ;;  %v1675_v21 = vld [vmem:[%s2247_s5 + $0xd8] ss:$20 sps:$4 sm:$0xff]   ;;  %v1678_v27 = vld [vmem:[%s2247_s5 + $0x60] ss:$20 sps:$4 sm:$0xff]   ;;  %v1680_v29 = vld [vmem:[%s2247_s5 + $0x10] ss:$20 sps:$4 sm:$0xff]  }
  0xfc   : > { %v1532_v44 = vpop.f32.mrf.mxu0  ;;  %v1679_v28 = vld [vmem:[%s2247_s5 + $0x38] ss:$20 sps:$4 sm:$0xff]  }
  0xfd   : > { %v653_v45 = vadd.f32 %v645_v34, %v637_v37  ;;  %v635_v46 = vadd.f32 %v627_v32, %v563_v38  ;;  %v584_v48 = vadd.f32 %v1532_v44, %v451_v31 }
  0xfe   : > { %v575_v50 = vpop.f32.mrf.mxu0 }
  0xff   : > { %1683 = vtanh.f32 %v653_v45  ;;  %v651_v53 = vadd.f32 %v643_v43, %v635_v46  ;;  %v576_v55 = vadd.f32 %v575_v50, %v449_v36  ;;  %v640_v56 = vadd.f32 %v632_v40, %v584_v48 }
 0x100   : > { %1685 = vtanh.f32 %v650_v41  ;;  %v1533_v59 = vpop.f32.mrf.mxu0 }
 0x101   : > { %1687 = vtanh.f32 %v651_v53  ;;  %v638_v60 = vadd.f32 %v630_v42, %v576_v55  ;;  %v587_v61 = vadd.f32 %v1533_v59, %v452_v47  ;;  %v656_v62 = vadd.f32 %v648_v52, %v640_v56 }
 0x102   : > { %v578_v63 = vpop.f32.mrf.mxu0 }
 0x103   : > { %v654_v3 = vadd.f32 %v646_v58, %v638_v60  ;;  %v579_v5 = vadd.f32 %v578_v63, %v450_v49  ;;  %v641_v6 = vadd.f32 %v633_v51, %v587_v61  ;;  %1689 = vtanh.f32 %v656_v62 }
 0x105   : > { %v639_v11 = vadd.f32 %v631_v57, %v579_v5  ;;  %v657_v12 = vadd.f32 %v649_v1, %v641_v6  ;;  %1691 = vtanh.f32 %v654_v3 }
 0x107   : > { %v655_v9 = vadd.f32 %v647_v8, %v639_v11  ;;  %1693 = vtanh.f32 %v657_v12 }
 0x108   : > { %v1682_v10 = vpop.eup %1681 }
 0x109   : > { %1695 = vtanh.f32 %v655_v9 }
 0x10c   : > { %v1684_v13 = vpop.eup %1683 }
 0x10d   : > { %v1686_v14 = vpop.eup %1685  ;;  %v667_v15 = vpack.c.bf16 %v1684_v13, %v1682_v10 }
 0x10e   : > { %v1688_v16 = vpop.eup %1687 }
 0x10f   : > { %v666_v17 = vpack.c.bf16 %v1688_v16, %v1686_v14  ;;  %1483 = vst [vmem:[%s2057_s18 + $0x8] sm:$0xff] %v667_v15  }
 0x110   : > { %v1690_v19 = vpop.eup %1689 }
 0x111   : > { %1467 = vst [vmem:[%s2057_s18] sm:$0xff] %v666_v17   ;;  %1022 = vmatmul.mubr.bf16.vlgmr.msra.gmra.mxu1 %v666_v17  ;;  %1095 = vmatmul.mubr.bf16.vlgmr.msra.gmra.mxu0 %v666_v17 }
 0x112   : > { %1535 = vmatpush3.bf16.msra.mxu1 %v2022_v54  ;;  %1031 = vmatprep.mubr.bf16.mxu1 %v1760_v4  ;;  %v1692_v20 = vpop.eup %1691  ;;  %v1676_v54 = vld [vmem:[%s2247_s5 + $0xb0] ss:$20 sps:$4 sm:$0xff]  }
 0x113   : > { %1536 = vmatprep.subr.bf16.mxu1 %v1674_v18  ;;  %1104 = vmatprep.mubr.bf16.mxu0 %v1760_v4 }
 0x114   : > { %v1694_v22 = vpop.eup %1693 }
 0x115   : > { %v669_v23 = vpack.c.bf16 %v1694_v22, %v1690_v19 }
 0x116   : > { %v1696_v24 = vpop.eup %1695  ;;  %1537 = vmatpush3.bf16.msra.mxu1 %v1674_v18 }
 0x117   : > { %1538 = vmatprep.subr.bf16.mxu1 %v1675_v21  ;;  %v668_v25 = vpack.c.bf16 %v1696_v24, %v1692_v20  ;;  %1485 = vst [vmem:[%s2057_s18 + $0x18] sm:$0xff] %v669_v23  }
 0x119   : > { %1032 = vmatmul.mubr.bf16.gmra.mxu1 %v667_v15  ;;  %1105 = vmatmul.mubr.bf16.gmra.mxu0 %v667_v15  ;;  %1484 = vst [vmem:[%s2057_s18 + $0x10] sm:$0xff] %v668_v25   ;;  %s1701_s18 = sshll.u32 %s1761_s9, 4  ;;  %s1702_s18 = int_to_ptr.vmem [resolvable:$false] %s1701_s18 }
 0x11a   : > { %1539 = vmatpush3.bf16.msra.mxu1 %v1675_v21  ;;  %1041 = vmatprep.mubr.bf16.mxu1 %v1760_v4  ;;  %s1703_s13 = scalar_lea.vmem %s1702_s18, 1024  ;;  %p1704_p0 = scmp.lt.s32.totalorder %s2095_s24, %s1702_s18 }
 0x11b   : > { %1540 = vmatprep.subr.bf16.mxu1 %v1676_v54  ;;  %1114 = vmatprep.mubr.bf16.mxu0 %v1760_v4  ;;  %p1705_p1 = scmp.lt.s32.totalorder %s1703_s13, %s1697_s12 }
 0x11d   : > { %p1706_p2 = por %p1705_p1, %p1704_p0 }
 0x11e   : > { %1541 = vmatpush3.bf16.msra.mxu1 %v1676_v54 }
 0x11f   : > { %1542 = vmatprep.subr.bf16.mxu1 %v1677_v26  ;;  %p1707_p3 = pnand %p1706_p2, %p1700_p13 }
 0x121   : > { %1042 = vmatmul.mubr.bf16.gmra.mxu1 %v668_v25  ;;  %1115 = vmatmul.mubr.bf16.gmra.mxu0 %v668_v25 }
 0x122   : > { %1543 = vmatpush3.bf16.msra.mxu1 %v1677_v26  ;;  %1051 = vmatprep.mubr.bf16.mxu1 %v1760_v4 }
 0x123   : > { %1544 = vmatprep.subr.bf16.mxu1 %v1678_v27  ;;  %1124 = vmatprep.mubr.bf16.mxu0 %v1760_v4 }
 0x126   : > { %1545 = vmatpush3.bf16.msra.mxu1 %v1678_v27 }
 0x127   : > { %1546 = vmatprep.subr.bf16.mxu1 %v1679_v28 }
 0x129   : > { %1052 = vmatmul.mubr.bf16.gmra.mxu1 %v669_v23  ;;  %1125 = vmatmul.mubr.bf16.gmra.mxu0 %v669_v23 }
 0x12a   : > { %1547 = vmatpush3.bf16.msra.mxu1 %v1679_v28  ;;  %1550 = vmatprep.mubr.bf16.mxu1 %v666_v17 }
 0x12b   : > { %1548 = vmatprep.subr.bf16.mxu1 %v1680_v29 }
 0x12e   : > { %1549 = vmatpush3.bf16.msra.mxu1 %v1680_v29 }
 0x131   : > { %1551 = vmatmul.mubr.bf16.vlgmr.msra.gmra.mxu1 %v667_v15 }
 0x132   : > { %1554 = vmatprep.mubr.bf16.mxu1 %v668_v25 }
 0x139   : > { %1555 = vmatmul.mubr.bf16.gmra.mxu1 %v669_v23 }
 0x13a   : > { %1710 = shalt.err (!%p1707_p3)
}
 0x13b   : > { %s1711_s17 = scalar_lea.hbm %s2093_s26, 512  ;;  %s1715_s23 = scalar_lea.hbm %s2249_s7, 1024 }
 0x13c   : > { %p1712_p4 = scmp.ne.s32.totalorder %s2093_s26, %s1711_s17  ;;  %p1716_p9 = scmp.lt.s32.totalorder %s2093_s26, %s2249_s7 }
 0x13d   : > { %p1717_p10 = scmp.lt.s32.totalorder %s1715_s23, %s1711_s17 }
 0x13e   : > { %p1713_p7 = pnand %p1712_p4, %p1847_p5 }
 0x13f   : > { %p1718_p11 = por %p1717_p10, %p1716_p9 }
 0x140   : > { %p1714_p8 = pneg %p1713_p7 }
 0x142   : > { %p1719_p12 = pnand %p1718_p11, %p1714_p8 }
 0x144   : > { %1722 = shalt.err (!%p1719_p12)
}
 0x145   : > { %s1762_s12 = smov 64   ;;  %s1763_s9 = smov 4   ;;  %v766_v4 = vsub.s32 2, %v2025_v0  ;;  %v2126_v30 = vld [vmem:[%s2248_s6] sm:$0x1f]  ;;  %v770_v31 = vsub.s32 3, %v2025_v0 }
 0x146   : > { %1559 = dma.vmem_to_hbm [thread:$0]  (%p1847_p5), %s2095_s24, 512, %s2093_s26, %s2099_s21, %s1762_s12, %s1762_s12, %s1763_s9   ;;  %v2133_v32 = vrot.slane %v2126_v30, %v443_v2  ;;  %v2141_v34 = vrot.slane %v2126_v30, %v624_v7  ;;  %v774_v26 = vsub.s32 4, %v2025_v0 }
 0x147   : > { %s1558_s17 = smul.u32 40, %s2258_s19  ;;  %v2136_v33 = vrot.slane %v2126_v30, %v766_v4  ;;  %v2144_v35 = vrot.slane %v2126_v30, %v770_v31 }
 0x149   : > { %s2149_s19 = scalar_lea.vmem %s2250_s8, %s1558_s17 }
 0x1d1   : > { %v1023_v2 = vpop.f32.mrf.mxu1  ;;  %v1096_v36 = vpop.f32.mrf.mxu0 }
 0x1d2   : > { %v1024_v37 = vadd.f32 %v1023_v2, %v2133_v32  ;;  %v1097_v7 = vadd.f32 %v1096_v36, %v2136_v33 }
 0x1d3   : > { %v1025_v38 = vpop.f32.mrf.mxu1  ;;  %v1098_v39 = vpop.f32.mrf.mxu0 }
 0x1d4   : > { %1200 = vst [vmem:[%s2149_s19] sm:$0xff] %v1024_v37  ;;  %1202 = vst [vmem:[%s2149_s19 + $0x10] sm:$0xff] %v1097_v7  ;;  %v1026_v40 = vadd.f32 %v1025_v38, %v2141_v34  ;;  %v1099_v41 = vadd.f32 %v1098_v39, %v2144_v35  ;;  %v775_v37 = vrot.slane %v2126_v30, %v774_v26 }
 0x1d5   : > { %v1027_v42 = vpop.f32.mrf.mxu1  ;;  %v1100_v43 = vpop.f32.mrf.mxu0 }
 0x1d6   : > { %1201 = vst [vmem:[%s2149_s19 + $0x8] sm:$0xff] %v1026_v40  ;;  %1203 = vst [vmem:[%s2149_s19 + $0x18] sm:$0xff] %v1099_v41  ;;  %v1028_v44 = vadd.f32 %v1027_v42, %v2133_v32  ;;  %v1101_v45 = vadd.f32 %v1100_v43, %v2136_v33 }
 0x1d7   : > { %v1029_v46 = vpop.f32.mrf.mxu1  ;;  %v1102_v47 = vpop.f32.mrf.mxu0 }
 0x1d8   : > { %1205 = vst [vmem:[%s2149_s19 + $0x28] sm:$0xff] %v1028_v44  ;;  %1207 = vst [vmem:[%s2149_s19 + $0x38] sm:$0xff] %v1101_v45  ;;  %v1030_v48 = vadd.f32 %v1029_v46, %v2141_v34  ;;  %v1103_v49 = vadd.f32 %v1102_v47, %v2144_v35 }
 0x1d9   : > { %v1033_v50 = vpop.f32.mrf.mxu1  ;;  %v1106_v51 = vpop.f32.mrf.mxu0 }
 0x1da   : > { %1206 = vst [vmem:[%s2149_s19 + $0x30] sm:$0xff] %v1030_v48  ;;  %1208 = vst [vmem:[%s2149_s19 + $0x40] sm:$0xff] %v1103_v49  ;;  %v1034_v52 = vadd.f32 %v1033_v50, %v2133_v32  ;;  %v1107_v53 = vadd.f32 %v1106_v51, %v2136_v33 }
 0x1db   : > { %v1035_v55 = vpop.f32.mrf.mxu1  ;;  %v1108_v56 = vpop.f32.mrf.mxu0 }
 0x1dc   : > { %1210 = vst [vmem:[%s2149_s19 + $0x50] sm:$0xff] %v1034_v52  ;;  %1212 = vst [vmem:[%s2149_s19 + $0x60] sm:$0xff] %v1107_v53  ;;  %v1036_v57 = vadd.f32 %v1035_v55, %v2141_v34  ;;  %v1109_v58 = vadd.f32 %v1108_v56, %v2144_v35 }
 0x1dd   : > { %v1037_v59 = vpop.f32.mrf.mxu1  ;;  %v1110_v60 = vpop.f32.mrf.mxu0 }
 0x1de   : > { %1211 = vst [vmem:[%s2149_s19 + $0x58] sm:$0xff] %v1036_v57  ;;  %1213 = vst [vmem:[%s2149_s19 + $0x68] sm:$0xff] %v1109_v58  ;;  %v1038_v61 = vadd.f32 %v1037_v59, %v2133_v32  ;;  %v1111_v62 = vadd.f32 %v1110_v60, %v2136_v33 }
 0x1df   : > { %v1039_v63 = vpop.f32.mrf.mxu1  ;;  %v1112_v1 = vpop.f32.mrf.mxu0 }
 0x1e0   : > { %1215 = vst [vmem:[%s2149_s19 + $0x78] sm:$0xff] %v1038_v61  ;;  %1217 = vst [vmem:[%s2149_s19 + $0x88] sm:$0xff] %v1111_v62  ;;  %v1040_v3 = vadd.f32 %v1039_v63, %v2141_v34  ;;  %v1113_v5 = vadd.f32 %v1112_v1, %v2144_v35 }
 0x1e1   : > { %v1043_v6 = vpop.f32.mrf.mxu1  ;;  %v1116_v8 = vpop.f32.mrf.mxu0 }
 0x1e2   : > { %1216 = vst [vmem:[%s2149_s19 + $0x80] sm:$0xff] %v1040_v3  ;;  %1218 = vst [vmem:[%s2149_s19 + $0x90] sm:$0xff] %v1113_v5  ;;  %v1044_v11 = vadd.f32 %v1043_v6, %v2133_v32  ;;  %v1117_v12 = vadd.f32 %v1116_v8, %v2136_v33 }
 0x1e3   : > { %v1045_v9 = vpop.f32.mrf.mxu1  ;;  %v1118_v10 = vpop.f32.mrf.mxu0 }
 0x1e4   : > { %1220 = vst [vmem:[%s2149_s19 + $0xa0] sm:$0xff] %v1044_v11  ;;  %1222 = vst [vmem:[%s2149_s19 + $0xb0] sm:$0xff] %v1117_v12  ;;  %v1046_v13 = vadd.f32 %v1045_v9, %v2141_v34  ;;  %v1119_v14 = vadd.f32 %v1118_v10, %v2144_v35 }
 0x1e5   : > { %v1047_v15 = vpop.f32.mrf.mxu1  ;;  %v1120_v16 = vpop.f32.mrf.mxu0 }
 0x1e6   : > { %1221 = vst [vmem:[%s2149_s19 + $0xa8] sm:$0xff] %v1046_v13  ;;  %1223 = vst [vmem:[%s2149_s19 + $0xb8] sm:$0xff] %v1119_v14  ;;  %v1048_v17 = vadd.f32 %v1047_v15, %v2133_v32  ;;  %v1121_v18 = vadd.f32 %v1120_v16, %v2136_v33 }
 0x1e7   : > { %v1049_v19 = vpop.f32.mrf.mxu1  ;;  %v1122_v20 = vpop.f32.mrf.mxu0 }
 0x1e8   : > { %1225 = vst [vmem:[%s2149_s19 + $0xc8] sm:$0xff] %v1048_v17  ;;  %1227 = vst [vmem:[%s2149_s19 + $0xd8] sm:$0xff] %v1121_v18  ;;  %v1050_v21 = vadd.f32 %v1049_v19, %v2141_v34  ;;  %v1123_v22 = vadd.f32 %v1122_v20, %v2144_v35 }
 0x1e9   : > { %v1053_v23 = vpop.f32.mrf.mxu1  ;;  %v1126_v24 = vpop.f32.mrf.mxu0 }
 0x1ea   : > { %1226 = vst [vmem:[%s2149_s19 + $0xd0] sm:$0xff] %v1050_v21  ;;  %1228 = vst [vmem:[%s2149_s19 + $0xe0] sm:$0xff] %v1123_v22  ;;  %v1054_v54 = vadd.f32 %v1053_v23, %v2133_v32  ;;  %v1127_v25 = vadd.f32 %v1126_v24, %v2136_v33 }
 0x1eb   : > { %v1055_v27 = vpop.f32.mrf.mxu1  ;;  %v1128_v28 = vpop.f32.mrf.mxu0 }
 0x1ec   : > { %1230 = vst [vmem:[%s2149_s19 + $0xf0] sm:$0xff] %v1054_v54  ;;  %1232 = vst [vmem:[%s2149_s19 + $0x100] sm:$0xff] %v1127_v25  ;;  %v1056_v29 = vadd.f32 %v1055_v27, %v2141_v34  ;;  %v1129_v4 = vadd.f32 %v1128_v28, %v2144_v35 }
 0x1ed   : > { %v1057_v31 = vpop.f32.mrf.mxu1  ;;  %v1130_v2 = vpop.f32.mrf.mxu0 }
 0x1ee   : > { %1231 = vst [vmem:[%s2149_s19 + $0xf8] sm:$0xff] %v1056_v29  ;;  %1233 = vst [vmem:[%s2149_s19 + $0x108] sm:$0xff] %v1129_v4  ;;  %v1058_v36 = vadd.f32 %v1057_v31, %v2133_v32  ;;  %v1131_v0 = vadd.f32 %v1130_v2, %v2136_v33 }
 0x1ef   : > { %v1059_v7 = vpop.f32.mrf.mxu1  ;;  %v1132_v38 = vpop.f32.mrf.mxu0 }
 0x1f0   : > { %1235 = vst [vmem:[%s2149_s19 + $0x118] sm:$0xff] %v1058_v36  ;;  %1237 = vst [vmem:[%s2149_s19 + $0x128] sm:$0xff] %v1131_v0  ;;  %v1060_v39 = vadd.f32 %v1059_v7, %v2141_v34  ;;  %v1133_v40 = vadd.f32 %v1132_v38, %v2144_v35 }
 0x1f1   : > { %v1552_v41 = vpop.f32.mrf.mxu1 }
 0x1f2   : > { %1236 = vst [vmem:[%s2149_s19 + $0x120] sm:$0xff] %v1060_v39  ;;  %1238 = vst [vmem:[%s2149_s19 + $0x130] sm:$0xff] %v1133_v40  ;;  %v1178_v32 = vadd.f32 %v1552_v41, %v775_v37 }
 0x1f3   : > { %v1169_v42 = vpop.f32.mrf.mxu1 }
 0x1f4   : > { %1214 = vst [vmem:[%s2149_s19 + $0x70] sm:$0xff] %v1178_v32  ;;  %v1170_v33 = vadd.f32 %v1169_v42, %v775_v37 }
 0x1f5   : > { %v1553_v30 = vpop.f32.mrf.mxu1 }
 0x1f6   : > { %1204 = vst [vmem:[%s2149_s19 + $0x20] sm:$0xff] %v1170_v33  ;;  %v1181_v43 = vadd.f32 %v1553_v30, %v775_v37 }
 0x1f7   : > { %v1172_v44 = vpop.f32.mrf.mxu1 }
 0x1f8   : > { %1219 = vst [vmem:[%s2149_s19 + $0x98] sm:$0xff] %v1181_v43  ;;  %v1173_v34 = vadd.f32 %v1172_v44, %v775_v37 }
 0x1f9   : > { %v1556_v45 = vpop.f32.mrf.mxu1 }
 0x1fa   : > { %1209 = vst [vmem:[%s2149_s19 + $0x48] sm:$0xff] %v1173_v34  ;;  %v1194_v35 = vadd.f32 %v1556_v45, %v775_v37 }
 0x1fb   : > { %v1185_v46 = vpop.f32.mrf.mxu1 }
 0x1fc   : > { %1234 = vst [vmem:[%s2149_s19 + $0x110] sm:$0xff] %v1194_v35  ;;  %v1186_v47 = vadd.f32 %v1185_v46, %v775_v37 }
 0x1fd   : > { %v1557_v48 = vpop.f32.mrf.mxu1 }
 0x1fe   : > { %1224 = vst [vmem:[%s2149_s19 + $0xc0] sm:$0xff] %v1186_v47  ;;  %v1197_v49 = vadd.f32 %v1557_v48, %v775_v37 }
 0x1ff   : > { %v1188_v50 = vpop.f32.mrf.mxu1 }
 0x200   : > { %1239 = vst [vmem:[%s2149_s19 + $0x138] sm:$0xff] %v1197_v49  ;;  %v1189_v51 = vadd.f32 %v1188_v50, %v775_v37 }
 0x202   : > { %1229 = vst [vmem:[%s2149_s19 + $0xe8] sm:$0xff] %v1189_v51 }
 0x203 PF: > { %p1565_p5 = scmp.ge.s32.totalorder %s1757_s30, 2  ;;  %s1279_s26 = sand.u32 1, %s1745_s27  }
 0x204   : > { %s1280_s21 = scalar_lea.sflag [#allocation3], %s1279_s26 }
 0x205   : > { %p1562_p13 = pnand %p1565_p5, %p1851_p6 }
 0x207   : > { %p1563_p0 = pneg %p1562_p13 }
 0x209   : > { %1740 = dma.done.wait (%p1563_p0), %s1280_s21, 512  }
 0x20a   : > { %1742 = vsyncadd (%p1563_p0), %s1280_s21, 4294966784  ;;  %p19_p1 = scmp.ge.s32.totalorder %s1834_s11, 4   ;;  %s2253_s27 = smov %s1749_s28 }
 0x20b   : > { %s2254_s28 = smov %s1753_s29  ;;  %s2255_s29 = smov %s1845_s14 }
 0x20c   : > { %s2256_s30 = smov %s1834_s11  ;;  %21 = sbr.rel (!%p19_p1) target bundleno = 3 (0x3), region = 101 }
 0x211   :  { %1294 = vsyncpa [#allocation3], 1 }
 0x212   :  { %1296 = vsyncpa [#allocation3 + $0x1], 1 }

// kernel: volraft_forward.27
= control target key start
LH: loop header
LB: loop body
LE: loop exit
PB: predicated region body
PF: predicated region fallthrough
CT: control target
= control target key end

     0   :  { %s2528_s9 = smov 0   ;;  %s4400_s0 = inlined_call_operand.vmem [shape: f32[128,640], index: 0, kind: input, shape index: {}]   ;;  %s4401_s1 = inlined_call_operand.vmem [shape: f32[128,18], index: 1, kind: input, shape index: {}]   ;;  %s4402_s2 = inlined_call_operand.vmem [shape: f32[128,128], index: 2, kind: output, shape index: {}]  }
   0x1 LB: > { %s2201_s10 = sadd.s32 4294967295, %s2492_s9   ;;  %p2205_p0 = scmp.ge.s32.totalorder %s2492_s9, 1  ;;  %s2492_s9 = sphi %s2528_s9, %s12_s9  }
   0x2   : > { %p125_p1 = scmp.lt.s32.totalorder %s2492_s9, 3 }
   0x4   : > { %p126_p2 = pnand %p2205_p0, %p125_p1 }
   0x6   : > { %129 = sbr.rel (%p126_p2) target bundleno = 1024 (0x400), region = 28 }
   0xb   : > { %s2206_s11 = sshll.u32 %s2201_s10, 3  ;;  %v2494_v0 = vmov 0   ;;  %s2495_s16 = smov 64   ;;  %v2496_v41 = vmov 9   ;;  %v2497_v42 = vmov 1   ;;  %v2498_v43 = vmov 10  }
   0xc   : > { %p154_p3 = scmp.lt.s32.totalorder %s2206_s11, 15  ;;  %2243 = vset.pattern.permute.xlu1 %v2494_v0  ;;  %2242 = vset.pattern.permute.xlu0 %v2494_v0  ;;  %vm2116_vm0 = vcmask 523264  }
   0xe   : > { %s4853_s11 = smov (!%p154_p3, %s2206_s11), 15 }
   0xf   : > { %s2214_s12 = smul.u32 40, %s4853_s11  ;;  %s2209_s17 = sshll.u32 %s4853_s11, 3 }
  0x10   : > { %s2706_s20 = scalar_lea.vmem %s4401_s1, %s2209_s17  ;;  %s170_s23 = scalar_lea.vmem %s4402_s2, %s2209_s17 }
  0x11   : > { %s2542_s15 = scalar_lea.vmem %s4400_s0, %s2214_s12  ;;  %v2713_v33 = vld [vmem:[%s2706_s20 + $0x8] sm:$0xff]  ;;  %v2716_v34 = vld [vmem:[%s2706_s20] sm:$0xff]  ;;  %v2721_v35 = vld [vmem:[%s2706_s20 + $0x10] sm:$0xff] }
  0x12   : > { %v2545_v1 = vld [vmem:[%s2542_s15 + $0x50] sm:$0xff]  ;;  %v2548_v2 = vld [vmem:[%s2542_s15] sm:$0xff]  ;;  %v2555_v3 = vld [vmem:[%s2542_s15 + $0x78] sm:$0xff]  ;;  %4504 = vst [vmem:[#allocation7_spill] sm:$0xff] %v2713_v33 }
  0x13   : > { %4499 = vst [vmem:[#allocation2_spill] sm:$0xff] %v2548_v2  ;;  %232 = vrot.lane.b32.xlu1 %v2545_v1, %s2495_s16  ;;  %228 = vrot.lane.b32.xlu0 %v2548_v2, %s2495_s16  ;;  %v2558_v4 = vld [vmem:[%s2542_s15 + $0x28] sm:$0xff]  ;;  %v2568_v6 = vld [vmem:[%s2542_s15 + $0xa0] sm:$0xff]  ;;  %4505 = vst [vmem:[#allocation8_spill] sm:$0xff] %v2716_v34 }
  0x14   : > { %v2565_v5 = vld [vmem:[%s2542_s15 + $0xc8] sm:$0xff]  ;;  %v2575_v7 = vld [vmem:[%s2542_s15 + $0x118] sm:$0xff]  ;;  %v2578_v8 = vld [vmem:[%s2542_s15 + $0xf0] sm:$0xff]  ;;  %4506 = vst [vmem:[#allocation9_spill] sm:$0xff] %v2721_v35 }
  0x15   : > { %v2585_v9 = vld [vmem:[%s2542_s15 + $0x30] sm:$0xff]  ;;  %v2588_v10 = vld [vmem:[%s2542_s15 + $0x8] sm:$0xff]  ;;  %v2595_v11 = vld [vmem:[%s2542_s15 + $0x80] sm:$0xff] }
  0x16   : > { %4500 = vst [vmem:[#allocation3_spill] sm:$0xff] %v2585_v9  ;;  %4501 = vst [vmem:[#allocation4_spill] sm:$0xff] %v2588_v10  ;;  %v2598_v12 = vld [vmem:[%s2542_s15 + $0x58] sm:$0xff]  ;;  %v2605_v13 = vld [vmem:[%s2542_s15 + $0xd0] sm:$0xff] }
  0x17   : > { %234 = vrot.lane.b32.xlu1 %v2555_v3, %s2495_s16  ;;  %230 = vrot.lane.b32.xlu0 %v2558_v4, %s2495_s16  ;;  %4502 = vst [vmem:[#allocation5_spill] sm:$0xff] %v2598_v12  ;;  %v2608_v14 = vld [vmem:[%s2542_s15 + $0xa8] sm:$0xff]  ;;  %v2615_v15 = vld [vmem:[%s2542_s15 + $0x120] sm:$0xff] }
  0x18   : > { %v2618_v16 = vld [vmem:[%s2542_s15 + $0xf8] sm:$0xff]  ;;  %v2628_v18 = vld [vmem:[%s2542_s15 + $0x10] sm:$0xff]  ;;  %v2635_v19 = vld [vmem:[%s2542_s15 + $0x88] sm:$0xff] }
  0x19   : > { %v2625_v17 = vld [vmem:[%s2542_s15 + $0x38] sm:$0xff]  ;;  %4503 = vst [vmem:[#allocation6_spill] sm:$0xff] %v2628_v18  ;;  %v2638_v20 = vld [vmem:[%s2542_s15 + $0x60] sm:$0xff]  ;;  %v2648_v22 = vld [vmem:[%s2542_s15 + $0xb0] sm:$0xff] }
  0x1a   : > { %v2645_v21 = vld [vmem:[%s2542_s15 + $0xd8] sm:$0xff]  ;;  %v2655_v23 = vld [vmem:[%s2542_s15 + $0x128] sm:$0xff]  ;;  %v2658_v24 = vld [vmem:[%s2542_s15 + $0x100] sm:$0xff] }
  0x1b   : > { %238 = vrot.lane.b32.xlu1 %v2565_v5, %s2495_s16  ;;  %236 = vrot.lane.b32.xlu0 %v2568_v6, %s2495_s16  ;;  %v2665_v25 = vld [vmem:[%s2542_s15 + $0x40] sm:$0xff]  ;;  %v2668_v26 = vld [vmem:[%s2542_s15 + $0x18] sm:$0xff] }
  0x1c   : > { %v2675_v27 = vld [vmem:[%s2542_s15 + $0x90] sm:$0xff]  ;;  %v2678_v28 = vld [vmem:[%s2542_s15 + $0x68] sm:$0xff]  ;;  %v2685_v29 = vld [vmem:[%s2542_s15 + $0xe0] sm:$0xff] }
  0x1d   : > { %v2688_v30 = vld [vmem:[%s2542_s15 + $0xb8] sm:$0xff]  ;;  %v2696_v31 = vld [vmem:[%s2542_s15 + $0x130] sm:$0xff]  ;;  %v2699_v32 = vld [vmem:[%s2542_s15 + $0x108] sm:$0xff] }
  0x1e   : > { %v2724_v36 = vld [vmem:[%s2706_s20 + $0x18] sm:$0xff]  ;;  %v2729_v37 = vld [vmem:[%s2706_s20 + $0x20] sm:$0xff]  ;;  %v2732_v38 = vld [vmem:[%s2706_s20 + $0x28] sm:$0xff] }
  0x1f   : > { %242 = vrot.lane.b32.xlu1 %v2575_v7, %s2495_s16  ;;  %240 = vrot.lane.b32.xlu0 %v2578_v8, %s2495_s16  ;;  %4507 = vst [vmem:[#allocation10_spill] sm:$0xff] %v2724_v36  ;;  %v2737_v39 = vld [vmem:[%s2706_s20 + $0x30] sm:$0xff]  ;;  %v2740_v40 = vld [vmem:[%s2706_s20 + $0x38] sm:$0xff] }
  0x23   : > { %278 = vrot.lane.b32.xlu1 %v2585_v9, %s2495_s16  ;;  %276 = vrot.lane.b32.xlu0 %v2588_v10, %s2495_s16 }
  0x27   : > { %282 = vrot.lane.b32.xlu1 %v2595_v11, %s2495_s16  ;;  %280 = vrot.lane.b32.xlu0 %v2598_v12, %s2495_s16 }
  0x2b   : > { %286 = vrot.lane.b32.xlu1 %v2605_v13, %s2495_s16  ;;  %284 = vrot.lane.b32.xlu0 %v2608_v14, %s2495_s16 }
  0x2f   : > { %290 = vrot.lane.b32.xlu1 %v2615_v15, %s2495_s16  ;;  %288 = vrot.lane.b32.xlu0 %v2618_v16, %s2495_s16 }
  0x33   : > { %326 = vrot.lane.b32.xlu1 %v2625_v17, %s2495_s16  ;;  %324 = vrot.lane.b32.xlu0 %v2628_v18, %s2495_s16 }
  0x37   : > { %330 = vrot.lane.b32.xlu1 %v2635_v19, %s2495_s16  ;;  %328 = vrot.lane.b32.xlu0 %v2638_v20, %s2495_s16 }
  0x3b   : > { %334 = vrot.lane.b32.xlu1 %v2645_v21, %s2495_s16  ;;  %332 = vrot.lane.b32.xlu0 %v2648_v22, %s2495_s16 }
  0x3f   : > { %338 = vrot.lane.b32.xlu1 %v2655_v23, %s2495_s16  ;;  %336 = vrot.lane.b32.xlu0 %v2658_v24, %s2495_s16 }
  0x43   : > { %374 = vrot.lane.b32.xlu1 %v2665_v25, %s2495_s16  ;;  %372 = vrot.lane.b32.xlu0 %v2668_v26, %s2495_s16 }
  0x47   : > { %378 = vrot.lane.b32.xlu1 %v2675_v27, %s2495_s16  ;;  %376 = vrot.lane.b32.xlu0 %v2678_v28, %s2495_s16 }
  0x4b   : > { %382 = vrot.lane.b32.xlu1 %v2685_v29, %s2495_s16  ;;  %380 = vrot.lane.b32.xlu0 %v2688_v30, %s2495_s16 }
  0x4f   : > { %386 = vrot.lane.b32.xlu1 %v2696_v31, %s2495_s16  ;;  %384 = vrot.lane.b32.xlu0 %v2699_v32, %s2495_s16 }
  0x53   : > { %883 = vperm.xlu1 %2243, %v2713_v33   ;;  %878 = vperm.xlu0 %2242, %v2716_v34  }
  0x57   : > { %888 = vperm.xlu1 %2243, %v2721_v35   ;;  %893 = vperm.xlu0 %2242, %v2724_v36  }
  0x5b   : > { %898 = vperm.xlu1 %2243, %v2729_v37   ;;  %903 = vperm.xlu0 %2242, %v2732_v38  }
  0x5f   : > { %908 = vperm.xlu1 %2243, %v2737_v39   ;;  %913 = vperm.xlu0 %2242, %v2740_v40  }
  0x63   : > { %2244 = vset.pattern.permute.xlu1 %v2496_v41  ;;  %2245 = vset.pattern.permute.xlu0 %v2496_v41 }
  0x64   : > { %925 = vperm.xlu1 %2244, %v2716_v34   ;;  %929 = vperm.xlu0 %2245, %v2713_v33  }
  0x68   : > { %933 = vperm.xlu1 %2244, %v2721_v35   ;;  %941 = vperm.xlu0 %2245, %v2729_v37  }
  0x6c   : > { %937 = vperm.xlu1 %2244, %v2724_v36   ;;  %949 = vperm.xlu0 %2245, %v2737_v39  }
  0x70   : > { %945 = vperm.xlu1 %2244, %v2732_v38   ;;  %2246 = vset.pattern.permute.xlu0 %v2497_v42 }
  0x71   : > { %1005 = vperm.xlu0 %2246, %v2716_v34  }
  0x74   : > { %953 = vperm.xlu1 %2244, %v2740_v40  }
  0x75   : > { %1017 = vperm.xlu0 %2246, %v2724_v36  }
  0x78   : > { %2247 = vset.pattern.permute.xlu1 %v2497_v42 }
  0x79   : > { %1009 = vperm.xlu1 %2247, %v2713_v33   ;;  %1025 = vperm.xlu0 %2246, %v2732_v38  }
  0x7d   : > { %1013 = vperm.xlu1 %2247, %v2721_v35   ;;  %1033 = vperm.xlu0 %2246, %v2740_v40  }
  0x81   : > { %1021 = vperm.xlu1 %2247, %v2729_v37   ;;  %2249 = vset.pattern.permute.xlu0 %v2498_v43 }
  0x82   : > { %1089 = vperm.xlu0 %2249, %v2713_v33  }
  0x85   : > { %v233_v44 = vpop.permute.xlu1 %232  ;;  %v229_v45 = vpop.permute.xlu0 %228  ;;  %1029 = vperm.xlu1 %2247, %v2737_v39  }
  0x86   : > { %v252_v58 = vmax.f32 %v2548_v2, %v229_v45  ;;  %v254_v42 = vmax.f32 %v2545_v1, %v233_v44 }
  0x88   : > { %v260_v62 = vmax.f32 %v252_v58, %v2588_v10  ;;  %v262_v10 = vmax.f32 %v254_v42, %v2598_v12 }
  0x89   : > { %v235_v46 = vpop.permute.xlu1 %234  ;;  %v231_v47 = vpop.permute.xlu0 %230  ;;  %2248 = vset.pattern.permute.xlu1 %v2498_v43 }
  0x8a   : > { %1085 = vperm.xlu1 %2248, %v2716_v34   ;;  %v253_v61 = vmax.f32 %v2558_v4, %v231_v47  ;;  %v255_v43 = vmax.f32 %v2555_v3, %v235_v46 }
  0x8c   : > { %v261_v41 = vmax.f32 %v253_v61, %v2585_v9  ;;  %v263_v58 = vmax.f32 %v255_v43, %v2595_v11 }
  0x8d   : > { %v239_v48 = vpop.permute.xlu1 %238  ;;  %v237_v49 = vpop.permute.xlu0 %236 }
  0x8e   : > { %1093 = vperm.xlu1 %2248, %v2721_v35   ;;  %v256_v35 = vmax.f32 %v2568_v6, %v237_v49  ;;  %v257_v2 = vmax.f32 %v2565_v5, %v239_v48 }
  0x90   : > { %v264_v44 = vmax.f32 %v256_v35, %v2608_v14  ;;  %v265_v48 = vmax.f32 %v257_v2, %v2605_v13 }
  0x91   : > { %v243_v50 = vpop.permute.xlu1 %242  ;;  %v241_v51 = vpop.permute.xlu0 %240 }
  0x92   : > { %1097 = vperm.xlu1 %2248, %v2724_v36   ;;  %v258_v47 = vmax.f32 %v2578_v8, %v241_v51 }
  0x94   : > { %v266_v51 = vmax.f32 %v258_v47, %v2618_v16  ;;  %v2789_v47 = vld [vmem:[%s2542_s15 + $0x48] sm:$0xff] }
  0x95   : > { %v279_v52 = vpop.permute.xlu1 %278  ;;  %v277_v53 = vpop.permute.xlu0 %276 }
  0x96   : > { %v300_v36 = vmax.f32 %v260_v62, %v277_v53  ;;  %v301_v45 = vmax.f32 %v261_v41, %v279_v52  ;;  %v259_v52 = vmax.f32 %v2575_v7, %v243_v50 }
  0x98   : > { %v308_v61 = vmax.f32 %v300_v36, %v2628_v18  ;;  %v309_v49 = vmax.f32 %v301_v45, %v2625_v17 }
  0x99   : > { %v283_v54 = vpop.permute.xlu1 %282  ;;  %v281_v55 = vpop.permute.xlu0 %280 }
  0x9a   : > { %v303_v53 = vmax.f32 %v263_v58, %v283_v54  ;;  %v302_v62 = vmax.f32 %v262_v10, %v281_v55  ;;  %v267_v54 = vmax.f32 %v259_v52, %v2615_v15 }
  0x9c   : > { %v311_v18 = vmax.f32 %v303_v53, %v2635_v19  ;;  %v310_v10 = vmax.f32 %v302_v62, %v2638_v20 }
  0x9d   : > { %v287_v56 = vpop.permute.xlu1 %286  ;;  %v285_v57 = vpop.permute.xlu0 %284 }
  0x9e   : > { %v305_v42 = vmax.f32 %v265_v48, %v287_v56  ;;  %v304_v12 = vmax.f32 %v264_v44, %v285_v57  ;;  %v2805_v48 = vld [vmem:[%s2542_s15 + $0x98] sm:$0xff] }
  0xa0   : > { %v313_v56 = vmax.f32 %v305_v42, %v2645_v21  ;;  %v312_v57 = vmax.f32 %v304_v12, %v2648_v22 }
  0xa1   : > { %v291_v59 = vpop.permute.xlu1 %290  ;;  %v289_v60 = vpop.permute.xlu0 %288 }
  0xa2   : > { %v306_v55 = vmax.f32 %v266_v51, %v289_v60 }
  0xa5   : > { %v327_v63 = vpop.permute.xlu1 %326  ;;  %v325_v0 = vpop.permute.xlu0 %324 }
  0xa6   : > { %v349_v41 = vmax.f32 %v309_v49, %v327_v63  ;;  %v348_v43 = vmax.f32 %v308_v61, %v325_v0  ;;  %v307_v0 = vmax.f32 %v267_v54, %v291_v59  ;;  %v2792_v61 = vld [vmem:[%s2542_s15 + $0x20] sm:$0xff] }
  0xa8   : > { %v357_v2 = vmax.f32 %v349_v41, %v2665_v25  ;;  %v356_v63 = vmax.f32 %v348_v43, %v2668_v26  ;;  %v315_v52 = vmax.f32 %v307_v0, %v2655_v23 }
  0xa9   : > { %v331_v34 = vpop.permute.xlu1 %330  ;;  %v329_v33 = vpop.permute.xlu0 %328 }
  0xaa   : > { %v351_v50 = vmax.f32 %v311_v18, %v331_v34  ;;  %v350_v45 = vmax.f32 %v310_v10, %v329_v33  ;;  %v314_v34 = vmax.f32 %v306_v55, %v2658_v24 }
  0xac   : > { %v359_v12 = vmax.f32 %v351_v50, %v2675_v27  ;;  %v358_v62 = vmax.f32 %v350_v45, %v2678_v28 }
  0xad   : > { %v335_v9 = vpop.permute.xlu1 %334  ;;  %v333_v46 = vpop.permute.xlu0 %332 }
  0xae   : > { %v353_v33 = vmax.f32 %v313_v56, %v335_v9  ;;  %v352_v49 = vmax.f32 %v312_v57, %v333_v46  ;;  %v2808_v9 = vld [vmem:[%s2542_s15 + $0x70] sm:$0xff] }
  0xb0   : > { %v361_v46 = vmax.f32 %v353_v33, %v2685_v29  ;;  %v360_v56 = vmax.f32 %v352_v49, %v2688_v30 }
  0xb1   : > { %v339_v36 = vpop.permute.xlu1 %338  ;;  %v337_v35 = vpop.permute.xlu0 %336 }
  0xb2   : > { %v355_v55 = vmax.f32 %v315_v52, %v339_v36  ;;  %v354_v50 = vmax.f32 %v314_v34, %v337_v35  ;;  %v2852_v52 = vld [vmem:[%s2542_s15 + $0x110] sm:$0xff]  ;;  %v2501_v36 = vmov 3  }
  0xb4   : > { %v363_v33 = vmax.f32 %v355_v55, %v2696_v31  ;;  %v362_v34 = vmax.f32 %v354_v50, %v2699_v32 }
  0xb5   : > { %v375_v58 = vpop.permute.xlu1 %374  ;;  %v373_v44 = vpop.permute.xlu0 %372 }
  0xb6   : > { %v397_v60 = vmax.f32 %v357_v2, %v375_v58  ;;  %v396_v18 = vmax.f32 %v356_v63, %v373_v44  ;;  %v2826_v63 = vld [vmem:[%s2542_s15 + $0xe8] sm:$0xff]  ;;  %v2834_v44 = vld [vmem:[%s2542_s15 + $0xc0] sm:$0xff] }
  0xb8   : > { %v2796_v53 = vmax.f32 %v397_v60, %v2789_v47  ;;  %v2799_v59 = vmax.f32 %v396_v18, %v2792_v61 }
  0xb9   : > { %v379_v51 = vpop.permute.xlu1 %378  ;;  %v377_v41 = vpop.permute.xlu0 %376 }
  0xba   : > { %v399_v10 = vmax.f32 %v359_v12, %v379_v51  ;;  %v398_v54 = vmax.f32 %v358_v62, %v377_v41  ;;  %446 = vrot.lane.b32.xlu1 %v2796_v53, %s2495_s16  ;;  %444 = vrot.lane.b32.xlu0 %v2799_v59, %s2495_s16  ;;  %v2849_v62 = vld [vmem:[%s2542_s15 + $0x138] sm:$0xff] }
  0xbb   : > { %4508 = vst [vmem:[#allocation11_spill] sm:$0xff] %v2849_v62 }
  0xbc   : > { %v2820_v45 = vmax.f32 %v399_v10, %v2805_v48  ;;  %v2823_v2 = vmax.f32 %v398_v54, %v2808_v9 }
  0xbd   : > { %v383_v0 = vpop.permute.xlu1 %382  ;;  %v381_v57 = vpop.permute.xlu0 %380 }
  0xbe   : > { %v401_v35 = vmax.f32 %v361_v46, %v383_v0  ;;  %450 = vrot.lane.b32.xlu1 %v2820_v45, %s2495_s16  ;;  %v400_v60 = vmax.f32 %v360_v56, %v381_v57  ;;  %448 = vrot.lane.b32.xlu0 %v2823_v2, %s2495_s16 }
  0xc0   : > { %v2841_v18 = vmax.f32 %v401_v35, %v2826_v63  ;;  %v2846_v12 = vmax.f32 %v400_v60, %v2834_v44  ;;  %v2499_v35 = vmov 2   ;;  %v4510_v60 = vld [vmem:[#allocation7_spill] sm:$0xff] }
  0xc1   : > { %v387_v49 = vpop.permute.xlu1 %386  ;;  %v385_v51 = vpop.permute.xlu0 %384 }
  0xc2   : > { %v403_v10 = vmax.f32 %v363_v33, %v387_v49  ;;  %v402_v54 = vmax.f32 %v362_v34, %v385_v51  ;;  %454 = vrot.lane.b32.xlu1 %v2841_v18, %s2495_s16  ;;  %452 = vrot.lane.b32.xlu0 %v2846_v12, %s2495_s16  ;;  %v4511_v33 = vld [vmem:[#allocation8_spill] sm:$0xff]  ;;  %v4512_v34 = vld [vmem:[#allocation9_spill] sm:$0xff]  ;;  %v4514_v51 = vld [vmem:[#allocation10_spill] sm:$0xff] }
  0xc4   : > { %v2863_v55 = vmax.f32 %v403_v10, %v2849_v62  ;;  %v2866_v50 = vmax.f32 %v402_v54, %v2852_v52  ;;  %v2500_v54 = vmov 11  }
  0xc6   : > { %458 = vrot.lane.b32.xlu1 %v2863_v55, %s2495_s16  ;;  %456 = vrot.lane.b32.xlu0 %v2866_v50, %s2495_s16 }
  0xca   : > { %1105 = vperm.xlu1 %2248, %v2732_v38   ;;  %1101 = vperm.xlu0 %2249, %v2729_v37  }
  0xce   : > { %1113 = vperm.xlu1 %2248, %v2740_v40   ;;  %1109 = vperm.xlu0 %2249, %v2737_v39   ;;  %v2880_v57 = vpop.permute.xlu1 %883  ;;  %v2897_v0 = vpop.permute.xlu0 %878 }
  0xcf   : > { %4509 = vst [vmem:[#allocation12_spill] sm:$0xff] %v2880_v57  ;;  %4517 = vst [vmem:[#allocation10_spill] sm:$0xff] %v2897_v0 }
  0xd2   : > { %2251 = vset.pattern.permute.xlu1 %v2499_v35  ;;  %2250 = vset.pattern.permute.xlu0 %v2499_v35  ;;  %v2885_v49 = vpop.permute.xlu1 %888  ;;  %v2904_v46 = vpop.permute.xlu0 %893 }
  0xd3   : > { %1177 = vperm.xlu1 %2251, %v4510_v60   ;;  %1173 = vperm.xlu0 %2250, %v4511_v33   ;;  %4513 = vst [vmem:[#allocation7_spill] sm:$0xff] %v2885_v49  ;;  %4519 = vst [vmem:[#allocation14_spill] sm:$0xff] %v2904_v46 }
  0xd6   : > { %v2890_v10 = vpop.permute.xlu1 %898 }
  0xd7   : > { %1181 = vperm.xlu1 %2251, %v4512_v34   ;;  %1185 = vperm.xlu0 %2250, %v4514_v51   ;;  %4515 = vst [vmem:[#allocation8_spill] sm:$0xff] %v2890_v10 }
  0xda   : > { %v2894_v35 = vpop.permute.xlu1 %908 }
  0xdb   : > { %1189 = vperm.xlu1 %2251, %v2729_v37   ;;  %1193 = vperm.xlu0 %2250, %v2732_v38   ;;  %4516 = vst [vmem:[#allocation9_spill] sm:$0xff] %v2894_v35 }
  0xdf   : > { %1197 = vperm.xlu1 %2251, %v2737_v39   ;;  %1201 = vperm.xlu0 %2250, %v2740_v40   ;;  %v2902_v56 = vpop.permute.xlu1 %925 }
  0xe0   : > { %4518 = vst [vmem:[#allocation13_spill] sm:$0xff] %v2902_v56 }
  0xe3   : > { %2252 = vset.pattern.permute.xlu1 %v2500_v54  ;;  %2253 = vset.pattern.permute.xlu0 %v2500_v54  ;;  %v2908_v41 = vpop.permute.xlu1 %933  ;;  %v2911_v54 = vpop.permute.xlu0 %903 }
  0xe4   : > { %1221 = vperm.xlu1 %2252, %v4511_v33   ;;  %1225 = vperm.xlu0 %2253, %v4510_v60   ;;  %4520 = vst [vmem:[#allocation15_spill] sm:$0xff] %v2908_v41  ;;  %4521 = vst [vmem:[#allocation16_spill] sm:$0xff] %v2911_v54  ;;  %v2502_v54 = vmov 12  }
  0xe7   : > { %v2915_v58 = vpop.permute.xlu1 %937  ;;  %v2918_v42 = vpop.permute.xlu0 %913 }
  0xe8   : > { %1229 = vperm.xlu1 %2252, %v4512_v34   ;;  %1237 = vperm.xlu0 %2253, %v2729_v37   ;;  %4522 = vst [vmem:[#allocation17_spill] sm:$0xff] %v2915_v58  ;;  %4523 = vst [vmem:[#allocation18_spill] sm:$0xff] %v2918_v42 }
  0xeb   : > { %v2922_v43 = vpop.permute.xlu1 %945  ;;  %v2924_v41 = vpop.permute.xlu0 %929 }
  0xec   : > { %1233 = vperm.xlu1 %2252, %v4514_v51   ;;  %1245 = vperm.xlu0 %2253, %v2737_v39   ;;  %4524 = vst [vmem:[#allocation19_spill] sm:$0xff] %v2922_v43  ;;  %4525 = vst [vmem:[#allocation20_spill] sm:$0xff] %v2924_v41 }
  0xef   : > { %v2929_v56 = vpop.permute.xlu1 %953  ;;  %v2931_v42 = vpop.permute.xlu0 %941 }
  0xf0   : > { %1241 = vperm.xlu1 %2252, %v2732_v38   ;;  %2254 = vset.pattern.permute.xlu0 %v2501_v36  ;;  %4526 = vst [vmem:[#allocation21_spill] sm:$0xff] %v2929_v56  ;;  %4527 = vst [vmem:[#allocation22_spill] sm:$0xff] %v2931_v42 }
  0xf1   : > { %1277 = vperm.xlu0 %2254, %v4511_v33  }
  0xf3   : > { %v2936_v58 = vpop.permute.xlu0 %949 }
  0xf4   : > { %1249 = vperm.xlu1 %2252, %v2740_v40   ;;  %4529 = vst [vmem:[#allocation24_spill] sm:$0xff] %v2936_v58 }
  0xf5   : > { %1289 = vperm.xlu0 %2254, %v4514_v51  }
  0xf7   : > { %v2941_v46 = vpop.permute.xlu0 %1005 }
  0xf8   : > { %2255 = vset.pattern.permute.xlu1 %v2501_v36  ;;  %v2934_v36 = vpop.permute.xlu1 %1009  ;;  %4531 = vst [vmem:[#allocation26_spill] sm:$0xff] %v2941_v46 }
  0xf9   : > { %1281 = vperm.xlu1 %2255, %v4510_v60   ;;  %1297 = vperm.xlu0 %2254, %v2732_v38   ;;  %4528 = vst [vmem:[#allocation23_spill] sm:$0xff] %v2934_v36 }
  0xfb   : > { %v2945_v56 = vpop.permute.xlu0 %1017 }
  0xfc   : > { %v2939_v43 = vpop.permute.xlu1 %1013  ;;  %4533 = vst [vmem:[#allocation28_spill] sm:$0xff] %v2945_v56 }
  0xfd   : > { %1285 = vperm.xlu1 %2255, %v4512_v34   ;;  %1305 = vperm.xlu0 %2254, %v2740_v40   ;;  %4530 = vst [vmem:[#allocation25_spill] sm:$0xff] %v2939_v43 }
  0xff   : > { %v2949_v42 = vpop.permute.xlu0 %1025 }
 0x100   : > { %v2943_v57 = vpop.permute.xlu1 %1021  ;;  %4535 = vst [vmem:[#allocation30_spill] sm:$0xff] %v2949_v42 }
 0x101   : > { %1293 = vperm.xlu1 %2255, %v2729_v37   ;;  %2257 = vset.pattern.permute.xlu0 %v2502_v54  ;;  %4532 = vst [vmem:[#allocation27_spill] sm:$0xff] %v2943_v57 }
 0x103   : > { %v2953_v10 = vpop.permute.xlu0 %1033 }
 0x104   : > { %v2947_v41 = vpop.permute.xlu1 %1029  ;;  %4537 = vst [vmem:[#allocation32_spill] sm:$0xff] %v2953_v10 }
 0x105   : > { %1301 = vperm.xlu1 %2255, %v2737_v39   ;;  %4534 = vst [vmem:[#allocation29_spill] sm:$0xff] %v2947_v41  ;;  %v4541_v41 = vld [vmem:[#allocation2_spill] sm:$0xff] }
 0x108   : > { %v2951_v35 = vpop.permute.xlu1 %1085 }
 0x109   : > { %2256 = vset.pattern.permute.xlu1 %v2502_v54  ;;  %4536 = vst [vmem:[#allocation31_spill] sm:$0xff] %v2951_v35  ;;  %v2957_v54 = vpop.permute.xlu0 %1089 }
 0x10a   : > { %1357 = vperm.xlu1 %2256, %v4511_v33   ;;  %4539 = vst [vmem:[#allocation34_spill] sm:$0xff] %v2957_v54 }
 0x10c   : > { %v2955_v58 = vpop.permute.xlu1 %1093 }
 0x10d   : > { %4538 = vst [vmem:[#allocation33_spill] sm:$0xff] %v2955_v58 }
 0x110   : > { %v2959_v49 = vpop.permute.xlu1 %1097 }
 0x111   : > { %4540 = vst [vmem:[#allocation35_spill] sm:$0xff] %v2959_v49 }
 0x12c   : > { %v2961_v0 = vpop.permute.xlu1 %446  ;;  %v2965_v56 = vpop.permute.xlu0 %444 }
 0x12d   : > { %v469_v36 = vsub.f32 %v2558_v4, %v2961_v0  ;;  %v468_v42 = vsub.f32 %v4541_v41, %v2965_v56 }
 0x12f   : > { %v478_v57 = vmul.f32 1.442695, %v469_v36  ;;  %v476_v10 = vmul.f32 1.442695, %v468_v42 }
 0x130   : > { %v2969_v35 = vpop.permute.xlu1 %450  ;;  %v2973_v54 = vpop.permute.xlu0 %448 }
 0x131   : > { %2280 = vpow2.f32 %v478_v57  ;;  %v471_v58 = vsub.f32 %v2555_v3, %v2969_v35  ;;  %v470_v4 = vsub.f32 %v2545_v1, %v2973_v54 }
 0x132   : > { %2282 = vpow2.f32 %v476_v10 }
 0x133   : > { %v482_v49 = vmul.f32 1.442695, %v471_v58  ;;  %v480_v46 = vmul.f32 1.442695, %v470_v4 }
 0x134   : > { %v2977_v43 = vpop.permute.xlu1 %454  ;;  %v2981_v36 = vpop.permute.xlu0 %452 }
 0x135   : > { %2284 = vpow2.f32 %v482_v49  ;;  %v473_v41 = vsub.f32 %v2565_v5, %v2977_v43  ;;  %v472_v3 = vsub.f32 %v2568_v6, %v2981_v36  ;;  %v4544_v6 = vld [vmem:[#allocation3_spill] sm:$0xff] }
 0x136   : > { %2286 = vpow2.f32 %v480_v46  ;;  %v517_v46 = vsub.f32 %v4544_v6, %v2961_v0 }
 0x137   : > { %v486_v42 = vmul.f32 1.442695, %v473_v41  ;;  %v484_v1 = vmul.f32 1.442695, %v472_v3  ;;  %v4546_v3 = vld [vmem:[#allocation4_spill] sm:$0xff] }
 0x138   : > { %v2987_v58 = vpop.permute.xlu1 %458  ;;  %v2995_v10 = vpop.permute.xlu0 %456 }
 0x139   : > { %2288 = vpow2.f32 %v486_v42  ;;  %v475_v49 = vsub.f32 %v2575_v7, %v2987_v58  ;;  %v474_v41 = vsub.f32 %v2578_v8, %v2995_v10  ;;  %v526_v7 = vmul.f32 1.442695, %v517_v46 }
 0x13a   : > { %2290 = vpow2.f32 %v484_v1  ;;  %v4547_v1 = vld [vmem:[#allocation5_spill] sm:$0xff]  ;;  %v521_v46 = vsub.f32 %v2605_v13, %v2977_v43  ;;  %v565_v13 = vsub.f32 %v2625_v17, %v2961_v0  ;;  %v567_v17 = vsub.f32 %v2635_v19, %v2969_v35 }
 0x13b   : > { %v490_v4 = vmul.f32 1.442695, %v475_v49  ;;  %v488_v62 = vmul.f32 1.442695, %v474_v41  ;;  %v518_v49 = vsub.f32 %v4547_v1, %v2973_v54  ;;  %v523_v41 = vsub.f32 %v2615_v15, %v2987_v58 }
 0x13c   : > { %v574_v15 = vmul.f32 1.442695, %v565_v13  ;;  %v569_v19 = vsub.f32 %v2645_v21, %v2977_v43 }
 0x13d   : > { %2292 = vpow2.f32 %v490_v4  ;;  %v520_v4 = vsub.f32 %v2608_v14, %v2981_v36  ;;  %v522_v14 = vsub.f32 %v2618_v16, %v2995_v10 }
 0x13e   : > { %v2985_v57 = vpop.eup %2280  ;;  %2294 = vpow2.f32 %v526_v7  ;;  %v538_v7 = vmul.f32 1.442695, %v523_v41  ;;  %v578_v41 = vmul.f32 1.442695, %v567_v17  ;;  %v582_v21 = vmul.f32 1.442695, %v569_v19 }
 0x13f   : > { %4542 = vst [vmem:[#allocation2_spill] sm:$0xff] %v2985_v57  ;;  %670 = vrot.lane.b32.xlu1 %v2985_v57, %s2495_s16  ;;  %v2993_v5 = vpop.eup %2282  ;;  %v516_v57 = vsub.f32 %v4546_v3, %v2965_v56  ;;  %2296 = vpow2.f32 %v488_v62  ;;  %v532_v62 = vmul.f32 1.442695, %v520_v4  ;;  %v566_v4 = vsub.f32 %v2638_v20, %v2973_v54 }
 0x140   : > { %4543 = vst [vmem:[#allocation36_spill] sm:$0xff] %v2993_v5  ;;  %668 = vrot.lane.b32.xlu0 %v2993_v5, %s2495_s16  ;;  %v519_v5 = vsub.f32 %v2595_v11, %v2969_v35  ;;  %v528_v11 = vmul.f32 1.442695, %v518_v49  ;;  %v568_v20 = vsub.f32 %v2648_v22, %v2981_v36  ;;  %v613_v22 = vsub.f32 %v2665_v25, %v2961_v0 }
 0x141   : > { %v524_v8 = vmul.f32 1.442695, %v516_v57  ;;  %v534_v57 = vmul.f32 1.442695, %v521_v46  ;;  %v536_v46 = vmul.f32 1.442695, %v522_v14  ;;  %v612_v0 = vsub.f32 %v2668_v26, %v2965_v56 }
 0x142   : > { %v3003_v42 = vpop.eup %2284  ;;  %v580_v17 = vmul.f32 1.442695, %v568_v20  ;;  %v622_v25 = vmul.f32 1.442695, %v613_v22  ;;  %v614_v26 = vsub.f32 %v2678_v28, %v2973_v54 }
 0x143   : > { %4545 = vst [vmem:[#allocation3_spill] sm:$0xff] %v3003_v42  ;;  %674 = vrot.lane.b32.xlu1 %v3003_v42, %s2495_s16  ;;  %v3011_v6 = vpop.eup %2286  ;;  %v530_v42 = vmul.f32 1.442695, %v519_v5  ;;  %2298 = vpow2.f32 %v524_v8  ;;  %v4548_v8 = vld [vmem:[#allocation6_spill] sm:$0xff] }
 0x144   : > { %672 = vrot.lane.b32.xlu0 %v3011_v6, %s2495_s16  ;;  %v564_v1 = vsub.f32 %v4548_v8, %v2965_v56  ;;  %v624_v28 = vmul.f32 1.442695, %v614_v26 }
 0x145   : > { %2300 = vpow2.f32 %v530_v42  ;;  %v3057_v13 = vpop.permute.xlu1 %1105 }
 0x146   : > { %v3019_v3 = vpop.eup %2288  ;;  %2302 = vpow2.f32 %v528_v11  ;;  %v572_v16 = vmul.f32 1.442695, %v564_v1 }
 0x147   : > { %678 = vrot.lane.b32.xlu1 %v3019_v3, %s2495_s16  ;;  %v3027_v5 = vpop.eup %2290  ;;  %2304 = vpow2.f32 %v534_v57 }
 0x148   : > { %676 = vrot.lane.b32.xlu0 %v3027_v5, %s2495_s16  ;;  %2306 = vpow2.f32 %v532_v62 }
 0x149   : > { %2308 = vpow2.f32 %v538_v7  ;;  %v576_v7 = vmul.f32 1.442695, %v566_v4  ;;  %v3073_v1 = vpop.permute.xlu1 %1113 }
 0x14a   : > { %v3035_v42 = vpop.eup %2292  ;;  %2310 = vpow2.f32 %v574_v15  ;;  %v571_v15 = vsub.f32 %v2655_v23, %v2987_v58  ;;  %v570_v23 = vsub.f32 %v2658_v24, %v2995_v10  ;;  %v615_v24 = vsub.f32 %v2675_v27, %v2969_v35 }
 0x14b   : > { %682 = vrot.lane.b32.xlu1 %v3035_v42, %s2495_s16  ;;  %v3041_v49 = vpop.eup %2294  ;;  %2312 = vpow2.f32 %v536_v46  ;;  %v617_v27 = vsub.f32 %v2685_v29, %v2977_v43  ;;  %v616_v29 = vsub.f32 %v2688_v30, %v2981_v36  ;;  %v618_v30 = vsub.f32 %v2699_v32, %v2995_v10 }
 0x14c   : > { %4549 = vst [vmem:[#allocation4_spill] sm:$0xff] %v3041_v49  ;;  %v3045_v11 = vpop.eup %2296  ;;  %2314 = vpow2.f32 %v572_v16  ;;  %v586_v16 = vmul.f32 1.442695, %v571_v15  ;;  %v626_v15 = vmul.f32 1.442695, %v615_v24 }
 0x14d   : > { %680 = vrot.lane.b32.xlu0 %v3045_v11, %s2495_s16  ;;  %2316 = vpow2.f32 %v578_v41  ;;  %v628_v24 = vmul.f32 1.442695, %v616_v29 }
 0x14e   : > { %2318 = vpow2.f32 %v576_v7  ;;  %v3091_v41 = vpop.permute.xlu1 %1177  ;;  %v584_v7 = vmul.f32 1.442695, %v570_v23 }
 0x14f   : > { %718 = vrot.lane.b32.xlu1 %v3041_v49, %s2495_s16  ;;  %2320 = vpow2.f32 %v582_v21  ;;  %4556 = vst [vmem:[#allocation41_spill] sm:$0xff] %v3091_v41  ;;  %v620_v21 = vmul.f32 1.442695, %v612_v0  ;;  %v3373_v49 = vld [vmem:[%s2706_s20 + $0x18] sm:$0xff] }
 0x150   : > { %v3053_v57 = vpop.eup %2298  ;;  %2322 = vpow2.f32 %v580_v17  ;;  %v3115_v17 = vpop.permute.xlu0 %1101  ;;  %4606 = vst [vmem:[#allocation87_spill] sm:$0xff] %v3373_v49 }
 0x151   : > { %4550 = vst [vmem:[#allocation5_spill] sm:$0xff] %v3053_v57  ;;  %716 = vrot.lane.b32.xlu0 %v3053_v57, %s2495_s16  ;;  %2324 = vpow2.f32 %v586_v16  ;;  %4562 = vst [vmem:[#allocation47_spill] sm:$0xff] %v3115_v17  ;;  %v630_v16 = vmul.f32 1.442695, %v617_v27  ;;  %v2469_v17 = vld [vmem:[%s2542_s15 + $0x118] sm:$0xff] }
 0x152   : > { %v3059_v62 = vpop.eup %2300  ;;  %2326 = vpow2.f32 %v622_v25  ;;  %v3111_v35 = vpop.permute.xlu1 %1181  ;;  %v619_v25 = vsub.f32 %v2696_v31, %v2987_v58  ;;  %v632_v31 = vmul.f32 1.442695, %v618_v30  ;;  %v3434_v57 = vld [vmem:[%s2706_s20 + $0x38] sm:$0xff] }
 0x153   : > { %4551 = vst [vmem:[#allocation6_spill] sm:$0xff] %v3059_v62  ;;  %722 = vrot.lane.b32.xlu1 %v3059_v62, %s2495_s16  ;;  %v3067_v14 = vpop.eup %2302  ;;  %2328 = vpow2.f32 %v584_v7  ;;  %4560 = vst [vmem:[#allocation45_spill] sm:$0xff] %v3111_v35  ;;  %v2440_v35 = vld [vmem:[%s2542_s15 + $0x28] sm:$0xff] }
 0x154   : > { %4552 = vst [vmem:[#allocation37_spill] sm:$0xff] %v3067_v14  ;;  %v3071_v8 = vpop.eup %2304  ;;  %2330 = vpow2.f32 %v620_v21  ;;  %v3139_v36 = vpop.permute.xlu0 %1109  ;;  %v634_v21 = vmul.f32 1.442695, %v619_v25  ;;  %4615 = vst [vmem:[#allocation95_spill] sm:$0xff] %v3434_v57 }
 0x155   : > { %4553 = vst [vmem:[#allocation38_spill] sm:$0xff] %v3071_v8  ;;  %720 = vrot.lane.b32.xlu0 %v3067_v14, %s2495_s16  ;;  %v3081_v46 = vpop.eup %2306  ;;  %2332 = vpow2.f32 %v626_v15  ;;  %4567 = vst [vmem:[#allocation52_spill] sm:$0xff] %v3139_v36 }
 0x156   : > { %4554 = vst [vmem:[#allocation39_spill] sm:$0xff] %v3081_v46  ;;  %v3085_v4 = vpop.eup %2308  ;;  %v3131_v23 = vpop.permute.xlu1 %1189  ;;  %2334 = vpow2.f32 %v624_v28 }
 0x157   : > { %726 = vrot.lane.b32.xlu1 %v3071_v8, %s2495_s16  ;;  %4555 = vst [vmem:[#allocation40_spill] sm:$0xff] %v3085_v4  ;;  %v3095_v19 = vpop.eup %2310  ;;  %4565 = vst [vmem:[#allocation50_spill] sm:$0xff] %v3131_v23  ;;  %2336 = vpow2.f32 %v630_v16 }
 0x158   : > { %4557 = vst [vmem:[#allocation42_spill] sm:$0xff] %v3095_v19  ;;  %v3099_v20 = vpop.eup %2312  ;;  %2338 = vpow2.f32 %v628_v24  ;;  %v3151_v15 = vpop.permute.xlu0 %1173 }
 0x159   : > { %724 = vrot.lane.b32.xlu0 %v3081_v46, %s2495_s16  ;;  %4558 = vst [vmem:[#allocation43_spill] sm:$0xff] %v3099_v20  ;;  %v3107_v56 = vpop.eup %2314  ;;  %4571 = vst [vmem:[#allocation56_spill] sm:$0xff] %v3151_v15  ;;  %2340 = vpow2.f32 %v634_v21 }
 0x15a   : > { %4559 = vst [vmem:[#allocation44_spill] sm:$0xff] %v3107_v56  ;;  %v3113_v22 = vpop.eup %2316  ;;  %v3149_v58 = vpop.permute.xlu1 %1197  ;;  %2342 = vpow2.f32 %v632_v31 }
 0x15b   : > { %730 = vrot.lane.b32.xlu1 %v3085_v4, %s2495_s16  ;;  %4561 = vst [vmem:[#allocation46_spill] sm:$0xff] %v3113_v22  ;;  %v3121_v54 = vpop.eup %2318  ;;  %4570 = vst [vmem:[#allocation55_spill] sm:$0xff] %v3149_v58 }
 0x15c   : > { %4563 = vst [vmem:[#allocation48_spill] sm:$0xff] %v3121_v54  ;;  %v3125_v43 = vpop.eup %2320  ;;  %v3169_v16 = vpop.permute.xlu0 %1185 }
 0x15d   : > { %728 = vrot.lane.b32.xlu0 %v3099_v20, %s2495_s16  ;;  %4564 = vst [vmem:[#allocation49_spill] sm:$0xff] %v3125_v43  ;;  %v3135_v0 = vpop.eup %2322  ;;  %4576 = vst [vmem:[#allocation61_spill] sm:$0xff] %v3169_v16 }
 0x15e   : > { %4566 = vst [vmem:[#allocation51_spill] sm:$0xff] %v3135_v0  ;;  %v3141_v7 = vpop.eup %2324 }
 0x15f   : > { %766 = vrot.lane.b32.xlu1 %v3095_v19, %s2495_s16  ;;  %4568 = vst [vmem:[#allocation53_spill] sm:$0xff] %v3141_v7  ;;  %v3147_v26 = vpop.eup %2326  ;;  %v3167_v28 = vpop.permute.xlu1 %1221 }
 0x160   : > { %4569 = vst [vmem:[#allocation54_spill] sm:$0xff] %v3147_v26  ;;  %v3153_v32 = vpop.eup %2328  ;;  %4575 = vst [vmem:[#allocation60_spill] sm:$0xff] %v3167_v28  ;;  %v3181_v30 = vpop.permute.xlu0 %1193 }
 0x161   : > { %764 = vrot.lane.b32.xlu0 %v3107_v56, %s2495_s16  ;;  %4572 = vst [vmem:[#allocation57_spill] sm:$0xff] %v3153_v32  ;;  %v3159_v10 = vpop.eup %2330  ;;  %4580 = vst [vmem:[#allocation65_spill] sm:$0xff] %v3181_v30 }
 0x162   : > { %4573 = vst [vmem:[#allocation58_spill] sm:$0xff] %v3159_v10  ;;  %v3161_v27 = vpop.eup %2332 }
 0x163   : > { %770 = vrot.lane.b32.xlu1 %v3113_v22, %s2495_s16  ;;  %4574 = vst [vmem:[#allocation59_spill] sm:$0xff] %v3161_v27  ;;  %v3171_v29 = vpop.eup %2334  ;;  %v3179_v24 = vpop.permute.xlu1 %1229  ;;  %v4601_v22 = vsub.f32 %v2792_v61, %v2799_v59  ;;  %v4602_v61 = vsub.f32 %v2805_v48, %v2820_v45 }
 0x164   : > { %4577 = vst [vmem:[#allocation62_spill] sm:$0xff] %v3171_v29  ;;  %v3173_v25 = vpop.eup %2336  ;;  %4579 = vst [vmem:[#allocation64_spill] sm:$0xff] %v3179_v24  ;;  %v3198_v30 = vpop.permute.xlu0 %1201 }
 0x165   : > { %768 = vrot.lane.b32.xlu0 %v3121_v54, %s2495_s16  ;;  %4578 = vst [vmem:[#allocation63_spill] sm:$0xff] %v3173_v25  ;;  %v3183_v21 = vpop.eup %2338  ;;  %4585 = vst [vmem:[#allocation70_spill] sm:$0xff] %v3198_v30  ;;  %v2503_v30 = vmov 4   ;;  %v2443_v54 = vld [vmem:[%s2542_s15 + $0x50] sm:$0xff] }
 0x166   : > { %4581 = vst [vmem:[#allocation66_spill] sm:$0xff] %v3183_v21  ;;  %v3188_v31 = vpop.eup %2340 }
 0x167   : > { %774 = vrot.lane.b32.xlu1 %v3125_v43, %s2495_s16  ;;  %4582 = vst [vmem:[#allocation67_spill] sm:$0xff] %v3188_v31  ;;  %v3190_v28 = vpop.eup %2342  ;;  %v3196_v24 = vpop.permute.xlu1 %1233 }
 0x168   : > { %4583 = vst [vmem:[#allocation68_spill] sm:$0xff] %v3190_v28  ;;  %4584 = vst [vmem:[#allocation69_spill] sm:$0xff] %v3196_v24  ;;  %v3204_v16 = vpop.permute.xlu0 %1225 }
 0x169   : > { %772 = vrot.lane.b32.xlu0 %v3135_v0, %s2495_s16  ;;  %4587 = vst [vmem:[#allocation72_spill] sm:$0xff] %v3204_v16 }
 0x16b   : > { %778 = vrot.lane.b32.xlu1 %v3141_v7, %s2495_s16  ;;  %v2441_v7 = vld [vmem:[%s2542_s15] sm:$0xff] }
 0x16c   : > { %v3212_v24 = vpop.permute.xlu0 %1237  ;;  %v412_v43 = vsub.f32 %v2441_v7, %v2799_v59 }
 0x16d   : > { %776 = vrot.lane.b32.xlu0 %v3153_v32, %s2495_s16  ;;  %4589 = vst [vmem:[#allocation74_spill] sm:$0xff] %v3212_v24 }
 0x16e   : > { %v420_v7 = vmul.f32 1.442695, %v412_v43 }
 0x16f   : > { %814 = vrot.lane.b32.xlu1 %v3147_v26, %s2495_s16 }
 0x171   : > { %812 = vrot.lane.b32.xlu0 %v3159_v10, %s2495_s16 }
 0x173   : > { %818 = vrot.lane.b32.xlu1 %v3161_v27, %s2495_s16  ;;  %v2505_v27 = vmov 5  }
 0x175   : > { %816 = vrot.lane.b32.xlu0 %v3171_v29, %s2495_s16 }
 0x177   : > { %822 = vrot.lane.b32.xlu1 %v3173_v25, %s2495_s16 }
 0x179   : > { %820 = vrot.lane.b32.xlu0 %v3183_v21, %s2495_s16  ;;  %v3202_v21 = vpop.permute.xlu1 %1241 }
 0x17a   : > { %4586 = vst [vmem:[#allocation71_spill] sm:$0xff] %v3202_v21  ;;  %v3218_v21 = vpop.permute.xlu0 %1245 }
 0x17b   : > { %1365 = vperm.xlu1 %2256, %v4512_v34   ;;  %4591 = vst [vmem:[#allocation76_spill] sm:$0xff] %v3218_v21  ;;  %v2504_v21 = vmov 13  }
 0x17d   : > { %824 = vrot.lane.b32.xlu0 %v3190_v28, %s2495_s16  ;;  %v3210_v28 = vpop.permute.xlu1 %1249 }
 0x17e   : > { %4588 = vst [vmem:[#allocation73_spill] sm:$0xff] %v3210_v28  ;;  %v3224_v28 = vpop.permute.xlu0 %1277 }
 0x17f   : > { %826 = vrot.lane.b32.xlu1 %v3188_v31, %s2495_s16  ;;  %4593 = vst [vmem:[#allocation78_spill] sm:$0xff] %v3224_v28  ;;  %v2472_v28 = vld [vmem:[%s2542_s15 + $0xb8] sm:$0xff] }
 0x181   : > { %1361 = vperm.xlu0 %2257, %v4510_v60   ;;  %v3214_v29 = vpop.permute.xlu1 %1281 }
 0x182   : > { %4590 = vst [vmem:[#allocation75_spill] sm:$0xff] %v3214_v29  ;;  %v3232_v24 = vpop.permute.xlu0 %1289  ;;  %v2463_v29 = vld [vmem:[%s2542_s15 + $0x18] sm:$0xff] }
 0x183   : > { %1369 = vperm.xlu1 %2256, %v4514_v51   ;;  %4595 = vst [vmem:[#allocation80_spill] sm:$0xff] %v3232_v24  ;;  %v2461_v24 = vld [vmem:[%s2542_s15 + $0x60] sm:$0xff]  ;;  %v588_v62 = vsub.f32 %v2463_v29, %v2799_v59 }
 0x185   : > { %1373 = vperm.xlu0 %2257, %v2729_v37   ;;  %v3222_v41 = vpop.permute.xlu1 %1285 }
 0x186   : > { %4592 = vst [vmem:[#allocation77_spill] sm:$0xff] %v3222_v41  ;;  %v3238_v31 = vpop.permute.xlu0 %1297  ;;  %v3400_v41 = vld [vmem:[%s2706_s20 + $0x28] sm:$0xff] }
 0x187   : > { %1377 = vperm.xlu1 %2256, %v2732_v38   ;;  %4597 = vst [vmem:[#allocation82_spill] sm:$0xff] %v3238_v31  ;;  %4611 = vst [vmem:[#allocation92_spill] sm:$0xff] %v3400_v41 }
 0x189   : > { %1381 = vperm.xlu0 %2257, %v2737_v39  }
 0x18b   : > { %1385 = vperm.xlu1 %2256, %v2740_v40  }
 0x18d   : > { %2258 = vset.pattern.permute.xlu0 %v2503_v30 }
 0x18e   : > { %1445 = vperm.xlu0 %2258, %v4511_v33  }
 0x18f   : > { %2259 = vset.pattern.permute.xlu1 %v2503_v30  ;;  %v3228_v30 = vpop.permute.xlu1 %1293 }
 0x190   : > { %1449 = vperm.xlu1 %2259, %v4510_v60   ;;  %4594 = vst [vmem:[#allocation79_spill] sm:$0xff] %v3228_v30 }
 0x192   : > { %1457 = vperm.xlu0 %2258, %v4514_v51  }
 0x193   : > { %v3236_v16 = vpop.permute.xlu1 %1301 }
 0x194   : > { %1453 = vperm.xlu1 %2259, %v4512_v34   ;;  %4596 = vst [vmem:[#allocation81_spill] sm:$0xff] %v3236_v16 }
 0x196   : > { %1465 = vperm.xlu0 %2258, %v2732_v38  }
 0x197   : > { %v3242_v10 = vpop.permute.xlu1 %1357 }
 0x198   : > { %1461 = vperm.xlu1 %2259, %v2729_v37   ;;  %4598 = vst [vmem:[#allocation83_spill] sm:$0xff] %v3242_v10 }
 0x19a   : > { %1473 = vperm.xlu0 %2258, %v2740_v40  }
 0x19c   : > { %1469 = vperm.xlu1 %2259, %v2737_v39  }
 0x19e   : > { %2261 = vset.pattern.permute.xlu0 %v2504_v21 }
 0x19f   : > { %1497 = vperm.xlu0 %2261, %v4510_v60  }
 0x1a0   : > { %2260 = vset.pattern.permute.xlu1 %v2504_v21  ;;  %v3246_v21 = vpop.permute.xlu0 %1305 }
 0x1a1   : > { %1493 = vperm.xlu1 %2260, %v4511_v33   ;;  %4599 = vst [vmem:[#allocation84_spill] sm:$0xff] %v3246_v21  ;;  %v2458_v21 = vld [vmem:[%s2542_s15 + $0xf8] sm:$0xff] }
 0x1a2   : > { %v498_v31 = vsub.f32 %v2458_v21, %v2866_v50 }
 0x1a3   : > { %1509 = vperm.xlu0 %2261, %v2729_v37  }
 0x1a5   : > { %1501 = vperm.xlu1 %2260, %v4512_v34  }
 0x1a7   : > { %1517 = vperm.xlu0 %2261, %v2737_v39  }
 0x1a9   : > { %1505 = vperm.xlu1 %2260, %v4514_v51  }
 0x1ab   : > { %2262 = vset.pattern.permute.xlu0 %v2505_v27 }
 0x1ac   : > { %1549 = vperm.xlu0 %2262, %v4511_v33   ;;  %v413_v33 = vsub.f32 %v2440_v35, %v2796_v53  ;;  %v2442_v35 = vld [vmem:[%s2542_s15 + $0x78] sm:$0xff] }
 0x1ad   : > { %1513 = vperm.xlu1 %2260, %v2732_v38   ;;  %v415_v32 = vsub.f32 %v2442_v35, %v2820_v45  ;;  %v2506_v35 = vmov 14  }
 0x1ae   : > { %v422_v19 = vmul.f32 1.442695, %v413_v33 }
 0x1b0   : > { %1561 = vperm.xlu0 %2262, %v4514_v51   ;;  %v4600_v51 = vsub.f32 %v2789_v47, %v2796_v53  ;;  %v414_v47 = vsub.f32 %v2443_v54, %v2823_v2  ;;  %v2445_v54 = vld [vmem:[%s2542_s15 + $0x30] sm:$0xff] }
 0x1b1   : > { %v3248_v25 = vpop.permute.xlu1 %670  ;;  %1521 = vperm.xlu1 %2260, %v2740_v40   ;;  %v493_v48 = vsub.f32 %v2445_v54, %v2796_v53 }
 0x1b2   : > { %v3252_v58 = vpop.permute.xlu0 %668 }
 0x1b4   : > { %1569 = vperm.xlu0 %2262, %v2732_v38   ;;  %v644_v38 = vmul.f32 1.442695, %v4601_v22  ;;  %v650_v22 = vmul.f32 1.442695, %v4602_v61  ;;  %v2446_v61 = vld [vmem:[%s2542_s15 + $0xa0] sm:$0xff] }
 0x1b5   : > { %v3255_v26 = vpop.permute.xlu1 %674  ;;  %2263 = vset.pattern.permute.xlu1 %v2505_v27  ;;  %v646_v27 = vmul.f32 1.442695, %v4600_v51  ;;  %v4603_v51 = vsub.f32 %v2808_v9, %v2823_v2  ;;  %v2447_v9 = vld [vmem:[%s2542_s15 + $0xf0] sm:$0xff] }
 0x1b6   : > { %v3258_v23 = vpop.permute.xlu0 %672  ;;  %1553 = vperm.xlu1 %2263, %v4510_v60  }
 0x1b7   : > { %2344 = vpow2.f32 %v646_v27  ;;  %v648_v43 = vmul.f32 1.442695, %v4603_v51  ;;  %v426_v27 = vmul.f32 1.442695, %v415_v32  ;;  %v418_v51 = vsub.f32 %v2447_v9, %v2866_v50 }
 0x1b8   : > { %1577 = vperm.xlu0 %2262, %v2740_v40   ;;  %v2444_v40 = vld [vmem:[%s2542_s15 + $0xc8] sm:$0xff]  ;;  %2346 = vpow2.f32 %v644_v38  ;;  %v424_v38 = vmul.f32 1.442695, %v414_v47 }
 0x1b9   : > { %v3264_v15 = vpop.permute.xlu1 %678  ;;  %2348 = vpow2.f32 %v422_v19  ;;  %v2448_v19 = vld [vmem:[%s2542_s15 + $0x8] sm:$0xff]  ;;  %v432_v9 = vmul.f32 1.442695, %v418_v51 }
 0x1ba   : > { %1557 = vperm.xlu1 %2263, %v4512_v34   ;;  %v3278_v0 = vpop.permute.xlu0 %676  ;;  %v417_v34 = vsub.f32 %v2444_v40, %v2841_v18  ;;  %v416_v40 = vsub.f32 %v2446_v61, %v2846_v12  ;;  %2350 = vpow2.f32 %v420_v7  ;;  %v492_v32 = vsub.f32 %v2448_v19, %v2799_v59  ;;  %v2451_v19 = vld [vmem:[%s2542_s15 + $0x38] sm:$0xff] }
 0x1bb   : > { %2352 = vpow2.f32 %v650_v22  ;;  %v502_v61 = vmul.f32 1.442695, %v493_v48  ;;  %v2450_v22 = vld [vmem:[%s2542_s15 + $0x58] sm:$0xff] }
 0x1bc   : > { %2265 = vset.pattern.permute.xlu0 %v2506_v35  ;;  %v430_v10 = vmul.f32 1.442695, %v417_v34  ;;  %2354 = vpow2.f32 %v648_v43  ;;  %v428_v47 = vmul.f32 1.442695, %v416_v40  ;;  %v494_v34 = vsub.f32 %v2450_v22, %v2823_v2  ;;  %v2452_v40 = vld [vmem:[%s2542_s15 + $0xd0] sm:$0xff] }
 0x1bd   : > { %v3287_v33 = vpop.permute.xlu1 %682  ;;  %1633 = vperm.xlu0 %2265, %v4510_v60   ;;  %v2449_v60 = vld [vmem:[%s2542_s15 + $0x80] sm:$0xff]  ;;  %2356 = vpow2.f32 %v426_v27  ;;  %v541_v43 = vsub.f32 %v2451_v19, %v2796_v53  ;;  %v3323_v22 = vld [vmem:[%s2706_s20 + $0x30] sm:$0xff] }
 0x1be   : > { %1565 = vperm.xlu1 %2263, %v2729_v37   ;;  %v495_v7 = vsub.f32 %v2449_v60, %v2820_v45  ;;  %2358 = vpow2.f32 %v424_v38  ;;  %v2453_v38 = vld [vmem:[%s2542_s15 + $0xa8] sm:$0xff]  ;;  %v2456_v19 = vld [vmem:[%s2542_s15 + $0x10] sm:$0xff] }
 0x1bf   : > { %v3300_v56 = vpop.permute.xlu0 %680  ;;  %2360 = vpow2.f32 %v430_v10  ;;  %v496_v51 = vsub.f32 %v2453_v38, %v2846_v12  ;;  %v504_v10 = vmul.f32 1.442695, %v494_v34 }
 0x1c0   : > { %2362 = vpow2.f32 %v502_v61  ;;  %v506_v60 = vmul.f32 1.442695, %v495_v7  ;;  %v540_v61 = vsub.f32 %v2456_v19, %v2799_v59  ;;  %v2457_v7 = vld [vmem:[%s2542_s15 + $0x88] sm:$0xff] }
 0x1c1   : > { %v3302_v54 = vpop.permute.xlu1 %718  ;;  %1645 = vperm.xlu0 %2265, %v2729_v37   ;;  %v497_v37 = vsub.f32 %v2452_v40, %v2841_v18  ;;  %2364 = vpow2.f32 %v428_v47  ;;  %v543_v40 = vsub.f32 %v2457_v7, %v2820_v45  ;;  %v508_v19 = vmul.f32 1.442695, %v496_v51 }
 0x1c2   : > { %1573 = vperm.xlu1 %2263, %v2737_v39   ;;  %v500_v39 = vmul.f32 1.442695, %v492_v32  ;;  %v3327_v32 = vld [vmem:[%s2706_s20] sm:$0xff]  ;;  %2366 = vpow2.f32 %v432_v9  ;;  %v548_v21 = vmul.f32 1.442695, %v540_v61 }
 0x1c3   : > { %v3314_v48 = vpop.permute.xlu0 %716  ;;  %v510_v38 = vmul.f32 1.442695, %v497_v37  ;;  %v2459_v9 = vld [vmem:[%s2542_s15 + $0x40] sm:$0xff]  ;;  %v3348_v37 = vld [vmem:[%s2706_s20 + $0x10] sm:$0xff] }
 0x1c4   : > { %2368 = vpow2.f32 %v500_v39  ;;  %v3340_v4 = vpop.eup %2344  ;;  %v4437_v39 = vmov 6  }
 0x1c5   : > { %v3316_v27 = vpop.permute.xlu1 %722  ;;  %1653 = vperm.xlu0 %2265, %v3323_v22   ;;  %2370 = vpow2.f32 %v506_v60  ;;  %v3344_v7 = vpop.eup %2346  ;;  %v542_v60 = vsub.f32 %v2461_v24, %v2823_v2  ;;  %v512_v24 = vmul.f32 1.442695, %v498_v31  ;;  %v2466_v31 = vld [vmem:[%s2542_s15 + $0xb0] sm:$0xff] }
 0x1c6   : > { %2264 = vset.pattern.permute.xlu1 %v2506_v35  ;;  %v550_v35 = vmul.f32 1.442695, %v541_v43  ;;  %v589_v43 = vsub.f32 %v2459_v9, %v2796_v53  ;;  %2372 = vpow2.f32 %v504_v10  ;;  %v3353_v51 = vpop.eup %2348  ;;  %v554_v53 = vmul.f32 1.442695, %v543_v40  ;;  %v2462_v10 = vld [vmem:[%s2542_s15 + $0xd8] sm:$0xff]  ;;  %v2464_v40 = vld [vmem:[%s2542_s15 + $0x90] sm:$0xff] }
 0x1c7   : > { %1629 = vperm.xlu1 %2264, %v3327_v32   ;;  %v3334_v47 = vpop.permute.xlu0 %720  ;;  %4604 = vst [vmem:[#allocation85_spill] sm:$0xff] %v3353_v51  ;;  %v545_v9 = vsub.f32 %v2462_v10, %v2841_v18  ;;  %v591_v36 = vsub.f32 %v2464_v40, %v2820_v45  ;;  %v544_v30 = vsub.f32 %v2466_v31, %v2846_v12  ;;  %v2467_v40 = vld [vmem:[%s2542_s15 + $0x68] sm:$0xff] }
 0x1c8   : > { %2374 = vpow2.f32 %v550_v35  ;;  %v598_v35 = vmul.f32 1.442695, %v589_v43  ;;  %v693_v29 = vadd.f32 %v3353_v51, %v3248_v25  ;;  %v590_v31 = vsub.f32 %v2467_v40, %v2823_v2  ;;  %v2468_v51 = vld [vmem:[%s2542_s15 + $0xe0] sm:$0xff] }
 0x1c9   : > { %v3336_v34 = vpop.permute.xlu1 %726  ;;  %2266 = vset.pattern.permute.xlu0 %v4437_v39  ;;  %v3358_v39 = vpop.eup %2350  ;;  %2376 = vpow2.f32 %v510_v38  ;;  %v552_v38 = vmul.f32 1.442695, %v542_v60  ;;  %v558_v45 = vmul.f32 1.442695, %v545_v9  ;;  %v596_v60 = vmul.f32 1.442695, %v588_v62 }
 0x1ca   : > { %1717 = vperm.xlu0 %2266, %v3327_v32   ;;  %4605 = vst [vmem:[#allocation86_spill] sm:$0xff] %v3358_v39  ;;  %v3366_v16 = vpop.eup %2352  ;;  %2378 = vpow2.f32 %v508_v19  ;;  %v602_v25 = vmul.f32 1.442695, %v591_v36  ;;  %v556_v62 = vmul.f32 1.442695, %v544_v30  ;;  %v2471_v2 = vld [vmem:[%s2542_s15 + $0x100] sm:$0xff]  ;;  %v692_v36 = vadd.f32 %v3358_v39, %v3252_v58 }
 0x1cb   : > { %1637 = vperm.xlu1 %2264, %v3348_v37   ;;  %v3360_v8 = vpop.permute.xlu0 %724  ;;  %v3370_v10 = vpop.eup %2354  ;;  %2380 = vpow2.f32 %v548_v21  ;;  %v546_v40 = vsub.f32 %v2471_v2, %v2866_v50  ;;  %v600_v2 = vmul.f32 1.442695, %v590_v31  ;;  %v592_v58 = vsub.f32 %v2472_v28, %v2846_v12  ;;  %v2473_v31 = vld [vmem:[%s2542_s15 + $0x120] sm:$0xff] }
 0x1cc   : > { %v3378_v59 = vpop.eup %2356  ;;  %2382 = vpow2.f32 %v554_v53  ;;  %v593_v53 = vsub.f32 %v2468_v51, %v2841_v18  ;;  %v499_v28 = vsub.f32 %v2473_v31, %v2863_v55 }
 0x1cd   : > { %v3362_v61 = vpop.permute.xlu1 %730  ;;  %4607 = vst [vmem:[#allocation88_spill] sm:$0xff] %v3378_v59  ;;  %v3383_v19 = vpop.eup %2358  ;;  %2384 = vpow2.f32 %v512_v24  ;;  %v419_v24 = vsub.f32 %v2469_v17, %v2863_v55  ;;  %v695_v51 = vadd.f32 %v3378_v59, %v3255_v26  ;;  %v4613_v26 = vsub.f32 %v2826_v63, %v2841_v18 }
 0x1ce   : > { %1729 = vperm.xlu0 %2266, %v3373_v49   ;;  %4608 = vst [vmem:[#allocation89_spill] sm:$0xff] %v3383_v19  ;;  %v3391_v20 = vpop.eup %2360  ;;  %2386 = vpow2.f32 %v598_v35  ;;  %v606_v59 = vmul.f32 1.442695, %v593_v53  ;;  %v694_v14 = vadd.f32 %v3383_v19, %v3258_v23  ;;  %v560_v23 = vmul.f32 1.442695, %v546_v40 }
 0x1cf   : > { %1641 = vperm.xlu1 %2264, %v3373_v49   ;;  %v3385_v43 = vpop.permute.xlu0 %728  ;;  %4609 = vst [vmem:[#allocation90_spill] sm:$0xff] %v3391_v20  ;;  %v3395_v9 = vpop.eup %2362  ;;  %2388 = vpow2.f32 %v552_v38  ;;  %v697_v18 = vadd.f32 %v3391_v20, %v3264_v15 }
 0x1d0   : > { %4610 = vst [vmem:[#allocation91_spill] sm:$0xff] %v3395_v9  ;;  %v3405_v35 = vpop.eup %2364  ;;  %v701_v17 = vadd.f32 %v3395_v9, %v693_v29  ;;  %2390 = vpow2.f32 %v558_v45  ;;  %v654_v29 = vmul.f32 1.442695, %v4613_v26  ;;  %v2475_v26 = vld [vmem:[%s2542_s15 + $0x108] sm:$0xff] }
 0x1d1   : > { %v3387_v21 = vpop.permute.xlu1 %766  ;;  %v3413_v46 = vpop.eup %2366  ;;  %2392 = vpow2.f32 %v596_v60  ;;  %v434_v60 = vmul.f32 1.442695, %v419_v24  ;;  %v594_v31 = vsub.f32 %v2475_v26, %v2866_v50  ;;  %v4617_v26 = vmov 6  }
 0x1d2   : > { %1737 = vperm.xlu0 %2266, %v3400_v41   ;;  %4612 = vst [vmem:[#allocation93_spill] sm:$0xff] %v3413_v46  ;;  %v3421_v39 = vpop.eup %2368  ;;  %v741_v45 = vadd.f32 %v3302_v54, %v701_v17  ;;  %2394 = vpow2.f32 %v602_v25 }
 0x1d3   : > { %1649 = vperm.xlu1 %2264, %v3400_v41   ;;  %v3415_v30 = vpop.permute.xlu0 %764  ;;  %v3427_v9 = vpop.eup %2370  ;;  %2396 = vpow2.f32 %v556_v62  ;;  %v700_v54 = vadd.f32 %v3421_v39, %v692_v36  ;;  %v604_v62 = vmul.f32 1.442695, %v592_v58  ;;  %v514_v58 = vmul.f32 1.442695, %v499_v28 }
 0x1d4   : > { %4614 = vst [vmem:[#allocation94_spill] sm:$0xff] %v3427_v9  ;;  %v3437_v63 = vpop.eup %2372  ;;  %v703_v25 = vadd.f32 %v3427_v9, %v695_v51  ;;  %2398 = vpow2.f32 %v600_v2  ;;  %v696_v9 = vadd.f32 %v3405_v35, %v3278_v0 }
 0x1d5   : > { %v3417_v38 = vpop.permute.xlu1 %770  ;;  %v3444_v53 = vpop.eup %2374  ;;  %v740_v36 = vadd.f32 %v3314_v48, %v700_v54  ;;  %2400 = vpow2.f32 %v606_v59  ;;  %v702_v2 = vadd.f32 %v3437_v63, %v694_v14  ;;  %v4618_v48 = vsub.f32 %v2834_v44, %v2846_v12  ;;  %v3471_v54 = vld [vmem:[%s2706_s20 + $0x8] sm:$0xff] }
 0x1d6   : > { %1745 = vperm.xlu0 %2266, %v3434_v57   ;;  %v3452_v15 = vpop.eup %2376  ;;  %v743_v51 = vadd.f32 %v3316_v27, %v703_v25  ;;  %v749_v40 = vadd.f32 %v3444_v53, %v741_v45  ;;  %2402 = vpow2.f32 %v434_v60  ;;  %4619 = vst [vmem:[#allocation97_spill] sm:$0xff] %v3471_v54  ;;  %v4452_v14 = vmov 16   ;;  %v2477_v44 = vld [vmem:[%s2542_s15 + $0x128] sm:$0xff] }
 0x1d7   : > { %1657 = vperm.xlu1 %2264, %v3434_v57   ;;  %v3446_v24 = vpop.permute.xlu0 %768  ;;  %4616 = vst [vmem:[#allocation96_spill] sm:$0xff] %v3452_v15  ;;  %v3457_v20 = vpop.eup %2378  ;;  %v652_v27 = vmul.f32 1.442695, %v4618_v48  ;;  %v705_v59 = vadd.f32 %v3452_v15, %v697_v18  ;;  %2404 = vpow2.f32 %v560_v23  ;;  %v742_v60 = vadd.f32 %v3334_v47, %v702_v2 }
 0x1d8   : > { %v3463_v19 = vpop.eup %2380  ;;  %v789_v45 = vadd.f32 %v3387_v21, %v749_v40  ;;  %2406 = vpow2.f32 %v654_v29  ;;  %v547_v12 = vsub.f32 %v2477_v44, %v2863_v55  ;;  %v608_v21 = vmul.f32 1.442695, %v594_v31 }
 0x1d9   : > { %v3448_v17 = vpop.permute.xlu1 %774  ;;  %v3475_v0 = vpop.eup %2382  ;;  %v745_v23 = vadd.f32 %v3336_v34, %v705_v59  ;;  %v748_v40 = vadd.f32 %v3463_v19, %v740_v36  ;;  %2408 = vpow2.f32 %v604_v62  ;;  %v4620_v47 = vsub.f32 %v2852_v52, %v2866_v50 }
 0x1da   : > { %2269 = vset.pattern.permute.xlu0 %v4452_v14  ;;  %v3483_v25 = vpop.eup %2384  ;;  %v698_v48 = vadd.f32 %v3413_v46, %v3300_v56  ;;  %v704_v31 = vadd.f32 %v3457_v20, %v696_v9  ;;  %2410 = vpow2.f32 %v514_v58  ;;  %v4700_v46 = vld [vmem:[#allocation35_spill] sm:$0xff] }
 0x1db   : > { %2267 = vset.pattern.permute.xlu1 %v4617_v26  ;;  %v773_v28 = vpop.permute.xlu0 %772  ;;  %1901 = vperm.xlu0 %2269, %v3327_v32   ;;  %v751_v26 = vadd.f32 %v3475_v0, %v743_v51  ;;  %v3488_v29 = vpop.eup %2386  ;;  %v656_v2 = vmul.f32 1.442695, %v4620_v47  ;;  %2412 = vpow2.f32 %v652_v27  ;;  %v788_v34 = vadd.f32 %v3415_v30, %v748_v40  ;;  %v2478_v27 = vld [vmem:[%s2542_s15 + $0x130] sm:$0xff] }
 0x1dc   : > { %1721 = vperm.xlu1 %2267, %v3471_v54   ;;  %v3496_v44 = vpop.eup %2388  ;;  %v797_v36 = vadd.f32 %v3488_v29, %v789_v45  ;;  %v744_v50 = vadd.f32 %v3360_v8, %v704_v31  ;;  %v562_v51 = vmul.f32 1.442695, %v547_v12  ;;  %v595_v30 = vsub.f32 %v2478_v27, %v2863_v55  ;;  %v3522_v27 = vld [vmem:[%s2706_s20 + $0x20] sm:$0xff] }
 0x1dd   : > { %v3480_v18 = vpop.permute.xlu1 %778  ;;  %v791_v62 = vadd.f32 %v3417_v38, %v751_v26  ;;  %v3502_v52 = vpop.eup %2390  ;;  %v750_v56 = vadd.f32 %v3496_v44, %v742_v60  ;;  %2414 = vpow2.f32 %v608_v21  ;;  %v706_v8 = vadd.f32 %v3483_v25, %v698_v48  ;;  %4621 = vst [vmem:[#allocation98_spill] sm:$0xff] %v3522_v27 }
 0x1de   : > { %v3509_v38 = vpop.eup %2392  ;;  %v753_v59 = vadd.f32 %v3502_v52, %v745_v23  ;;  %2416 = vpow2.f32 %v656_v2 }
 0x1df   : > { %v777_v9 = vpop.permute.xlu0 %776  ;;  %1913 = vperm.xlu0 %2269, %v3373_v49   ;;  %v3512_v40 = vpop.eup %2394  ;;  %v790_v60 = vadd.f32 %v3446_v24, %v750_v56  ;;  %v796_v31 = vadd.f32 %v3509_v38, %v788_v34  ;;  %2418 = vpow2.f32 %v562_v51  ;;  %v610_v24 = vmul.f32 1.442695, %v595_v30 }
 0x1e0   : > { %1725 = vperm.xlu1 %2267, %v3348_v37   ;;  %v3516_v12 = vpop.eup %2396  ;;  %v793_v26 = vadd.f32 %v3448_v17, %v753_v59  ;;  %v799_v21 = vadd.f32 %v3512_v40, %v791_v62  ;;  %v746_v17 = vadd.f32 %v3385_v43, %v706_v8  ;;  %v4623_v43 = vld [vmem:[#allocation11_spill] sm:$0xff] }
 0x1e1   : > { %v815_v58 = vpop.permute.xlu1 %814  ;;  %v752_v23 = vadd.f32 %v3516_v12, %v744_v50  ;;  %v4624_v8 = vsub.f32 %v4623_v43, %v2863_v55 }
 0x1e2   : > { %v837_v45 = vadd.f32 %v815_v58, %v797_v36  ;;  %v3528_v36 = vpop.eup %2398 }
 0x1e3   : > { %v813_v2 = vpop.permute.xlu0 %812  ;;  %1921 = vperm.xlu0 %2269, %v3400_v41   ;;  %v3531_v58 = vpop.eup %2400  ;;  %v798_v59 = vadd.f32 %v3528_v36, %v790_v60  ;;  %v792_v50 = vadd.f32 %v773_v28, %v752_v23 }
 0x1e4   : > { %v845_v47 = vadd.f32 %v3340_v4, %v837_v45  ;;  %1733 = vperm.xlu1 %2267, %v3522_v27   ;;  %v836_v34 = vadd.f32 %v813_v2, %v796_v31  ;;  %v3534_v62 = vpop.eup %2402  ;;  %v801_v30 = vadd.f32 %v3531_v58, %v793_v26 }
 0x1e5   : > { %v819_v48 = vpop.permute.xlu1 %818  ;;  %4622 = vst [vmem:[#allocation99_spill] sm:$0xff] %v3534_v62  ;;  %v3540_v14 = vpop.eup %2404  ;;  %v699_v60 = vadd.f32 %v3534_v62, %v3287_v33 }
 0x1e6   : > { %2420 = vrcp.f32 %v845_v47  ;;  %v839_v56 = vadd.f32 %v819_v48, %v799_v21  ;;  %v844_v51 = vadd.f32 %v3344_v7, %v836_v34  ;;  %v658_v47 = vmul.f32 1.442695, %v4624_v8  ;;  %v3547_v28 = vpop.eup %2406 }
 0x1e7   : > { %v817_v31 = vpop.permute.xlu0 %816  ;;  %2422 = vpow2.f32 %v610_v24  ;;  %v754_v23 = vadd.f32 %v3540_v14, %v746_v17  ;;  %v3550_v26 = vpop.eup %2408  ;;  %v4453_v24 = vmov 15  }
 0x1e8   : > { %v847_v45 = vadd.f32 %v3366_v16, %v839_v56  ;;  %1741 = vperm.xlu1 %2267, %v3323_v22   ;;  %2424 = vrcp.f32 %v844_v51  ;;  %v838_v2 = vadd.f32 %v817_v31, %v798_v59  ;;  %v3552_v34 = vpop.eup %2410  ;;  %v800_v43 = vadd.f32 %v3550_v26, %v792_v50 }
 0x1e9   : > { %v823_v21 = vpop.permute.xlu1 %822  ;;  %4625 = vst [vmem:[#allocation11_spill] sm:$0xff] %v3552_v34  ;;  %v794_v55 = vadd.f32 %v777_v9, %v754_v23  ;;  %v3558_v8 = vpop.eup %2412  ;;  %v707_v17 = vadd.f32 %v3552_v34, %v699_v60 }
 0x1ea   : > { %v841_v48 = vadd.f32 %v823_v21, %v801_v30  ;;  %2426 = vrcp.f32 %v847_v45  ;;  %v846_v56 = vadd.f32 %v3370_v10, %v838_v2  ;;  %v2415_v9 = vpop.eup %2414 }
 0x1eb   : > { %2428 = vpow2.f32 %v658_v47  ;;  %v821_v59 = vpop.permute.xlu0 %820  ;;  %v747_v45 = vadd.f32 %v3362_v61, %v707_v17  ;;  %v2417_v30 = vpop.eup %2416  ;;  %v802_v31 = vadd.f32 %v2415_v9, %v794_v55 }
 0x1ec   : > { %v849_v33 = vadd.f32 %v3547_v28, %v841_v48  ;;  %2268 = vset.pattern.permute.xlu1 %v4453_v24  ;;  %2430 = vrcp.f32 %v846_v56  ;;  %v840_v51 = vadd.f32 %v821_v59, %v800_v43  ;;  %v3565_v23 = vpop.eup %2418 }
 0x1ed   : > { %1765 = vperm.xlu1 %2268, %v3327_v32   ;;  %v755_v2 = vadd.f32 %v3565_v23, %v747_v45 }
 0x1ee   : > { %2432 = vrcp.f32 %v849_v33  ;;  %v848_v50 = vadd.f32 %v3558_v8, %v840_v51 }
 0x1ef   : > { %v825_v21 = vpop.permute.xlu0 %824  ;;  %v795_v55 = vadd.f32 %v3480_v18, %v755_v2  ;;  %v4637_v2 = vmov 16  }
 0x1f0   : > { %2434 = vrcp.f32 %v848_v50  ;;  %v842_v47 = vadd.f32 %v825_v21, %v802_v31 }
 0x1f1   : > { %1773 = vperm.xlu1 %2268, %v3348_v37  }
 0x1f2   : > { %v850_v48 = vadd.f32 %v2417_v30, %v842_v47 }
 0x1f3   : > { %v3567_v60 = vpop.eup %2420 }
 0x1f4   : > { %4626 = vst [vmem:[#allocation100_spill] sm:$0xff] %v3567_v60  ;;  %v3572_v61 = vmul.f32 %v3567_v60, %v3444_v53  ;;  %v3576_v56 = vmul.f32 %v3567_v60, %v3488_v29  ;;  %v3582_v33 = vmul.f32 %v3567_v60, %v3340_v4  ;;  %v2423_v43 = vpop.eup %2422  ;;  %2436 = vrcp.f32 %v850_v48 }
 0x1f5   : > { %1777 = vperm.xlu1 %2268, %v3373_v49   ;;  %v3586_v59 = vpop.eup %2424  ;;  %v803_v4 = vadd.f32 %v2423_v43, %v795_v55 }
 0x1f6   : > { %4627 = vst [vmem:[#allocation101_spill] sm:$0xff] %v3572_v61  ;;  %4628 = vst [vmem:[#allocation102_spill] sm:$0xff] %v3582_v33  ;;  %v3584_v17 = vpop.permute.xlu1 %1365  ;;  %972 = vrot.lane.b32.xlu0 %v3586_v59, %s2495_s16  ;;  %v3594_v18 = vmul.f32 %v3586_v59, %v3463_v19  ;;  %v3598_v29 = vmul.f32 %v3586_v59, %v3509_v38 }
 0x1f7   : > { %v3588_v53 = vpop.eup %2426 }
 0x1f8   : > { %4629 = vst [vmem:[#allocation103_spill] sm:$0xff] %v3588_v53  ;;  %4630 = vst [vmem:[#allocation104_spill] sm:$0xff] %v3594_v18  ;;  %v3603_v51 = vmul.f32 %v3588_v53, %v3475_v0  ;;  %v3607_v45 = vmul.f32 %v3588_v53, %v3512_v40  ;;  %v2429_v50 = vpop.eup %2428 }
 0x1f9   : > { %4631 = vst [vmem:[#allocation105_spill] sm:$0xff] %v3598_v29  ;;  %1785 = vperm.xlu1 %2268, %v3400_v41   ;;  %v3609_v21 = vpop.eup %2430  ;;  %v4697_v41 = vld [vmem:[#allocation34_spill] sm:$0xff] }
 0x1fa   : > { %4632 = vst [vmem:[#allocation106_spill] sm:$0xff] %v3603_v51  ;;  %4633 = vst [vmem:[#allocation107_spill] sm:$0xff] %v3607_v45  ;;  %v827_v31 = vpop.permute.xlu1 %826  ;;  %976 = vrot.lane.b32.xlu0 %v3609_v21, %s2495_s16  ;;  %v3617_v38 = vmul.f32 %v3609_v21, %v3496_v44  ;;  %v3621_v0 = vmul.f32 %v3609_v21, %v3528_v36 }
 0x1fb   : > { %v843_v19 = vadd.f32 %v827_v31, %v803_v4  ;;  %v3611_v47 = vpop.eup %2432 }
 0x1fc   : > { %4634 = vst [vmem:[#allocation108_spill] sm:$0xff] %v3611_v47  ;;  %4635 = vst [vmem:[#allocation109_spill] sm:$0xff] %v3617_v38  ;;  %v3626_v48 = vmul.f32 %v3611_v47, %v3502_v52  ;;  %v3630_v55 = vmul.f32 %v3611_v47, %v3531_v58  ;;  %v3632_v4 = vpop.permute.xlu0 %1361  ;;  %v3651_v58 = vmul.f32 %v3586_v59, %v3344_v7 }
 0x1fd   : > { %4636 = vst [vmem:[#allocation110_spill] sm:$0xff] %v3621_v0  ;;  %v851_v40 = vadd.f32 %v2429_v50, %v843_v19  ;;  %2270 = vset.pattern.permute.xlu1 %v4637_v2  ;;  %v3637_v31 = vpop.eup %2434  ;;  %v3670_v7 = vmul.f32 %v3611_v47, %v3547_v28 }
 0x1fe   : > { %4638 = vst [vmem:[#allocation111_spill] sm:$0xff] %v3626_v48  ;;  %4639 = vst [vmem:[#allocation112_spill] sm:$0xff] %v3630_v55  ;;  %1905 = vperm.xlu1 %2270, %v3471_v54   ;;  %v3635_v44 = vpop.permute.xlu1 %1369  ;;  %980 = vrot.lane.b32.xlu0 %v3637_v31, %s2495_s16  ;;  %v3643_v52 = vmul.f32 %v3637_v31, %v3516_v12  ;;  %v3647_v36 = vmul.f32 %v3637_v31, %v3550_v26 }
 0x1ff   : > { %2438 = vrcp.f32 %v851_v40  ;;  %4641 = vst [vmem:[#allocation114_spill] sm:$0xff] %v3651_v58  ;;  %v3662_v12 = vmul.f32 %v3609_v21, %v3370_v10  ;;  %v3666_v26 = vmul.f32 %v3588_v53, %v3366_v16  ;;  %4645 = vst [vmem:[#allocation118_spill] sm:$0xff] %v3670_v7  ;;  %v3674_v24 = vmul.f32 %v3637_v31, %v3558_v8 }
 0x200   : > { %4640 = vst [vmem:[#allocation113_spill] sm:$0xff] %v3643_v52  ;;  %v3653_v19 = vpop.permute.xlu0 %1373 }
 0x201   : > { %v3658_v2 = vpop.eup %2436  ;;  %4643 = vst [vmem:[#allocation116_spill] sm:$0xff] %v3662_v12  ;;  %4644 = vst [vmem:[#allocation117_spill] sm:$0xff] %v3666_v26 }
 0x202   : > { %1909 = vperm.xlu1 %2270, %v3348_v37   ;;  %v3656_v40 = vpop.permute.xlu1 %1377  ;;  %4642 = vst [vmem:[#allocation115_spill] sm:$0xff] %v3658_v2  ;;  %4646 = vst [vmem:[#allocation119_spill] sm:$0xff] %v3674_v24  ;;  %984 = vrot.lane.b32.xlu0 %v3658_v2, %s2495_s16  ;;  %v3680_v58 = vmul.f32 %v3658_v2, %v3540_v14  ;;  %v3683_v10 = vmul.f32 %v3658_v2, %v2415_v9  ;;  %v4654_v24 = vmov 15  }
 0x203   : > { %v3687_v16 = vmul.f32 %v3658_v2, %v3483_v25  ;;  %v3690_v28 = vmul.f32 %v3658_v2, %v2417_v30  ;;  %v4699_v2 = vld [vmem:[#allocation28_spill] sm:$0xff] }
 0x204   : > { %4647 = vst [vmem:[#allocation120_spill] sm:$0xff] %v3680_v58  ;;  %4648 = vst [vmem:[#allocation121_spill] sm:$0xff] %v3683_v10  ;;  %v3692_v12 = vpop.permute.xlu0 %1381 }
 0x205   : > { %4649 = vst [vmem:[#allocation122_spill] sm:$0xff] %v3687_v16  ;;  %4650 = vst [vmem:[#allocation123_spill] sm:$0xff] %v3690_v28 }
 0x206   : > { %1917 = vperm.xlu1 %2270, %v3522_v27   ;;  %v3695_v8 = vpop.permute.xlu1 %1385  ;;  %1929 = vperm.xlu0 %2269, %v3434_v57  }
 0x209   : > { %v3700_v14 = vpop.permute.xlu0 %1445 }
 0x20a   : > { %974 = vrot.lane.b32.xlu1 %v3567_v60, %s2495_s16  ;;  %4651 = vst [vmem:[#allocation124_spill] sm:$0xff] %v3700_v14  ;;  %2271 = vset.pattern.permute.xlu0 %v4654_v24 }
 0x20b   : > { %v3702_v9 = vpop.permute.xlu1 %1449  ;;  %1769 = vperm.xlu0 %2271, %v3471_v54  }
 0x20c   : > { %4652 = vst [vmem:[#allocation125_spill] sm:$0xff] %v3702_v9  ;;  %v3704_v25 = vpop.eup %2438 }
 0x20d   : > { %4653 = vst [vmem:[#allocation126_spill] sm:$0xff] %v3704_v25  ;;  %v3710_v30 = vmul.f32 %v3704_v25, %v3565_v23  ;;  %v3713_v28 = vmul.f32 %v3704_v25, %v2423_v43  ;;  %v3718_v7 = vmul.f32 %v3704_v25, %v2429_v50  ;;  %v3720_v26 = vpop.permute.xlu0 %1457 }
 0x20e   : > { %978 = vrot.lane.b32.xlu1 %v3588_v53, %s2495_s16  ;;  %4657 = vst [vmem:[#allocation129_spill] sm:$0xff] %v3720_v26 }
 0x20f   : > { %4655 = vst [vmem:[#allocation127_spill] sm:$0xff] %v3710_v30  ;;  %4656 = vst [vmem:[#allocation128_spill] sm:$0xff] %v3718_v7  ;;  %v3722_v33 = vpop.permute.xlu1 %1453  ;;  %1781 = vperm.xlu0 %2271, %v3522_v27   ;;  %v2510_v7 = vmov 7  }
 0x210   : > { %4658 = vst [vmem:[#allocation130_spill] sm:$0xff] %v3722_v33 }
 0x211   : > { %v3727_v23 = vpop.permute.xlu0 %1465 }
 0x212   : > { %982 = vrot.lane.b32.xlu1 %v3611_v47, %s2495_s16  ;;  %4659 = vst [vmem:[#allocation131_spill] sm:$0xff] %v3727_v23 }
 0x213   : > { %v3729_v55 = vpop.permute.xlu1 %1461  ;;  %1793 = vperm.xlu0 %2271, %v3434_v57   ;;  %v4696_v57 = vld [vmem:[#allocation23_spill] sm:$0xff] }
 0x214   : > { %4660 = vst [vmem:[#allocation132_spill] sm:$0xff] %v3729_v55 }
 0x215   : > { %v3734_v43 = vpop.permute.xlu0 %1473 }
 0x216   : > { %986 = vrot.lane.b32.xlu1 %v3704_v25, %s2495_s16  ;;  %4661 = vst [vmem:[#allocation133_spill] sm:$0xff] %v3734_v43 }
 0x217   : > { %v3736_v50 = vpop.permute.xlu1 %1469  ;;  %2274 = vset.pattern.permute.xlu0 %v2510_v7 }
 0x218   : > { %4662 = vst [vmem:[#allocation134_spill] sm:$0xff] %v3736_v50  ;;  %1829 = vperm.xlu0 %2274, %v3348_v37  }
 0x21a   : > { %1925 = vperm.xlu1 %2270, %v3323_v22   ;;  %v3740_v45 = vpop.permute.xlu0 %1497 }
 0x21b   : > { %4663 = vst [vmem:[#allocation135_spill] sm:$0xff] %v3740_v45 }
 0x21c   : > { %v3742_v10 = vpop.permute.xlu1 %1493 }
 0x21d   : > { %4664 = vst [vmem:[#allocation136_spill] sm:$0xff] %v3742_v10 }
 0x21e   : > { %2272 = vset.pattern.permute.xlu1 %v4654_v24  ;;  %v3746_v0 = vpop.permute.xlu0 %1509 }
 0x21f   : > { %1789 = vperm.xlu1 %2272, %v3323_v22   ;;  %4665 = vst [vmem:[#allocation137_spill] sm:$0xff] %v3746_v0 }
 0x220   : > { %v3748_v29 = vpop.permute.xlu1 %1501 }
 0x221   : > { %4666 = vst [vmem:[#allocation138_spill] sm:$0xff] %v3748_v29 }
 0x222   : > { %v3753_v30 = vpop.permute.xlu0 %1517 }
 0x223   : > { %2273 = vset.pattern.permute.xlu1 %v2510_v7  ;;  %4668 = vst [vmem:[#allocation140_spill] sm:$0xff] %v3753_v30 }
 0x224   : > { %v3750_v43 = vpop.permute.xlu1 %1505  ;;  %1821 = vperm.xlu1 %2273, %v3327_v32  }
 0x225   : > { %4667 = vst [vmem:[#allocation139_spill] sm:$0xff] %v3750_v43 }
 0x227   : > { %v3758_v10 = vpop.permute.xlu0 %1549 }
 0x228   : > { %v3755_v23 = vpop.permute.xlu1 %1513  ;;  %1825 = vperm.xlu1 %2273, %v3471_v54   ;;  %v4695_v54 = vld [vmem:[#allocation2_spill] sm:$0xff] }
 0x229   : > { %4669 = vst [vmem:[#allocation141_spill] sm:$0xff] %v3755_v23 }
 0x22b   : > { %v3763_v0 = vpop.permute.xlu0 %1561 }
 0x22c   : > { %v3760_v24 = vpop.permute.xlu1 %1521  ;;  %1833 = vperm.xlu1 %2273, %v3373_v49  }
 0x22d   : > { %4670 = vst [vmem:[#allocation142_spill] sm:$0xff] %v3760_v24 }
 0x22f   : > { %v3766_v7 = vpop.permute.xlu0 %1569 }
 0x230   : > { %1837 = vperm.xlu1 %2273, %v3522_v27  }
 0x231   : > { %v3768_v29 = vpop.permute.xlu1 %1553 }
 0x233   : > { %v3770_v48 = vpop.permute.xlu0 %1577 }
 0x235   : > { %v3772_v30 = vpop.permute.xlu1 %1557 }
 0x238   : > { %v3776_v43 = vpop.permute.xlu0 %1633 }
 0x239   : > { %v3774_v23 = vpop.permute.xlu1 %1565 }
 0x23c   : > { %v3780_v24 = vpop.permute.xlu0 %1645 }
 0x23d   : > { %v3778_v26 = vpop.permute.xlu1 %1573 }
 0x240   : > { %v3782_v51 = vpop.permute.xlu0 %1653 }
 0x242   : > { %v3784_v45 = vpop.permute.xlu1 %1629 }
 0x245   : > { %v3788_v61 = vpop.permute.xlu0 %1717 }
 0x246   : > { %v3786_v9 = vpop.permute.xlu1 %1637  ;;  %4671 = vst [vmem:[#allocation143_spill] sm:$0xff] %v3788_v61 }
 0x249   : > { %v3792_v58 = vpop.permute.xlu0 %1729 }
 0x24a   : > { %v3790_v50 = vpop.permute.xlu1 %1641  ;;  %4672 = vst [vmem:[#allocation144_spill] sm:$0xff] %v3792_v58 }
 0x24d   : > { %v3796_v52 = vpop.permute.xlu0 %1737 }
 0x24e   : > { %v3794_v55 = vpop.permute.xlu1 %1649  ;;  %4673 = vst [vmem:[#allocation145_spill] sm:$0xff] %v3796_v52 }
 0x251   : > { %v3800_v38 = vpop.permute.xlu0 %1745 }
 0x252   : > { %v3798_v33 = vpop.permute.xlu1 %1657  ;;  %4674 = vst [vmem:[#allocation146_spill] sm:$0xff] %v3800_v38  ;;  %v4683_v38 = vld [vmem:[#allocation36_spill] sm:$0xff] }
 0x256   : > { %v3804_v18 = vpop.permute.xlu0 %1901 }
 0x257   : > { %v3802_v14 = vpop.permute.xlu1 %1721  ;;  %4676 = vst [vmem:[#allocation148_spill] sm:$0xff] %v3804_v18  ;;  %v4685_v18 = vld [vmem:[#allocation26_spill] sm:$0xff] }
 0x258   : > { %4675 = vst [vmem:[#allocation147_spill] sm:$0xff] %v3802_v14 }
 0x25a   : > { %v3808_v25 = vpop.permute.xlu0 %1913 }
 0x25b   : > { %v3806_v34 = vpop.permute.xlu1 %1725  ;;  %4678 = vst [vmem:[#allocation150_spill] sm:$0xff] %v3808_v25 }
 0x25c   : > { %4677 = vst [vmem:[#allocation149_spill] sm:$0xff] %v3806_v34 }
 0x25e   : > { %v3814_v58 = vpop.permute.xlu0 %1921 }
 0x25f   : > { %v3810_v61 = vpop.permute.xlu1 %1733  ;;  %4681 = vst [vmem:[#allocation153_spill] sm:$0xff] %v3814_v58  ;;  %v4687_v58 = vld [vmem:[#allocation25_spill] sm:$0xff] }
 0x260   : > { %4679 = vst [vmem:[#allocation151_spill] sm:$0xff] %v3810_v61 }
 0x263   : > { %v3812_v62 = vpop.permute.xlu1 %1741 }
 0x264   : > { %4680 = vst [vmem:[#allocation152_spill] sm:$0xff] %v3812_v62 }
 0x268   : > { %v3816_v15 = vpop.permute.xlu1 %1765  ;;  %v3818_v52 = vpop.permute.xlu0 %972 }
 0x269   : > { %4682 = vst [vmem:[#allocation154_spill] sm:$0xff] %v3816_v15  ;;  %v996_v47 = vmul.f32 %v4683_v38, %v3818_v52 }
 0x26b   : > { %v1036_v53 = vmul.f32 %v4685_v18, %v996_v47  ;;  %v4689_v18 = vld [vmem:[#allocation27_spill] sm:$0xff] }
 0x26c   : > { %v3822_v14 = vpop.permute.xlu1 %1773  ;;  %v3825_v34 = vpop.permute.xlu0 %976 }
 0x26d   : > { %4684 = vst [vmem:[#allocation36_spill] sm:$0xff] %v3822_v14  ;;  %v998_v61 = vmul.f32 %v3011_v6, %v3825_v34  ;;  %1052 = vrot.lane.b32.xlu1 %v1036_v53, %s2495_s16  ;;  %v4690_v53 = vld [vmem:[#allocation29_spill] sm:$0xff] }
 0x26f   : > { %v1038_v15 = vmul.f32 %v4687_v58, %v998_v61 }
 0x270   : > { %v3830_v62 = vpop.permute.xlu1 %1777  ;;  %v3833_v60 = vpop.permute.xlu0 %980 }
 0x271   : > { %4686 = vst [vmem:[#allocation26_spill] sm:$0xff] %v3830_v62  ;;  %v1000_v38 = vmul.f32 %v3027_v5, %v3833_v60  ;;  %1056 = vrot.lane.b32.xlu1 %v1038_v15, %s2495_s16 }
 0x273   : > { %v1040_v27 = vmul.f32 %v4689_v18, %v1000_v38 }
 0x274   : > { %v3838_v14 = vpop.permute.xlu1 %1785  ;;  %v3841_v25 = vpop.permute.xlu0 %984 }
 0x275   : > { %4688 = vst [vmem:[#allocation25_spill] sm:$0xff] %v3838_v14  ;;  %v1002_v6 = vmul.f32 %v3045_v11, %v3841_v25  ;;  %1060 = vrot.lane.b32.xlu1 %v1040_v27, %s2495_s16 }
 0x277   : > { %v1042_v58 = vmul.f32 %v4690_v53, %v1002_v6 }
 0x279   : > { %v3847_v62 = vpop.permute.xlu1 %1905  ;;  %1064 = vrot.lane.b32.xlu1 %v1042_v58, %s2495_s16 }
 0x27a   : > { %4691 = vst [vmem:[#allocation27_spill] sm:$0xff] %v3847_v62 }
 0x27d   : > { %v3850_v5 = vpop.permute.xlu1 %1909 }
 0x27e   : > { %4692 = vst [vmem:[#allocation29_spill] sm:$0xff] %v3850_v5  ;;  %v4698_v5 = vld [vmem:[#allocation3_spill] sm:$0xff] }
 0x281   : > { %v3852_v15 = vpop.permute.xlu1 %1917  ;;  %v3854_v14 = vpop.permute.xlu0 %1929 }
 0x282   : > { %4693 = vst [vmem:[#allocation155_spill] sm:$0xff] %v3852_v15  ;;  %4694 = vst [vmem:[#allocation156_spill] sm:$0xff] %v3854_v14 }
 0x285   : > { %v3856_v18 = vpop.permute.xlu1 %974 }
 0x286   : > { %v997_v16 = vmul.f32 %v4695_v54, %v3856_v18  ;;  %v1770_v11 = vpop.permute.xlu0 %1769 }
 0x287   : > { %v3863_v62 = vmul.f32 %v1770_v11, %v3576_v56  ;;  %v4702_v11 = vld [vmem:[#allocation30_spill] sm:$0xff] }
 0x288   : > { %v1037_v27 = vmul.f32 %v4696_v57, %v997_v16  ;;  %v1117_v53 = vmul.f32 %v4697_v41, %v997_v16 }
 0x289   : > { %v3865_v58 = vpop.permute.xlu1 %978 }
 0x28a   : > { %v999_v15 = vmul.f32 %v4698_v5, %v3865_v58  ;;  %1054 = vrot.lane.b32.xlu0 %v1037_v27, %s2495_s16  ;;  %1134 = vrot.lane.b32.xlu1 %v1117_v53, %s2495_s16  ;;  %v1782_v14 = vpop.permute.xlu0 %1781 }
 0x28b   : > { %v3874_v57 = vmul.f32 %v1782_v14, %v3647_v36 }
 0x28c   : > { %v1039_v54 = vmul.f32 %v4699_v2, %v999_v15  ;;  %v1119_v49 = vmul.f32 %v4700_v46, %v999_v15 }
 0x28d   : > { %4701 = vst [vmem:[#allocation2_spill] sm:$0xff] %v3874_v57  ;;  %v3876_v41 = vpop.permute.xlu1 %982  ;;  %v4707_v57 = vld [vmem:[#allocation78_spill] sm:$0xff] }
 0x28e   : > { %v1001_v16 = vmul.f32 %v3019_v3, %v3876_v41  ;;  %1058 = vrot.lane.b32.xlu0 %v1039_v54, %s2495_s16  ;;  %1138 = vrot.lane.b32.xlu1 %v1119_v49, %s2495_s16  ;;  %v1794_v5 = vpop.permute.xlu0 %1793  ;;  %v4703_v3 = vld [vmem:[#allocation32_spill] sm:$0xff]  ;;  %v4704_v54 = vld [vmem:[#allocation5_spill] sm:$0xff] }
 0x28f   : > { %v3885_v2 = vmul.f32 %v1794_v5, %v3713_v28  ;;  %v4706_v5 = vld [vmem:[#allocation37_spill] sm:$0xff] }
 0x290   : > { %v1041_v27 = vmul.f32 %v4702_v11, %v1001_v16  ;;  %v1121_v53 = vmul.f32 %v3057_v13, %v1001_v16  ;;  %v1268_v11 = vmul.f32 %v4704_v54, %v3818_v52  ;;  %v4705_v13 = vld [vmem:[#allocation31_spill] sm:$0xff]  ;;  %v4710_v54 = vld [vmem:[#allocation77_spill] sm:$0xff] }
 0x291   : > { %v3887_v46 = vpop.permute.xlu1 %986  ;;  %v1116_v16 = vmul.f32 %v4705_v13, %v996_v47  ;;  %v4711_v47 = vld [vmem:[#allocation47_spill] sm:$0xff] }
 0x292   : > { %v1003_v14 = vmul.f32 %v3035_v42, %v3887_v46  ;;  %1062 = vrot.lane.b32.xlu0 %v1041_v27, %s2495_s16  ;;  %1142 = vrot.lane.b32.xlu1 %v1121_v53, %s2495_s16  ;;  %v1270_v42 = vmul.f32 %v4706_v5, %v3825_v34  ;;  %v1308_v27 = vmul.f32 %v4707_v57, %v1268_v11  ;;  %v4708_v53 = vld [vmem:[#allocation33_spill] sm:$0xff]  ;;  %v4712_v13 = vld [vmem:[#allocation43_spill] sm:$0xff] }
 0x293   : > { %v1274_v57 = vmul.f32 %v4712_v13, %v3841_v25  ;;  %v4713_v5 = vld [vmem:[#allocation79_spill] sm:$0xff] }
 0x294   : > { %v1043_v15 = vmul.f32 %v4703_v3, %v1003_v14  ;;  %v1123_v49 = vmul.f32 %v3073_v1, %v1003_v14  ;;  %v1118_v1 = vmul.f32 %v4708_v53, %v998_v61  ;;  %v4709_v14 = vld [vmem:[#allocation39_spill] sm:$0xff]  ;;  %v4714_v61 = vld [vmem:[#allocation4_spill] sm:$0xff] }
 0x295   : > { %v1272_v3 = vmul.f32 %v4709_v14, %v3833_v60  ;;  %v4715_v53 = vld [vmem:[#allocation52_spill] sm:$0xff] }
 0x296   : > { %1066 = vrot.lane.b32.xlu0 %v1043_v15, %s2495_s16  ;;  %1146 = vrot.lane.b32.xlu1 %v1123_v49, %s2495_s16  ;;  %v1310_v15 = vmul.f32 %v4710_v54, %v1270_v42  ;;  %v1120_v49 = vmul.f32 %v4711_v47, %v1000_v38  ;;  %v1122_v14 = vmul.f32 %v4715_v53, %v1002_v6  ;;  %v4716_v54 = vld [vmem:[#allocation81_spill] sm:$0xff]  ;;  %v4717_v38 = vld [vmem:[#allocation6_spill] sm:$0xff]  ;;  %v4718_v47 = vld [vmem:[#allocation75_spill] sm:$0xff] }
 0x29a   : > { %1132 = vrot.lane.b32.xlu0 %v1116_v16, %s2495_s16  ;;  %1324 = vrot.lane.b32.xlu1 %v1308_v27, %s2495_s16  ;;  %v1312_v16 = vmul.f32 %v4713_v5, %v1272_v3  ;;  %v1269_v27 = vmul.f32 %v4714_v61, %v3856_v18  ;;  %v4719_v5 = vld [vmem:[#allocation38_spill] sm:$0xff] }
 0x29b   : > { %v1273_v6 = vmul.f32 %v4719_v5, %v3876_v41 }
 0x29c   : > { %v1309_v13 = vmul.f32 %v4718_v47, %v1269_v27 }
 0x29e   : > { %1136 = vrot.lane.b32.xlu0 %v1118_v1, %s2495_s16  ;;  %1328 = vrot.lane.b32.xlu1 %v1310_v15, %s2495_s16  ;;  %v1314_v1 = vmul.f32 %v4716_v54, %v1274_v57  ;;  %v1271_v15 = vmul.f32 %v4717_v38, %v3865_v58  ;;  %v4723_v38 = vld [vmem:[#allocation84_spill] sm:$0xff] }
 0x2a0   : > { %v1391_v53 = vmul.f32 %v3635_v44, %v1271_v15 }
 0x2a2   : > { %1140 = vrot.lane.b32.xlu0 %v1120_v49, %s2495_s16  ;;  %1332 = vrot.lane.b32.xlu1 %v1312_v16, %s2495_s16  ;;  %v1389_v49 = vmul.f32 %v3632_v4, %v1269_v27  ;;  %v4720_v16 = vld [vmem:[#allocation80_spill] sm:$0xff]  ;;  %v1393_v27 = vmul.f32 %v3656_v40, %v1273_v6 }
 0x2a3   : > { %v1311_v61 = vmul.f32 %v4720_v16, %v1271_v15  ;;  %v4726_v16 = vld [vmem:[#allocation48_spill] sm:$0xff] }
 0x2a4   : > { %v1542_v40 = vmul.f32 %v4726_v16, %v3825_v34 }
 0x2a6   : > { %1144 = vrot.lane.b32.xlu0 %v1122_v14, %s2495_s16  ;;  %1336 = vrot.lane.b32.xlu1 %v1314_v1, %s2495_s16  ;;  %v4721_v14 = vld [vmem:[#allocation40_spill] sm:$0xff]  ;;  %v4722_v1 = vld [vmem:[#allocation82_spill] sm:$0xff] }
 0x2a7   : > { %v1275_v54 = vmul.f32 %v4721_v14, %v3887_v46  ;;  %v1313_v4 = vmul.f32 %v4722_v1, %v1273_v6  ;;  %v1582_v14 = vmul.f32 %v3772_v30, %v1542_v40 }
 0x2a9   : > { %v1315_v47 = vmul.f32 %v4723_v38, %v1275_v54  ;;  %v1395_v15 = vmul.f32 %v3695_v8, %v1275_v54  ;;  %v3958_v54 = vpop.permute.xlu1 %1925 }
 0x2aa   : > { %1326 = vrot.lane.b32.xlu0 %v1309_v13, %s2495_s16  ;;  %1406 = vrot.lane.b32.xlu1 %v1389_v49, %s2495_s16  ;;  %v4724_v13 = vld [vmem:[#allocation44_spill] sm:$0xff]  ;;  %v4725_v49 = vld [vmem:[#allocation83_spill] sm:$0xff] }
 0x2ab   : > { %v1540_v44 = vmul.f32 %v4724_v13, %v3818_v52  ;;  %v1388_v5 = vmul.f32 %v4725_v49, %v1268_v11  ;;  %v1392_v11 = vmul.f32 %v3653_v19, %v1272_v3  ;;  %v4730_v19 = vld [vmem:[#allocation46_spill] sm:$0xff] }
 0x2ad   : > { %v1580_v6 = vmul.f32 %v3758_v10, %v1540_v44  ;;  %v4728_v10 = vld [vmem:[#allocation57_spill] sm:$0xff] }
 0x2ae   : > { %1330 = vrot.lane.b32.xlu0 %v1311_v61, %s2495_s16  ;;  %1410 = vrot.lane.b32.xlu1 %v1391_v53, %s2495_s16  ;;  %v1390_v61 = vmul.f32 %v3584_v17, %v1270_v42  ;;  %v4727_v53 = vld [vmem:[#allocation51_spill] sm:$0xff]  ;;  %v1546_v1 = vmul.f32 %v4728_v10, %v3841_v25  ;;  %v4729_v17 = vld [vmem:[#allocation42_spill] sm:$0xff]  ;;  %v1394_v42 = vmul.f32 %v3692_v12, %v1274_v57  ;;  %v4731_v12 = vld [vmem:[#allocation49_spill] sm:$0xff] }
 0x2af   : > { %v1544_v8 = vmul.f32 %v4727_v53, %v3833_v60  ;;  %v1541_v30 = vmul.f32 %v4729_v17, %v3856_v18  ;;  %v4737_v17 = vld [vmem:[#allocation7_spill] sm:$0xff] }
 0x2b0   : > { %v1586_v38 = vmul.f32 %v3778_v26, %v1546_v1  ;;  %v1545_v26 = vmul.f32 %v4731_v12, %v3876_v41 }
 0x2b1   : > { %v1581_v3 = vmul.f32 %v3768_v29, %v1541_v30  ;;  %v4732_v29 = vld [vmem:[#allocation53_spill] sm:$0xff] }
 0x2b2   : > { %1334 = vrot.lane.b32.xlu0 %v1313_v4, %s2495_s16  ;;  %1414 = vrot.lane.b32.xlu1 %v1393_v27, %s2495_s16  ;;  %v1584_v4 = vmul.f32 %v3774_v23, %v1544_v8  ;;  %v3970_v27 = vpop.permute.xlu1 %1789  ;;  %v1543_v23 = vmul.f32 %v4730_v19, %v3865_v58  ;;  %v1585_v49 = vmul.f32 %v3766_v7, %v1545_v26 }
 0x2b3   : > { %v1665_v16 = vmul.f32 %v3794_v55, %v1545_v26  ;;  %v1660_v7 = vmul.f32 %v3784_v45, %v1540_v44  ;;  %v4733_v55 = vld [vmem:[#allocation86_spill] sm:$0xff]  ;;  %v4735_v44 = vld [vmem:[#allocation89_spill] sm:$0xff]  ;;  %v4049_v19 = vmul.f32 %v3637_v31, %v3457_v20 }
 0x2b4   : > { %v1583_v57 = vmul.f32 %v3763_v0, %v1543_v23  ;;  %v4734_v45 = vld [vmem:[#allocation10_spill] sm:$0xff]  ;;  %v4745_v20 = vld [vmem:[#allocation9_spill] sm:$0xff] }
 0x2b6   : > { %1338 = vrot.lane.b32.xlu0 %v1315_v47, %s2495_s16  ;;  %1418 = vrot.lane.b32.xlu1 %v1395_v15, %s2495_s16  ;;  %v1661_v47 = vmul.f32 %v3776_v43, %v1541_v30  ;;  %v3980_v13 = vpop.permute.xlu1 %1821  ;;  %v1663_v15 = vmul.f32 %v3790_v50, %v1543_v23  ;;  %v1547_v43 = vmul.f32 %v4732_v29, %v3887_v46 }
 0x2b7   : > { %v4039_v30 = vmul.f32 %v3637_v31, %v3405_v35  ;;  %v4740_v35 = vld [vmem:[#allocation87_spill] sm:$0xff] }
 0x2b8   : > { %v1587_v0 = vmul.f32 %v3770_v48, %v1547_v43  ;;  %v1667_v50 = vmul.f32 %v3798_v33, %v1547_v43  ;;  %v1662_v48 = vmul.f32 %v3786_v9, %v1542_v40  ;;  %v4016_v33 = vmul.f32 %v3586_v59, %v3421_v39  ;;  %v4736_v39 = vld [vmem:[#allocation56_spill] sm:$0xff] }
 0x2b9   : > { %v1664_v9 = vmul.f32 %v3780_v24, %v1544_v8  ;;  %v1666_v24 = vmul.f32 %v3782_v51, %v1546_v1  ;;  %v4742_v51 = vld [vmem:[#allocation115_spill] sm:$0xff] }
 0x2ba   : > { %1404 = vrot.lane.b32.xlu0 %v1388_v5, %s2495_s16  ;;  %1596 = vrot.lane.b32.xlu1 %v1580_v6, %s2495_s16  ;;  %v3992_v5 = vpop.permute.xlu1 %1825 }
 0x2be   : > { %1408 = vrot.lane.b32.xlu0 %v1390_v61, %s2495_s16  ;;  %1600 = vrot.lane.b32.xlu1 %v1582_v14, %s2495_s16  ;;  %v4000_v6 = vpop.permute.xlu1 %1833  ;;  %v4008_v61 = vmul.f32 %v3586_v59, %v4733_v55  ;;  %v2511_v14 = vmov 17   ;;  %v1204_v59 = vmul.f32 %v4736_v39, %v4016_v33  ;;  %v4748_v55 = vld [vmem:[#allocation122_spill] sm:$0xff]  ;;  %v2512_v39 = vmov 8  }
 0x2c2   : > { %1412 = vrot.lane.b32.xlu0 %v1392_v11, %s2495_s16  ;;  %1604 = vrot.lane.b32.xlu1 %v1584_v4, %s2495_s16  ;;  %v4011_v53 = vpop.permute.xlu1 %1837  ;;  %v4024_v11 = vmul.f32 %v3609_v21, %v4735_v44  ;;  %v4032_v4 = vmul.f32 %v3609_v21, %v3437_v63  ;;  %v4738_v63 = vld [vmem:[#allocation45_spill] sm:$0xff]  ;;  %v4750_v44 = vld [vmem:[#allocation27_spill] sm:$0xff] }
 0x2c4   : > { %v1206_v21 = vmul.f32 %v4738_v63, %v4032_v4 }
 0x2c6   : > { %1416 = vrot.lane.b32.xlu0 %v1394_v42, %s2495_s16  ;;  %1608 = vrot.lane.b32.xlu1 %v1586_v38, %s2495_s16 }
 0x2ca   : > { %1598 = vrot.lane.b32.xlu0 %v1581_v3, %s2495_s16  ;;  %1678 = vrot.lane.b32.xlu1 %v1661_v47, %s2495_s16  ;;  %v4741_v3 = vld [vmem:[#allocation93_spill] sm:$0xff] }
 0x2cb   : > { %v4056_v1 = vmul.f32 %v4742_v51, %v4741_v3 }
 0x2cd   : > { %v922_v31 = vmul.f32 %v4745_v20, %v4056_v1  ;;  %v4114_v20 = vld [vmem:[%s2706_s20 + $0x30] sm:$0xff] }
 0x2ce   : > { %1602 = vrot.lane.b32.xlu0 %v1583_v57, %s2495_s16  ;;  %1682 = vrot.lane.b32.xlu1 %v1663_v15, %s2495_s16  ;;  %v4743_v57 = vld [vmem:[#allocation92_spill] sm:$0xff]  ;;  %v4744_v15 = vld [vmem:[#allocation50_spill] sm:$0xff] }
 0x2cf   : > { %v1208_v29 = vmul.f32 %v4744_v15, %v4049_v19  ;;  %v4763_v15 = vld [vmem:[#allocation103_spill] sm:$0xff] }
 0x2d2   : > { %1606 = vrot.lane.b32.xlu0 %v1585_v49, %s2495_s16  ;;  %1686 = vrot.lane.b32.xlu1 %v1665_v16, %s2495_s16  ;;  %v4746_v16 = vld [vmem:[#allocation54_spill] sm:$0xff] }
 0x2d6   : > { %1610 = vrot.lane.b32.xlu0 %v1587_v0, %s2495_s16  ;;  %1690 = vrot.lane.b32.xlu1 %v1667_v50, %s2495_s16  ;;  %v4070_v0 = vmul.f32 %v4746_v16, %v3856_v18  ;;  %v4752_v18 = vld [vmem:[#allocation97_spill] sm:$0xff]  ;;  %v4765_v16 = vld [vmem:[#allocation12_spill] sm:$0xff] }
 0x2da   : > { %1676 = vrot.lane.b32.xlu0 %v1660_v7, %s2495_s16  ;;  %1845 = vperm.xlu1 %2273, %v3323_v22   ;;  %v916_v22 = vmul.f32 %v4734_v45, %v4008_v61  ;;  %v4747_v7 = vld [vmem:[#allocation95_spill] sm:$0xff] }
 0x2de   : > { %1680 = vrot.lane.b32.xlu0 %v1662_v48, %s2495_s16  ;;  %2275 = vset.pattern.permute.xlu1 %v2511_v14  ;;  %v4749_v48 = vld [vmem:[#allocation55_spill] sm:$0xff] }
 0x2df   : > { %2037 = vperm.xlu1 %2275, %v3327_v32   ;;  %v1053_v40 = vpop.permute.xlu1 %1052  ;;  %v918_v32 = vmul.f32 %v4737_v17, %v4024_v11  ;;  %v1210_v45 = vmul.f32 %v4749_v48, %v4748_v55 }
 0x2e0   : > { %v1076_v10 = vadd.f32 %v1053_v40, %v916_v22  ;;  %v4751_v40 = vld [vmem:[#allocation59_spill] sm:$0xff] }
 0x2e2   : > { %1684 = vrot.lane.b32.xlu0 %v1664_v9, %s2495_s16  ;;  %v4042_v8 = vadd.f32 %v1204_v59, %v1076_v10  ;;  %v1933_v9 = vmul.f32 %v4750_v44, %v4070_v0  ;;  %v4082_v10 = vmul.f32 %v4751_v40, %v3865_v58  ;;  %v4753_v59 = vld [vmem:[#allocation63_spill] sm:$0xff]  ;;  %v4756_v58 = vld [vmem:[#allocation85_spill] sm:$0xff] }
 0x2e3   : > { %2045 = vperm.xlu1 %2275, %v3348_v37   ;;  %v1057_v42 = vpop.permute.xlu1 %1056  ;;  %v4739_v37 = vld [vmem:[#allocation8_spill] sm:$0xff]  ;;  %v4089_v17 = vmul.f32 %v4753_v59, %v3876_v41  ;;  %v4760_v41 = vld [vmem:[#allocation67_spill] sm:$0xff] }
 0x2e4   : > { %v1078_v38 = vadd.f32 %v1057_v42, %v918_v32  ;;  %v920_v23 = vmul.f32 %v4739_v37, %v4039_v30  ;;  %v4754_v32 = vld [vmem:[#allocation150_spill] sm:$0xff]  ;;  %v4758_v37 = vld [vmem:[#allocation91_spill] sm:$0xff]  ;;  %v4107_v51 = vmul.f32 %v4760_v41, %v3887_v46  ;;  %v4766_v46 = vld [vmem:[#allocation72_spill] sm:$0xff] }
 0x2e5   : > { %v4755_v42 = vld [vmem:[#allocation98_spill] sm:$0xff] }
 0x2e6   : > { %1688 = vrot.lane.b32.xlu0 %v1666_v24, %s2495_s16  ;;  %v4058_v47 = vadd.f32 %v1206_v21, %v1078_v38  ;;  %v1935_v24 = vmul.f32 %v4754_v32, %v4082_v10  ;;  %v4757_v38 = vld [vmem:[#allocation100_spill] sm:$0xff]  ;;  %v4096_v21 = vpop.permute.xlu0 %1829  ;;  %v4772_v41 = vld [vmem:[#allocation62_spill] sm:$0xff] }
 0x2e7   : > { %2049 = vperm.xlu1 %2275, %v4740_v35   ;;  %v1061_v12 = vpop.permute.xlu1 %1060  ;;  %v869_v63 = vmul.f32 %v4757_v38, %v4756_v58  ;;  %v4759_v35 = vld [vmem:[#allocation58_spill] sm:$0xff] }
 0x2e8   : > { %v1080_v26 = vadd.f32 %v1061_v12, %v920_v23  ;;  %v1165_v23 = vmul.f32 %v4757_v38, %v4758_v37  ;;  %v4103_v3 = vmul.f32 %v4759_v35, %v3818_v52  ;;  %v4761_v12 = vld [vmem:[#allocation153_spill] sm:$0xff]  ;;  %v4770_v38 = vld [vmem:[#allocation156_spill] sm:$0xff] }
 0x2e9   : > { %v1939_v37 = vmul.f32 %v4770_v38, %v4107_v51 }
 0x2ea   : > { %1841 = vperm.xlu0 %2274, %v4743_v57   ;;  %v4066_v43 = vadd.f32 %v1208_v29, %v1080_v26  ;;  %v1937_v26 = vmul.f32 %v4761_v12, %v4089_v17  ;;  %v1253_v48 = vmul.f32 %v4766_v46, %v1165_v23  ;;  %v4131_v12 = vmul.f32 %v4772_v41, %v3825_v34 }
 0x2eb   : > { %2057 = vperm.xlu1 %2275, %v4743_v57   ;;  %v1065_v49 = vpop.permute.xlu1 %1064  ;;  %v4762_v57 = vld [vmem:[#allocation88_spill] sm:$0xff] }
 0x2ec   : > { %v1082_v50 = vadd.f32 %v1065_v49, %v922_v31  ;;  %v871_v29 = vmul.f32 %v4763_v15, %v4762_v57  ;;  %v4764_v31 = vld [vmem:[#allocation20_spill] sm:$0xff] }
 0x2ed   : > { %v957_v49 = vmul.f32 %v4764_v31, %v869_v63 }
 0x2ee   : > { %1849 = vperm.xlu0 %2274, %v4747_v7   ;;  %v4076_v22 = vadd.f32 %v1210_v45, %v1082_v50  ;;  %v917_v50 = vmul.f32 %v4765_v16, %v869_v63  ;;  %v4767_v45 = vld [vmem:[#allocation41_spill] sm:$0xff]  ;;  %v4771_v63 = vld [vmem:[#allocation14_spill] sm:$0xff] }
 0x2ef   : > { %2065 = vperm.xlu1 %2275, %v4747_v7   ;;  %v1205_v44 = vmul.f32 %v4767_v45, %v1165_v23  ;;  %v919_v35 = vmul.f32 %v4771_v63, %v871_v29  ;;  %v4773_v23 = vld [vmem:[#allocation90_spill] sm:$0xff]  ;;  %v4777_v45 = vld [vmem:[#allocation61_spill] sm:$0xff] }
 0x2f0   : > { %v4783_v63 = vld [vmem:[#allocation126_spill] sm:$0xff] }
 0x2f2   : > { %2276 = vset.pattern.permute.xlu0 %v2511_v14 }
 0x2f3   : > { %2041 = vperm.xlu0 %2276, %v4752_v18   ;;  %1950 = vrot.lane.b32.xlu1 %v1933_v9, %s2495_s16  ;;  %v4768_v9 = vld [vmem:[#allocation148_spill] sm:$0xff] }
 0x2f4   : > { %2278 = vset.pattern.permute.xlu1 %v2512_v39  ;;  %v1932_v40 = vmul.f32 %v4768_v9, %v4103_v3 }
 0x2f7   : > { %2053 = vperm.xlu0 %2276, %v4755_v42   ;;  %1954 = vrot.lane.b32.xlu1 %v1935_v24, %s2495_s16  ;;  %v4769_v24 = vld [vmem:[#allocation94_spill] sm:$0xff] }
 0x2f8   : > { %v1167_v58 = vmul.f32 %v4763_v15, %v4769_v24  ;;  %v4775_v15 = vld [vmem:[#allocation17_spill] sm:$0xff] }
 0x2f9   : > { %v959_v16 = vmul.f32 %v4775_v15, %v871_v29 }
 0x2fa   : > { %v1207_v9 = vmul.f32 %v4777_v45, %v1167_v58  ;;  %v4787_v45 = vld [vmem:[#allocation11_spill] sm:$0xff] }
 0x2fb   : > { %2061 = vperm.xlu0 %2276, %v4114_v20   ;;  %1958 = vrot.lane.b32.xlu1 %v1937_v26, %s2495_s16  ;;  %v4774_v26 = vld [vmem:[#allocation108_spill] sm:$0xff] }
 0x2fc   : > { %v1135_v52 = vpop.permute.xlu1 %1134  ;;  %v1055_v7 = vpop.permute.xlu0 %1054  ;;  %v873_v57 = vmul.f32 %v4774_v26, %v4773_v23  ;;  %v4784_v23 = vld [vmem:[#allocation19_spill] sm:$0xff] }
 0x2fd   : > { %v1157_v59 = vadd.f32 %v1135_v52, %v957_v49  ;;  %v1077_v32 = vadd.f32 %v1055_v7, %v917_v50  ;;  %v4776_v52 = vld [vmem:[#allocation29_spill] sm:$0xff] }
 0x2fe   : > { %v1934_v7 = vmul.f32 %v4776_v52, %v4131_v12 }
 0x2ff   : > { %1948 = vrot.lane.b32.xlu0 %v1932_v40, %s2495_s16  ;;  %v4136_v31 = vadd.f32 %v1253_v48, %v1157_v59  ;;  %v4138_v49 = vadd.f32 %v1205_v44, %v1077_v32  ;;  %1962 = vrot.lane.b32.xlu1 %v1939_v37, %s2495_s16  ;;  %v4778_v40 = vld [vmem:[#allocation96_spill] sm:$0xff]  ;;  %v4779_v59 = vld [vmem:[#allocation69_spill] sm:$0xff]  ;;  %v4780_v32 = vld [vmem:[#allocation66_spill] sm:$0xff] }
 0x300   : > { %v1059_v50 = vpop.permute.xlu0 %1058  ;;  %2277 = vset.pattern.permute.xlu0 %v2512_v39  ;;  %v1139_v34 = vpop.permute.xlu1 %1138  ;;  %v1169_v24 = vmul.f32 %v4774_v26, %v4778_v40  ;;  %v1255_v44 = vmul.f32 %v4779_v59, %v1167_v58  ;;  %v4150_v38 = vmul.f32 %v4780_v32, %v3833_v60  ;;  %v4781_v39 = vld [vmem:[#allocation16_spill] sm:$0xff]  ;;  %v4782_v37 = vld [vmem:[#allocation99_spill] sm:$0xff]  ;;  %v961_v26 = vmul.f32 %v4784_v23, %v873_v57 }
 0x301   : > { %v1079_v46 = vadd.f32 %v1059_v50, %v919_v35  ;;  %v1159_v48 = vadd.f32 %v1139_v34, %v959_v16  ;;  %v921_v29 = vmul.f32 %v4781_v39, %v873_v57  ;;  %v875_v41 = vmul.f32 %v4783_v63, %v4782_v37  ;;  %v4785_v60 = vld [vmem:[#allocation155_spill] sm:$0xff]  ;;  %v4790_v57 = vld [vmem:[#allocation18_spill] sm:$0xff]  ;;  %v2481_v39 = vld [vmem:[%s2706_s20 + $0x10] sm:$0xff] }
 0x302   : > { %v1936_v16 = vmul.f32 %v4785_v60, %v4150_v38  ;;  %v1171_v40 = vmul.f32 %v4783_v63, %v4787_v45 }
 0x303   : > { %1952 = vrot.lane.b32.xlu0 %v1934_v7, %s2495_s16  ;;  %v4156_v35 = vadd.f32 %v1207_v9, %v1079_v46  ;;  %1993 = vperm.xlu1 %2278, %v4752_v18   ;;  %v4160_v58 = vadd.f32 %v1255_v44, %v1159_v48  ;;  %v4786_v7 = vld [vmem:[#allocation65_spill] sm:$0xff]  ;;  %v4788_v9 = vld [vmem:[#allocation71_spill] sm:$0xff]  ;;  %v4789_v18 = vld [vmem:[#allocation68_spill] sm:$0xff]  ;;  %v923_v48 = vmul.f32 %v4790_v57, %v875_v41 }
 0x304   : > { %v1063_v15 = vpop.permute.xlu0 %1062  ;;  %v1143_v50 = vpop.permute.xlu1 %1142  ;;  %v1209_v34 = vmul.f32 %v4786_v7, %v1169_v24  ;;  %v1257_v59 = vmul.f32 %v4788_v9, %v1169_v24  ;;  %v4170_v32 = vmul.f32 %v4789_v18, %v3841_v25  ;;  %v4796_v57 = vld [vmem:[#allocation104_spill] sm:$0xff] }
 0x305   : > { %v1081_v52 = vadd.f32 %v1063_v15, %v921_v29  ;;  %v1161_v46 = vadd.f32 %v1143_v50, %v961_v26  ;;  %v4791_v29 = vld [vmem:[#allocation21_spill] sm:$0xff]  ;;  %v4792_v26 = vld [vmem:[#allocation70_spill] sm:$0xff] }
 0x306   : > { %v963_v37 = vmul.f32 %v4791_v29, %v875_v41  ;;  %v1938_v24 = vmul.f32 %v3958_v54, %v4170_v32  ;;  %v1211_v60 = vmul.f32 %v4792_v26, %v1171_v40  ;;  %v4793_v50 = vld [vmem:[#allocation73_spill] sm:$0xff]  ;;  %v2482_v29 = vld [vmem:[%s2706_s20] sm:$0xff] }
 0x307   : > { %1956 = vrot.lane.b32.xlu0 %v1936_v16, %s2495_s16  ;;  %v4174_v44 = vadd.f32 %v1209_v34, %v1081_v52  ;;  %1997 = vperm.xlu1 %2278, %v2481_v39   ;;  %v4178_v15 = vadd.f32 %v1257_v59, %v1161_v46  ;;  %v1259_v7 = vmul.f32 %v4793_v50, %v1171_v40  ;;  %v4794_v52 = vld [vmem:[#allocation13_spill] sm:$0xff]  ;;  %v4795_v59 = vld [vmem:[#allocation60_spill] sm:$0xff] }
 0x308   : > { %v1067_v23 = vpop.permute.xlu0 %1066  ;;  %v1147_v63 = vpop.permute.xlu1 %1146  ;;  %v956_v34 = vmul.f32 %v4794_v52, %v4008_v61  ;;  %v1252_v18 = vmul.f32 %v4795_v59, %v4016_v33  ;;  %v4798_v61 = vld [vmem:[#allocation15_spill] sm:$0xff]  ;;  %v1852_v50 = vmul.f32 %v3980_v13, %v4103_v3  ;;  %v4803_v59 = vld [vmem:[#allocation74_spill] sm:$0xff]  ;;  %v4804_v13 = vld [vmem:[#allocation113_spill] sm:$0xff] }
 0x309   : > { %v1083_v25 = vadd.f32 %v1067_v23, %v923_v48  ;;  %v1163_v16 = vadd.f32 %v1147_v63, %v963_v37  ;;  %v4797_v48 = vld [vmem:[#allocation124_spill] sm:$0xff]  ;;  %v958_v37 = vmul.f32 %v4798_v61, %v4024_v11 }
 0x30a   : > { %v1476_v40 = vmul.f32 %v4797_v48, %v4796_v57  ;;  %v4805_v3 = vld [vmem:[#allocation132_spill] sm:$0xff]  ;;  %v1854_v48 = vmul.f32 %v4096_v21, %v4131_v12  ;;  %v4809_v12 = vld [vmem:[#allocation134_spill] sm:$0xff] }
 0x30b   : > { %1960 = vrot.lane.b32.xlu0 %v1938_v24, %s2495_s16  ;;  %v4187_v41 = vadd.f32 %v1211_v60, %v1083_v25  ;;  %2005 = vperm.xlu1 %2278, %v4755_v42   ;;  %v4190_v46 = vadd.f32 %v1259_v7, %v1163_v16  ;;  %v4799_v25 = vld [vmem:[#allocation64_spill] sm:$0xff]  ;;  %v4800_v60 = vld [vmem:[#allocation109_spill] sm:$0xff]  ;;  %v4801_v16 = vld [vmem:[#allocation130_spill] sm:$0xff] }
 0x30c   : > { %v1133_v45 = vpop.permute.xlu0 %1132  ;;  %v1325_v54 = vpop.permute.xlu1 %1324  ;;  %v1254_v26 = vmul.f32 %v4799_v25, %v4032_v4  ;;  %v2483_v7 = vld [vmem:[%s2706_s20 + $0x18] sm:$0xff]  ;;  %v4808_v21 = vld [vmem:[#allocation120_spill] sm:$0xff] }
 0x30d   : > { %v1156_v9 = vadd.f32 %v1133_v45, %v956_v34  ;;  %v1348_v39 = vadd.f32 %v1325_v54, %v4042_v8  ;;  %v1478_v8 = vmul.f32 %v4801_v16, %v4800_v60  ;;  %v2485_v16 = vld [vmem:[%s2706_s20 + $0x38] sm:$0xff] }
 0x30f   : > { %1989 = vperm.xlu0 %2277, %v2482_v29   ;;  %v4200_v42 = vadd.f32 %v1252_v18, %v1156_v9  ;;  %2013 = vperm.xlu1 %2278, %v4114_v20   ;;  %v4203_v24 = vadd.f32 %v1476_v40, %v1348_v39  ;;  %v4802_v20 = vld [vmem:[#allocation22_spill] sm:$0xff]  ;;  %v1256_v18 = vmul.f32 %v4803_v59, %v4049_v19  ;;  %v2484_v40 = vld [vmem:[%s2706_s20 + $0x28] sm:$0xff]  ;;  %v4806_v39 = vld [vmem:[#allocation24_spill] sm:$0xff] }
 0x310   : > { %v1137_v23 = vpop.permute.xlu0 %1136  ;;  %v1329_v63 = vpop.permute.xlu1 %1328  ;;  %v960_v52 = vmul.f32 %v4802_v20, %v4039_v30  ;;  %v962_v29 = vmul.f32 %v4806_v39, %v4056_v1  ;;  %v4811_v20 = vld [vmem:[#allocation125_spill] sm:$0xff] }
 0x311   : > { %v1158_v33 = vadd.f32 %v1137_v23, %v958_v37  ;;  %v1350_v11 = vadd.f32 %v1329_v63, %v4058_v47  ;;  %v1480_v47 = vmul.f32 %v4805_v3, %v4804_v13  ;;  %v4813_v3 = vld [vmem:[#allocation106_spill] sm:$0xff] }
 0x313   : > { %2001 = vperm.xlu0 %2277, %v2483_v7   ;;  %v4215_v34 = vadd.f32 %v1254_v26, %v1158_v33  ;;  %1868 = vrot.lane.b32.xlu1 %v1852_v50, %s2495_s16  ;;  %v4218_v4 = vadd.f32 %v1478_v8, %v1350_v11  ;;  %v4807_v33 = vld [vmem:[#allocation76_spill] sm:$0xff]  ;;  %v1856_v26 = vmul.f32 %v4011_v53, %v4150_v38  ;;  %v4810_v7 = vld [vmem:[#allocation101_spill] sm:$0xff] }
 0x314   : > { %v1141_v45 = vpop.permute.xlu0 %1140  ;;  %v1333_v54 = vpop.permute.xlu1 %1332  ;;  %v1258_v25 = vmul.f32 %v4807_v33, %v4748_v55  ;;  %v1477_v55 = vmul.f32 %v4811_v20, %v4810_v7  ;;  %v4821_v20 = vld [vmem:[#allocation142_spill] sm:$0xff] }
 0x315   : > { %v1160_v9 = vadd.f32 %v1141_v45, %v960_v52  ;;  %v1352_v30 = vadd.f32 %v1333_v54, %v4066_v43  ;;  %v1482_v43 = vmul.f32 %v4809_v12, %v4808_v21  ;;  %v1853_v52 = vmul.f32 %v3992_v5, %v4070_v0 }
 0x316   : > { %v1855_v0 = vmul.f32 %v4000_v6, %v4082_v10  ;;  %v4818_v6 = vld [vmem:[#allocation141_spill] sm:$0xff] }
 0x317   : > { %2009 = vperm.xlu0 %2277, %v2484_v40   ;;  %v4230_v61 = vadd.f32 %v1256_v18, %v1160_v9  ;;  %1872 = vrot.lane.b32.xlu1 %v1854_v48, %s2495_s16  ;;  %v4233_v19 = vadd.f32 %v1480_v47, %v1352_v30  ;;  %v4814_v47 = vld [vmem:[#allocation129_spill] sm:$0xff] }
 0x318   : > { %v1145_v37 = vpop.permute.xlu0 %1144  ;;  %v1337_v23 = vpop.permute.xlu1 %1336  ;;  %v1479_v5 = vmul.f32 %v4814_v47, %v4813_v3 }
 0x319   : > { %v1162_v63 = vadd.f32 %v1145_v37, %v962_v29  ;;  %v1354_v1 = vadd.f32 %v1337_v23, %v4076_v22  ;;  %v4812_v22 = vld [vmem:[#allocation135_spill] sm:$0xff] }
 0x31a   : > { %v1525_v38 = vmul.f32 %v4812_v22, %v4810_v7  ;;  %v4817_v23 = vld [vmem:[#allocation131_spill] sm:$0xff]  ;;  %v4822_v22 = vld [vmem:[#allocation136_spill] sm:$0xff] }
 0x31b   : > { %2017 = vperm.xlu0 %2277, %v2485_v16   ;;  %v4243_v8 = vadd.f32 %v1258_v25, %v1162_v63  ;;  %1876 = vrot.lane.b32.xlu1 %v1856_v26, %s2495_s16  ;;  %v4246_v11 = vadd.f32 %v1482_v43, %v1354_v1  ;;  %v4820_v1 = vld [vmem:[#allocation133_spill] sm:$0xff] }
 0x31c   : > { %v1327_v50 = vpop.permute.xlu0 %1326  ;;  %v1407_v45 = vpop.permute.xlu1 %1406 }
 0x31d   : > { %v1349_v53 = vadd.f32 %v1327_v50, %v4138_v49  ;;  %v1429_v54 = vadd.f32 %v1407_v45, %v4136_v31  ;;  %v4815_v31 = vld [vmem:[#allocation139_spill] sm:$0xff] }
 0x31e   : > { %v1527_v30 = vmul.f32 %v4815_v31, %v4813_v3  ;;  %v4824_v3 = vld [vmem:[#allocation143_spill] sm:$0xff] }
 0x31f   : > { %1870 = vrot.lane.b32.xlu0 %v1853_v52, %s2495_s16  ;;  %v4257_v9 = vadd.f32 %v1477_v55, %v1349_v53  ;;  %v4259_v18 = vadd.f32 %v1525_v38, %v1429_v54 }
 0x320   : > { %v1331_v59 = vpop.permute.xlu0 %1330  ;;  %2279 = vset.pattern.permute.xlu0 %v2511_v14  ;;  %v1411_v49 = vpop.permute.xlu1 %1410  ;;  %v4816_v14 = vld [vmem:[#allocation111_spill] sm:$0xff] }
 0x321   : > { %v1351_v48 = vadd.f32 %v1331_v59, %v4156_v35  ;;  %v1431_v40 = vadd.f32 %v1411_v49, %v4160_v58  ;;  %v1481_v63 = vmul.f32 %v4817_v23, %v4816_v14  ;;  %v1529_v10 = vmul.f32 %v4818_v6, %v4816_v14  ;;  %v4819_v58 = vld [vmem:[#allocation127_spill] sm:$0xff]  ;;  %v4823_v59 = vld [vmem:[#allocation105_spill] sm:$0xff] }
 0x322   : > { %v1483_v16 = vmul.f32 %v4820_v1, %v4819_v58  ;;  %v1531_v55 = vmul.f32 %v4821_v20, %v4819_v58  ;;  %v1748_v47 = vmul.f32 %v4824_v3, %v4823_v59  ;;  %v4834_v3 = vld [vmem:[#allocation107_spill] sm:$0xff] }
 0x323   : > { %1874 = vrot.lane.b32.xlu0 %v1855_v0, %s2495_s16  ;;  %v1487_v39 = vadd.f32 %v1479_v5, %v1351_v48  ;;  %v1535_v37 = vadd.f32 %v1527_v30, %v1431_v40  ;;  %v4826_v40 = vld [vmem:[#allocation110_spill] sm:$0xff] }
 0x324   : > { %v1335_v29 = vpop.permute.xlu0 %1334  ;;  %v1415_v33 = vpop.permute.xlu1 %1414 }
 0x325   : > { %v1353_v25 = vadd.f32 %v1335_v29, %v4174_v44  ;;  %v1433_v35 = vadd.f32 %v1415_v33, %v4178_v15  ;;  %v1524_v15 = vmul.f32 %v4822_v22, %v4796_v57  ;;  %v4827_v57 = vld [vmem:[#allocation149_spill] sm:$0xff] }
 0x326   : > { %v1750_v29 = vmul.f32 %v4827_v57, %v4826_v40  ;;  %v4837_v57 = vld [vmem:[#allocation112_spill] sm:$0xff] }
 0x327   : > { %v1489_v12 = vadd.f32 %v1481_v63, %v1353_v25  ;;  %v1537_v26 = vadd.f32 %v1529_v10, %v1433_v35 }
 0x328   : > { %v1339_v43 = vpop.permute.xlu0 %1338  ;;  %v1419_v50 = vpop.permute.xlu1 %1418 }
 0x329   : > { %v1355_v7 = vadd.f32 %v1339_v43, %v4187_v41  ;;  %v1435_v52 = vadd.f32 %v1419_v50, %v4190_v46  ;;  %v4825_v46 = vld [vmem:[#allocation138_spill] sm:$0xff] }
 0x32a   : > { %v1526_v48 = vmul.f32 %v4825_v46, %v4800_v60  ;;  %v4829_v60 = vld [vmem:[#allocation151_spill] sm:$0xff]  ;;  %v4836_v46 = vld [vmem:[#allocation26_spill] sm:$0xff] }
 0x32b   : > { %v1491_v44 = vadd.f32 %v1483_v16, %v1355_v7  ;;  %v1539_v53 = vadd.f32 %v1531_v55, %v1435_v52  ;;  %v1752_v10 = vmul.f32 %v4829_v60, %v3647_v36  ;;  %v4831_v7 = vld [vmem:[#allocation121_spill] sm:$0xff]  ;;  %v4840_v60 = vld [vmem:[#allocation146_spill] sm:$0xff] }
 0x32c   : > { %v1405_v45 = vpop.permute.xlu0 %1404  ;;  %v1597_v38 = vpop.permute.xlu1 %1596 }
 0x32d   : > { %v1428_v54 = vadd.f32 %v1405_v45, %v4200_v42  ;;  %v1620_v5 = vadd.f32 %v1597_v38, %v4203_v24  ;;  %v4828_v24 = vld [vmem:[#allocation137_spill] sm:$0xff] }
 0x32e   : > { %v1528_v33 = vmul.f32 %v4828_v24, %v4804_v13  ;;  %v4832_v13 = vld [vmem:[#allocation152_spill] sm:$0xff] }
 0x32f   : > { %v1532_v41 = vadd.f32 %v1524_v15, %v1428_v54  ;;  %v4289_v49 = vadd.f32 %v1748_v47, %v1620_v5  ;;  %v1754_v20 = vmul.f32 %v4832_v13, %v4831_v7  ;;  %v4835_v47 = vld [vmem:[#allocation144_spill] sm:$0xff] }
 0x330   : > { %v1409_v0 = vpop.permute.xlu0 %1408  ;;  %v1601_v31 = vpop.permute.xlu1 %1600 }
 0x331   : > { %v1430_v30 = vadd.f32 %v1409_v0, %v4215_v34  ;;  %v1622_v42 = vadd.f32 %v1601_v31, %v4218_v4  ;;  %v4830_v4 = vld [vmem:[#allocation140_spill] sm:$0xff] }
 0x332   : > { %v1530_v1 = vmul.f32 %v4830_v4, %v4808_v21 }
 0x333   : > { %v1534_v14 = vadd.f32 %v1526_v48, %v1430_v30  ;;  %v4297_v63 = vadd.f32 %v1750_v29, %v1622_v42  ;;  %v1799_v48 = vmul.f32 %v4836_v46, %v4834_v3  ;;  %v4844_v46 = vld [vmem:[#allocation102_spill] sm:$0xff] }
 0x334   : > { %v1413_v23 = vpop.permute.xlu0 %1412  ;;  %v1605_v25 = vpop.permute.xlu1 %1604 }
 0x335   : > { %v1432_v6 = vadd.f32 %v1413_v23, %v4230_v61  ;;  %v1624_v34 = vadd.f32 %v1605_v25, %v4233_v19  ;;  %v4833_v19 = vld [vmem:[#allocation147_spill] sm:$0xff] }
 0x336   : > { %v1749_v45 = vmul.f32 %v4833_v19, %v3576_v56 }
 0x337   : > { %v1536_v35 = vadd.f32 %v1528_v33, %v1432_v6  ;;  %v4305_v58 = vadd.f32 %v1752_v10, %v1624_v34 }
 0x338   : > { %v1417_v43 = vpop.permute.xlu0 %1416  ;;  %v1609_v16 = vpop.permute.xlu1 %1608 }
 0x339   : > { %v1434_v50 = vadd.f32 %v1417_v43, %v4243_v8  ;;  %v1626_v61 = vadd.f32 %v1609_v16, %v4246_v11  ;;  %v1751_v11 = vmul.f32 %v4835_v47, %v4834_v3 }
 0x33b   : > { %v1538_v55 = vadd.f32 %v1530_v1, %v1434_v50  ;;  %v4313_v36 = vadd.f32 %v1754_v20, %v1626_v61  ;;  %v4842_v61 = vld [vmem:[#allocation36_spill] sm:$0xff] }
 0x33c   : > { %v1599_v52 = vpop.permute.xlu0 %1598  ;;  %v1679_v22 = vpop.permute.xlu1 %1678 }
 0x33d   : > { %v1621_v15 = vadd.f32 %v1599_v52, %v4257_v9  ;;  %v1701_v21 = vadd.f32 %v1679_v22, %v4259_v18  ;;  %v4838_v18 = vld [vmem:[#allocation145_spill] sm:$0xff]  ;;  %v1798_v52 = vmul.f32 %v4842_v61, %v4826_v40 }
 0x33e   : > { %v1753_v29 = vmul.f32 %v4838_v18, %v4837_v57  ;;  %v4845_v18 = vld [vmem:[#allocation117_spill] sm:$0xff] }
 0x33f   : > { %v4319_v38 = vadd.f32 %v1749_v45, %v1621_v15  ;;  %v1805_v54 = vadd.f32 %v3863_v62, %v1701_v21  ;;  %v4839_v62 = vld [vmem:[#allocation25_spill] sm:$0xff]  ;;  %v4843_v15 = vld [vmem:[#allocation2_spill] sm:$0xff] }
 0x340   : > { %v1603_v8 = vpop.permute.xlu0 %1602  ;;  %v1683_v5 = vpop.permute.xlu1 %1682  ;;  %v1801_v24 = vmul.f32 %v4839_v62, %v4837_v57 }
 0x341   : > { %v1623_v0 = vadd.f32 %v1603_v8, %v1487_v39  ;;  %v1703_v31 = vadd.f32 %v1683_v5, %v1535_v37  ;;  %v1755_v37 = vmul.f32 %v4840_v60, %v3713_v28 }
 0x343   : > { %v4326_v56 = vadd.f32 %v1751_v11, %v1623_v0  ;;  %v1807_v9 = vadd.f32 %v1799_v48, %v1703_v31 }
 0x344   : > { %v1607_v30 = vpop.permute.xlu0 %1606  ;;  %v1687_v42 = vpop.permute.xlu1 %1686 }
 0x345   : > { %v1625_v23 = vadd.f32 %v1607_v30, %v1489_v12  ;;  %v1705_v33 = vadd.f32 %v1687_v42, %v1537_v26  ;;  %v4841_v12 = vld [vmem:[#allocation154_spill] sm:$0xff] }
 0x346   : > { %v1796_v50 = vmul.f32 %v4841_v12, %v4823_v59 }
 0x347   : > { %v4332_v25 = vadd.f32 %v1753_v29, %v1625_v23  ;;  %v1809_v6 = vadd.f32 %v1801_v24, %v1705_v33 }
 0x348   : > { %v1611_v39 = vpop.permute.xlu0 %1610  ;;  %v1691_v10 = vpop.permute.xlu1 %1690 }
 0x349   : > { %v1627_v34 = vadd.f32 %v1611_v39, %v1491_v44  ;;  %v1707_v43 = vadd.f32 %v1691_v10, %v1539_v53 }
 0x34b   : > { %v4336_v4 = vadd.f32 %v1755_v37, %v1627_v34  ;;  %v1811_v16 = vadd.f32 %v3885_v2, %v1707_v43  ;;  %v1802_v2 = vmul.f32 %v3970_v27, %v4831_v7  ;;  %v4847_v37 = vld [vmem:[#allocation114_spill] sm:$0xff]  ;;  %v4848_v43 = vld [vmem:[#allocation128_spill] sm:$0xff] }
 0x34c   : > { %v1677_v1 = vpop.permute.xlu0 %1676 }
 0x34d   : > { %v1700_v13 = vadd.f32 %v1677_v1, %v1532_v41 }
 0x34f   : > { %v1804_v26 = vadd.f32 %v1796_v50, %v1700_v13 }
 0x350   : > { %v1681_v20 = vpop.permute.xlu0 %1680 }
 0x351   : > { %v1702_v19 = vadd.f32 %v1681_v20, %v1534_v14  ;;  %v4849_v20 = vld [vmem:[#allocation116_spill] sm:$0xff] }
 0x353   : > { %v1806_v45 = vadd.f32 %v1798_v52, %v1702_v19 }
 0x354   : > { %v1685_v28 = vpop.permute.xlu0 %1684 }
 0x355   : > { %v1704_v22 = vadd.f32 %v1685_v28, %v1536_v35  ;;  %v1846_v44 = vpop.permute.xlu1 %1845 }
 0x356   : > { %v1858_v53 = vmul.f32 %v1846_v44, %v4170_v32 }
 0x357   : > { %v1808_v21 = vadd.f32 %v4843_v15, %v1704_v22  ;;  %v4850_v22 = vld [vmem:[#allocation119_spill] sm:$0xff] }
 0x358   : > { %v1689_v8 = vpop.permute.xlu0 %1688  ;;  %1880 = vrot.lane.b32.xlu1 %v1858_v53, %s2495_s16 }
 0x359   : > { %v1706_v59 = vadd.f32 %v1689_v8, %v1538_v55  ;;  %v4851_v8 = vld [vmem:[#allocation123_spill] sm:$0xff] }
 0x35a   : > { %v2038_v41 = vpop.permute.xlu1 %2037 }
 0x35b   : > { %v1810_v3 = vadd.f32 %v1802_v2, %v1706_v59 }
 0x35e   : > { %v2046_v47 = vpop.permute.xlu1 %2045 }
 0x35f   : > { %v2070_v61 = vmul.f32 %v2046_v47, %v4849_v20 }
 0x362   : > { %v2050_v40 = vpop.permute.xlu1 %2049 }
 0x363   : > { %v2071_v29 = vmul.f32 %v2050_v40, %v4845_v18 }
 0x365   : > { %v1842_v14 = vpop.permute.xlu0 %1841 }
 0x366   : > { %v1857_v11 = vmul.f32 %v1842_v14, %v4089_v17  ;;  %v2058_v35 = vpop.permute.xlu1 %2057 }
 0x368   : > { %1878 = vrot.lane.b32.xlu0 %v1857_v11, %s2495_s16 }
 0x369   : > { %v1850_v32 = vpop.permute.xlu0 %1849 }
 0x36a   : > { %v1859_v5 = vmul.f32 %v1850_v32, %v4107_v51  ;;  %v2066_v0 = vpop.permute.xlu1 %2065  ;;  %v4846_v51 = vld [vmem:[#allocation118_spill] sm:$0xff] }
 0x36b   : > { %v2073_v24 = vmul.f32 %v2058_v35, %v4846_v51  ;;  %v2075_v1 = vmul.f32 %v2066_v0, %v4848_v43 }
 0x36c   : > { %1882 = vrot.lane.b32.xlu0 %v1859_v5, %s2495_s16 }
 0x36e   : > { %v2042_v27 = vpop.permute.xlu0 %2041  ;;  %v1951_v7 = vpop.permute.xlu1 %1950 }
 0x36f   : > { %v2069_v55 = vmul.f32 %v2042_v27, %v4844_v46  ;;  %v1973_v48 = vadd.f32 %v1951_v7, %v1805_v54  ;;  %v2068_v54 = vmul.f32 %v2038_v41, %v4847_v37 }
 0x371   : > { %v2077_v31 = vadd.f32 %v2069_v55, %v1973_v48 }
 0x372   : > { %v2054_v30 = vpop.permute.xlu0 %2053  ;;  %v1955_v57 = vpop.permute.xlu1 %1954 }
 0x373   : > { %v1975_v17 = vadd.f32 %v1955_v57, %v1807_v9  ;;  %2094 = vrot.lane.b32.xlu0 %v2077_v31, %s2495_s16 }
 0x375   : > { %v2079_v42 = vadd.f32 %v2071_v29, %v1975_v17 }
 0x376   : > { %v2062_v23 = vpop.permute.xlu0 %2061  ;;  %v1959_v62 = vpop.permute.xlu1 %1958 }
 0x377   : > { %v1977_v33 = vadd.f32 %v1959_v62, %v1809_v6  ;;  %2098 = vrot.lane.b32.xlu0 %v2079_v42, %s2495_s16  ;;  %v2074_v2 = vmul.f32 %v2062_v23, %v4851_v8 }
 0x379   : > { %v2081_v39 = vadd.f32 %v2073_v24, %v1977_v33 }
 0x37a   : > { %v1949_v60 = vpop.permute.xlu0 %1948  ;;  %v1963_v10 = vpop.permute.xlu1 %1962 }
 0x37b   : > { %v1972_v34 = vadd.f32 %v1949_v60, %v1804_v26  ;;  %v1979_v12 = vadd.f32 %v1963_v10, %v1811_v16  ;;  %2102 = vrot.lane.b32.xlu0 %v2081_v39, %s2495_s16  ;;  %v2072_v26 = vmul.f32 %v2054_v30, %v4850_v22 }
 0x37d   : > { %v2076_v9 = vadd.f32 %v2068_v54, %v1972_v34  ;;  %v2083_v50 = vadd.f32 %v2075_v1, %v1979_v12 }
 0x37e   : > { %v1953_v13 = vpop.permute.xlu0 %1952  ;;  %v1994_v52 = vpop.permute.xlu1 %1993 }
 0x37f   : > { %v1974_v6 = vadd.f32 %v1953_v13, %v1806_v45  ;;  %2092 = vrot.lane.b32.xlu1 %v2076_v9, %s2495_s16  ;;  %2106 = vrot.lane.b32.xlu0 %v2083_v50, %s2495_s16  ;;  %v2021_v17 = vmul.f32 %v1994_v52, %v4844_v46 }
 0x381   : > { %v2078_v19 = vadd.f32 %v2070_v61, %v1974_v6 }
 0x382   : > { %v1957_v28 = vpop.permute.xlu0 %1956  ;;  %v1998_v44 = vpop.permute.xlu1 %1997 }
 0x383   : > { %v1976_v53 = vadd.f32 %v1957_v28, %v1808_v21  ;;  %2096 = vrot.lane.b32.xlu1 %v2078_v19, %s2495_s16  ;;  %v2022_v27 = vmul.f32 %v1998_v44, %v4849_v20 }
 0x385   : > { %v2080_v16 = vadd.f32 %v2072_v26, %v1976_v53 }
 0x386   : > { %v1961_v15 = vpop.permute.xlu0 %1960  ;;  %v2006_v59 = vpop.permute.xlu1 %2005 }
 0x387   : > { %v1978_v41 = vadd.f32 %v1961_v15, %v1810_v3  ;;  %2100 = vrot.lane.b32.xlu1 %v2080_v16, %s2495_s16  ;;  %v2024_v31 = vmul.f32 %v2006_v59, %v4850_v22 }
 0x389   : > { %v2082_v45 = vadd.f32 %v2074_v2, %v1978_v41 }
 0x38a   : > { %v1990_v47 = vpop.permute.xlu0 %1989  ;;  %v2014_v40 = vpop.permute.xlu1 %2013 }
 0x38b   : > { %2104 = vrot.lane.b32.xlu1 %v2082_v45, %s2495_s16  ;;  %v2020_v35 = vmul.f32 %v1990_v47, %v4847_v37  ;;  %v2026_v39 = vmul.f32 %v2014_v40, %v4851_v8 }
 0x38e   : > { %v2002_v14 = vpop.permute.xlu0 %2001  ;;  %v1869_v11 = vpop.permute.xlu1 %1868 }
 0x38f   : > { %v1892_v21 = vadd.f32 %v1869_v11, %v4289_v49  ;;  %v2023_v62 = vmul.f32 %v2002_v14, %v4845_v18 }
 0x391   : > { %v2028_v32 = vadd.f32 %v2020_v35, %v1892_v21 }
 0x392   : > { %v2010_v5 = vpop.permute.xlu0 %2009  ;;  %v1873_v0 = vpop.permute.xlu1 %1872 }
 0x393   : > { %v1894_v3 = vadd.f32 %v1873_v0, %v4297_v63  ;;  %v2025_v54 = vmul.f32 %v2010_v5, %v4846_v51 }
 0x395   : > { %v2030_v7 = vadd.f32 %v2022_v27, %v1894_v3 }
 0x396   : > { %v2018_v55 = vpop.permute.xlu0 %2017  ;;  %v1877_v48 = vpop.permute.xlu1 %1876 }
 0x397   : > { %v1896_v30 = vadd.f32 %v1877_v48, %v4305_v58  ;;  %v2027_v34 = vmul.f32 %v2018_v55, %v4848_v43 }
 0x399   : > { %v2032_v57 = vadd.f32 %v2024_v31, %v1896_v30 }
 0x39a   : > { %v1871_v29 = vpop.permute.xlu0 %1870 }
 0x39b   : > { %v1893_v49 = vadd.f32 %v1871_v29, %v4319_v38 }
 0x39d   : > { %v2029_v42 = vadd.f32 %v2021_v17, %v1893_v49 }
 0x39e   : > { %v1875_v23 = vpop.permute.xlu0 %1874 }
 0x39f   : > { %v1895_v63 = vadd.f32 %v1875_v23, %v4326_v56 }
 0x3a1   : > { %v2031_v24 = vadd.f32 %v2023_v62, %v1895_v63 }
 0x3ca   : > { %v1881_v33 = vpop.permute.xlu1 %1880 }
 0x3cb   : > { %v1898_v60 = vadd.f32 %v1881_v33, %v4313_v36 }
 0x3cd   : > { %v2034_v58 = vadd.f32 %v2026_v39, %v1898_v60 }
 0x3da   : > { %v1879_v37 = vpop.permute.xlu0 %1878 }
 0x3db   : > { %v1897_v46 = vadd.f32 %v1879_v37, %v4332_v25 }
 0x3dd   : > { %v2033_v38 = vadd.f32 %v2025_v54, %v1897_v46 }
 0x3de   : > { %v1883_v10 = vpop.permute.xlu0 %1882 }
 0x3df   : > { %v1899_v18 = vadd.f32 %v1883_v10, %v4336_v4 }
 0x3e1   : > { %v2035_v1 = vadd.f32 %v2027_v34, %v1899_v18 }
 0x3e5   : > { %v2095_v36 = vpop.permute.xlu0 %2094 }
 0x3e6   : > { %v2118_v56 = vsel %vm2116_vm0, %v2029_v42, %v2095_v36 }
 0x3e7   : > { %2126 = vst [vmem:[%s170_s23 + $0x8] sm:$0xff] %v2118_v56 }
 0x3e9   : > { %v2099_v51 = vpop.permute.xlu0 %2098 }
 0x3ea   : > { %v2120_v25 = vsel %vm2116_vm0, %v2031_v24, %v2099_v51 }
 0x3eb   : > { %2128 = vst [vmem:[%s170_s23 + $0x18] sm:$0xff] %v2120_v25 }
 0x3ed   : > { %v2103_v12 = vpop.permute.xlu0 %2102 }
 0x3ee   : > { %v2122_v43 = vsel %vm2116_vm0, %v2033_v38, %v2103_v12 }
 0x3ef   : > { %2130 = vst [vmem:[%s170_s23 + $0x28] sm:$0xff] %v2122_v43 }
 0x3f1   : > { %v2093_v4 = vpop.permute.xlu1 %2092  ;;  %v2107_v50 = vpop.permute.xlu0 %2106 }
 0x3f2   : > { %v2117_v9 = vsel %vm2116_vm0, %v2028_v32, %v2093_v4  ;;  %v2124_v13 = vsel %vm2116_vm0, %v2035_v1, %v2107_v50 }
 0x3f3   : > { %2125 = vst [vmem:[%s170_s23] sm:$0xff] %v2117_v9  ;;  %2132 = vst [vmem:[%s170_s23 + $0x38] sm:$0xff] %v2124_v13 }
 0x3f5   : > { %v2097_v20 = vpop.permute.xlu1 %2096 }
 0x3f6   : > { %v2119_v61 = vsel %vm2116_vm0, %v2030_v7, %v2097_v20 }
 0x3f7   : > { %2127 = vst [vmem:[%s170_s23 + $0x10] sm:$0xff] %v2119_v61 }
 0x3f9   : > { %v2101_v52 = vpop.permute.xlu1 %2100 }
 0x3fa   : > { %v2121_v6 = vsel %vm2116_vm0, %v2032_v57, %v2101_v52 }
 0x3fb   : > { %2129 = vst [vmem:[%s170_s23 + $0x20] sm:$0xff] %v2121_v6 }
 0x3fd   : > { %v2105_v19 = vpop.permute.xlu1 %2104 }
 0x3fe   : > { %v2123_v28 = vsel %vm2116_vm0, %v2034_v58, %v2105_v19 }
 0x3ff   : > { %2131 = vst [vmem:[%s170_s23 + $0x30] sm:$0xff] %v2123_v28 }
 0x400 PF: > { %s12_s9 = sadd.s32 1, %s2492_s9  }
 0x401   : > { %p9_p4 = scmp.ge.s32.totalorder %s12_s9, 4  }
 0x403   :  { %11 = sbr.rel (!%p9_p4) target bundleno = 1 (0x1), region = 61 }

</bundles_post_ra>
